<compile_context>
chip_gen: v5e
topology: v5e:2x2
jax: 0.10.0
libtpu: 0.0.40
codegen_flags: <defaults>
</compile_context>

<pallas_src>
import functools

import jax
import jax.numpy as jnp
from jax.experimental import pallas as pl
from jax.experimental.pallas import tpu as pltpu


def _gelu(x):
    # tanh-approximate GELU (VPU + EUP friendly).
    # TODO(synk): PyTorch nn.GELU() defaults to the exact erf form; the tanh
    # approximation differs by <1e-3 and avoids relying on an erf lowering.
    c = 0.7978845608028654  # sqrt(2/pi)
    return 0.5 * x * (1.0 + jnp.tanh(c * (x + 0.044715 * x * x * x)))


# ---------------------------------------------------------------------------
# Fused per-image kernel:
#   conv3x3 + GELU  ->  patch-embed matmul  ->  GroupNorm + GELU  ->  1x1 proj
# ---------------------------------------------------------------------------
def _fused_kernel(x_ref, w1_ref, b1_ref, w2_ref, b2_ref, avg_ref,
                  gamma_ref, beta_ref, w3_ref, b3_ref, o_ref,
                  *, patch, hp, wp, cin):
    p = patch
    t = hp * wp  # number of patches (= tokens) per image

    # x_ref: (hq, p, p, wq, cin) with hq = hp+1, wq = wp+1; element
    #   x_ref[rg, rp, cp, cg, ci] == padded_image[rg*p + rp, cg*p + cp, ci].
    # Tap slab S_{a,b}[i, j, :] = padded_image[i*p + a, j*p + b, :], a,b in [0, p+2):
    # purely static indexing (int on middle dims) + contiguous slices on leading /
    # sublane dims -> no strided access, no relayout-heavy transposes.
    slabs = {}
    for a in range(p + 2):
        for b in range(p + 2):
            slabs[(a, b)] = x_ref[a // p:a // p + hp, a % p, b % p,
                                  b // p:b // p + wp, :]          # (hp, wp, cin)

    w1 = w1_ref[...]                                              # (9*cin, 48)
    b1 = b1_ref[...]                                              # (1, 48)

    # --- conv3x3 + GELU, emitted directly in patch-im2col layout ---
    hs = []
    for di in range(p):          # within-patch row offset
        for dj in range(p):      # within-patch col offset
            taps = [slabs[(di + ki, dj + kj)]
                    for ki in range(3) for kj in range(3)]
            pcat = jnp.concatenate(taps, axis=-1)                 # (hp, wp, 9*cin)
            # Merge leading dims only (lane dim unchanged); trivial when wp % 8 == 0.
            p2d = pcat.reshape(t, 9 * cin)
            h = jnp.dot(p2d, w1, preferred_element_type=jnp.float32) + b1
            hs.append(_gelu(h))                                   # (t, 48)
    p2 = jnp.concatenate(hs, axis=-1)                             # (t, p*p*48) lane-dense

    # --- patch_embed (stride == kernel) as one matmul on the patch-im2col slab ---
    h2 = jnp.dot(p2, w2_ref[...], preferred_element_type=jnp.float32) + b2_ref[...]

    # --- GroupNorm (biased variance, eps=1e-5) via block-diagonal averaging matmul ---
    s = jnp.sum(h2, axis=0, keepdims=True)                        # (1, C)
    mean = jnp.dot(s, avg_ref[...], preferred_element_type=jnp.float32)
    hc = h2 - mean
    s2 = jnp.sum(hc * hc, axis=0, keepdims=True)                  # (1, C)
    var = jnp.dot(s2, avg_ref[...], preferred_element_type=jnp.float32)
    inv = jax.lax.rsqrt(var + 1e-5)
    hn = hc * inv * gamma_ref[...] + beta_ref[...]

    # --- GELU + 1x1 conv (channel mixing matmul) ---
    hg = _gelu(hn)
    y = jnp.dot(hg, w3_ref[...], preferred_element_type=jnp.float32) + b3_ref[...]
    o_ref[...] = y.astype(o_ref.dtype)


# ---------------------------------------------------------------------------
# Full forward (matches FeatureExtractor.forward)
# ---------------------------------------------------------------------------
def feature_extractor_forward(x_nchw, params, *, patch_size=3, win_size=4,
                              num_groups=8):
    w1, b1 = params["w1"], params["b1"]            # [3,3,Cin,48] HWIO, [48]
    w2, b2 = params["w2"], params["b2"]            # [p,p,48,C]  HWIO, [C]
    gamma, beta = params["gamma"], params["beta"]  # [C], [C]
    w3, b3 = params["w3"], params["b3"]            # [C,C] (in,out), [C]

    bsz, cin, hh, ww = x_nchw.shape
    p = patch_size
    assert hh % p == 0 and ww % p == 0
    hp, wp = hh // p, ww // p
    c1 = w1.shape[-1]
    c = w2.shape[-1]
    t = hp * wp
    k2 = p * p * c1

    # ---- wrapper-side layout only (small Cin-channel input): pad + phase-split ----
    x = jnp.transpose(x_nchw, (0, 2, 3, 1))                       # NHWC
    hq, wq = hp + 1, wp + 1
    xpad = jnp.pad(x, ((0, 0), (1, hq * p - hh - 1), (1, wq * p - ww - 1), (0, 0)))
    xr = xpad.reshape(bsz, hq, p, wq, p, cin)
    xr = jnp.transpose(xr, (0, 1, 2, 4, 3, 5))                    # (B, hq, rp, cp, wq, Cin)

    # Block-diagonal group-averaging matrix (includes 1/(T*cpg)) for GroupNorm stats.
    cpg = c // num_groups
    ch = jnp.arange(c)
    same_group = (ch[:, None] // cpg) == (ch[None, :] // cpg)
    avg = same_group.astype(jnp.float32) / float(t * cpg)

    kern = functools.partial(_fused_kernel, patch=p, hp=hp, wp=wp, cin=cin)

    out = pl.pallas_call(
        kern,
        out_shape=jax.ShapeDtypeStruct((bsz, t, c), x.dtype),
        grid_spec=pltpu.PrefetchScalarGridSpec(
            num_scalar_prefetch=0,
            grid=(bsz,),
            in_specs=[
                pl.BlockSpec((None, hq, p, p, wq, cin),
                             lambda b: (b, 0, 0, 0, 0, 0)),
                pl.BlockSpec((9 * cin, c1), lambda b: (0, 0)),
                pl.BlockSpec((1, c1), lambda b: (0, 0)),
                pl.BlockSpec((k2, c), lambda b: (0, 0)),
                pl.BlockSpec((1, c), lambda b: (0, 0)),
                pl.BlockSpec((c, c), lambda b: (0, 0)),
                pl.BlockSpec((1, c), lambda b: (0, 0)),
                pl.BlockSpec((1, c), lambda b: (0, 0)),
                pl.BlockSpec((c, c), lambda b: (0, 0)),
                pl.BlockSpec((1, c), lambda b: (0, 0)),
            ],
            out_specs=pl.BlockSpec((None, t, c), lambda b: (b, 0, 0)),
        ),
        compiler_params=pltpu.CompilerParams(
            dimension_semantics=("parallel",),
            vmem_limit_bytes=32 * 1024 * 1024),
        cost_estimate=pl.CostEstimate(
            flops=2 * bsz * t * (81 * cin * c1 + k2 * c + c * c) + 4 * bsz * c * c,
            transcendentals=bsz * (t * (k2 + c) + c),
            bytes_accessed=4 * (bsz * hq * p * p * wq * cin + bsz * t * c
                                + 9 * cin * c1 + k2 * c + 3 * c * c + 5 * c)),
    )(xr,
      w1.reshape(9 * cin, c1), b1.reshape(1, c1),
      w2.reshape(k2, c), b2.reshape(1, c),
      avg, gamma.reshape(1, c), beta.reshape(1, c),
      w3, b3.reshape(1, c))

    # --- window_partition (pure layout, wrapper side) ---
    y = out.reshape(bsz, hp, wp, c)
    assert hp % win_size == 0 and wp % win_size == 0
    nh, nw = hp // win_size, wp // win_size
    wins = y.reshape(bsz, nh, win_size, nw, win_size, c)
    wins = jnp.transpose(wins, (0, 1, 3, 2, 4, 5))
    wins = wins.reshape(bsz, nh * nw, win_size * win_size, c)
    return wins, nh, nw


# ---------------------------------------------------------------------------
# Pure-JAX reference (same math, standard XLA ops) for validation.
# ---------------------------------------------------------------------------
def _reference_forward(x_nchw, params, *, patch_size=3, win_size=4,
                       num_groups=8, eps=1e-5):
    w1, b1 = params["w1"], params["b1"]
    w2, b2 = params["w2"], params["b2"]
    gamma, beta = params["gamma"], params["beta"]
    w3, b3 = params["w3"], params["b3"]

    x = jnp.transpose(x_nchw, (0, 2, 3, 1))
    dn = ("NHWC", "HWIO", "NHWC")
    y = jax.lax.conv_general_dilated(x, w1, (1, 1), "SAME",
                                     dimension_numbers=dn) + b1
    y = _gelu(y)
    y = jax.lax.conv_general_dilated(y, w2, (patch_size, patch_size), "VALID",
                                     dimension_numbers=dn) + b2

    bsz, hp, wp, c = y.shape
    cpg = c // num_groups
    yg = y.reshape(bsz, hp * wp, num_groups, cpg)
    mean = yg.mean(axis=(1, 3), keepdims=True)
    var = ((yg - mean) ** 2).mean(axis=(1, 3), keepdims=True)
    yn = ((yg - mean) / jnp.sqrt(var + eps)).reshape(bsz, hp, wp, c)
    yn = yn * gamma + beta
    yn = _gelu(yn)
    y = jnp.einsum("bhwc,cd->bhwd", yn, w3) + b3

    nh, nw = hp // win_size, wp // win_size
    wins = y.reshape(bsz, nh, win_size, nw, win_size, c)
    wins = jnp.transpose(wins, (0, 1, 3, 2, 4, 5))
    wins = wins.reshape(bsz, nh * nw, win_size * win_size, c)
    return wins, nh, nw


if __name__ == "__main__":
    key = jax.random.PRNGKey(0)
    ks = jax.random.split(key, 9)

    B, Cin, H, W = 2, 3, 24, 24
    patch_size, embed_dim, win_size, groups = 3, 48, 4, 8

    x = jax.random.normal(ks[0], (B, Cin, H, W), dtype=jnp.float32)
    params = dict(
        w1=jax.random.normal(ks[1], (3, 3, Cin, 48), jnp.float32)
        / (3.0 * jnp.sqrt(float(Cin))),
        b1=0.1 * jax.random.normal(ks[2], (48,), jnp.float32),
        w2=jax.random.normal(ks[3], (patch_size, patch_size, 48, embed_dim),
                             jnp.float32) / (float(patch_size) * jnp.sqrt(48.0)),
        b2=0.1 * jax.random.normal(ks[4], (embed_dim,), jnp.float32),
        gamma=1.0 + 0.1 * jax.random.normal(ks[5], (embed_dim,), jnp.float32),
        beta=0.1 * jax.random.normal(ks[6], (embed_dim,), jnp.float32),
        w3=jax.random.normal(ks[7], (embed_dim, embed_dim), jnp.float32)
        / jnp.sqrt(float(embed_dim)),
        b3=0.1 * jax.random.normal(ks[8], (embed_dim,), jnp.float32),
    )

    wins, nh, nw = feature_extractor_forward(
        x, params, patch_size=patch_size, win_size=win_size, num_groups=groups)
    wins = jax.block_until_ready(wins)

    ref_wins, ref_nh, ref_nw = _reference_forward(
        x, params, patch_size=patch_size, win_size=win_size, num_groups=groups)

    assert (nh, nw) == (ref_nh, ref_nw) == (H // patch_size // win_size,
                                            W // patch_size // win_size)
    assert wins.shape == (B, nh * nw, win_size * win_size, embed_dim), wins.shape
    max_err = float(jnp.max(jnp.abs(wins - ref_wins)))
    assert jnp.allclose(wins, ref_wins, atol=1e-4, rtol=1e-4), max_err

    print("KERNEL_OK")
</pallas_src>

<mosaic_0001>
module attributes {stable_mosaic.version = 11 : i64} {
  func.func @_fused_kernel(%arg0: i32, %arg1: memref<1x9x3x3x9x3xf32, #tpu.memory_space<vmem>>, %arg2: memref<27x48xf32, #tpu.memory_space<vmem>>, %arg3: memref<1x48xf32, #tpu.memory_space<vmem>>, %arg4: memref<432x48xf32, #tpu.memory_space<vmem>>, %arg5: memref<1x48xf32, #tpu.memory_space<vmem>>, %arg6: memref<48x48xf32, #tpu.memory_space<vmem>>, %arg7: memref<1x48xf32, #tpu.memory_space<vmem>>, %arg8: memref<1x48xf32, #tpu.memory_space<vmem>>, %arg9: memref<48x48xf32, #tpu.memory_space<vmem>>, %arg10: memref<1x48xf32, #tpu.memory_space<vmem>>, %arg11: memref<1x64x48xf32, #tpu.memory_space<vmem>>) attributes {dimension_semantics = [#tpu.dimension_semantics<parallel>], iteration_bounds = array<i64: 2>, scalar_prefetch = 0 : i64, scratch_operands = 0 : i64, tpu.core_type = #tpu.core_type<tc>, window_params = [{transform_indices = @transform_0, window_bounds = array<i64: 1, 9, 3, 3, 9, 3>}, {pipeline_mode = #tpu.pipeline_mode<synchronous>, transform_indices = @transform_1, window_bounds = array<i64: 27, 48>}, {pipeline_mode = #tpu.pipeline_mode<synchronous>, transform_indices = @transform_2, window_bounds = array<i64: 1, 48>}, {pipeline_mode = #tpu.pipeline_mode<synchronous>, transform_indices = @transform_3, window_bounds = array<i64: 432, 48>}, {pipeline_mode = #tpu.pipeline_mode<synchronous>, transform_indices = @transform_4, window_bounds = array<i64: 1, 48>}, {pipeline_mode = #tpu.pipeline_mode<synchronous>, transform_indices = @transform_5, window_bounds = array<i64: 48, 48>}, {pipeline_mode = #tpu.pipeline_mode<synchronous>, transform_indices = @transform_6, window_bounds = array<i64: 1, 48>}, {pipeline_mode = #tpu.pipeline_mode<synchronous>, transform_indices = @transform_7, window_bounds = array<i64: 1, 48>}, {pipeline_mode = #tpu.pipeline_mode<synchronous>, transform_indices = @transform_8, window_bounds = array<i64: 48, 48>}, {pipeline_mode = #tpu.pipeline_mode<synchronous>, transform_indices = @transform_9, window_bounds = array<i64: 1, 48>}, {transform_indices = @transform_10, window_bounds = array<i64: 1, 64, 48>}]} {
    %c0 = arith.constant 0 : index
    %c0_0 = arith.constant 0 : index
    %c0_1 = arith.constant 0 : index
    %c0_2 = arith.constant 0 : index
    %c0_3 = arith.constant 0 : index
    %c0_4 = arith.constant 0 : index
    %0 = vector.load %arg1[%c0, %c0_0, %c0_1, %c0_2, %c0_3, %c0_4] : memref<1x9x3x3x9x3xf32, #tpu.memory_space<vmem>>, vector<1x8x1x1x8x3xf32>
    %1 = vector.shape_cast %0 : vector<1x8x1x1x8x3xf32> to vector<8x8x3xf32>
    %c0_5 = arith.constant 0 : index
    %c0_6 = arith.constant 0 : index
    %c0_7 = arith.constant 0 : index
    %c1 = arith.constant 1 : index
    %c0_8 = arith.constant 0 : index
    %c0_9 = arith.constant 0 : index
    %2 = vector.load %arg1[%c0_5, %c0_6, %c0_7, %c1, %c0_8, %c0_9] : memref<1x9x3x3x9x3xf32, #tpu.memory_space<vmem>>, vector<1x8x1x1x8x3xf32>
    %3 = vector.shape_cast %2 : vector<1x8x1x1x8x3xf32> to vector<8x8x3xf32>
    %c0_10 = arith.constant 0 : index
    %c0_11 = arith.constant 0 : index
    %c0_12 = arith.constant 0 : index
    %c2 = arith.constant 2 : index
    %c0_13 = arith.constant 0 : index
    %c0_14 = arith.constant 0 : index
    %4 = vector.load %arg1[%c0_10, %c0_11, %c0_12, %c2, %c0_13, %c0_14] : memref<1x9x3x3x9x3xf32, #tpu.memory_space<vmem>>, vector<1x8x1x1x8x3xf32>
    %5 = vector.shape_cast %4 : vector<1x8x1x1x8x3xf32> to vector<8x8x3xf32>
    %c0_15 = arith.constant 0 : index
    %c0_16 = arith.constant 0 : index
    %c0_17 = arith.constant 0 : index
    %c0_18 = arith.constant 0 : index
    %c1_19 = arith.constant 1 : index
    %c0_20 = arith.constant 0 : index
    %6 = vector.load %arg1[%c0_15, %c0_16, %c0_17, %c0_18, %c1_19, %c0_20] : memref<1x9x3x3x9x3xf32, #tpu.memory_space<vmem>>, vector<1x8x1x1x8x3xf32>
    %7 = vector.shape_cast %6 : vector<1x8x1x1x8x3xf32> to vector<8x8x3xf32>
    %c0_21 = arith.constant 0 : index
    %c0_22 = arith.constant 0 : index
    %c0_23 = arith.constant 0 : index
    %c1_24 = arith.constant 1 : index
    %c1_25 = arith.constant 1 : index
    %c0_26 = arith.constant 0 : index
    %8 = vector.load %arg1[%c0_21, %c0_22, %c0_23, %c1_24, %c1_25, %c0_26] : memref<1x9x3x3x9x3xf32, #tpu.memory_space<vmem>>, vector<1x8x1x1x8x3xf32>
    %9 = vector.shape_cast %8 : vector<1x8x1x1x8x3xf32> to vector<8x8x3xf32>
    %c0_27 = arith.constant 0 : index
    %c0_28 = arith.constant 0 : index
    %c1_29 = arith.constant 1 : index
    %c0_30 = arith.constant 0 : index
    %c0_31 = arith.constant 0 : index
    %c0_32 = arith.constant 0 : index
    %10 = vector.load %arg1[%c0_27, %c0_28, %c1_29, %c0_30, %c0_31, %c0_32] : memref<1x9x3x3x9x3xf32, #tpu.memory_space<vmem>>, vector<1x8x1x1x8x3xf32>
    %11 = vector.shape_cast %10 : vector<1x8x1x1x8x3xf32> to vector<8x8x3xf32>
    %c0_33 = arith.constant 0 : index
    %c0_34 = arith.constant 0 : index
    %c1_35 = arith.constant 1 : index
    %c1_36 = arith.constant 1 : index
    %c0_37 = arith.constant 0 : index
    %c0_38 = arith.constant 0 : index
    %12 = vector.load %arg1[%c0_33, %c0_34, %c1_35, %c1_36, %c0_37, %c0_38] : memref<1x9x3x3x9x3xf32, #tpu.memory_space<vmem>>, vector<1x8x1x1x8x3xf32>
    %13 = vector.shape_cast %12 : vector<1x8x1x1x8x3xf32> to vector<8x8x3xf32>
    %c0_39 = arith.constant 0 : index
    %c0_40 = arith.constant 0 : index
    %c1_41 = arith.constant 1 : index
    %c2_42 = arith.constant 2 : index
    %c0_43 = arith.constant 0 : index
    %c0_44 = arith.constant 0 : index
    %14 = vector.load %arg1[%c0_39, %c0_40, %c1_41, %c2_42, %c0_43, %c0_44] : memref<1x9x3x3x9x3xf32, #tpu.memory_space<vmem>>, vector<1x8x1x1x8x3xf32>
    %15 = vector.shape_cast %14 : vector<1x8x1x1x8x3xf32> to vector<8x8x3xf32>
    %c0_45 = arith.constant 0 : index
    %c0_46 = arith.constant 0 : index
    %c1_47 = arith.constant 1 : index
    %c0_48 = arith.constant 0 : index
    %c1_49 = arith.constant 1 : index
    %c0_50 = arith.constant 0 : index
    %16 = vector.load %arg1[%c0_45, %c0_46, %c1_47, %c0_48, %c1_49, %c0_50] : memref<1x9x3x3x9x3xf32, #tpu.memory_space<vmem>>, vector<1x8x1x1x8x3xf32>
    %17 = vector.shape_cast %16 : vector<1x8x1x1x8x3xf32> to vector<8x8x3xf32>
    %c0_51 = arith.constant 0 : index
    %c0_52 = arith.constant 0 : index
    %c1_53 = arith.constant 1 : index
    %c1_54 = arith.constant 1 : index
    %c1_55 = arith.constant 1 : index
    %c0_56 = arith.constant 0 : index
    %18 = vector.load %arg1[%c0_51, %c0_52, %c1_53, %c1_54, %c1_55, %c0_56] : memref<1x9x3x3x9x3xf32, #tpu.memory_space<vmem>>, vector<1x8x1x1x8x3xf32>
    %19 = vector.shape_cast %18 : vector<1x8x1x1x8x3xf32> to vector<8x8x3xf32>
    %c0_57 = arith.constant 0 : index
    %c0_58 = arith.constant 0 : index
    %c2_59 = arith.constant 2 : index
    %c0_60 = arith.constant 0 : index
    %c0_61 = arith.constant 0 : index
    %c0_62 = arith.constant 0 : index
    %20 = vector.load %arg1[%c0_57, %c0_58, %c2_59, %c0_60, %c0_61, %c0_62] : memref<1x9x3x3x9x3xf32, #tpu.memory_space<vmem>>, vector<1x8x1x1x8x3xf32>
    %21 = vector.shape_cast %20 : vector<1x8x1x1x8x3xf32> to vector<8x8x3xf32>
    %c0_63 = arith.constant 0 : index
    %c0_64 = arith.constant 0 : index
    %c2_65 = arith.constant 2 : index
    %c1_66 = arith.constant 1 : index
    %c0_67 = arith.constant 0 : index
    %c0_68 = arith.constant 0 : index
    %22 = vector.load %arg1[%c0_63, %c0_64, %c2_65, %c1_66, %c0_67, %c0_68] : memref<1x9x3x3x9x3xf32, #tpu.memory_space<vmem>>, vector<1x8x1x1x8x3xf32>
    %23 = vector.shape_cast %22 : vector<1x8x1x1x8x3xf32> to vector<8x8x3xf32>
    %c0_69 = arith.constant 0 : index
    %c0_70 = arith.constant 0 : index
    %c2_71 = arith.constant 2 : index
    %c2_72 = arith.constant 2 : index
    %c0_73 = arith.constant 0 : index
    %c0_74 = arith.constant 0 : index
    %24 = vector.load %arg1[%c0_69, %c0_70, %c2_71, %c2_72, %c0_73, %c0_74] : memref<1x9x3x3x9x3xf32, #tpu.memory_space<vmem>>, vector<1x8x1x1x8x3xf32>
    %25 = vector.shape_cast %24 : vector<1x8x1x1x8x3xf32> to vector<8x8x3xf32>
    %c0_75 = arith.constant 0 : index
    %c0_76 = arith.constant 0 : index
    %c2_77 = arith.constant 2 : index
    %c0_78 = arith.constant 0 : index
    %c1_79 = arith.constant 1 : index
    %c0_80 = arith.constant 0 : index
    %26 = vector.load %arg1[%c0_75, %c0_76, %c2_77, %c0_78, %c1_79, %c0_80] : memref<1x9x3x3x9x3xf32, #tpu.memory_space<vmem>>, vector<1x8x1x1x8x3xf32>
    %27 = vector.shape_cast %26 : vector<1x8x1x1x8x3xf32> to vector<8x8x3xf32>
    %c0_81 = arith.constant 0 : index
    %c0_82 = arith.constant 0 : index
    %c2_83 = arith.constant 2 : index
    %c1_84 = arith.constant 1 : index
    %c1_85 = arith.constant 1 : index
    %c0_86 = arith.constant 0 : index
    %28 = vector.load %arg1[%c0_81, %c0_82, %c2_83, %c1_84, %c1_85, %c0_86] : memref<1x9x3x3x9x3xf32, #tpu.memory_space<vmem>>, vector<1x8x1x1x8x3xf32>
    %29 = vector.shape_cast %28 : vector<1x8x1x1x8x3xf32> to vector<8x8x3xf32>
    %c0_87 = arith.constant 0 : index
    %c1_88 = arith.constant 1 : index
    %c0_89 = arith.constant 0 : index
    %c0_90 = arith.constant 0 : index
    %c0_91 = arith.constant 0 : index
    %c0_92 = arith.constant 0 : index
    %30 = vector.load %arg1[%c0_87, %c1_88, %c0_89, %c0_90, %c0_91, %c0_92] : memref<1x9x3x3x9x3xf32, #tpu.memory_space<vmem>>, vector<1x8x1x1x8x3xf32>
    %31 = vector.shape_cast %30 : vector<1x8x1x1x8x3xf32> to vector<8x8x3xf32>
    %c0_93 = arith.constant 0 : index
    %c1_94 = arith.constant 1 : index
    %c0_95 = arith.constant 0 : index
    %c1_96 = arith.constant 1 : index
    %c0_97 = arith.constant 0 : index
    %c0_98 = arith.constant 0 : index
    %32 = vector.load %arg1[%c0_93, %c1_94, %c0_95, %c1_96, %c0_97, %c0_98] : memref<1x9x3x3x9x3xf32, #tpu.memory_space<vmem>>, vector<1x8x1x1x8x3xf32>
    %33 = vector.shape_cast %32 : vector<1x8x1x1x8x3xf32> to vector<8x8x3xf32>
    %c0_99 = arith.constant 0 : index
    %c1_100 = arith.constant 1 : index
    %c0_101 = arith.constant 0 : index
    %c2_102 = arith.constant 2 : index
    %c0_103 = arith.constant 0 : index
    %c0_104 = arith.constant 0 : index
    %34 = vector.load %arg1[%c0_99, %c1_100, %c0_101, %c2_102, %c0_103, %c0_104] : memref<1x9x3x3x9x3xf32, #tpu.memory_space<vmem>>, vector<1x8x1x1x8x3xf32>
    %35 = vector.shape_cast %34 : vector<1x8x1x1x8x3xf32> to vector<8x8x3xf32>
    %c0_105 = arith.constant 0 : index
    %c1_106 = arith.constant 1 : index
    %c0_107 = arith.constant 0 : index
    %c0_108 = arith.constant 0 : index
    %c1_109 = arith.constant 1 : index
    %c0_110 = arith.constant 0 : index
    %36 = vector.load %arg1[%c0_105, %c1_106, %c0_107, %c0_108, %c1_109, %c0_110] : memref<1x9x3x3x9x3xf32, #tpu.memory_space<vmem>>, vector<1x8x1x1x8x3xf32>
    %37 = vector.shape_cast %36 : vector<1x8x1x1x8x3xf32> to vector<8x8x3xf32>
    %c0_111 = arith.constant 0 : index
    %c1_112 = arith.constant 1 : index
    %c0_113 = arith.constant 0 : index
    %c1_114 = arith.constant 1 : index
    %c1_115 = arith.constant 1 : index
    %c0_116 = arith.constant 0 : index
    %38 = vector.load %arg1[%c0_111, %c1_112, %c0_113, %c1_114, %c1_115, %c0_116] : memref<1x9x3x3x9x3xf32, #tpu.memory_space<vmem>>, vector<1x8x1x1x8x3xf32>
    %39 = vector.shape_cast %38 : vector<1x8x1x1x8x3xf32> to vector<8x8x3xf32>
    %c0_117 = arith.constant 0 : index
    %c1_118 = arith.constant 1 : index
    %c1_119 = arith.constant 1 : index
    %c0_120 = arith.constant 0 : index
    %c0_121 = arith.constant 0 : index
    %c0_122 = arith.constant 0 : index
    %40 = vector.load %arg1[%c0_117, %c1_118, %c1_119, %c0_120, %c0_121, %c0_122] : memref<1x9x3x3x9x3xf32, #tpu.memory_space<vmem>>, vector<1x8x1x1x8x3xf32>
    %41 = vector.shape_cast %40 : vector<1x8x1x1x8x3xf32> to vector<8x8x3xf32>
    %c0_123 = arith.constant 0 : index
    %c1_124 = arith.constant 1 : index
    %c1_125 = arith.constant 1 : index
    %c1_126 = arith.constant 1 : index
    %c0_127 = arith.constant 0 : index
    %c0_128 = arith.constant 0 : index
    %42 = vector.load %arg1[%c0_123, %c1_124, %c1_125, %c1_126, %c0_127, %c0_128] : memref<1x9x3x3x9x3xf32, #tpu.memory_space<vmem>>, vector<1x8x1x1x8x3xf32>
    %43 = vector.shape_cast %42 : vector<1x8x1x1x8x3xf32> to vector<8x8x3xf32>
    %c0_129 = arith.constant 0 : index
    %c1_130 = arith.constant 1 : index
    %c1_131 = arith.constant 1 : index
    %c2_132 = arith.constant 2 : index
    %c0_133 = arith.constant 0 : index
    %c0_134 = arith.constant 0 : index
    %44 = vector.load %arg1[%c0_129, %c1_130, %c1_131, %c2_132, %c0_133, %c0_134] : memref<1x9x3x3x9x3xf32, #tpu.memory_space<vmem>>, vector<1x8x1x1x8x3xf32>
    %45 = vector.shape_cast %44 : vector<1x8x1x1x8x3xf32> to vector<8x8x3xf32>
    %c0_135 = arith.constant 0 : index
    %c1_136 = arith.constant 1 : index
    %c1_137 = arith.constant 1 : index
    %c0_138 = arith.constant 0 : index
    %c1_139 = arith.constant 1 : index
    %c0_140 = arith.constant 0 : index
    %46 = vector.load %arg1[%c0_135, %c1_136, %c1_137, %c0_138, %c1_139, %c0_140] : memref<1x9x3x3x9x3xf32, #tpu.memory_space<vmem>>, vector<1x8x1x1x8x3xf32>
    %47 = vector.shape_cast %46 : vector<1x8x1x1x8x3xf32> to vector<8x8x3xf32>
    %c0_141 = arith.constant 0 : index
    %c1_142 = arith.constant 1 : index
    %c1_143 = arith.constant 1 : index
    %c1_144 = arith.constant 1 : index
    %c1_145 = arith.constant 1 : index
    %c0_146 = arith.constant 0 : index
    %48 = vector.load %arg1[%c0_141, %c1_142, %c1_143, %c1_144, %c1_145, %c0_146] : memref<1x9x3x3x9x3xf32, #tpu.memory_space<vmem>>, vector<1x8x1x1x8x3xf32>
    %49 = vector.shape_cast %48 : vector<1x8x1x1x8x3xf32> to vector<8x8x3xf32>
    %c0_147 = arith.constant 0 : index
    %c0_148 = arith.constant 0 : index
    %50 = vector.load %arg2[%c0_147, %c0_148] : memref<27x48xf32, #tpu.memory_space<vmem>>, vector<27x48xf32>
    %c0_149 = arith.constant 0 : index
    %c0_150 = arith.constant 0 : index
    %51 = vector.load %arg3[%c0_149, %c0_150] : memref<1x48xf32, #tpu.memory_space<vmem>>, vector<1x48xf32>
    %52 = tpu.concatenate %1, %3, %5, %11, %13, %15, %21, %23, %25 in 2 : vector<8x8x3xf32>, vector<8x8x3xf32>, vector<8x8x3xf32>, vector<8x8x3xf32>, vector<8x8x3xf32>, vector<8x8x3xf32>, vector<8x8x3xf32>, vector<8x8x3xf32>, vector<8x8x3xf32> -> vector<8x8x27xf32>
    %53 = vector.shape_cast %52 : vector<8x8x27xf32> to vector<64x27xf32>
    %cst = arith.constant dense<0.000000e+00> : vector<64x48xf32>
    %54 = tpu.matmul %53, %50, %cst {dimension_numbers = #tpu.dot_dimension_numbers<[1], [0], [0], [1], [0, 0, 1, 1], [], []>} : vector<64x27xf32>, vector<27x48xf32>, vector<64x48xf32> -> vector<64x48xf32>
    %55 = vector.broadcast %51 : vector<1x48xf32> to vector<64x48xf32>
    %56 = arith.addf %54, %55 : vector<64x48xf32>
    %cst_151 = arith.constant 5.000000e-01 : f32
    %57 = vector.broadcast %cst_151 : f32 to vector<64x48xf32>
    %58 = arith.mulf %57, %56 : vector<64x48xf32>
    %cst_152 = arith.constant 4.471500e-02 : f32
    %59 = vector.broadcast %cst_152 : f32 to vector<64x48xf32>
    %60 = arith.mulf %59, %56 : vector<64x48xf32>
    %61 = arith.mulf %60, %56 : vector<64x48xf32>
    %62 = arith.mulf %61, %56 : vector<64x48xf32>
    %63 = arith.addf %56, %62 : vector<64x48xf32>
    %cst_153 = arith.constant 0.797884583 : f32
    %64 = vector.broadcast %cst_153 : f32 to vector<64x48xf32>
    %65 = arith.mulf %64, %63 : vector<64x48xf32>
    %66 = math.tanh %65 : vector<64x48xf32>
    %cst_154 = arith.constant 1.000000e+00 : f32
    %67 = vector.broadcast %cst_154 : f32 to vector<64x48xf32>
    %68 = arith.addf %67, %66 : vector<64x48xf32>
    %69 = arith.mulf %58, %68 : vector<64x48xf32>
    %70 = tpu.concatenate %3, %5, %7, %13, %15, %17, %23, %25, %27 in 2 : vector<8x8x3xf32>, vector<8x8x3xf32>, vector<8x8x3xf32>, vector<8x8x3xf32>, vector<8x8x3xf32>, vector<8x8x3xf32>, vector<8x8x3xf32>, vector<8x8x3xf32>, vector<8x8x3xf32> -> vector<8x8x27xf32>
    %71 = vector.shape_cast %70 : vector<8x8x27xf32> to vector<64x27xf32>
    %cst_155 = arith.constant dense<0.000000e+00> : vector<64x48xf32>
    %72 = tpu.matmul %71, %50, %cst_155 {dimension_numbers = #tpu.dot_dimension_numbers<[1], [0], [0], [1], [0, 0, 1, 1], [], []>} : vector<64x27xf32>, vector<27x48xf32>, vector<64x48xf32> -> vector<64x48xf32>
    %73 = vector.broadcast %51 : vector<1x48xf32> to vector<64x48xf32>
    %74 = arith.addf %72, %73 : vector<64x48xf32>
    %cst_156 = arith.constant 5.000000e-01 : f32
    %75 = vector.broadcast %cst_156 : f32 to vector<64x48xf32>
    %76 = arith.mulf %75, %74 : vector<64x48xf32>
    %cst_157 = arith.constant 4.471500e-02 : f32
    %77 = vector.broadcast %cst_157 : f32 to vector<64x48xf32>
    %78 = arith.mulf %77, %74 : vector<64x48xf32>
    %79 = arith.mulf %78, %74 : vector<64x48xf32>
    %80 = arith.mulf %79, %74 : vector<64x48xf32>
    %81 = arith.addf %74, %80 : vector<64x48xf32>
    %cst_158 = arith.constant 0.797884583 : f32
    %82 = vector.broadcast %cst_158 : f32 to vector<64x48xf32>
    %83 = arith.mulf %82, %81 : vector<64x48xf32>
    %84 = math.tanh %83 : vector<64x48xf32>
    %cst_159 = arith.constant 1.000000e+00 : f32
    %85 = vector.broadcast %cst_159 : f32 to vector<64x48xf32>
    %86 = arith.addf %85, %84 : vector<64x48xf32>
    %87 = arith.mulf %76, %86 : vector<64x48xf32>
    %88 = tpu.concatenate %5, %7, %9, %15, %17, %19, %25, %27, %29 in 2 : vector<8x8x3xf32>, vector<8x8x3xf32>, vector<8x8x3xf32>, vector<8x8x3xf32>, vector<8x8x3xf32>, vector<8x8x3xf32>, vector<8x8x3xf32>, vector<8x8x3xf32>, vector<8x8x3xf32> -> vector<8x8x27xf32>
    %89 = vector.shape_cast %88 : vector<8x8x27xf32> to vector<64x27xf32>
    %cst_160 = arith.constant dense<0.000000e+00> : vector<64x48xf32>
    %90 = tpu.matmul %89, %50, %cst_160 {dimension_numbers = #tpu.dot_dimension_numbers<[1], [0], [0], [1], [0, 0, 1, 1], [], []>} : vector<64x27xf32>, vector<27x48xf32>, vector<64x48xf32> -> vector<64x48xf32>
    %91 = vector.broadcast %51 : vector<1x48xf32> to vector<64x48xf32>
    %92 = arith.addf %90, %91 : vector<64x48xf32>
    %cst_161 = arith.constant 5.000000e-01 : f32
    %93 = vector.broadcast %cst_161 : f32 to vector<64x48xf32>
    %94 = arith.mulf %93, %92 : vector<64x48xf32>
    %cst_162 = arith.constant 4.471500e-02 : f32
    %95 = vector.broadcast %cst_162 : f32 to vector<64x48xf32>
    %96 = arith.mulf %95, %92 : vector<64x48xf32>
    %97 = arith.mulf %96, %92 : vector<64x48xf32>
    %98 = arith.mulf %97, %92 : vector<64x48xf32>
    %99 = arith.addf %92, %98 : vector<64x48xf32>
    %cst_163 = arith.constant 0.797884583 : f32
    %100 = vector.broadcast %cst_163 : f32 to vector<64x48xf32>
    %101 = arith.mulf %100, %99 : vector<64x48xf32>
    %102 = math.tanh %101 : vector<64x48xf32>
    %cst_164 = arith.constant 1.000000e+00 : f32
    %103 = vector.broadcast %cst_164 : f32 to vector<64x48xf32>
    %104 = arith.addf %103, %102 : vector<64x48xf32>
    %105 = arith.mulf %94, %104 : vector<64x48xf32>
    %106 = tpu.concatenate %11, %13, %15, %21, %23, %25, %31, %33, %35 in 2 : vector<8x8x3xf32>, vector<8x8x3xf32>, vector<8x8x3xf32>, vector<8x8x3xf32>, vector<8x8x3xf32>, vector<8x8x3xf32>, vector<8x8x3xf32>, vector<8x8x3xf32>, vector<8x8x3xf32> -> vector<8x8x27xf32>
    %107 = vector.shape_cast %106 : vector<8x8x27xf32> to vector<64x27xf32>
    %cst_165 = arith.constant dense<0.000000e+00> : vector<64x48xf32>
    %108 = tpu.matmul %107, %50, %cst_165 {dimension_numbers = #tpu.dot_dimension_numbers<[1], [0], [0], [1], [0, 0, 1, 1], [], []>} : vector<64x27xf32>, vector<27x48xf32>, vector<64x48xf32> -> vector<64x48xf32>
    %109 = vector.broadcast %51 : vector<1x48xf32> to vector<64x48xf32>
    %110 = arith.addf %108, %109 : vector<64x48xf32>
    %cst_166 = arith.constant 5.000000e-01 : f32
    %111 = vector.broadcast %cst_166 : f32 to vector<64x48xf32>
    %112 = arith.mulf %111, %110 : vector<64x48xf32>
    %cst_167 = arith.constant 4.471500e-02 : f32
    %113 = vector.broadcast %cst_167 : f32 to vector<64x48xf32>
    %114 = arith.mulf %113, %110 : vector<64x48xf32>
    %115 = arith.mulf %114, %110 : vector<64x48xf32>
    %116 = arith.mulf %115, %110 : vector<64x48xf32>
    %117 = arith.addf %110, %116 : vector<64x48xf32>
    %cst_168 = arith.constant 0.797884583 : f32
    %118 = vector.broadcast %cst_168 : f32 to vector<64x48xf32>
    %119 = arith.mulf %118, %117 : vector<64x48xf32>
    %120 = math.tanh %119 : vector<64x48xf32>
    %cst_169 = arith.constant 1.000000e+00 : f32
    %121 = vector.broadcast %cst_169 : f32 to vector<64x48xf32>
    %122 = arith.addf %121, %120 : vector<64x48xf32>
    %123 = arith.mulf %112, %122 : vector<64x48xf32>
    %124 = tpu.concatenate %13, %15, %17, %23, %25, %27, %33, %35, %37 in 2 : vector<8x8x3xf32>, vector<8x8x3xf32>, vector<8x8x3xf32>, vector<8x8x3xf32>, vector<8x8x3xf32>, vector<8x8x3xf32>, vector<8x8x3xf32>, vector<8x8x3xf32>, vector<8x8x3xf32> -> vector<8x8x27xf32>
    %125 = vector.shape_cast %124 : vector<8x8x27xf32> to vector<64x27xf32>
    %cst_170 = arith.constant dense<0.000000e+00> : vector<64x48xf32>
    %126 = tpu.matmul %125, %50, %cst_170 {dimension_numbers = #tpu.dot_dimension_numbers<[1], [0], [0], [1], [0, 0, 1, 1], [], []>} : vector<64x27xf32>, vector<27x48xf32>, vector<64x48xf32> -> vector<64x48xf32>
    %127 = vector.broadcast %51 : vector<1x48xf32> to vector<64x48xf32>
    %128 = arith.addf %126, %127 : vector<64x48xf32>
    %cst_171 = arith.constant 5.000000e-01 : f32
    %129 = vector.broadcast %cst_171 : f32 to vector<64x48xf32>
    %130 = arith.mulf %129, %128 : vector<64x48xf32>
    %cst_172 = arith.constant 4.471500e-02 : f32
    %131 = vector.broadcast %cst_172 : f32 to vector<64x48xf32>
    %132 = arith.mulf %131, %128 : vector<64x48xf32>
    %133 = arith.mulf %132, %128 : vector<64x48xf32>
    %134 = arith.mulf %133, %128 : vector<64x48xf32>
    %135 = arith.addf %128, %134 : vector<64x48xf32>
    %cst_173 = arith.constant 0.797884583 : f32
    %136 = vector.broadcast %cst_173 : f32 to vector<64x48xf32>
    %137 = arith.mulf %136, %135 : vector<64x48xf32>
    %138 = math.tanh %137 : vector<64x48xf32>
    %cst_174 = arith.constant 1.000000e+00 : f32
    %139 = vector.broadcast %cst_174 : f32 to vector<64x48xf32>
    %140 = arith.addf %139, %138 : vector<64x48xf32>
    %141 = arith.mulf %130, %140 : vector<64x48xf32>
    %142 = tpu.concatenate %15, %17, %19, %25, %27, %29, %35, %37, %39 in 2 : vector<8x8x3xf32>, vector<8x8x3xf32>, vector<8x8x3xf32>, vector<8x8x3xf32>, vector<8x8x3xf32>, vector<8x8x3xf32>, vector<8x8x3xf32>, vector<8x8x3xf32>, vector<8x8x3xf32> -> vector<8x8x27xf32>
    %143 = vector.shape_cast %142 : vector<8x8x27xf32> to vector<64x27xf32>
    %cst_175 = arith.constant dense<0.000000e+00> : vector<64x48xf32>
    %144 = tpu.matmul %143, %50, %cst_175 {dimension_numbers = #tpu.dot_dimension_numbers<[1], [0], [0], [1], [0, 0, 1, 1], [], []>} : vector<64x27xf32>, vector<27x48xf32>, vector<64x48xf32> -> vector<64x48xf32>
    %145 = vector.broadcast %51 : vector<1x48xf32> to vector<64x48xf32>
    %146 = arith.addf %144, %145 : vector<64x48xf32>
    %cst_176 = arith.constant 5.000000e-01 : f32
    %147 = vector.broadcast %cst_176 : f32 to vector<64x48xf32>
    %148 = arith.mulf %147, %146 : vector<64x48xf32>
    %cst_177 = arith.constant 4.471500e-02 : f32
    %149 = vector.broadcast %cst_177 : f32 to vector<64x48xf32>
    %150 = arith.mulf %149, %146 : vector<64x48xf32>
    %151 = arith.mulf %150, %146 : vector<64x48xf32>
    %152 = arith.mulf %151, %146 : vector<64x48xf32>
    %153 = arith.addf %146, %152 : vector<64x48xf32>
    %cst_178 = arith.constant 0.797884583 : f32
    %154 = vector.broadcast %cst_178 : f32 to vector<64x48xf32>
    %155 = arith.mulf %154, %153 : vector<64x48xf32>
    %156 = math.tanh %155 : vector<64x48xf32>
    %cst_179 = arith.constant 1.000000e+00 : f32
    %157 = vector.broadcast %cst_179 : f32 to vector<64x48xf32>
    %158 = arith.addf %157, %156 : vector<64x48xf32>
    %159 = arith.mulf %148, %158 : vector<64x48xf32>
    %160 = tpu.concatenate %21, %23, %25, %31, %33, %35, %41, %43, %45 in 2 : vector<8x8x3xf32>, vector<8x8x3xf32>, vector<8x8x3xf32>, vector<8x8x3xf32>, vector<8x8x3xf32>, vector<8x8x3xf32>, vector<8x8x3xf32>, vector<8x8x3xf32>, vector<8x8x3xf32> -> vector<8x8x27xf32>
    %161 = vector.shape_cast %160 : vector<8x8x27xf32> to vector<64x27xf32>
    %cst_180 = arith.constant dense<0.000000e+00> : vector<64x48xf32>
    %162 = tpu.matmul %161, %50, %cst_180 {dimension_numbers = #tpu.dot_dimension_numbers<[1], [0], [0], [1], [0, 0, 1, 1], [], []>} : vector<64x27xf32>, vector<27x48xf32>, vector<64x48xf32> -> vector<64x48xf32>
    %163 = vector.broadcast %51 : vector<1x48xf32> to vector<64x48xf32>
    %164 = arith.addf %162, %163 : vector<64x48xf32>
    %cst_181 = arith.constant 5.000000e-01 : f32
    %165 = vector.broadcast %cst_181 : f32 to vector<64x48xf32>
    %166 = arith.mulf %165, %164 : vector<64x48xf32>
    %cst_182 = arith.constant 4.471500e-02 : f32
    %167 = vector.broadcast %cst_182 : f32 to vector<64x48xf32>
    %168 = arith.mulf %167, %164 : vector<64x48xf32>
    %169 = arith.mulf %168, %164 : vector<64x48xf32>
    %170 = arith.mulf %169, %164 : vector<64x48xf32>
    %171 = arith.addf %164, %170 : vector<64x48xf32>
    %cst_183 = arith.constant 0.797884583 : f32
    %172 = vector.broadcast %cst_183 : f32 to vector<64x48xf32>
    %173 = arith.mulf %172, %171 : vector<64x48xf32>
    %174 = math.tanh %173 : vector<64x48xf32>
    %cst_184 = arith.constant 1.000000e+00 : f32
    %175 = vector.broadcast %cst_184 : f32 to vector<64x48xf32>
    %176 = arith.addf %175, %174 : vector<64x48xf32>
    %177 = arith.mulf %166, %176 : vector<64x48xf32>
    %178 = tpu.concatenate %23, %25, %27, %33, %35, %37, %43, %45, %47 in 2 : vector<8x8x3xf32>, vector<8x8x3xf32>, vector<8x8x3xf32>, vector<8x8x3xf32>, vector<8x8x3xf32>, vector<8x8x3xf32>, vector<8x8x3xf32>, vector<8x8x3xf32>, vector<8x8x3xf32> -> vector<8x8x27xf32>
    %179 = vector.shape_cast %178 : vector<8x8x27xf32> to vector<64x27xf32>
    %cst_185 = arith.constant dense<0.000000e+00> : vector<64x48xf32>
    %180 = tpu.matmul %179, %50, %cst_185 {dimension_numbers = #tpu.dot_dimension_numbers<[1], [0], [0], [1], [0, 0, 1, 1], [], []>} : vector<64x27xf32>, vector<27x48xf32>, vector<64x48xf32> -> vector<64x48xf32>
    %181 = vector.broadcast %51 : vector<1x48xf32> to vector<64x48xf32>
    %182 = arith.addf %180, %181 : vector<64x48xf32>
    %cst_186 = arith.constant 5.000000e-01 : f32
    %183 = vector.broadcast %cst_186 : f32 to vector<64x48xf32>
    %184 = arith.mulf %183, %182 : vector<64x48xf32>
    %cst_187 = arith.constant 4.471500e-02 : f32
    %185 = vector.broadcast %cst_187 : f32 to vector<64x48xf32>
    %186 = arith.mulf %185, %182 : vector<64x48xf32>
    %187 = arith.mulf %186, %182 : vector<64x48xf32>
    %188 = arith.mulf %187, %182 : vector<64x48xf32>
    %189 = arith.addf %182, %188 : vector<64x48xf32>
    %cst_188 = arith.constant 0.797884583 : f32
    %190 = vector.broadcast %cst_188 : f32 to vector<64x48xf32>
    %191 = arith.mulf %190, %189 : vector<64x48xf32>
    %192 = math.tanh %191 : vector<64x48xf32>
    %cst_189 = arith.constant 1.000000e+00 : f32
    %193 = vector.broadcast %cst_189 : f32 to vector<64x48xf32>
    %194 = arith.addf %193, %192 : vector<64x48xf32>
    %195 = arith.mulf %184, %194 : vector<64x48xf32>
    %196 = tpu.concatenate %25, %27, %29, %35, %37, %39, %45, %47, %49 in 2 : vector<8x8x3xf32>, vector<8x8x3xf32>, vector<8x8x3xf32>, vector<8x8x3xf32>, vector<8x8x3xf32>, vector<8x8x3xf32>, vector<8x8x3xf32>, vector<8x8x3xf32>, vector<8x8x3xf32> -> vector<8x8x27xf32>
    %197 = vector.shape_cast %196 : vector<8x8x27xf32> to vector<64x27xf32>
    %cst_190 = arith.constant dense<0.000000e+00> : vector<64x48xf32>
    %198 = tpu.matmul %197, %50, %cst_190 {dimension_numbers = #tpu.dot_dimension_numbers<[1], [0], [0], [1], [0, 0, 1, 1], [], []>} : vector<64x27xf32>, vector<27x48xf32>, vector<64x48xf32> -> vector<64x48xf32>
    %199 = vector.broadcast %51 : vector<1x48xf32> to vector<64x48xf32>
    %200 = arith.addf %198, %199 : vector<64x48xf32>
    %cst_191 = arith.constant 5.000000e-01 : f32
    %201 = vector.broadcast %cst_191 : f32 to vector<64x48xf32>
    %202 = arith.mulf %201, %200 : vector<64x48xf32>
    %cst_192 = arith.constant 4.471500e-02 : f32
    %203 = vector.broadcast %cst_192 : f32 to vector<64x48xf32>
    %204 = arith.mulf %203, %200 : vector<64x48xf32>
    %205 = arith.mulf %204, %200 : vector<64x48xf32>
    %206 = arith.mulf %205, %200 : vector<64x48xf32>
    %207 = arith.addf %200, %206 : vector<64x48xf32>
    %cst_193 = arith.constant 0.797884583 : f32
    %208 = vector.broadcast %cst_193 : f32 to vector<64x48xf32>
    %209 = arith.mulf %208, %207 : vector<64x48xf32>
    %210 = math.tanh %209 : vector<64x48xf32>
    %cst_194 = arith.constant 1.000000e+00 : f32
    %211 = vector.broadcast %cst_194 : f32 to vector<64x48xf32>
    %212 = arith.addf %211, %210 : vector<64x48xf32>
    %213 = arith.mulf %202, %212 : vector<64x48xf32>
    %214 = tpu.concatenate %69, %87, %105, %123, %141, %159, %177, %195, %213 in 1 : vector<64x48xf32>, vector<64x48xf32>, vector<64x48xf32>, vector<64x48xf32>, vector<64x48xf32>, vector<64x48xf32>, vector<64x48xf32>, vector<64x48xf32>, vector<64x48xf32> -> vector<64x432xf32>
    %c0_195 = arith.constant 0 : index
    %c0_196 = arith.constant 0 : index
    %215 = vector.load %arg4[%c0_195, %c0_196] : memref<432x48xf32, #tpu.memory_space<vmem>>, vector<432x48xf32>
    %cst_197 = arith.constant dense<0.000000e+00> : vector<64x48xf32>
    %216 = tpu.matmul %214, %215, %cst_197 {dimension_numbers = #tpu.dot_dimension_numbers<[1], [0], [0], [1], [0, 0, 1, 1], [], []>} : vector<64x432xf32>, vector<432x48xf32>, vector<64x48xf32> -> vector<64x48xf32>
    %c0_198 = arith.constant 0 : index
    %c0_199 = arith.constant 0 : index
    %217 = vector.load %arg5[%c0_198, %c0_199] : memref<1x48xf32, #tpu.memory_space<vmem>>, vector<1x48xf32>
    %218 = vector.broadcast %217 : vector<1x48xf32> to vector<64x48xf32>
    %219 = arith.addf %216, %218 : vector<64x48xf32>
    %cst_200 = arith.constant dense<0.000000e+00> : vector<48xf32>
    %220 = vector.multi_reduction <add>, %219, %cst_200 [0] : vector<64x48xf32> to vector<48xf32>
    %221 = vector.shape_cast %220 : vector<48xf32> to vector<1x48xf32>
    %c0_201 = arith.constant 0 : index
    %c0_202 = arith.constant 0 : index
    %222 = vector.load %arg6[%c0_201, %c0_202] : memref<48x48xf32, #tpu.memory_space<vmem>>, vector<48x48xf32>
    %cst_203 = arith.constant dense<0.000000e+00> : vector<1x48xf32>
    %223 = tpu.matmul %221, %222, %cst_203 {dimension_numbers = #tpu.dot_dimension_numbers<[1], [0], [0], [1], [0, 0, 1, 1], [], []>} : vector<1x48xf32>, vector<48x48xf32>, vector<1x48xf32> -> vector<1x48xf32>
    %224 = vector.broadcast %223 : vector<1x48xf32> to vector<64x48xf32>
    %225 = arith.subf %219, %224 : vector<64x48xf32>
    %226 = arith.mulf %225, %225 : vector<64x48xf32>
    %cst_204 = arith.constant dense<0.000000e+00> : vector<48xf32>
    %227 = vector.multi_reduction <add>, %226, %cst_204 [0] : vector<64x48xf32> to vector<48xf32>
    %228 = vector.shape_cast %227 : vector<48xf32> to vector<1x48xf32>
    %c0_205 = arith.constant 0 : index
    %c0_206 = arith.constant 0 : index
    %229 = vector.load %arg6[%c0_205, %c0_206] : memref<48x48xf32, #tpu.memory_space<vmem>>, vector<48x48xf32>
    %cst_207 = arith.constant dense<0.000000e+00> : vector<1x48xf32>
    %230 = tpu.matmul %228, %229, %cst_207 {dimension_numbers = #tpu.dot_dimension_numbers<[1], [0], [0], [1], [0, 0, 1, 1], [], []>} : vector<1x48xf32>, vector<48x48xf32>, vector<1x48xf32> -> vector<1x48xf32>
    %cst_208 = arith.constant 9.99999974E-6 : f32
    %231 = vector.broadcast %cst_208 : f32 to vector<1x48xf32>
    %232 = arith.addf %230, %231 : vector<1x48xf32>
    %233 = math.rsqrt %232 : vector<1x48xf32>
    %234 = vector.broadcast %233 : vector<1x48xf32> to vector<64x48xf32>
    %235 = arith.mulf %225, %234 : vector<64x48xf32>
    %c0_209 = arith.constant 0 : index
    %c0_210 = arith.constant 0 : index
    %236 = vector.load %arg7[%c0_209, %c0_210] : memref<1x48xf32, #tpu.memory_space<vmem>>, vector<1x48xf32>
    %237 = vector.broadcast %236 : vector<1x48xf32> to vector<64x48xf32>
    %238 = arith.mulf %235, %237 : vector<64x48xf32>
    %c0_211 = arith.constant 0 : index
    %c0_212 = arith.constant 0 : index
    %239 = vector.load %arg8[%c0_211, %c0_212] : memref<1x48xf32, #tpu.memory_space<vmem>>, vector<1x48xf32>
    %240 = vector.broadcast %239 : vector<1x48xf32> to vector<64x48xf32>
    %241 = arith.addf %238, %240 : vector<64x48xf32>
    %cst_213 = arith.constant 5.000000e-01 : f32
    %242 = vector.broadcast %cst_213 : f32 to vector<64x48xf32>
    %243 = arith.mulf %242, %241 : vector<64x48xf32>
    %cst_214 = arith.constant 4.471500e-02 : f32
    %244 = vector.broadcast %cst_214 : f32 to vector<64x48xf32>
    %245 = arith.mulf %244, %241 : vector<64x48xf32>
    %246 = arith.mulf %245, %241 : vector<64x48xf32>
    %247 = arith.mulf %246, %241 : vector<64x48xf32>
    %248 = arith.addf %241, %247 : vector<64x48xf32>
    %cst_215 = arith.constant 0.797884583 : f32
    %249 = vector.broadcast %cst_215 : f32 to vector<64x48xf32>
    %250 = arith.mulf %249, %248 : vector<64x48xf32>
    %251 = math.tanh %250 : vector<64x48xf32>
    %cst_216 = arith.constant 1.000000e+00 : f32
    %252 = vector.broadcast %cst_216 : f32 to vector<64x48xf32>
    %253 = arith.addf %252, %251 : vector<64x48xf32>
    %254 = arith.mulf %243, %253 : vector<64x48xf32>
    %c0_217 = arith.constant 0 : index
    %c0_218 = arith.constant 0 : index
    %255 = vector.load %arg9[%c0_217, %c0_218] : memref<48x48xf32, #tpu.memory_space<vmem>>, vector<48x48xf32>
    %cst_219 = arith.constant dense<0.000000e+00> : vector<64x48xf32>
    %256 = tpu.matmul %254, %255, %cst_219 {dimension_numbers = #tpu.dot_dimension_numbers<[1], [0], [0], [1], [0, 0, 1, 1], [], []>} : vector<64x48xf32>, vector<48x48xf32>, vector<64x48xf32> -> vector<64x48xf32>
    %c0_220 = arith.constant 0 : index
    %c0_221 = arith.constant 0 : index
    %257 = vector.load %arg10[%c0_220, %c0_221] : memref<1x48xf32, #tpu.memory_space<vmem>>, vector<1x48xf32>
    %258 = vector.broadcast %257 : vector<1x48xf32> to vector<64x48xf32>
    %259 = arith.addf %256, %258 : vector<64x48xf32>
    %c0_222 = arith.constant 0 : index
    %c0_223 = arith.constant 0 : index
    %c0_224 = arith.constant 0 : index
    %260 = vector.load %arg11[%c0_222, %c0_223, %c0_224] : memref<1x64x48xf32, #tpu.memory_space<vmem>>, vector<1x64x48xf32>
    %261 = vector.shape_cast %260 : vector<1x64x48xf32> to vector<64x48xf32>
    %262 = vector.shape_cast %259 : vector<64x48xf32> to vector<1x64x48xf32>
    tpu.vector_store %arg11[%c0_222, %c0_223, %c0_224], %262 {strides = array<i32>} : memref<1x64x48xf32, #tpu.memory_space<vmem>>, vector<1x64x48xf32>,
    return
  }
  func.func @transform_0(%arg0: i32) -> (i32, i32, i32, i32, i32, i32) {
    %c0_i32 = arith.constant 0 : i32
    %c0_i32_0 = arith.constant 0 : i32
    %c0_i32_1 = arith.constant 0 : i32
    %c0_i32_2 = arith.constant 0 : i32
    %c0_i32_3 = arith.constant 0 : i32
    %c0_i32_4 = arith.constant 0 : i32
    return %arg0, %c0_i32, %c0_i32_0, %c0_i32_1, %c0_i32_2, %c0_i32_3 : i32, i32, i32, i32, i32, i32
  }
  func.func @transform_1(%arg0: i32) -> (i32, i32) {
    %c0_i32 = arith.constant 0 : i32
    %c0_i32_0 = arith.constant 0 : i32
    %c0_i32_1 = arith.constant 0 : i32
    return %c0_i32, %c0_i32_0 : i32, i32
  }
  func.func @transform_2(%arg0: i32) -> (i32, i32) {
    %c0_i32 = arith.constant 0 : i32
    %c0_i32_0 = arith.constant 0 : i32
    %c0_i32_1 = arith.constant 0 : i32
    return %c0_i32, %c0_i32_0 : i32, i32
  }
  func.func @transform_3(%arg0: i32) -> (i32, i32) {
    %c0_i32 = arith.constant 0 : i32
    %c0_i32_0 = arith.constant 0 : i32
    %c0_i32_1 = arith.constant 0 : i32
    return %c0_i32, %c0_i32_0 : i32, i32
  }
  func.func @transform_4(%arg0: i32) -> (i32, i32) {
    %c0_i32 = arith.constant 0 : i32
    %c0_i32_0 = arith.constant 0 : i32
    %c0_i32_1 = arith.constant 0 : i32
    return %c0_i32, %c0_i32_0 : i32, i32
  }
  func.func @transform_5(%arg0: i32) -> (i32, i32) {
    %c0_i32 = arith.constant 0 : i32
    %c0_i32_0 = arith.constant 0 : i32
    %c0_i32_1 = arith.constant 0 : i32
    return %c0_i32, %c0_i32_0 : i32, i32
  }
  func.func @transform_6(%arg0: i32) -> (i32, i32) {
    %c0_i32 = arith.constant 0 : i32
    %c0_i32_0 = arith.constant 0 : i32
    %c0_i32_1 = arith.constant 0 : i32
    return %c0_i32, %c0_i32_0 : i32, i32
  }
  func.func @transform_7(%arg0: i32) -> (i32, i32) {
    %c0_i32 = arith.constant 0 : i32
    %c0_i32_0 = arith.constant 0 : i32
    %c0_i32_1 = arith.constant 0 : i32
    return %c0_i32, %c0_i32_0 : i32, i32
  }
  func.func @transform_8(%arg0: i32) -> (i32, i32) {
    %c0_i32 = arith.constant 0 : i32
    %c0_i32_0 = arith.constant 0 : i32
    %c0_i32_1 = arith.constant 0 : i32
    return %c0_i32, %c0_i32_0 : i32, i32
  }
  func.func @transform_9(%arg0: i32) -> (i32, i32) {
    %c0_i32 = arith.constant 0 : i32
    %c0_i32_0 = arith.constant 0 : i32
    %c0_i32_1 = arith.constant 0 : i32
    return %c0_i32, %c0_i32_0 : i32, i32
  }
  func.func @transform_10(%arg0: i32) -> (i32, i32, i32) {
    %c0_i32 = arith.constant 0 : i32
    %c0_i32_0 = arith.constant 0 : i32
    %c0_i32_1 = arith.constant 0 : i32
    return %arg0, %c0_i32, %c0_i32_0 : i32, i32, i32
  }
}

</mosaic_0001>

<bundles_post_ra>
// kernel: tpu_custom_call.1
= control target key start
LH: loop header
LB: loop body
LE: loop exit
PB: predicated region body
PF: predicated region fallthrough
CT: control target
= control target key end

     0   :  { %s6118_s13 = smov 0   ;;  %s10872_s0 = inlined_call_operand.vmem [shape: f32[2,9,3,3,9,3], index: 0, kind: input, shape index: {}]   ;;  %s10873_s1 = inlined_call_operand.vmem [shape: f32[27,48], index: 1, kind: input, shape index: {}]   ;;  %s10874_s2 = inlined_call_operand.vmem [shape: f32[1,48], index: 2, kind: input, shape index: {}]   ;;  %s10875_s3 = inlined_call_operand.vmem [shape: f32[432,48], index: 3, kind: input, shape index: {}]   ;;  %s10876_s4 = inlined_call_operand.vmem [shape: f32[1,48], index: 4, kind: input, shape index: {}]   ;;  %s10877_s5 = inlined_call_operand.vmem [shape: f32[48,48], index: 5, kind: input, shape index: {}]   ;;  %s10878_s6 = inlined_call_operand.vmem [shape: f32[1,48], index: 6, kind: input, shape index: {}]   ;;  %s10879_s7 = inlined_call_operand.vmem [shape: f32[1,48], index: 7, kind: input, shape index: {}]   ;;  %s10880_s8 = inlined_call_operand.vmem [shape: f32[48,48], index: 8, kind: input, shape index: {}]   ;;  %s10881_s9 = inlined_call_operand.vmem [shape: f32[1,48], index: 9, kind: input, shape index: {}]   ;;  %s10882_s10 = inlined_call_operand.vmem [shape: f32[2,64,48], index: 10, kind: output, shape index: {}]  }
   0x1 LB: > { %s5221_s14 = sadd.s32 4294967295, %s6046_s13   ;;  %p5225_p0 = scmp.ge.s32.totalorder %s6046_s13, 1  ;;  %s6046_s13 = sphi %s6118_s13, %s20_s13  }
   0x2   : > { %p312_p1 = scmp.lt.s32.totalorder %s6046_s13, 3 }
   0x4   : > { %p313_p2 = pnand %p5225_p0, %p312_p1 }
   0x6   : > { %316 = sbr.rel (%p313_p2) target bundleno = 2493 (0x9bd), region = 60 }
   0xb   : > { %p350_p3 = scmp.lt.s32.totalorder %s5221_s14, 1  ;;  %s6048_s19 = smov 3   ;;  %vm935_vm0 = vcmask 1042432   ;;  %vm835_vm1 = vcmask 23552   ;;  %vm844_vm2 = vcmask 48128   ;;  %vm853_vm3 = vcmask 72704  }
   0xc   : > { %s6049_s20 = smov 6   ;;  %s6050_s21 = smov 9   ;;  %vm862_vm4 = vcmask 97280   ;;  %vm871_vm5 = vcmask 121856   ;;  %vm880_vm6 = vcmask 146432   ;;  %vm898_vm7 = vcmask 195584  }
   0xd   : > { %s11272_s14 = smov (!%p350_p3, %s5221_s14), 1  ;;  %s6051_s22 = smov 12   ;;  %vm889_vm8 = vcmask 171008   ;;  %vm910_vm9 = vcmask 220160   ;;  %vm4548_vm10 = vcmask 392192   ;;  %vm4566_vm11 = vcmask 130048  }
   0xe   : > { %s5523_s15 = smul.u32 1296, %s11272_s14  ;;  %s6052_s23 = smov 15   ;;  %vm4575_vm12 = vcmask 523264   ;;  %vm4584_vm13 = vcmask 916480   ;;  %vm4593_vm14 = vcmask 261120   ;;  %vm4602_vm15 = vcmask 654336  }
   0xf   : > { %s6053_s24 = smov 18   ;;  %s6054_s25 = smov 21  }
  0x10   : > { %s6132_s18 = scalar_lea.vmem %s10872_s0, %s5523_s15  ;;  %s6055_s26 = smov 24  }
  0x11   : > { %v5233_v0 = vld [vmem:[%s6132_s18 + $0x250] sm:$0xff]  ;;  %v5234_v3 = vld [vmem:[%s6132_s18 + $0x2e0] sm:$0xff]  ;;  %s6062_s29 = smov 48  }
  0x12   : > { %v5231_v1 = vld [vmem:[%s6132_s18 + $0x130] sm:$0xff]  ;;  %595 = vrot.lane.b32.xlu2 %v5233_v0, %s6048_s19  ;;  %v5232_v4 = vld [vmem:[%s6132_s18 + $0x1c0] sm:$0xff] }
  0x13   : > { %v5229_v2 = vld [vmem:[%s6132_s18 + $0x10] sm:$0xff]  ;;  %591 = vrot.lane.b32.xlu1 %v5231_v1, %s6048_s19  ;;  %v5230_v5 = vld [vmem:[%s6132_s18 + $0xa0] sm:$0xff] }
  0x14   : > { %587 = vrot.lane.b32.xlu0 %v5229_v2, %s6048_s19  ;;  %v6147_v6 = vld [vmem:[%s6132_s18 + $0x20] sm:$0xff]  ;;  %v5235_v8 = vld [vmem:[%s6132_s18 + $0x370] sm:$0xff] }
  0x15   : > { %v5236_v7 = vld [vmem:[%s6132_s18 + $0x400] sm:$0xff]  ;;  %v6156_v9 = vld [vmem:[%s6132_s18 + $0x1d0] sm:$0xff] }
  0x16   : > { %v6159_v10 = vld [vmem:[%s6132_s18 + $0x140] sm:$0xff]  ;;  %v6162_v11 = vld [vmem:[%s6132_s18 + $0xb0] sm:$0xff] }
  0x17   : > { %v6171_v12 = vld [vmem:[%s6132_s18 + $0x380] sm:$0xff]  ;;  %v6174_v13 = vld [vmem:[%s6132_s18 + $0x2f0] sm:$0xff] }
  0x18   : > { %v6177_v14 = vld [vmem:[%s6132_s18 + $0x260] sm:$0xff]  ;;  %v5253_v16 = vld [vmem:[%s6132_s18 + $0x30] sm:$0xff] }
  0x19   : > { %v5254_v15 = vld [vmem:[%s6132_s18 + $0xc0] sm:$0xff]  ;;  %v6188_v17 = vld [vmem:[%s6132_s18 + $0x410] sm:$0xff] }
  0x1a   : > { %597 = vrot.lane.b32.xlu2 %v5234_v3, %s6048_s19  ;;  %v5257_v18 = vld [vmem:[%s6132_s18 + $0x270] sm:$0xff]  ;;  %v5256_v19 = vld [vmem:[%s6132_s18 + $0x1e0] sm:$0xff] }
  0x1b   : > { %593 = vrot.lane.b32.xlu1 %v5232_v4, %s6048_s19  ;;  %v5255_v20 = vld [vmem:[%s6132_s18 + $0x150] sm:$0xff]  ;;  %v5260_v21 = vld [vmem:[%s6132_s18 + $0x420] sm:$0xff] }
  0x1c   : > { %589 = vrot.lane.b32.xlu0 %v5230_v5, %s6048_s19  ;;  %v5259_v22 = vld [vmem:[%s6132_s18 + $0x390] sm:$0xff]  ;;  %v5258_v23 = vld [vmem:[%s6132_s18 + $0x300] sm:$0xff] }
  0x1d   : > { %v6207_v24 = vld [vmem:[%s6132_s18 + $0x160] sm:$0xff]  ;;  %v6210_v25 = vld [vmem:[%s6132_s18 + $0xd0] sm:$0xff] }
  0x1e   : > { %v6213_v26 = vld [vmem:[%s6132_s18 + $0x40] sm:$0xff]  ;;  %v6222_v27 = vld [vmem:[%s6132_s18 + $0x310] sm:$0xff] }
  0x1f   : > { %v6225_v28 = vld [vmem:[%s6132_s18 + $0x280] sm:$0xff]  ;;  %v6228_v29 = vld [vmem:[%s6132_s18 + $0x1f0] sm:$0xff] }
  0x20   : > { %v6237_v30 = vld [vmem:[%s6132_s18 + $0x50] sm:$0xff]  ;;  %v6243_v32 = vld [vmem:[%s6132_s18 + $0x3a0] sm:$0xff] }
  0x21   : > { %v6240_v31 = vld [vmem:[%s6132_s18 + $0x430] sm:$0xff]  ;;  %v6252_v33 = vld [vmem:[%s6132_s18 + $0x200] sm:$0xff] }
  0x22   : > { %619 = vrot.lane.b32.xlu2 %v6147_v6, %s6049_s20  ;;  %10977 = vst [vmem:[#allocation2_spill] sm:$0xff] %v6252_v33  ;;  %v6255_v34 = vld [vmem:[%s6132_s18 + $0x170] sm:$0xff]  ;;  %v6258_v35 = vld [vmem:[%s6132_s18 + $0xe0] sm:$0xff] }
  0x23   : > { %601 = vrot.lane.b32.xlu1 %v5236_v7, %s6048_s19  ;;  %10978 = vst [vmem:[#allocation3_spill] sm:$0xff] %v6258_v35  ;;  %v6269_v37 = vld [vmem:[%s6132_s18 + $0x3b0] sm:$0xff]  ;;  %v6272_v38 = vld [vmem:[%s6132_s18 + $0x320] sm:$0xff] }
  0x24   : > { %599 = vrot.lane.b32.xlu0 %v5235_v8, %s6048_s19  ;;  %10979 = vst [vmem:[#allocation4_spill] sm:$0xff] %v6269_v37  ;;  %v6275_v39 = vld [vmem:[%s6132_s18 + $0x290] sm:$0xff]  ;;  %v5293_v42 = vld [vmem:[%s6132_s18 + $0x60] sm:$0xff] }
  0x25   : > { %10980 = vst [vmem:[#allocation5_spill] sm:$0xff] %v6275_v39  ;;  %v5294_v41 = vld [vmem:[%s6132_s18 + $0xf0] sm:$0xff]  ;;  %v6288_v43 = vld [vmem:[%s6132_s18 + $0x440] sm:$0xff] }
  0x26   : > { %10981 = vst [vmem:[#allocation6_spill] sm:$0xff] %v6288_v43  ;;  %v5297_v45 = vld [vmem:[%s6132_s18 + $0x2a0] sm:$0xff]  ;;  %v5296_v46 = vld [vmem:[%s6132_s18 + $0x210] sm:$0xff] }
  0x27   : > { %v5295_v47 = vld [vmem:[%s6132_s18 + $0x180] sm:$0xff]  ;;  %v5300_v51 = vld [vmem:[%s6132_s18 + $0x450] sm:$0xff] }
  0x28   : > { %v5299_v52 = vld [vmem:[%s6132_s18 + $0x3c0] sm:$0xff]  ;;  %v5298_v53 = vld [vmem:[%s6132_s18 + $0x330] sm:$0xff] }
  0x29   : > { %v6321_v57 = vld [vmem:[%s6132_s18 + $0x190] sm:$0xff]  ;;  %v6324_v58 = vld [vmem:[%s6132_s18 + $0x100] sm:$0xff] }
  0x2a   : > { %625 = vrot.lane.b32.xlu2 %v6156_v9, %s6049_s20  ;;  %v6327_v59 = vld [vmem:[%s6132_s18 + $0x70] sm:$0xff]  ;;  %v6342_v63 = vld [vmem:[%s6132_s18 + $0x340] sm:$0xff] }
  0x2b   : > { %623 = vrot.lane.b32.xlu1 %v6159_v10, %s6049_s20  ;;  %10982 = vst [vmem:[#allocation7_spill] sm:$0xff] %v6342_v63  ;;  %v6345_v0 = vld [vmem:[%s6132_s18 + $0x2b0] sm:$0xff]  ;;  %v6348_v1 = vld [vmem:[%s6132_s18 + $0x220] sm:$0xff] }
  0x2c   : > { %621 = vrot.lane.b32.xlu0 %v6162_v11, %s6049_s20  ;;  %10983 = vst [vmem:[#allocation8_spill] sm:$0xff] %v6345_v0  ;;  %v6363_v5 = vld [vmem:[%s6132_s18 + $0x80] sm:$0xff]  ;;  %v6369_v8 = vld [vmem:[%s6132_s18 + $0x3d0] sm:$0xff] }
  0x2d   : > { %10985 = vst [vmem:[#allocation10_spill] sm:$0xff] %v6363_v5  ;;  %v6366_v7 = vld [vmem:[%s6132_s18 + $0x460] sm:$0xff] }
  0x2e   : > { %10986 = vst [vmem:[#allocation11_spill] sm:$0xff] %v6366_v7 }
  0x2f   : > { %10987 = vst [vmem:[#allocation12_spill] sm:$0xff] %v6369_v8 }
  0x32   : > { %631 = vrot.lane.b32.xlu2 %v6171_v12, %s6049_s20 }
  0x33   : > { %629 = vrot.lane.b32.xlu1 %v6174_v13, %s6049_s20 }
  0x34   : > { %627 = vrot.lane.b32.xlu0 %v6177_v14, %s6049_s20 }
  0x3a   : > { %653 = vrot.lane.b32.xlu2 %v5254_v15, %s6050_s21 }
  0x3b   : > { %651 = vrot.lane.b32.xlu1 %v5253_v16, %s6050_s21 }
  0x3c   : > { %633 = vrot.lane.b32.xlu0 %v6188_v17, %s6049_s20 }
  0x42   : > { %659 = vrot.lane.b32.xlu2 %v5257_v18, %s6050_s21 }
  0x43   : > { %657 = vrot.lane.b32.xlu1 %v5256_v19, %s6050_s21  ;;  %v6384_v19 = vld [vmem:[%s6132_s18 + $0x230] sm:$0xff] }
  0x44   : > { %655 = vrot.lane.b32.xlu0 %v5255_v20, %s6050_s21  ;;  %10988 = vst [vmem:[#allocation13_spill] sm:$0xff] %v6384_v19  ;;  %v6387_v20 = vld [vmem:[%s6132_s18 + $0x1a0] sm:$0xff] }
  0x45   : > { %10989 = vst [vmem:[#allocation14_spill] sm:$0xff] %v6387_v20 }
  0x4a   : > { %665 = vrot.lane.b32.xlu2 %v5260_v21, %s6050_s21  ;;  %v6390_v21 = vld [vmem:[%s6132_s18 + $0x110] sm:$0xff] }
  0x4b   : > { %663 = vrot.lane.b32.xlu1 %v5259_v22, %s6050_s21  ;;  %10990 = vst [vmem:[#allocation15_spill] sm:$0xff] %v6390_v21 }
  0x4c   : > { %661 = vrot.lane.b32.xlu0 %v5258_v23, %s6050_s21 }
  0x52   : > { %687 = vrot.lane.b32.xlu2 %v6207_v24, %s6051_s22 }
  0x53   : > { %685 = vrot.lane.b32.xlu1 %v6210_v25, %s6051_s22 }
  0x54   : > { %683 = vrot.lane.b32.xlu0 %v6213_v26, %s6051_s22 }
  0x5a   : > { %693 = vrot.lane.b32.xlu2 %v6222_v27, %s6051_s22 }
  0x5b   : > { %691 = vrot.lane.b32.xlu1 %v6225_v28, %s6051_s22 }
  0x5c   : > { %689 = vrot.lane.b32.xlu0 %v6228_v29, %s6051_s22 }
  0x62   : > { %715 = vrot.lane.b32.xlu2 %v6237_v30, %s6052_s23 }
  0x63   : > { %697 = vrot.lane.b32.xlu1 %v6240_v31, %s6051_s22 }
  0x64   : > { %695 = vrot.lane.b32.xlu0 %v6243_v32, %s6051_s22 }
  0x6a   : > { %721 = vrot.lane.b32.xlu2 %v6252_v33, %s6052_s23 }
  0x6b   : > { %719 = vrot.lane.b32.xlu1 %v6255_v34, %s6052_s23 }
  0x6c   : > { %717 = vrot.lane.b32.xlu0 %v6258_v35, %s6052_s23  ;;  %v6266_v36 = vpop.permute.xlu2 %595 }
  0x72   : > { %727 = vrot.lane.b32.xlu2 %v6269_v37, %s6052_s23 }
  0x73   : > { %725 = vrot.lane.b32.xlu1 %v6272_v38, %s6052_s23 }
  0x74   : > { %723 = vrot.lane.b32.xlu0 %v6275_v39, %s6052_s23  ;;  %v6283_v40 = vpop.permute.xlu2 %597 }
  0x7a   : > { %749 = vrot.lane.b32.xlu2 %v5294_v41, %s6053_s24 }
  0x7b   : > { %747 = vrot.lane.b32.xlu1 %v5293_v42, %s6053_s24  ;;  %v6405_v42 = vld [vmem:[%s6132_s18 + $0x3e0] sm:$0xff] }
  0x7c   : > { %729 = vrot.lane.b32.xlu0 %v6288_v43, %s6052_s23  ;;  %v6294_v44 = vpop.permute.xlu2 %619  ;;  %10991 = vst [vmem:[#allocation16_spill] sm:$0xff] %v6405_v42 }
  0x82   : > { %755 = vrot.lane.b32.xlu2 %v5297_v45, %s6053_s24  ;;  %v6408_v45 = vld [vmem:[%s6132_s18 + $0x350] sm:$0xff] }
  0x83   : > { %753 = vrot.lane.b32.xlu1 %v5296_v46, %s6053_s24  ;;  %10992 = vst [vmem:[#allocation17_spill] sm:$0xff] %v6408_v45  ;;  %v6411_v46 = vld [vmem:[%s6132_s18 + $0x2c0] sm:$0xff] }
  0x84   : > { %751 = vrot.lane.b32.xlu0 %v5295_v47, %s6053_s24  ;;  %v6302_v48 = vpop.permute.xlu2 %625  ;;  %10993 = vst [vmem:[#allocation18_spill] sm:$0xff] %v6411_v46 }
  0x85   : > { %v6304_v49 = vpop.permute.xlu1 %591 }
  0x86   : > { %v6306_v50 = vpop.permute.xlu0 %587 }
  0x8a   : > { %761 = vrot.lane.b32.xlu2 %v5300_v51, %s6053_s24 }
  0x8b   : > { %759 = vrot.lane.b32.xlu1 %v5299_v52, %s6053_s24 }
  0x8c   : > { %757 = vrot.lane.b32.xlu0 %v5298_v53, %s6053_s24  ;;  %v6314_v54 = vpop.permute.xlu2 %631  ;;  %v6426_v53 = vld [vmem:[%s6132_s18 + $0x470] sm:$0xff] }
  0x8d   : > { %v6316_v55 = vpop.permute.xlu1 %593  ;;  %10994 = vst [vmem:[#allocation19_spill] sm:$0xff] %v6426_v53 }
  0x8e   : > { %v6318_v56 = vpop.permute.xlu0 %589 }
  0x92   : > { %783 = vrot.lane.b32.xlu2 %v6321_v57, %s6054_s25 }
  0x93   : > { %781 = vrot.lane.b32.xlu1 %v6324_v58, %s6054_s25 }
  0x94   : > { %779 = vrot.lane.b32.xlu0 %v6327_v59, %s6054_s25  ;;  %v6335_v60 = vpop.permute.xlu2 %653 }
  0x95   : > { %v6337_v61 = vpop.permute.xlu1 %601 }
  0x96   : > { %v6339_v62 = vpop.permute.xlu0 %599 }
  0x9a   : > { %789 = vrot.lane.b32.xlu2 %v6342_v63, %s6054_s25  ;;  %v6509_v63 = vld [vmem:[%s10873_s1 + $0x18] sm:$0x7] }
  0x9b   : > { %787 = vrot.lane.b32.xlu1 %v6345_v0, %s6054_s25  ;;  %v6492_v0 = vld [vmem:[%s6132_s18 + $0x1b1] sm:$0xff]  ;;  %5413 = vmatpush.msk.msra.mxu0 %vm935_vm0, %v6509_v63 }
  0x9c   : > { %785 = vrot.lane.b32.xlu0 %v6348_v1, %s6054_s25  ;;  %v6356_v2 = vpop.permute.xlu2 %659  ;;  %11002 = vst [vmem:[#allocation27_spill] sm:$0xff] %v6492_v0  ;;  %5515 = vmatpush.msk.msra.mxu1 %vm935_vm0, %v6509_v63 }
  0x9d   : > { %10984 = vst [vmem:[#allocation9_spill] sm:$0xff] %v6356_v2  ;;  %v6358_v3 = vpop.permute.xlu1 %623  ;;  %5431 = vmatpush.msk.msra.mxu2 %vm935_vm0, %v6509_v63  ;;  %5519 = vmatpush.msk.msra.mxu3 %vm935_vm0, %v6509_v63 }
  0x9e   : > { %v6360_v4 = vpop.permute.xlu0 %621 }
  0xa2   : > { %811 = vrot.lane.b32.xlu2 %v6363_v5, %s6055_s26  ;;  %v6486_v5 = vld [vmem:[%s6132_s18 + $0x2d1] sm:$0xff] }
  0xa3   : > { %793 = vrot.lane.b32.xlu1 %v6366_v7, %s6054_s25  ;;  %v6471_v7 = vld [vmem:[%s6132_s18 + $0x1] sm:$0xff]  ;;  %11000 = vst [vmem:[#allocation25_spill] sm:$0xff] %v6486_v5 }
  0xa4   : > { %791 = vrot.lane.b32.xlu0 %v6369_v8, %s6054_s25  ;;  %v6377_v15 = vpop.permute.xlu2 %665  ;;  %10998 = vst [vmem:[#allocation23_spill] sm:$0xff] %v6471_v7 }
  0xa5   : > { %v6379_v16 = vpop.permute.xlu1 %629 }
  0xa6   : > { %v6381_v18 = vpop.permute.xlu0 %627 }
  0xaa   : > { %817 = vrot.lane.b32.xlu2 %v6384_v19, %s6055_s26  ;;  %v6465_v19 = vld [vmem:[%s6132_s18 + $0x121] sm:$0xff] }
  0xab   : > { %815 = vrot.lane.b32.xlu1 %v6387_v20, %s6055_s26  ;;  %10996 = vst [vmem:[#allocation21_spill] sm:$0xff] %v6465_v19 }
  0xac   : > { %813 = vrot.lane.b32.xlu0 %v6390_v21, %s6055_s26  ;;  %v6398_v22 = vpop.permute.xlu2 %687  ;;  %v6489_v21 = vld [vmem:[%s6132_s18 + $0x241] sm:$0xff] }
  0xad   : > { %v6400_v23 = vpop.permute.xlu1 %651  ;;  %11001 = vst [vmem:[#allocation26_spill] sm:$0xff] %v6489_v21 }
  0xae   : > { %v6402_v41 = vpop.permute.xlu0 %633 }
  0xb2   : > { %823 = vrot.lane.b32.xlu2 %v6405_v42, %s6055_s26 }
  0xb3   : > { %821 = vrot.lane.b32.xlu1 %v6408_v45, %s6055_s26 }
  0xb4   : > { %819 = vrot.lane.b32.xlu0 %v6411_v46, %s6055_s26  ;;  %v6419_v47 = vpop.permute.xlu2 %693  ;;  %v6468_v46 = vld [vmem:[%s6132_s18 + $0x91] sm:$0xff] }
  0xb5   : > { %v6421_v51 = vpop.permute.xlu1 %657  ;;  %10997 = vst [vmem:[#allocation22_spill] sm:$0xff] %v6468_v46 }
  0xb6   : > { %v6423_v52 = vpop.permute.xlu0 %655 }
  0xba   : > { %1054 = vrot.lane.b32.xlu2 %v6162_v11, %s6048_s19 }
  0xbb   : > { %1052 = vrot.lane.b32.xlu1 %v6147_v6, %s6048_s19 }
  0xbc   : > { %825 = vrot.lane.b32.xlu0 %v6426_v53, %s6055_s26  ;;  %v6434_v45 = vpop.permute.xlu2 %715 }
  0xbd   : > { %v6436_v42 = vpop.permute.xlu1 %663 }
  0xbe   : > { %v6438_v20 = vpop.permute.xlu0 %661 }
  0xc2   : > { %1060 = vrot.lane.b32.xlu2 %v6177_v14, %s6048_s19 }
  0xc3   : > { %1058 = vrot.lane.b32.xlu1 %v6156_v9, %s6048_s19 }
  0xc4   : > { %1056 = vrot.lane.b32.xlu0 %v6159_v10, %s6048_s19  ;;  %v6446_v6 = vpop.permute.xlu2 %721 }
  0xc5   : > { %v6448_v11 = vpop.permute.xlu1 %685 }
  0xc6   : > { %v6450_v53 = vpop.permute.xlu0 %683 }
  0xca   : > { %1066 = vrot.lane.b32.xlu2 %v6188_v17, %s6048_s19 }
  0xcb   : > { %1064 = vrot.lane.b32.xlu1 %v6171_v12, %s6048_s19 }
  0xcc   : > { %1062 = vrot.lane.b32.xlu0 %v6174_v13, %s6048_s19  ;;  %v6458_v9 = vpop.permute.xlu2 %727 }
  0xcd   : > { %v6460_v10 = vpop.permute.xlu1 %691 }
  0xce   : > { %10995 = vst [vmem:[#allocation20_spill] sm:$0xff] %v6460_v10  ;;  %v6462_v14 = vpop.permute.xlu0 %689 }
  0xd2   : > { %1088 = vrot.lane.b32.xlu2 %v6465_v19, %s6049_s20 }
  0xd3   : > { %1086 = vrot.lane.b32.xlu1 %v6468_v46, %s6049_s20 }
  0xd4   : > { %1084 = vrot.lane.b32.xlu0 %v6471_v7, %s6049_s20  ;;  %v6479_v12 = vpop.permute.xlu2 %749 }
  0xd5   : > { %v6481_v13 = vpop.permute.xlu1 %697 }
  0xd6   : > { %10999 = vst [vmem:[#allocation24_spill] sm:$0xff] %v6481_v13  ;;  %v6483_v17 = vpop.permute.xlu0 %695 }
  0xda   : > { %1094 = vrot.lane.b32.xlu2 %v6486_v5, %s6049_s20  ;;  %v6514_v5 = vld [vmem:[%s10873_s1 + $0x10] sm:$0xff] }
  0xdb   : > { %1092 = vrot.lane.b32.xlu1 %v6489_v21, %s6049_s20  ;;  %v6517_v21 = vld [vmem:[%s6132_s18 + $0x3f1] sm:$0xff]  ;;  %952 = vmatpush.msra.mxu0 %v6514_v5 }
  0xdc   : > { %1090 = vrot.lane.b32.xlu0 %v6492_v0, %s6049_s20  ;;  %v6500_v46 = vpop.permute.xlu2 %755  ;;  %11004 = vst [vmem:[#allocation29_spill] sm:$0xff] %v6517_v21  ;;  %v6524_v0 = vld [vmem:[%s6132_s18 + $0x361] sm:$0xff]  ;;  %5516 = vmatpush.msra.mxu1 %v6514_v5 }
  0xdd   : > { %11003 = vst [vmem:[#allocation28_spill] sm:$0xff] %v6500_v46  ;;  %v6502_v19 = vpop.permute.xlu1 %719  ;;  %v6541_v46 = vld [vmem:[%s10873_s1 + $0x8] sm:$0xff]  ;;  %1786 = vmatpush.msra.mxu2 %v6514_v5  ;;  %5520 = vmatpush.msra.mxu3 %v6514_v5 }
  0xde   : > { %v6504_v7 = vpop.permute.xlu0 %717  ;;  %11005 = vst [vmem:[#allocation30_spill] sm:$0xff] %v6524_v0  ;;  %953 = vmatpush.msra.mxu0 %v6541_v46  ;;  %5517 = vmatpush.msra.mxu1 %v6541_v46 }
  0xdf   : > { %1787 = vmatpush.msra.mxu2 %v6541_v46  ;;  %5521 = vmatpush.msra.mxu3 %v6541_v46 }
  0xe2   : > { %1108 = vrot.lane.b32.xlu2 %v6213_v26, %s6050_s21 }
  0xe3   : > { %1098 = vrot.lane.b32.xlu1 %v6517_v21, %s6049_s20  ;;  %v6557_v21 = vld [vmem:[%s10873_s1] sm:$0xff] }
  0xe4   : > { %1096 = vrot.lane.b32.xlu0 %v6524_v0, %s6049_s20  ;;  %v6544_v8 = vpop.permute.xlu2 %761  ;;  %954 = vmatpush.msra.mxu0 %v6557_v21 }
  0xe5   : > { %11006 = vst [vmem:[#allocation31_spill] sm:$0xff] %v6544_v8  ;;  %v6546_v10 = vpop.permute.xlu1 %725  ;;  %5518 = vmatpush.msra.mxu1 %v6557_v21  ;;  %1788 = vmatpush.msra.mxu2 %v6557_v21 }
  0xe6   : > { %v6550_v26 = vpop.permute.xlu0 %723  ;;  %5522 = vmatpush.msra.mxu3 %v6557_v21  ;;  %5449 = vmatpush.msk.msrb.mxu0 %vm935_vm0, %v6509_v63 }
  0xe7   : > { %11007 = vst [vmem:[#allocation32_spill] sm:$0xff] %v6550_v26  ;;  %5422 = vmatpush.msk.msrb.mxu1 %vm935_vm0, %v6509_v63  ;;  %5440 = vmatpush.msk.msrb.mxu2 %vm935_vm0, %v6509_v63 }
  0xe8   : > { %5476 = vmatpush.msk.msrb.mxu3 %vm935_vm0, %v6509_v63  ;;  %2604 = vmatpush.msrb.mxu0 %v6514_v5 }
  0xe9   : > { %1369 = vmatpush.msrb.mxu1 %v6514_v5  ;;  %2203 = vmatpush.msrb.mxu2 %v6514_v5 }
  0xea   : > { %1114 = vrot.lane.b32.xlu2 %v6228_v29, %s6050_s21  ;;  %3823 = vmatpush.msrb.mxu3 %v6514_v5 }
  0xeb   : > { %1112 = vrot.lane.b32.xlu1 %v6207_v24, %s6050_s21  ;;  %1370 = vmatpush.msrb.mxu1 %v6541_v46 }
  0xec   : > { %1110 = vrot.lane.b32.xlu0 %v6210_v25, %s6050_s21  ;;  %v6574_v0 = vpop.permute.xlu2 %783  ;;  %2204 = vmatpush.msrb.mxu2 %v6541_v46 }
  0xed   : > { %v748_v8 = vpop.permute.xlu1 %747  ;;  %1371 = vmatpush.msrb.mxu1 %v6557_v21  ;;  %2605 = vmatpush.msrb.mxu0 %v6541_v46 }
  0xee   : > { %v6578_v26 = vpop.permute.xlu0 %729  ;;  %2205 = vmatpush.msrb.mxu2 %v6557_v21  ;;  %3824 = vmatpush.msrb.mxu3 %v6541_v46 }
  0xef   : > { %11008 = vst [vmem:[#allocation33_spill] sm:$0xff] %v6578_v26  ;;  %2606 = vmatpush.msrb.mxu0 %v6557_v21 }
  0xf0   : > { %3825 = vmatpush.msrb.mxu3 %v6557_v21 }
  0xf2   : > { %1120 = vrot.lane.b32.xlu2 %v6243_v32, %s6050_s21  ;;  %v360_v32 = vld [vmem:[%s6132_s18] sm:$0xff] }
  0xf3   : > { %1118 = vrot.lane.b32.xlu1 %v6222_v27, %s6050_s21  ;;  %v836_v27 = vsel %vm835_vm1, %v360_v32, %v6306_v50 }
  0xf4   : > { %1116 = vrot.lane.b32.xlu0 %v6225_v28, %s6050_s21  ;;  %v6598_v24 = vpop.permute.xlu2 %789  ;;  %v845_v2 = vsel %vm844_vm2, %v836_v27, %v6294_v44 }
  0xf5   : > { %v6600_v25 = vpop.permute.xlu1 %753 }
  0xf6   : > { %v6603_v29 = vpop.permute.xlu0 %751 }
  0xfa   : > { %1134 = vrot.lane.b32.xlu2 %v6258_v35, %s6051_s22  ;;  %v854_v35 = vsel %vm853_vm3, %v845_v2, %v6400_v23 }
  0xfb   : > { %1132 = vrot.lane.b32.xlu1 %v6237_v30, %s6051_s22 }
  0xfc   : > { %1122 = vrot.lane.b32.xlu0 %v6240_v31, %s6050_s21  ;;  %v812_v28 = vpop.permute.xlu2 %811  ;;  %v863_v31 = vsel %vm862_vm4, %v854_v35, %v6450_v53 }
  0xfd   : > { %v6615_v26 = vpop.permute.xlu1 %759  ;;  %v872_v44 = vsel %vm871_vm5, %v863_v31, %v6434_v45  ;;  %v6659_v31 = vld [vmem:[%s6132_s18 + $0xc1] sm:$0xff] }
  0xfe   : > { %v6617_v13 = vpop.permute.xlu0 %757  ;;  %v881_v35 = vsel %vm880_vm6, %v872_v44, %v748_v8  ;;  %11010 = vst [vmem:[#allocation35_spill] sm:$0xff] %v6659_v31  ;;  %v361_v44 = vld [vmem:[%s6132_s18 + $0x90] sm:$0xff] }
 0x102   : > { %1140 = vrot.lane.b32.xlu2 %v6275_v39, %s6051_s22  ;;  %v6689_v39 = vld [vmem:[%s6132_s18 + $0x271] sm:$0xff] }
 0x103   : > { %1138 = vrot.lane.b32.xlu1 %v6252_v33, %s6051_s22  ;;  %v365_v33 = vld [vmem:[%s6132_s18 + $0x2d0] sm:$0xff] }
 0x104   : > { %1136 = vrot.lane.b32.xlu0 %v6255_v34, %s6051_s22  ;;  %v6633_v50 = vpop.permute.xlu2 %817 }
 0x105   : > { %v782_v2 = vpop.permute.xlu1 %781 }
 0x106   : > { %v780_v23 = vpop.permute.xlu0 %779 }
 0x107   : > { %v890_v53 = vsel %vm889_vm8, %v881_v35, %v780_v23  ;;  %v6664_v35 = vld [vmem:[%s6132_s18 + $0x31] sm:$0xff]  ;;  %v837_v23 = vsel %vm835_vm1, %v361_v44, %v6318_v56  ;;  %v362_v56 = vld [vmem:[%s6132_s18 + $0x120] sm:$0xff] }
 0x108   : > { %v899_v32 = vsel %vm898_vm7, %v890_v53, %v812_v28  ;;  %v6656_v28 = vld [vmem:[%s6132_s18 + $0x151] sm:$0xff]  ;;  %v846_v53 = vsel %vm844_vm2, %v837_v23, %v6360_v4  ;;  %v6695_v4 = vld [vmem:[%s6132_s18 + $0x1e1] sm:$0xff] }
 0x109   : > { %5414 = vmatmul.msk.f32.vlgmr.msra.gmra.mxu0 %vm910_vm9, %v899_v32  ;;  %11009 = vst [vmem:[#allocation34_spill] sm:$0xff] %v6656_v28 }
 0x10a   : > { %5485 = vmatpush.msk.msra.mxu0 %vm935_vm0, %v6509_v63  ;;  %1146 = vrot.lane.b32.xlu2 %v6288_v43, %s6051_s22 }
 0x10b   : > { %1144 = vrot.lane.b32.xlu1 %v6269_v37, %s6051_s22 }
 0x10c   : > { %1142 = vrot.lane.b32.xlu0 %v6272_v38, %s6051_s22  ;;  %4224 = vmatpush.msra.mxu0 %v6514_v5  ;;  %v6648_v8 = vpop.permute.xlu2 %823 }
 0x10d   : > { %v6650_v45 = vpop.permute.xlu1 %787 }
 0x10e   : > { %v6652_v27 = vpop.permute.xlu0 %785  ;;  %4225 = vmatpush.msra.mxu0 %v6541_v46 }
 0x110   : > { %4226 = vmatpush.msra.mxu0 %v6557_v21 }
 0x112   : > { %1168 = vrot.lane.b32.xlu2 %v6656_v28, %s6052_s23  ;;  %v855_v28 = vsel %vm853_vm3, %v846_v53, %v6335_v60  ;;  %v838_v60 = vsel %vm835_vm1, %v362_v56, %v6304_v49  ;;  %v366_v53 = vld [vmem:[%s6132_s18 + $0x360] sm:$0xff] }
 0x113   : > { %1166 = vrot.lane.b32.xlu1 %v6659_v31, %s6052_s23  ;;  %v6686_v31 = vld [vmem:[%s6132_s18 + $0x301] sm:$0xff]  ;;  %v864_v44 = vsel %vm862_vm4, %v855_v28, %v6448_v11 }
 0x114   : > { %1164 = vrot.lane.b32.xlu0 %v6664_v35, %s6052_s23  ;;  %v6676_v32 = vpop.permute.xlu2 %1054  ;;  %v873_v23 = vsel %vm871_vm5, %v864_v44, %v6504_v7  ;;  %v847_v7 = vsel %vm844_vm2, %v838_v60, %v6358_v3  ;;  %v363_v44 = vld [vmem:[%s6132_s18 + $0x1b0] sm:$0xff]  ;;  %v6729_v60 = vld [vmem:[%s6132_s18 + $0x421] sm:$0xff] }
 0x115   : > { %11011 = vst [vmem:[#allocation36_spill] sm:$0xff] %v6676_v32  ;;  %v6678_v37 = vpop.permute.xlu1 %793  ;;  %v841_v32 = vsel %vm835_vm1, %v365_v33, %v6283_v40  ;;  %v882_v40 = vsel %vm880_vm6, %v873_v23, %v6479_v12  ;;  %v842_v12 = vsel %vm835_vm1, %v366_v53, %v6339_v62 }
 0x116   : > { %v6680_v43 = vpop.permute.xlu0 %791  ;;  %v850_v11 = vsel %vm844_vm2, %v841_v32, %v6379_v16  ;;  %v856_v16 = vsel %vm853_vm3, %v847_v7, %v6423_v52  ;;  %v891_v32 = vsel %vm889_vm8, %v882_v40, %v782_v2  ;;  %v6738_v2 = vld [vmem:[%s6132_s18 + $0x391] sm:$0xff] }
 0x117   : > { %v859_v33 = vsel %vm853_vm3, %v850_v11, %v6438_v20  ;;  %v865_v23 = vsel %vm862_vm4, %v856_v16, %v6398_v22  ;;  %v839_v11 = vsel %vm835_vm1, %v363_v44, %v6316_v55  ;;  %v851_v22 = vsel %vm844_vm2, %v842_v12, %v6314_v54  ;;  %v11019_v44 = vld [vmem:[#allocation7_spill] sm:$0xff]  ;;  %v11021_v12 = vld [vmem:[#allocation8_spill] sm:$0xff] }
 0x118   : > { %v868_v20 = vsel %vm862_vm4, %v859_v33, %v6419_v47  ;;  %v874_v47 = vsel %vm871_vm5, %v865_v23, %v6502_v19  ;;  %v848_v55 = vsel %vm844_vm2, %v839_v11, %v6302_v48  ;;  %v860_v19 = vsel %vm853_vm3, %v851_v22, %v6436_v42  ;;  %v11022_v23 = vld [vmem:[#allocation28_spill] sm:$0xff] }
 0x119   : > { %v877_v52 = vsel %vm871_vm5, %v868_v20, %v6546_v10  ;;  %v883_v62 = vsel %vm880_vm6, %v874_v47, %v6603_v29  ;;  %v857_v29 = vsel %vm853_vm3, %v848_v55, %v6421_v51  ;;  %v869_v54 = vsel %vm862_vm4, %v860_v19, %v6483_v17  ;;  %v364_v51 = vld [vmem:[%s6132_s18 + $0x240] sm:$0xff] }
 0x11a   : > { %1174 = vrot.lane.b32.xlu2 %v6686_v31, %s6052_s23  ;;  %v886_v7 = vsel %vm880_vm6, %v877_v52, %v6617_v13  ;;  %v892_v48 = vsel %vm889_vm8, %v883_v62, %v6574_v0  ;;  %v866_v42 = vsel %vm862_vm4, %v857_v29, %v6462_v14  ;;  %v878_v17 = vsel %vm871_vm5, %v869_v54, %v6458_v9 }
 0x11b   : > { %1172 = vrot.lane.b32.xlu1 %v6689_v39, %s6052_s23  ;;  %v895_v13 = vsel %vm889_vm8, %v886_v7, %v6598_v24  ;;  %v367_v24 = vld [vmem:[%s6132_s18 + $0x3f0] sm:$0xff]  ;;  %v875_v0 = vsel %vm871_vm5, %v866_v42, %v6446_v6  ;;  %v887_v14 = vsel %vm880_vm6, %v878_v17, %v6615_v26  ;;  %v840_v6 = vsel %vm835_vm1, %v364_v51, %v6266_v36  ;;  %v11029_v51 = vld [vmem:[#allocation19_spill] sm:$0xff] }
 0x11c   : > { %1170 = vrot.lane.b32.xlu0 %v6695_v4, %s6052_s23  ;;  %v6717_v28 = vpop.permute.xlu2 %1060  ;;  %v884_v16 = vsel %vm880_vm6, %v875_v0, %v6600_v25  ;;  %v11014_v26 = vld [vmem:[#allocation24_spill] sm:$0xff]  ;;  %v11031_v0 = vld [vmem:[#allocation17_spill] sm:$0xff] }
 0x11d   : > { %v816_v49 = vpop.permute.xlu1 %815  ;;  %v11030_v17 = vld [vmem:[#allocation16_spill] sm:$0xff] }
 0x11e   : > { %v814_v56 = vpop.permute.xlu0 %813  ;;  %v901_v53 = vsel %vm898_vm7, %v892_v48, %v816_v49  ;;  %v843_v49 = vsel %vm835_vm1, %v367_v24, %v6337_v61  ;;  %v893_v61 = vsel %vm889_vm8, %v884_v16, %v6652_v27  ;;  %v11015_v27 = vld [vmem:[#allocation20_spill] sm:$0xff]  ;;  %v11027_v48 = vld [vmem:[#allocation13_spill] sm:$0xff] }
 0x11f   : > { %v900_v3 = vsel %vm898_vm7, %v891_v32, %v814_v56 }
 0x120   : > { %5415 = vmatmul.msk.f32.gmra.mxu0 %vm910_vm9, %v900_v3  ;;  %v11020_v3 = vld [vmem:[#allocation31_spill] sm:$0xff] }
 0x122   : > { %1188 = vrot.lane.b32.xlu2 %v6327_v59, %s6053_s24 }
 0x123   : > { %1178 = vrot.lane.b32.xlu1 %v6729_v60, %s6052_s23 }
 0x124   : > { %1176 = vrot.lane.b32.xlu0 %v6738_v2, %s6052_s23  ;;  %v6760_v10 = vpop.permute.xlu2 %1066 }
 0x125   : > { %11012 = vst [vmem:[#allocation37_spill] sm:$0xff] %v6760_v10  ;;  %v822_v59 = vpop.permute.xlu1 %821 }
 0x126   : > { %v820_v33 = vpop.permute.xlu0 %819  ;;  %v904_v40 = vsel %vm898_vm7, %v895_v13, %v822_v59  ;;  %v11023_v59 = vld [vmem:[#allocation15_spill] sm:$0xff] }
 0x127   : > { %5419 = vmatmul.msk.f32.vlgmr.msra.gmra.mxu1 %vm910_vm9, %v904_v40  ;;  %v11025_v13 = vld [vmem:[#allocation11_spill] sm:$0xff]  ;;  %v11028_v40 = vld [vmem:[#allocation14_spill] sm:$0xff] }
 0x128   : > { %5416 = vmatmul.msk.f32.gmra.mxu0 %vm910_vm9, %v901_v53  ;;  %5458 = vmatpush.msk.msra.mxu1 %vm935_vm0, %v6509_v63  ;;  %v896_v63 = vsel %vm889_vm8, %v887_v14, %v6680_v43  ;;  %v849_v43 = vsel %vm844_vm2, %v840_v6, %v6381_v18  ;;  %v6895_v6 = vld [vmem:[%s6132_s18 + $0xf1] sm:$0xff] }
 0x129   : > { %v905_v36 = vsel %vm898_vm7, %v896_v63, %v6648_v8  ;;  %v6892_v63 = vld [vmem:[%s6132_s18 + $0x181] sm:$0xff] }
 0x12a   : > { %3005 = vmatpush.msra.mxu1 %v6514_v5  ;;  %1194 = vrot.lane.b32.xlu2 %v6348_v1, %s6053_s24  ;;  %v852_v5 = vsel %vm844_vm2, %v843_v49, %v6402_v41 }
 0x12b   : > { %1192 = vrot.lane.b32.xlu1 %v6321_v57, %s6053_s24  ;;  %v861_v41 = vsel %vm853_vm3, %v852_v5, %v6377_v15  ;;  %v11017_v15 = vld [vmem:[#allocation32_spill] sm:$0xff]  ;;  %v6898_v5 = vld [vmem:[%s6132_s18 + $0x61] sm:$0xff] }
 0x12c   : > { %1190 = vrot.lane.b32.xlu0 %v6324_v58, %s6053_s24  ;;  %3006 = vmatpush.msra.mxu1 %v6541_v46  ;;  %v6808_v1 = vpop.permute.xlu2 %1088  ;;  %v902_v58 = vsel %vm898_vm7, %v893_v61, %v6633_v50  ;;  %v11013_v46 = vld [vmem:[#allocation9_spill] sm:$0xff]  ;;  %v870_v25 = vsel %vm862_vm4, %v861_v41, %v11014_v26  ;;  %v11018_v50 = vld [vmem:[#allocation12_spill] sm:$0xff]  ;;  %v6916_v41 = vld [vmem:[%s6132_s18 + $0x2a1] sm:$0xff] }
 0x12d   : > { %v6810_v57 = vpop.permute.xlu1 %1052  ;;  %v858_v18 = vsel %vm853_vm3, %v849_v43, %v11013_v46  ;;  %11036 = vst [vmem:[#allocation32_spill] sm:$0xff] %v6916_v41 }
 0x12e   : > { %v826_v9 = vpop.permute.xlu0 %825  ;;  %3007 = vmatpush.msra.mxu1 %v6557_v21  ;;  %v867_v8 = vsel %vm862_vm4, %v858_v18, %v11015_v27  ;;  %v11016_v21 = vld [vmem:[#allocation33_spill] sm:$0xff]  ;;  %v6937_v27 = vld [vmem:[%s6132_s18 + $0x3c1] sm:$0xff] }
 0x12f   : > { %5420 = vmatmul.msk.f32.gmra.mxu1 %vm910_vm9, %v905_v36  ;;  %v879_v32 = vsel %vm871_vm5, %v870_v25, %v11016_v21  ;;  %v876_v56 = vsel %vm871_vm5, %v867_v8, %v11017_v15  ;;  %v6913_v36 = vld [vmem:[%s6132_s18 + $0x331] sm:$0xff]  ;;  %11038 = vst [vmem:[#allocation7_spill] sm:$0xff] %v6937_v27  ;;  %v11039_v8 = vld [vmem:[#allocation23_spill] sm:$0xff] }
 0x130   : > { %5417 = vmatmul.msk.f32.gmra.mxu0 %vm910_vm9, %v902_v58  ;;  %v888_v20 = vsel %vm880_vm6, %v879_v32, %v11020_v3  ;;  %v885_v52 = vsel %vm880_vm6, %v876_v56, %v11022_v23  ;;  %11035 = vst [vmem:[#allocation33_spill] sm:$0xff] %v6913_v36  ;;  %v6919_v58 = vld [vmem:[%s6132_s18 + $0x211] sm:$0xff]  ;;  %v11041_v56 = vld [vmem:[#allocation27_spill] sm:$0xff]  ;;  %v11045_v23 = vld [vmem:[#allocation30_spill] sm:$0xff] }
 0x131   : > { %v897_v11 = vsel %vm889_vm8, %v888_v20, %v6678_v37  ;;  %v894_v62 = vsel %vm889_vm8, %v885_v52, %v6650_v45  ;;  %v11024_v37 = vld [vmem:[#allocation10_spill] sm:$0xff]  ;;  %v6934_v25 = vld [vmem:[%s6132_s18 + $0x451] sm:$0xff] }
 0x132   : > { %1200 = vrot.lane.b32.xlu2 %v11018_v50, %s6053_s24  ;;  %v906_v55 = vsel %vm898_vm7, %v897_v11, %v826_v9  ;;  %v903_v19 = vsel %vm898_vm7, %v894_v62, %v820_v33  ;;  %v11026_v33 = vld [vmem:[#allocation18_spill] sm:$0xff]  ;;  %11037 = vst [vmem:[#allocation12_spill] sm:$0xff] %v6934_v25  ;;  %v11042_v50 = vld [vmem:[#allocation21_spill] sm:$0xff] }
 0x133   : > { %1198 = vrot.lane.b32.xlu1 %v11019_v44, %s6053_s24  ;;  %v11043_v44 = vld [vmem:[#allocation22_spill] sm:$0xff]  ;;  %v11046_v52 = vld [vmem:[#allocation25_spill] sm:$0xff] }
 0x134   : > { %1196 = vrot.lane.b32.xlu0 %v11021_v12, %s6053_s24  ;;  %v6843_v47 = vpop.permute.xlu2 %1094  ;;  %v11047_v11 = vld [vmem:[#allocation26_spill] sm:$0xff] }
 0x135   : > { %v6845_v7 = vpop.permute.xlu1 %1058 }
 0x136   : > { %v6849_v22 = vpop.permute.xlu0 %1056 }
 0x137   : > { %5421 = vmatmul.msk.f32.gmra.mxu1 %vm910_vm9, %v906_v55 }
 0x138   : > { %5418 = vmatmul.msk.f32.gmra.mxu0 %vm910_vm9, %v903_v19 }
 0x13a   : > { %1214 = vrot.lane.b32.xlu2 %v11023_v59, %s6054_s25 }
 0x13b   : > { %1212 = vrot.lane.b32.xlu1 %v11024_v37, %s6054_s25 }
 0x13c   : > { %1202 = vrot.lane.b32.xlu0 %v11025_v13, %s6053_s24  ;;  %v6861_v45 = vpop.permute.xlu2 %1108  ;;  %v5246_v13 = vld [vmem:[%s6132_s18 + $0xa1] sm:$0xff] }
 0x13d   : > { %v6863_v29 = vpop.permute.xlu1 %1064 }
 0x13e   : > { %v6865_v54 = vpop.permute.xlu0 %1062 }
 0x142   : > { %1220 = vrot.lane.b32.xlu2 %v11026_v33, %s6054_s25 }
 0x143   : > { %1218 = vrot.lane.b32.xlu1 %v11027_v48, %s6054_s25 }
 0x144   : > { %1216 = vrot.lane.b32.xlu0 %v11028_v40, %s6054_s25  ;;  %v6873_v42 = vpop.permute.xlu2 %1114 }
 0x145   : > { %v6875_v53 = vpop.permute.xlu1 %1086 }
 0x146   : > { %v6877_v24 = vpop.permute.xlu0 %1084 }
 0x14a   : > { %1226 = vrot.lane.b32.xlu2 %v11029_v51, %s6054_s25 }
 0x14b   : > { %1224 = vrot.lane.b32.xlu1 %v11030_v17, %s6054_s25 }
 0x14c   : > { %1222 = vrot.lane.b32.xlu0 %v11031_v0, %s6054_s25  ;;  %v6885_v14 = vpop.permute.xlu2 %1120 }
 0x14d   : > { %11032 = vst [vmem:[#allocation9_spill] sm:$0xff] %v6885_v14  ;;  %v6887_v49 = vpop.permute.xlu1 %1092 }
 0x14e   : > { %v6889_v16 = vpop.permute.xlu0 %1090 }
 0x152   : > { %1248 = vrot.lane.b32.xlu2 %v6892_v63, %s6055_s26 }
 0x153   : > { %1246 = vrot.lane.b32.xlu1 %v6895_v6, %s6055_s26 }
 0x154   : > { %1244 = vrot.lane.b32.xlu0 %v6898_v5, %s6055_s26  ;;  %v6906_v61 = vpop.permute.xlu2 %1134 }
 0x155   : > { %v6908_v43 = vpop.permute.xlu1 %1098 }
 0x156   : > { %11033 = vst [vmem:[#allocation24_spill] sm:$0xff] %v6908_v43  ;;  %v6910_v9 = vpop.permute.xlu0 %1096  ;;  %v5250_v43 = vld [vmem:[%s6132_s18 + $0x2e1] sm:$0xff] }
 0x157   : > { %11034 = vst [vmem:[#allocation20_spill] sm:$0xff] %v6910_v9  ;;  %v5288_v9 = vld [vmem:[%s6132_s18 + $0x1f1] sm:$0xff] }
 0x15a   : > { %1254 = vrot.lane.b32.xlu2 %v6913_v36, %s6055_s26  ;;  %v11057_v36 = vld [vmem:[#allocation4_spill] sm:$0xff] }
 0x15b   : > { %1252 = vrot.lane.b32.xlu1 %v6916_v41, %s6055_s26 }
 0x15c   : > { %1250 = vrot.lane.b32.xlu0 %v6919_v58, %s6055_s26  ;;  %v6927_v46 = vpop.permute.xlu2 %1140 }
 0x15d   : > { %v6929_v18 = vpop.permute.xlu1 %1112 }
 0x15e   : > { %v6931_v26 = vpop.permute.xlu0 %1110 }
 0x162   : > { %1469 = vrot.lane.b32.xlu2 %v11039_v8, %s6048_s19  ;;  %v5245_v8 = vld [vmem:[%s6132_s18 + $0x11] sm:$0xff] }
 0x163   : > { %1258 = vrot.lane.b32.xlu1 %v6934_v25, %s6055_s26  ;;  %v5247_v25 = vld [vmem:[%s6132_s18 + $0x131] sm:$0xff] }
 0x164   : > { %1256 = vrot.lane.b32.xlu0 %v6937_v27, %s6055_s26  ;;  %v6945_v21 = vpop.permute.xlu2 %1146  ;;  %v11059_v27 = vld [vmem:[#allocation34_spill] sm:$0xff] }
 0x165   : > { %11040 = vst [vmem:[#allocation31_spill] sm:$0xff] %v6945_v21  ;;  %v6947_v32 = vpop.permute.xlu1 %1118  ;;  %v5252_v21 = vld [vmem:[%s6132_s18 + $0x401] sm:$0xff] }
 0x166   : > { %v6949_v15 = vpop.permute.xlu0 %1116 }
 0x16a   : > { %1475 = vrot.lane.b32.xlu2 %v11041_v56, %s6048_s19  ;;  %v11048_v56 = vld [vmem:[#allocation29_spill] sm:$0xff] }
 0x16b   : > { %1473 = vrot.lane.b32.xlu1 %v11042_v50, %s6048_s19 }
 0x16c   : > { %1471 = vrot.lane.b32.xlu0 %v11043_v44, %s6048_s19  ;;  %v6957_v3 = vpop.permute.xlu2 %1168 }
 0x16d   : > { %v6959_v20 = vpop.permute.xlu1 %1132 }
 0x16e   : > { %v6961_v12 = vpop.permute.xlu0 %1122 }
 0x16f   : > { %11044 = vst [vmem:[#allocation8_spill] sm:$0xff] %v6961_v12  ;;  %v5251_v12 = vld [vmem:[%s6132_s18 + $0x371] sm:$0xff] }
 0x172   : > { %1481 = vrot.lane.b32.xlu2 %v11045_v23, %s6048_s19 }
 0x173   : > { %1479 = vrot.lane.b32.xlu1 %v11046_v52, %s6048_s19  ;;  %v5249_v52 = vld [vmem:[%s6132_s18 + $0x251] sm:$0xff] }
 0x174   : > { %1477 = vrot.lane.b32.xlu0 %v11047_v11, %s6048_s19  ;;  %v6969_v62 = vpop.permute.xlu2 %1174  ;;  %v5248_v11 = vld [vmem:[%s6132_s18 + $0x1c1] sm:$0xff] }
 0x175   : > { %v6971_v55 = vpop.permute.xlu1 %1138 }
 0x176   : > { %v6973_v19 = vpop.permute.xlu0 %1136 }
 0x17a   : > { %1503 = vrot.lane.b32.xlu2 %v5246_v13, %s6049_s20 }
 0x17b   : > { %1501 = vrot.lane.b32.xlu1 %v5245_v8, %s6049_s20 }
 0x17c   : > { %1483 = vrot.lane.b32.xlu0 %v11048_v56, %s6048_s19  ;;  %v6981_v50 = vpop.permute.xlu2 %1188 }
 0x17d   : > { %v6983_v44 = vpop.permute.xlu1 %1144 }
 0x17e   : > { %11049 = vst [vmem:[#allocation28_spill] sm:$0xff] %v6983_v44  ;;  %v6985_v23 = vpop.permute.xlu0 %1142  ;;  %v5285_v44 = vld [vmem:[%s6132_s18 + $0x41] sm:$0xff] }
 0x182   : > { %1509 = vrot.lane.b32.xlu2 %v5249_v52, %s6049_s20 }
 0x183   : > { %1507 = vrot.lane.b32.xlu1 %v5248_v11, %s6049_s20 }
 0x184   : > { %1505 = vrot.lane.b32.xlu0 %v5247_v25, %s6049_s20  ;;  %v6993_v13 = vpop.permute.xlu2 %1194  ;;  %v11051_v25 = vld [vmem:[#allocation3_spill] sm:$0xff] }
 0x185   : > { %v6995_v8 = vpop.permute.xlu1 %1166 }
 0x186   : > { %v1165_v56 = vpop.permute.xlu0 %1164 }
 0x18a   : > { %1515 = vrot.lane.b32.xlu2 %v5252_v21, %s6049_s20 }
 0x18b   : > { %1513 = vrot.lane.b32.xlu1 %v5251_v12, %s6049_s20 }
 0x18c   : > { %1511 = vrot.lane.b32.xlu0 %v5250_v43, %s6049_s20  ;;  %v7003_v41 = vpop.permute.xlu2 %1200 }
 0x18d   : > { %11050 = vst [vmem:[#allocation15_spill] sm:$0xff] %v7003_v41  ;;  %v7005_v52 = vpop.permute.xlu1 %1172  ;;  %v11054_v41 = vld [vmem:[#allocation5_spill] sm:$0xff] }
 0x18e   : > { %v7007_v11 = vpop.permute.xlu0 %1170 }
 0x192   : > { %1529 = vrot.lane.b32.xlu2 %v6255_v34, %s6050_s21  ;;  %v11055_v34 = vld [vmem:[#allocation2_spill] sm:$0xff] }
 0x193   : > { %1527 = vrot.lane.b32.xlu1 %v11051_v25, %s6050_s21 }
 0x194   : > { %1525 = vrot.lane.b32.xlu0 %v6237_v30, %s6050_s21  ;;  %v7015_v21 = vpop.permute.xlu2 %1214 }
 0x195   : > { %v7017_v12 = vpop.permute.xlu1 %1178 }
 0x196   : > { %11052 = vst [vmem:[#allocation10_spill] sm:$0xff] %v7017_v12  ;;  %v7019_v43 = vpop.permute.xlu0 %1176  ;;  %v11056_v12 = vld [vmem:[#allocation6_spill] sm:$0xff] }
 0x197   : > { %11053 = vst [vmem:[#allocation11_spill] sm:$0xff] %v7019_v43 }
 0x19a   : > { %1535 = vrot.lane.b32.xlu2 %v6272_v38, %s6050_s21 }
 0x19b   : > { %1533 = vrot.lane.b32.xlu1 %v11054_v41, %s6050_s21 }
 0x19c   : > { %1531 = vrot.lane.b32.xlu0 %v11055_v34, %s6050_s21  ;;  %v7027_v10 = vpop.permute.xlu2 %1220 }
 0x19d   : > { %v7029_v25 = vpop.permute.xlu1 %1192 }
 0x19e   : > { %v1191_v30 = vpop.permute.xlu0 %1190 }
 0x1a2   : > { %1549 = vrot.lane.b32.xlu2 %v6664_v35, %s6051_s22  ;;  %v11060_v35 = vld [vmem:[#allocation35_spill] sm:$0xff] }
 0x1a3   : > { %1539 = vrot.lane.b32.xlu1 %v11056_v12, %s6050_s21 }
 0x1a4   : > { %1537 = vrot.lane.b32.xlu0 %v11057_v36, %s6050_s21  ;;  %v7037_v38 = vpop.permute.xlu2 %1226 }
 0x1a5   : > { %11058 = vst [vmem:[#allocation18_spill] sm:$0xff] %v7037_v38  ;;  %v7039_v41 = vpop.permute.xlu1 %1198  ;;  %v5286_v38 = vld [vmem:[%s6132_s18 + $0xd1] sm:$0xff] }
 0x1a6   : > { %v7041_v34 = vpop.permute.xlu0 %1196 }
 0x1aa   : > { %1555 = vrot.lane.b32.xlu2 %v6695_v4, %s6051_s22 }
 0x1ab   : > { %1553 = vrot.lane.b32.xlu1 %v11059_v27, %s6051_s22 }
 0x1ac   : > { %1551 = vrot.lane.b32.xlu0 %v11060_v35, %s6051_s22  ;;  %v7049_v12 = vpop.permute.xlu2 %1248 }
 0x1ad   : > { %v1213_v36 = vpop.permute.xlu1 %1212 }
 0x1ae   : > { %v7051_v43 = vpop.permute.xlu0 %1202 }
 0x1af   : > { %11061 = vst [vmem:[#allocation13_spill] sm:$0xff] %v7051_v43 }
 0x1b2   : > { %1561 = vrot.lane.b32.xlu2 %v6738_v2, %s6051_s22  ;;  %v5839_v2 = vld [vmem:[%s6132_s18 + $0x10] sm:$0xff] }
 0x1b3   : > { %1559 = vrot.lane.b32.xlu1 %v6686_v31, %s6051_s22  ;;  %v1268_v31 = vsel %vm835_vm1, %v5839_v2, %v6810_v57  ;;  %v5287_v2 = vld [vmem:[%s6132_s18 + $0x161] sm:$0xff] }
 0x1b4   : > { %1557 = vrot.lane.b32.xlu0 %v6689_v39, %s6051_s22  ;;  %v7059_v4 = vpop.permute.xlu2 %1254  ;;  %v1276_v39 = vsel %vm844_vm2, %v1268_v31, %v6877_v24  ;;  %v5840_v24 = vld [vmem:[%s6132_s18 + $0xa0] sm:$0xff]  ;;  %v11064_v31 = vld [vmem:[#allocation36_spill] sm:$0xff] }
 0x1b5   : > { %11062 = vst [vmem:[#allocation14_spill] sm:$0xff] %v7059_v4  ;;  %v7061_v27 = vpop.permute.xlu1 %1218 }
 0x1b6   : > { %v1217_v35 = vpop.permute.xlu0 %1216 }
 0x1ba   : > { %1583 = vrot.lane.b32.xlu2 %v5286_v38, %s6052_s23  ;;  %v5289_v38 = vld [vmem:[%s6132_s18 + $0x281] sm:$0xff] }
 0x1bb   : > { %1581 = vrot.lane.b32.xlu1 %v5285_v44, %s6052_s23  ;;  %v1284_v44 = vsel %vm853_vm3, %v1276_v39, %v6861_v45  ;;  %v1269_v45 = vsel %vm835_vm1, %v5840_v24, %v11064_v31  ;;  %v5291_v24 = vld [vmem:[%s6132_s18 + $0x3a1] sm:$0xff]  ;;  %v5290_v31 = vld [vmem:[%s6132_s18 + $0x311] sm:$0xff] }
 0x1bc   : > { %1563 = vrot.lane.b32.xlu0 %v6729_v60, %s6051_s22  ;;  %v7074_v43 = vpop.permute.xlu2 %1469  ;;  %v1292_v57 = vsel %vm862_vm4, %v1284_v44, %v6959_v20  ;;  %v1277_v20 = vsel %vm844_vm2, %v1269_v45, %v6875_v53 }
 0x1bd   : > { %11063 = vst [vmem:[#allocation19_spill] sm:$0xff] %v7074_v43  ;;  %v7076_v14 = vpop.permute.xlu1 %1224  ;;  %v1300_v60 = vsel %vm871_vm5, %v1292_v57, %v1165_v56  ;;  %v1285_v44 = vsel %vm853_vm3, %v1277_v20, %v6931_v26 }
 0x1be   : > { %v7078_v4 = vpop.permute.xlu0 %1222  ;;  %v1308_v39 = vsel %vm880_vm6, %v1300_v60, %v6981_v50  ;;  %v1293_v53 = vsel %vm862_vm4, %v1285_v44, %v6906_v61  ;;  %v5841_v50 = vld [vmem:[%s6132_s18 + $0x130] sm:$0xff] }
 0x1bf   : > { %v1270_v60 = vsel %vm835_vm1, %v5841_v50, %v6849_v22  ;;  %v1301_v26 = vsel %vm871_vm5, %v1293_v53, %v6995_v8 }
 0x1c0   : > { %v1278_v61 = vsel %vm844_vm2, %v1270_v60, %v6808_v1  ;;  %v11067_v60 = vld [vmem:[#allocation9_spill] sm:$0xff] }
 0x1c1   : > { %v1286_v22 = vsel %vm853_vm3, %v1278_v61, %v6929_v18  ;;  %v5842_v18 = vld [vmem:[%s6132_s18 + $0x1c0] sm:$0xff]  ;;  %v11070_v61 = vld [vmem:[#allocation7_spill] sm:$0xff] }
 0x1c2   : > { %1589 = vrot.lane.b32.xlu2 %v5289_v38, %s6052_s23 }
 0x1c3   : > { %1587 = vrot.lane.b32.xlu1 %v5288_v9, %s6052_s23  ;;  %v1316_v9 = vsel %vm889_vm8, %v1308_v39, %v1213_v36  ;;  %v1309_v36 = vsel %vm880_vm6, %v1301_v26, %v1191_v30  ;;  %v1294_v30 = vsel %vm862_vm4, %v1286_v22, %v6973_v19  ;;  %v1271_v19 = vsel %vm835_vm1, %v5842_v18, %v6845_v7  ;;  %v11069_v26 = vld [vmem:[#allocation11_spill] sm:$0xff]  ;;  %v11071_v22 = vld [vmem:[#allocation33_spill] sm:$0xff] }
 0x1c4   : > { %1585 = vrot.lane.b32.xlu0 %v5287_v2, %s6052_s23  ;;  %v7098_v56 = vpop.permute.xlu2 %1475  ;;  %v5292_v2 = vld [vmem:[%s6132_s18 + $0x431] sm:$0xff]  ;;  %v1317_v8 = vsel %vm889_vm8, %v1309_v36, %v7015_v21  ;;  %v1302_v1 = vsel %vm871_vm5, %v1294_v30, %v6957_v3  ;;  %v1279_v3 = vsel %vm844_vm2, %v1271_v19, %v6889_v16 }
 0x1c5   : > { %v1247_v38 = vpop.permute.xlu1 %1246  ;;  %v1310_v44 = vsel %vm880_vm6, %v1302_v1, %v7029_v25  ;;  %v1287_v7 = vsel %vm853_vm3, %v1279_v3, %v6873_v42  ;;  %v11073_v30 = vld [vmem:[#allocation32_spill] sm:$0xff] }
 0x1c6   : > { %v1245_v57 = vpop.permute.xlu0 %1244  ;;  %v1325_v39 = vsel %vm898_vm7, %v1317_v8, %v1247_v38  ;;  %v1318_v21 = vsel %vm889_vm8, %v1310_v44, %v1217_v35  ;;  %v5843_v35 = vld [vmem:[%s6132_s18 + $0x250] sm:$0xff]  ;;  %v11075_v44 = vld [vmem:[#allocation15_spill] sm:$0xff] }
 0x1c7   : > { %v1324_v43 = vsel %vm898_vm7, %v1316_v9, %v1245_v57 }
 0x1c8   : > { %5423 = vmatmul.msk.f32.vlgmr.msrb.gmra.mxu1 %vm910_vm9, %v1324_v43 }
 0x1ca   : > { %1595 = vrot.lane.b32.xlu2 %v5292_v2, %s6052_s23 }
 0x1cb   : > { %1593 = vrot.lane.b32.xlu1 %v5291_v24, %s6052_s23 }
 0x1cc   : > { %1591 = vrot.lane.b32.xlu0 %v5290_v31, %s6052_s23  ;;  %v7121_v43 = vpop.permute.xlu2 %1481 }
 0x1cd   : > { %v1253_v45 = vpop.permute.xlu1 %1252 }
 0x1ce   : > { %v1251_v20 = vpop.permute.xlu0 %1250 }
 0x1d0   : > { %5424 = vmatmul.msk.f32.gmra.mxu1 %vm910_vm9, %v1325_v39  ;;  %v11074_v39 = vld [vmem:[#allocation24_spill] sm:$0xff] }
 0x1d2   : > { %1609 = vrot.lane.b32.xlu2 %v11028_v40, %s6053_s24 }
 0x1d3   : > { %1607 = vrot.lane.b32.xlu1 %v11023_v59, %s6053_s24  ;;  %v1326_v59 = vsel %vm898_vm7, %v1318_v21, %v7049_v12  ;;  %v1272_v12 = vsel %vm835_vm1, %v5843_v35, %v6717_v28  ;;  %v11076_v21 = vld [vmem:[#allocation8_spill] sm:$0xff]  ;;  %v5326_v35 = vld [vmem:[%s6132_s18 + $0x101] sm:$0xff] }
 0x1d4   : > { %1605 = vrot.lane.b32.xlu0 %v11024_v37, %s6053_s24  ;;  %v7147_v25 = vpop.permute.xlu2 %1503  ;;  %v1295_v37 = vsel %vm862_vm4, %v1287_v7, %v6971_v55  ;;  %v1280_v42 = vsel %vm844_vm2, %v1272_v12, %v6887_v49  ;;  %v5325_v12 = vld [vmem:[%s6132_s18 + $0x71] sm:$0xff] }
 0x1d5   : > { %v7149_v9 = vpop.permute.xlu1 %1258  ;;  %v1303_v16 = vsel %vm871_vm5, %v1295_v37, %v7007_v11 }
 0x1d6   : > { %v7151_v40 = vpop.permute.xlu0 %1256  ;;  %v1311_v55 = vsel %vm880_vm6, %v1303_v16, %v6993_v13  ;;  %v5844_v13 = vld [vmem:[%s6132_s18 + $0x2e0] sm:$0xff] }
 0x1d7   : > { %v1273_v57 = vsel %vm835_vm1, %v5844_v13, %v6865_v54 }
 0x1d8   : > { %5425 = vmatmul.msk.f32.gmra.mxu1 %vm910_vm9, %v1326_v59 }
 0x1da   : > { %1615 = vrot.lane.b32.xlu2 %v11031_v0, %s6053_s24  ;;  %v1288_v0 = vsel %vm853_vm3, %v1280_v42, %v6949_v15  ;;  %v11077_v42 = vld [vmem:[#allocation31_spill] sm:$0xff] }
 0x1db   : > { %1613 = vrot.lane.b32.xlu1 %v11026_v33, %s6053_s24  ;;  %v1319_v33 = vsel %vm889_vm8, %v1311_v55, %v7061_v27  ;;  %v1296_v49 = vsel %vm862_vm4, %v1288_v0, %v6927_v46  ;;  %v1281_v46 = vsel %vm844_vm2, %v1273_v57, %v6843_v47  ;;  %v11078_v0 = vld [vmem:[#allocation10_spill] sm:$0xff] }
 0x1dc   : > { %1611 = vrot.lane.b32.xlu0 %v11027_v48, %s6053_s24  ;;  %v7175_v11 = vpop.permute.xlu2 %1509  ;;  %v1327_v48 = vsel %vm898_vm7, %v1319_v33, %v1251_v20  ;;  %v1304_v15 = vsel %vm871_vm5, %v1296_v49, %v7005_v52  ;;  %v1289_v52 = vsel %vm853_vm3, %v1281_v46, %v6947_v32  ;;  %v11072_v20 = vld [vmem:[#allocation37_spill] sm:$0xff] }
 0x1dd   : > { %v7181_v38 = vpop.permute.xlu1 %1473  ;;  %v1312_v27 = vsel %vm880_vm6, %v1304_v15, %v7041_v34  ;;  %v11079_v33 = vld [vmem:[#allocation13_spill] sm:$0xff]  ;;  %v11081_v15 = vld [vmem:[#allocation18_spill] sm:$0xff] }
 0x1de   : > { %v7183_v28 = vpop.permute.xlu0 %1471 }
 0x1e0   : > { %5426 = vmatmul.msk.f32.gmra.mxu1 %vm910_vm9, %v1327_v48 }
 0x1e2   : > { %1629 = vrot.lane.b32.xlu2 %v6898_v5, %s6054_s25  ;;  %v1320_v5 = vsel %vm889_vm8, %v1312_v27, %v7027_v10  ;;  %v5845_v10 = vld [vmem:[%s6132_s18 + $0x370] sm:$0xff] }
 0x1e3   : > { %1619 = vrot.lane.b32.xlu1 %v11029_v51, %s6053_s24  ;;  %v1297_v51 = vsel %vm862_vm4, %v1289_v52, %v6985_v23  ;;  %v1274_v23 = vsel %vm835_vm1, %v5845_v10, %v6863_v29  ;;  %v5329_v52 = vld [vmem:[%s6132_s18 + $0x2b1] sm:$0xff] }
 0x1e4   : > { %1617 = vrot.lane.b32.xlu0 %v11030_v17, %s6053_s24  ;;  %v7204_v54 = vpop.permute.xlu2 %1515  ;;  %v1328_v17 = vsel %vm898_vm7, %v1320_v5, %v1253_v45  ;;  %v1305_v47 = vsel %vm871_vm5, %v1297_v51, %v6969_v62  ;;  %v11065_v62 = vld [vmem:[#allocation20_spill] sm:$0xff]  ;;  %v5846_v45 = vld [vmem:[%s6132_s18 + $0x400] sm:$0xff] }
 0x1e5   : > { %v7208_v2 = vpop.permute.xlu1 %1479  ;;  %v1313_v32 = vsel %vm880_vm6, %v1305_v47, %v7039_v41  ;;  %v1282_v41 = vsel %vm844_vm2, %v1274_v23, %v11065_v62  ;;  %v1275_v8 = vsel %vm835_vm1, %v5846_v45, %v11072_v20  ;;  %v5328_v5 = vld [vmem:[%s6132_s18 + $0x221] sm:$0xff]  ;;  %v5327_v51 = vld [vmem:[%s6132_s18 + $0x191] sm:$0xff] }
 0x1e6   : > { %v7210_v34 = vpop.permute.xlu0 %1477  ;;  %v1321_v24 = vsel %vm889_vm8, %v1313_v32, %v7078_v4  ;;  %v1290_v29 = vsel %vm853_vm3, %v1282_v41, %v11067_v60  ;;  %v11068_v4 = vld [vmem:[#allocation28_spill] sm:$0xff]  ;;  %v1283_v1 = vsel %vm844_vm2, %v1275_v8, %v11074_v39  ;;  %v5330_v23 = vld [vmem:[%s6132_s18 + $0x341] sm:$0xff] }
 0x1e7   : > { %v1291_v3 = vsel %vm853_vm3, %v1283_v1, %v11076_v21  ;;  %v5331_v10 = vld [vmem:[%s6132_s18 + $0x3d1] sm:$0xff]  ;;  %v5849_v60 = vld [vmem:[%s6132_s18 + $0x40] sm:$0xff]  ;;  %v7362_v21 = vpop.f32.mrf.mxu1 }
 0x1e8   : > { %5427 = vmatmul.msk.f32.gmra.mxu1 %vm910_vm9, %v1328_v17  ;;  %v1299_v55 = vsel %vm862_vm4, %v1291_v3, %v11077_v42  ;;  %v7348_v8 = vld [vmem:[%s6132_s18 + $0x50] sm:$0xff]  ;;  %v5855_v39 = vld [vmem:[%s6132_s18 + $0x3a0] sm:$0xff]  ;;  %11085 = vst [vmem:[#allocation27_spill] sm:$0xff] %v7362_v21 }
 0x1e9   : > { %11083 = vst [vmem:[#allocation17_spill] sm:$0xff] %v7348_v8  ;;  %v7365_v3 = vld [vmem:[%s6132_s18 + $0x200] sm:$0xff] }
 0x1ea   : > { %1635 = vrot.lane.b32.xlu2 %v6919_v58, %s6054_s25  ;;  %11086 = vst [vmem:[#allocation21_spill] sm:$0xff] %v7365_v3 }
 0x1eb   : > { %1633 = vrot.lane.b32.xlu1 %v6892_v63, %s6054_s25  ;;  %v11066_v63 = vld [vmem:[#allocation14_spill] sm:$0xff] }
 0x1ec   : > { %1631 = vrot.lane.b32.xlu0 %v6895_v6, %s6054_s25  ;;  %v7235_v53 = vpop.permute.xlu2 %1529  ;;  %v1329_v50 = vsel %vm898_vm7, %v1321_v24, %v11066_v63  ;;  %v1298_v6 = vsel %vm862_vm4, %v1290_v29, %v11068_v4  ;;  %v5847_v63 = vld [vmem:[%s6132_s18 + $0x160] sm:$0xff] }
 0x1ed   : > { %v7237_v58 = vpop.permute.xlu1 %1501  ;;  %v1306_v36 = vsel %vm871_vm5, %v1298_v6, %v11069_v26  ;;  %v5850_v26 = vld [vmem:[%s6132_s18 + $0x310] sm:$0xff] }
 0x1ee   : > { %v7239_v31 = vpop.permute.xlu0 %1483  ;;  %v1314_v18 = vsel %vm880_vm6, %v1306_v36, %v11075_v44  ;;  %v5851_v36 = vld [vmem:[%s6132_s18 + $0x280] sm:$0xff] }
 0x1ef   : > { %v1322_v59 = vsel %vm889_vm8, %v1314_v18, %v7076_v14  ;;  %v1307_v14 = vsel %vm871_vm5, %v1299_v55, %v11078_v0  ;;  %v7385_v55 = vpop.f32.mrf.mxu1  ;;  %v7388_v0 = vld [vmem:[%s6132_s18 + $0x3b0] sm:$0xff] }
 0x1f0   : > { %5428 = vmatmul.msk.f32.gmra.mxu1 %vm910_vm9, %v1329_v50  ;;  %v1330_v16 = vsel %vm898_vm7, %v1322_v59, %v7151_v40  ;;  %v1315_v48 = vsel %vm880_vm6, %v1307_v14, %v11079_v33  ;;  %v11080_v40 = vld [vmem:[#allocation12_spill] sm:$0xff]  ;;  %11090 = vst [vmem:[#allocation26_spill] sm:$0xff] %v7385_v55  ;;  %v7393_v14 = vld [vmem:[%s6132_s18 + $0x320] sm:$0xff] }
 0x1f1   : > { %v1323_v27 = vsel %vm889_vm8, %v1315_v48, %v11081_v15  ;;  %v5848_v50 = vld [vmem:[%s6132_s18 + $0xd0] sm:$0xff]  ;;  %11091 = vst [vmem:[#allocation29_spill] sm:$0xff] %v7388_v0 }
 0x1f2   : > { %1641 = vrot.lane.b32.xlu2 %v11070_v61, %s6054_s25  ;;  %v1331_v46 = vsel %vm898_vm7, %v1323_v27, %v7149_v9  ;;  %v5332_v9 = vld [vmem:[%s6132_s18 + $0x461] sm:$0xff]  ;;  %v5852_v61 = vld [vmem:[%s6132_s18 + $0x1f0] sm:$0xff]  ;;  %11092 = vst [vmem:[#allocation3_spill] sm:$0xff] %v7393_v14 }
 0x1f3   : > { %1639 = vrot.lane.b32.xlu1 %v11071_v22, %s6054_s25  ;;  %v7370_v59 = vld [vmem:[%s6132_s18 + $0x170] sm:$0xff] }
 0x1f4   : > { %1637 = vrot.lane.b32.xlu0 %v11073_v30, %s6054_s25  ;;  %v7263_v19 = vpop.permute.xlu2 %1535  ;;  %v5854_v30 = vld [vmem:[%s6132_s18 + $0x430] sm:$0xff]  ;;  %11087 = vst [vmem:[#allocation22_spill] sm:$0xff] %v7370_v59 }
 0x1f5   : > { %v7269_v7 = vpop.permute.xlu1 %1507  ;;  %v7398_v33 = vld [vmem:[%s6132_s18 + $0x290] sm:$0xff] }
 0x1f6   : > { %v7271_v37 = vpop.permute.xlu0 %1505  ;;  %11093 = vst [vmem:[#allocation5_spill] sm:$0xff] %v7398_v33  ;;  %v5862_v27 = vld [vmem:[%s6132_s18 + $0xf0] sm:$0xff] }
 0x1f8   : > { %5429 = vmatmul.msk.f32.gmra.mxu1 %vm910_vm9, %v1330_v16  ;;  %v7375_v16 = vld [vmem:[%s6132_s18 + $0xe0] sm:$0xff] }
 0x1f9   : > { %11088 = vst [vmem:[#allocation30_spill] sm:$0xff] %v7375_v16 }
 0x1fa   : > { %1663 = vrot.lane.b32.xlu2 %v5326_v35, %s6055_s26 }
 0x1fb   : > { %1661 = vrot.lane.b32.xlu1 %v5325_v12, %s6055_s26 }
 0x1fc   : > { %1643 = vrot.lane.b32.xlu0 %v11080_v40, %s6054_s25  ;;  %v7288_v49 = vpop.permute.xlu2 %1549 }
 0x1fd   : > { %v7290_v13 = vpop.permute.xlu1 %1513 }
 0x1fe   : > { %v7292_v57 = vpop.permute.xlu0 %1511 }
 0x200   : > { %5430 = vmatmul.msk.f32.gmra.mxu1 %vm910_vm9, %v1331_v46  ;;  %v5863_v46 = vld [vmem:[%s6132_s18 + $0x60] sm:$0xff] }
 0x202   : > { %1669 = vrot.lane.b32.xlu2 %v5329_v52, %s6055_s26  ;;  %v7413_v52 = vld [vmem:[%s6132_s18 + $0x440] sm:$0xff] }
 0x203   : > { %1667 = vrot.lane.b32.xlu1 %v5328_v5, %s6055_s26  ;;  %11094 = vst [vmem:[#allocation2_spill] sm:$0xff] %v7413_v52  ;;  %v7417_v5 = vpop.f32.mrf.mxu1 }
 0x204   : > { %1665 = vrot.lane.b32.xlu0 %v5327_v51, %s6055_s26  ;;  %v7305_v17 = vpop.permute.xlu2 %1555  ;;  %11095 = vst [vmem:[#allocation6_spill] sm:$0xff] %v7417_v5  ;;  %v7454_v5 = vld [vmem:[%s6132_s18 + $0x190] sm:$0xff] }
 0x205   : > { %v7307_v47 = vpop.permute.xlu1 %1527  ;;  %11099 = vst [vmem:[#allocation36_spill] sm:$0xff] %v7454_v5 }
 0x206   : > { %v7309_v32 = vpop.permute.xlu0 %1525 }
 0x20a   : > { %1675 = vrot.lane.b32.xlu2 %v5332_v9, %s6055_s26 }
 0x20b   : > { %1673 = vrot.lane.b32.xlu1 %v5331_v10, %s6055_s26 }
 0x20c   : > { %1671 = vrot.lane.b32.xlu0 %v5330_v23, %s6055_s26  ;;  %v7317_v24 = vpop.permute.xlu2 %1561  ;;  %v5865_v23 = vld [vmem:[%s6132_s18 + $0x2a0] sm:$0xff] }
 0x20d   : > { %v7319_v62 = vpop.permute.xlu1 %1533 }
 0x20e   : > { %v7321_v41 = vpop.permute.xlu0 %1531 }
 0x212   : > { %1890 = vrot.lane.b32.xlu2 %v5847_v63, %s6048_s19  ;;  %v5866_v63 = vld [vmem:[%s6132_s18 + $0x210] sm:$0xff] }
 0x213   : > { %1888 = vrot.lane.b32.xlu1 %v5848_v50, %s6048_s19  ;;  %v5867_v50 = vld [vmem:[%s6132_s18 + $0x180] sm:$0xff] }
 0x214   : > { %1886 = vrot.lane.b32.xlu0 %v5849_v60, %s6048_s19  ;;  %v7329_v29 = vpop.permute.xlu2 %1583 }
 0x215   : > { %v7331_v4 = vpop.permute.xlu1 %1539 }
 0x216   : > { %11082 = vst [vmem:[#allocation16_spill] sm:$0xff] %v7331_v4  ;;  %v7333_v6 = vpop.permute.xlu0 %1537 }
 0x21a   : > { %1896 = vrot.lane.b32.xlu2 %v5850_v26, %s6048_s19 }
 0x21b   : > { %1894 = vrot.lane.b32.xlu1 %v5851_v36, %s6048_s19 }
 0x21c   : > { %1892 = vrot.lane.b32.xlu0 %v5852_v61, %s6048_s19  ;;  %v7341_v22 = vpop.permute.xlu2 %1589 }
 0x21d   : > { %v7343_v45 = vpop.permute.xlu1 %1553 }
 0x21e   : > { %v7345_v20 = vpop.permute.xlu0 %1551 }
 0x222   : > { %1910 = vrot.lane.b32.xlu2 %v7348_v8, %s6049_s20 }
 0x223   : > { %1900 = vrot.lane.b32.xlu1 %v5854_v30, %s6048_s19  ;;  %v5868_v30 = vld [vmem:[%s6132_s18 + $0x450] sm:$0xff] }
 0x224   : > { %1898 = vrot.lane.b32.xlu0 %v5855_v39, %s6048_s19  ;;  %v7356_v1 = vpop.permute.xlu2 %1595  ;;  %v5869_v39 = vld [vmem:[%s6132_s18 + $0x3c0] sm:$0xff] }
 0x225   : > { %11084 = vst [vmem:[#allocation23_spill] sm:$0xff] %v7356_v1  ;;  %v7358_v44 = vpop.permute.xlu1 %1559  ;;  %v11108_v1 = vld [vmem:[#allocation19_spill] sm:$0xff] }
 0x226   : > { %v7360_v18 = vpop.permute.xlu0 %1557 }
 0x22a   : > { %1916 = vrot.lane.b32.xlu2 %v7365_v3, %s6049_s20 }
 0x22b   : > { %1914 = vrot.lane.b32.xlu1 %v7370_v59, %s6049_s20 }
 0x22c   : > { %1912 = vrot.lane.b32.xlu0 %v7375_v16, %s6049_s20  ;;  %v7379_v35 = vpop.permute.xlu2 %1609 }
 0x22d   : > { %v7381_v12 = vpop.permute.xlu1 %1581 }
 0x22e   : > { %v7383_v42 = vpop.permute.xlu0 %1563 }
 0x22f   : > { %11089 = vst [vmem:[#allocation25_spill] sm:$0xff] %v7383_v42 }
 0x232   : > { %1922 = vrot.lane.b32.xlu2 %v7388_v0, %s6049_s20  ;;  %v7485_v0 = vld [vmem:[%s6132_s18 + $0x340] sm:$0xff] }
 0x233   : > { %1920 = vrot.lane.b32.xlu1 %v7393_v14, %s6049_s20  ;;  %11103 = vst [vmem:[#allocation28_spill] sm:$0xff] %v7485_v0 }
 0x234   : > { %1918 = vrot.lane.b32.xlu0 %v7398_v33, %s6049_s20  ;;  %v7402_v48 = vpop.permute.xlu2 %1615 }
 0x235   : > { %v7404_v40 = vpop.permute.xlu1 %1587 }
 0x236   : > { %v7406_v15 = vpop.permute.xlu0 %1585 }
 0x23a   : > { %1936 = vrot.lane.b32.xlu2 %v5862_v27, %s6050_s21  ;;  %v5870_v27 = vld [vmem:[%s6132_s18 + $0x330] sm:$0xff] }
 0x23b   : > { %1934 = vrot.lane.b32.xlu1 %v5863_v46, %s6050_s21 }
 0x23c   : > { %1924 = vrot.lane.b32.xlu0 %v7413_v52, %s6049_s20  ;;  %v7419_v51 = vpop.permute.xlu2 %1629  ;;  %v7496_v52 = vld [vmem:[%s6132_s18 + $0x220] sm:$0xff] }
 0x23d   : > { %v7421_v9 = vpop.permute.xlu1 %1593  ;;  %11105 = vst [vmem:[#allocation7_spill] sm:$0xff] %v7496_v52 }
 0x23e   : > { %v7423_v10 = vpop.permute.xlu0 %1591 }
 0x242   : > { %1942 = vrot.lane.b32.xlu2 %v5865_v23, %s6050_s21 }
 0x243   : > { %1940 = vrot.lane.b32.xlu1 %v5866_v63, %s6050_s21 }
 0x244   : > { %1938 = vrot.lane.b32.xlu0 %v5867_v50, %s6050_s21  ;;  %v7433_v26 = vpop.permute.xlu2 %1635 }
 0x245   : > { %v7431_v60 = vpop.f32.mrf.mxu1  ;;  %v7435_v36 = vpop.permute.xlu1 %1607 }
 0x246   : > { %11096 = vst [vmem:[#allocation4_spill] sm:$0xff] %v7431_v60  ;;  %v7437_v61 = vpop.permute.xlu0 %1605 }
 0x24a   : > { %1948 = vrot.lane.b32.xlu2 %v5868_v30, %s6050_s21  ;;  %v7459_v30 = vld [vmem:[%s6132_s18 + $0x100] sm:$0xff] }
 0x24b   : > { %1946 = vrot.lane.b32.xlu1 %v5869_v39, %s6050_s21  ;;  %11100 = vst [vmem:[#allocation20_spill] sm:$0xff] %v7459_v30  ;;  %v7466_v39 = vld [vmem:[%s10874_s2] ss:$0 sm:$0xff] }
 0x24c   : > { %1944 = vrot.lane.b32.xlu0 %v5870_v27, %s6050_s21  ;;  %v7447_v23 = vpop.permute.xlu2 %1641  ;;  %v7469_v27 = vld [vmem:[%s6132_s18 + $0x70] sm:$0xff] }
 0x24d   : > { %v7445_v46 = vpop.f32.mrf.mxu1  ;;  %11098 = vst [vmem:[#allocation35_spill] sm:$0xff] %v7447_v23  ;;  %v7449_v63 = vpop.permute.xlu1 %1613  ;;  %v7522_v23 = vld [vmem:[%s6132_s18 + $0x3d0] sm:$0xff] }
 0x24e   : > { %11097 = vst [vmem:[#allocation34_spill] sm:$0xff] %v7445_v46  ;;  %v7451_v50 = vpop.permute.xlu0 %1611 }
 0x24f   : > { %11101 = vst [vmem:[#allocation14_spill] sm:$0xff] %v7469_v27 }
 0x250   : > { %11109 = vst [vmem:[#allocation32_spill] sm:$0xff] %v7522_v23 }
 0x252   : > { %1962 = vrot.lane.b32.xlu2 %v7454_v5, %s6051_s22 }
 0x253   : > { %1960 = vrot.lane.b32.xlu1 %v7459_v30, %s6051_s22 }
 0x254   : > { %1958 = vrot.lane.b32.xlu0 %v7469_v27, %s6051_s22  ;;  %v7473_v21 = vpop.permute.xlu2 %1663  ;;  %v7490_v27 = vld [vmem:[%s6132_s18 + $0x2b0] sm:$0xff] }
 0x255   : > { %v1379_v55 = vpop.f32.mrf.mxu1  ;;  %v7478_v60 = vpop.permute.xlu1 %1619  ;;  %11104 = vst [vmem:[#allocation11_spill] sm:$0xff] %v7490_v27 }
 0x256   : > { %v7476_v46 = vadd.f32 %v7466_v39, %v1379_v55  ;;  %11102 = vst [vmem:[#allocation9_spill] sm:$0xff] %v7478_v60  ;;  %v7480_v30 = vpop.permute.xlu0 %1617  ;;  %v7509_v60 = vld [vmem:[%s6132_s18 + $0x80] sm:$0xff] }
 0x257   : > { %11106 = vst [vmem:[#allocation33_spill] sm:$0xff] %v7509_v60 }
 0x258   : > { %v1407_v5 = vmul.f32 0.044715, %v7476_v46 }
 0x25a   : > { %v1415_v14 = vmul.f32 %v1407_v5, %v7476_v46  ;;  %1968 = vrot.lane.b32.xlu2 %v7485_v0, %s6051_s22 }
 0x25b   : > { %1966 = vrot.lane.b32.xlu1 %v7490_v27, %s6051_s22 }
 0x25c   : > { %v1423_v55 = vmul.f32 %v1415_v14, %v7476_v46  ;;  %1964 = vrot.lane.b32.xlu0 %v7496_v52, %s6051_s22  ;;  %v7500_v59 = vpop.permute.xlu2 %1669  ;;  %v7514_v52 = vld [vmem:[%s6132_s18 + $0x460] sm:$0xff] }
 0x25d   : > { %v1382_v5 = vpop.f32.mrf.mxu1  ;;  %v7504_v33 = vpop.permute.xlu1 %1633  ;;  %11107 = vst [vmem:[#allocation37_spill] sm:$0xff] %v7514_v52 }
 0x25e   : > { %v1431_v0 = vadd.f32 %v1423_v55, %v7476_v46  ;;  %v1383_v3 = vadd.f32 %v7466_v39, %v1382_v5  ;;  %v7506_v8 = vpop.permute.xlu0 %1631  ;;  %v5879_v55 = vld [vmem:[%s6132_s18 + $0x20] sm:$0xff] }
 0x25f   : > { %v1685_v5 = vsel %vm835_vm1, %v5879_v55, %v11108_v1 }
 0x260   : > { %v1408_v27 = vmul.f32 0.044715, %v1383_v3  ;;  %v1439_v14 = vmul.f32 0.7978846, %v1431_v0  ;;  %v1693_v0 = vsel %vm844_vm2, %v1685_v5, %v7237_v58 }
 0x262   : > { %v1416_v16 = vmul.f32 %v1408_v27, %v1383_v3  ;;  %1982 = vrot.lane.b32.xlu2 %v7509_v60, %s6052_s23  ;;  %5677 = vtanh.f32 %v1439_v14 }
 0x263   : > { %1972 = vrot.lane.b32.xlu1 %v7514_v52, %s6051_s22  ;;  %v1701_v52 = vsel %vm853_vm3, %v1693_v0, %v7309_v32 }
 0x264   : > { %v1424_v42 = vmul.f32 %v1416_v16, %v1383_v3  ;;  %1970 = vrot.lane.b32.xlu0 %v7522_v23, %s6051_s22  ;;  %v7528_v60 = vpop.permute.xlu2 %1675  ;;  %v1709_v5 = vsel %vm862_vm4, %v1701_v52, %v7288_v49 }
 0x265   : > { %v1385_v27 = vpop.f32.mrf.mxu1  ;;  %11110 = vst [vmem:[#allocation24_spill] sm:$0xff] %v7528_v60  ;;  %v7535_v16 = vpop.permute.xlu1 %1639  ;;  %v5881_v60 = vld [vmem:[%s6132_s18 + $0xb0] sm:$0xff] }
 0x266   : > { %v1432_v4 = vadd.f32 %v1424_v42, %v1383_v3  ;;  %v7533_v1 = vadd.f32 %v7466_v39, %v1385_v27  ;;  %v7537_v55 = vpop.permute.xlu0 %1637  ;;  %v1686_v32 = vsel %vm835_vm1, %v5881_v60, %v7183_v28  ;;  %v1717_v42 = vsel %vm871_vm5, %v1709_v5, %v7381_v12  ;;  %v7551_v27 = vld [vmem:[%s6132_s18 + $0x230] sm:$0xff] }
 0x267   : > { %v1725_v14 = vsel %vm880_vm6, %v1717_v42, %v7437_v61  ;;  %v7562_v12 = vld [vmem:[%s6132_s18 + $0x110] sm:$0xff]  ;;  %v1694_v52 = vsel %vm844_vm2, %v1686_v32, %v7147_v25 }
 0x268   : > { %v1440_v23 = vmul.f32 0.7978846, %v1432_v4  ;;  %v1409_v58 = vmul.f32 0.044715, %v7533_v1  ;;  %v7556_v4 = vld [vmem:[%s6132_s18 + $0x1a0] sm:$0xff]  ;;  %v5678_v28 = vpop.eup %5677  ;;  %11112 = vst [vmem:[#allocation8_spill] sm:$0xff] %v7562_v12 }
 0x269   : > { %11111 = vst [vmem:[#allocation15_spill] sm:$0xff] %v7556_v4 }
 0x26a   : > { %v1417_v0 = vmul.f32 %v1409_v58, %v7533_v1  ;;  %5679 = vtanh.f32 %v1440_v23  ;;  %1988 = vrot.lane.b32.xlu2 %v7551_v27, %s6052_s23  ;;  %v1702_v23 = vsel %vm853_vm3, %v1694_v52, %v7307_v47  ;;  %v5885_v52 = vld [vmem:[%s10873_s1 + $0x18] sm:$0x7] }
 0x26b   : > { %1986 = vrot.lane.b32.xlu1 %v7556_v4, %s6052_s23  ;;  %v1733_v4 = vsel %vm889_vm8, %v1725_v14, %v7419_v51  ;;  %v1710_v25 = vsel %vm862_vm4, %v1702_v23, %v7345_v20  ;;  %v1399_v51 = vmul.f32 0.5, %v7476_v46  ;;  %v1400_v14 = vmul.f32 0.5, %v1383_v3 }
 0x26c   : > { %v1425_v49 = vmul.f32 %v1417_v0, %v7533_v1  ;;  %1984 = vrot.lane.b32.xlu0 %v7562_v12, %s6052_s23  ;;  %v7568_v61 = vpop.permute.xlu2 %1890 }
 0x26d   : > { %v1388_v60 = vpop.f32.mrf.mxu1  ;;  %11113 = vst [vmem:[#allocation31_spill] sm:$0xff] %v7568_v61  ;;  %v1662_v42 = vpop.permute.xlu1 %1661  ;;  %v1455_v61 = vadd.f32 1.0, %v5678_v28 }
 0x26e   : > { %v1433_v58 = vadd.f32 %v1425_v49, %v7533_v1  ;;  %v7574_v5 = vadd.f32 %v7466_v39, %v1388_v60  ;;  %v7576_v0 = vpop.permute.xlu0 %1643  ;;  %v1741_v32 = vsel %vm898_vm7, %v1733_v4, %v1662_v42  ;;  %v1718_v4 = vsel %vm871_vm5, %v1710_v25, %v7329_v29  ;;  %v7596_v42 = vld [vmem:[%s6132_s18 + $0x3e0] sm:$0xff] }
 0x26f   : > { %5432 = vmatmul.msk.f32.vlgmr.msra.gmra.mxu2 %vm910_vm9, %v1741_v32  ;;  %v1726_v23 = vsel %vm880_vm6, %v1718_v4, %v7435_v36  ;;  %v7601_v32 = vld [vmem:[%s6132_s18 + $0x350] sm:$0xff]  ;;  %v7605_v3 = vmul.f32 %v1455_v61, %v1399_v51  ;;  %v5888_v29 = vld [vmem:[%s6132_s18 + $0x140] sm:$0xff] }
 0x270   : > { %v5680_v47 = vpop.eup %5679  ;;  %v1410_v49 = vmul.f32 0.044715, %v7574_v5  ;;  %5467 = vmatpush.msk.msra.mxu2 %vm935_vm0, %v5885_v52  ;;  %v1441_v28 = vmul.f32 0.7978846, %v1433_v58  ;;  %v1687_v58 = vsel %vm835_vm1, %v5888_v29, %v7181_v38  ;;  %v1734_v36 = vsel %vm889_vm8, %v1726_v23, %v7506_v8  ;;  %v5890_v61 = vld [vmem:[%s10873_s1 + $0x10] sm:$0xff]  ;;  %v7639_v23 = vld [vmem:[%s6132_s18 + $0x120] sm:$0xff] }
 0x271   : > { %v1456_v20 = vadd.f32 1.0, %v5680_v47  ;;  %11114 = vst [vmem:[#allocation10_spill] sm:$0xff] %v7605_v3  ;;  %v7616_v47 = vld [vmem:[%s6132_s18 + $0x2c0] sm:$0xff]  ;;  %v1695_v38 = vsel %vm844_vm2, %v1687_v58, %v7271_v37  ;;  %v1742_v4 = vsel %vm898_vm7, %v1734_v36, %v7473_v21  ;;  %v7642_v29 = vld [vmem:[%s6132_s18 + $0x90] sm:$0xff]  ;;  %vm4557_vm0 = vcmask 785408  }
 0x272   : > { %v1418_v60 = vmul.f32 %v1410_v49, %v7574_v5  ;;  %1994 = vrot.lane.b32.xlu2 %v7596_v42, %s6052_s23  ;;  %3422 = vmatpush.msra.mxu2 %v5890_v61  ;;  %5681 = vtanh.f32 %v1441_v28  ;;  %v1703_v37 = vsel %vm853_vm3, %v1695_v38, %v7235_v53  ;;  %11116 = vst [vmem:[#allocation12_spill] sm:$0xff] %v7639_v23  ;;  %v5892_v28 = vld [vmem:[%s10873_s1] sm:$0xff]  ;;  %v5893_v36 = vld [vmem:[%s6132_s18 + $0x1d0] sm:$0xff] }
 0x273   : > { %1992 = vrot.lane.b32.xlu1 %v7601_v32, %s6052_s23  ;;  %v7607_v46 = vmul.f32 %v1456_v20, %v1400_v14  ;;  %v5891_v20 = vld [vmem:[%s10873_s1 + $0x8] sm:$0xff]  ;;  %11117 = vst [vmem:[#allocation18_spill] sm:$0xff] %v7642_v29  ;;  %v1711_v58 = vsel %vm862_vm4, %v1703_v37, %v7343_v45  ;;  %v1688_v45 = vsel %vm835_vm1, %v5893_v36, %v7098_v56  ;;  %v5903_v3 = vld [vmem:[%s6132_s18 + $0x271] sm:$0xff] }
 0x274   : > { %v1426_v25 = vmul.f32 %v1418_v60, %v7574_v5  ;;  %1990 = vrot.lane.b32.xlu0 %v7616_v47, %s6052_s23  ;;  %v7625_v49 = vpop.permute.xlu2 %1896  ;;  %3423 = vmatpush.msra.mxu2 %v5891_v20  ;;  %v1719_v21 = vsel %vm871_vm5, %v1711_v58, %v7406_v15  ;;  %v1696_v15 = vsel %vm844_vm2, %v1688_v45, %v7269_v7  ;;  %v5336_v58 = vld [vmem:[%s6132_s18 + $0x240] sm:$0xff] }
 0x275   : > { %11115 = vst [vmem:[#allocation13_spill] sm:$0xff] %v7607_v46  ;;  %v1668_v51 = vpop.permute.xlu1 %1667  ;;  %v1727_v61 = vsel %vm880_vm6, %v1719_v21, %v7379_v35  ;;  %v5337_v35 = vld [vmem:[%s6132_s18 + $0x2d0] sm:$0xff]  ;;  %v5895_v45 = vld [vmem:[%s6132_s18 + $0x260] sm:$0xff] }
 0x276   : > { %v1434_v52 = vadd.f32 %v1426_v25, %v7574_v5  ;;  %v1666_v14 = vpop.permute.xlu0 %1665  ;;  %3424 = vmatpush.msra.mxu2 %v5892_v28  ;;  %v7659_v25 = vld [vmem:[%s6132_s18 + $0x470] sm:$0xff]  ;;  %v1735_v56 = vsel %vm889_vm8, %v1727_v61, %v7504_v33  ;;  %v1402_v33 = vmul.f32 0.5, %v7574_v5  ;;  %v7955_v46 = vld [vmem:[%s6132_s18 + $0x1e1] sm:$0xff] }
 0x277   : > { %5433 = vmatmul.msk.f32.gmra.mxu2 %vm910_vm9, %v1742_v4  ;;  %v1743_v37 = vsel %vm898_vm7, %v1735_v56, %v1666_v14  ;;  %v7684_v21 = vld [vmem:[%s6132_s18 + $0x1b0] sm:$0xff]  ;;  %v1689_v14 = vsel %vm835_vm1, %v5895_v45, %v7210_v34  ;;  %v7758_v45 = vld [vmem:[%s6132_s18 + $0xa0] sm:$0xff] }
 0x278   : > { %v1442_v60 = vmul.f32 0.7978846, %v1434_v52  ;;  %v5682_v53 = vpop.eup %5681  ;;  %v1704_v52 = vsel %vm853_vm3, %v1696_v15, %v7321_v41  ;;  %11118 = vst [vmem:[#allocation19_spill] sm:$0xff] %v7684_v21  ;;  %v1401_v41 = vmul.f32 0.5, %v7533_v1  ;;  %v1697_v34 = vsel %vm844_vm2, %v1689_v14, %v7175_v11 }
 0x279   : > { %v1712_v28 = vsel %vm862_vm4, %v1704_v52, %v7305_v17  ;;  %v1705_v5 = vsel %vm853_vm3, %v1697_v34, %v7319_v62 }
 0x27a   : > { %5683 = vtanh.f32 %v1442_v60  ;;  %2016 = vrot.lane.b32.xlu2 %v7639_v23, %s6053_s24  ;;  %v1457_v60 = vadd.f32 1.0, %v5682_v53  ;;  %v1720_v53 = vsel %vm871_vm5, %v1712_v28, %v7404_v40  ;;  %v11151_v23 = vld [vmem:[#allocation7_spill] sm:$0xff] }
 0x27b   : > { %2014 = vrot.lane.b32.xlu1 %v7642_v29, %s6053_s24  ;;  %v1728_v15 = vsel %vm880_vm6, %v1720_v53, %v7451_v50  ;;  %v7930_v50 = vld [vmem:[%s6132_s18 + $0x151] sm:$0xff] }
 0x27c   : > { %1996 = vrot.lane.b32.xlu0 %v7659_v25, %s6052_s23  ;;  %v7667_v38 = vpop.permute.xlu2 %1910  ;;  %v7697_v17 = vmul.f32 %v1457_v60, %v1401_v41  ;;  %v1736_v56 = vsel %vm889_vm8, %v1728_v15, %v7433_v26  ;;  %v5340_v60 = vld [vmem:[%s6132_s18 + $0x480] sm:$0xff] }
 0x27d   : > { %v7673_v20 = vpop.permute.xlu1 %1673  ;;  %v1744_v11 = vsel %vm898_vm7, %v1736_v56, %v1668_v51 }
 0x27e   : > { %v7675_v4 = vpop.permute.xlu0 %1671  ;;  %11119 = vst [vmem:[#allocation38_spill] sm:$0xff] %v7697_v17 }
 0x27f   : > { %5434 = vmatmul.msk.f32.gmra.mxu2 %vm910_vm9, %v1743_v37  ;;  %v1713_v37 = vsel %vm862_vm4, %v1705_v5, %v7360_v18  ;;  %v5896_v18 = vld [vmem:[%s6132_s18 + $0x2f0] sm:$0xff] }
 0x280   : > { %v5684_v7 = vpop.eup %5683  ;;  %v1721_v62 = vsel %vm871_vm5, %v1713_v37, %v7341_v22  ;;  %v1690_v26 = vsel %vm835_vm1, %v5896_v18, %v7208_v2  ;;  %v11124_v18 = vld [vmem:[#allocation25_spill] sm:$0xff] }
 0x281   : > { %v1458_v36 = vadd.f32 1.0, %v5684_v7  ;;  %v5339_v7 = vld [vmem:[%s6132_s18 + $0x3f0] sm:$0xff]  ;;  %v1698_v22 = vsel %vm844_vm2, %v1690_v26, %v7292_v57 }
 0x282   : > { %2022 = vrot.lane.b32.xlu2 %v5337_v35, %s6053_s24  ;;  %v5338_v35 = vld [vmem:[%s6132_s18 + $0x360] sm:$0xff]  ;;  %v1706_v2 = vsel %vm853_vm3, %v1698_v22, %v7263_v19  ;;  %v7833_v22 = vld [vmem:[%s6132_s18 + $0x490] sm:$0xff] }
 0x283   : > { %2020 = vrot.lane.b32.xlu1 %v5336_v58, %s6053_s24  ;;  %v7699_v1 = vmul.f32 %v1458_v36, %v1402_v33  ;;  %v1729_v58 = vsel %vm880_vm6, %v1721_v62, %v7449_v63  ;;  %v7753_v36 = vld [vmem:[%s6132_s18 + $0x130] sm:$0xff]  ;;  %v1714_v57 = vsel %vm862_vm4, %v1706_v2, %v7358_v44  ;;  %v5897_v19 = vld [vmem:[%s6132_s18 + $0x380] sm:$0xff]  ;;  %v11123_v62 = vld [vmem:[#allocation35_spill] sm:$0xff] }
 0x284   : > { %2018 = vrot.lane.b32.xlu0 %v7684_v21, %s6053_s24  ;;  %v7705_v40 = vpop.permute.xlu2 %1916  ;;  %v1737_v51 = vsel %vm889_vm8, %v1729_v58, %v7537_v55  ;;  %v7750_v55 = vld [vmem:[%s6132_s18 + $0x1c0] sm:$0xff]  ;;  %v1722_v14 = vsel %vm871_vm5, %v1714_v57, %v7423_v10  ;;  %11126 = vst [vmem:[#allocation35_spill] sm:$0xff] %v7833_v22  ;;  %v11127_v2 = vld [vmem:[#allocation23_spill] sm:$0xff] }
 0x285   : > { %11120 = vst [vmem:[#allocation39_spill] sm:$0xff] %v7699_v1  ;;  %v7711_v61 = vpop.permute.xlu1 %1888  ;;  %v1745_v33 = vsel %vm898_vm7, %v1737_v51, %v7500_v59  ;;  %v1691_v59 = vsel %vm835_vm1, %v5897_v19, %v7121_v43  ;;  %v1730_v10 = vsel %vm880_vm6, %v1722_v14, %v7402_v48  ;;  %v7792_v48 = vld [vmem:[%s6132_s18 + $0x2e0] sm:$0xff]  ;;  %v11128_v14 = vld [vmem:[#allocation9_spill] sm:$0xff] }
 0x286   : > { %v7713_v52 = vpop.permute.xlu0 %1886  ;;  %v1699_v44 = vsel %vm844_vm2, %v1691_v59, %v7290_v13  ;;  %v1738_v34 = vsel %vm889_vm8, %v1730_v10, %v7535_v16  ;;  %v7789_v13 = vld [vmem:[%s6132_s18 + $0x370] sm:$0xff]  ;;  %11121 = vst [vmem:[#allocation40_spill] sm:$0xff] %v7792_v48  ;;  %v5902_v1 = vld [vmem:[%s6132_s18 + $0x301] sm:$0xff] }
 0x287   : > { %5435 = vmatmul.msk.f32.gmra.mxu2 %vm910_vm9, %v1744_v11  ;;  %v1707_v15 = vsel %vm853_vm3, %v1699_v44, %v7333_v6  ;;  %v1746_v56 = vsel %vm898_vm7, %v1738_v34, %v7675_v4  ;;  %v7797_v6 = vld [vmem:[%s6132_s18 + $0x250] sm:$0xff]  ;;  %v11149_v21 = vld [vmem:[#allocation14_spill] sm:$0xff] }
 0x288   : > { %v1715_v37 = vsel %vm862_vm4, %v1707_v15, %v7317_v24  ;;  %v5898_v11 = vld [vmem:[%s6132_s18 + $0x410] sm:$0xff] }
 0x289   : > { %v1692_v16 = vsel %vm835_vm1, %v5898_v11, %v7239_v31  ;;  %v1723_v4 = vsel %vm871_vm5, %v1715_v37, %v7421_v9  ;;  %v11130_v15 = vld [vmem:[#allocation24_spill] sm:$0xff]  ;;  %v7866_v37 = vld [vmem:[%s6132_s18 + $0x140] sm:$0xff] }
 0x28a   : > { %2028 = vrot.lane.b32.xlu2 %v5340_v60, %s6053_s24  ;;  %v1731_v60 = vsel %vm880_vm6, %v1723_v4, %v7480_v30  ;;  %v1700_v31 = vsel %vm844_vm2, %v1692_v16, %v7204_v54  ;;  %v7830_v54 = vld [vmem:[%s6132_s18 + $0xb0] sm:$0xff]  ;;  %11133 = vst [vmem:[#allocation24_spill] sm:$0xff] %v7866_v37 }
 0x28b   : > { %2026 = vrot.lane.b32.xlu1 %v5339_v7, %s6053_s24  ;;  %v11122_v7 = vld [vmem:[#allocation16_spill] sm:$0xff]  ;;  %v1739_v58 = vsel %vm889_vm8, %v1731_v60, %v11123_v62 }
 0x28c   : > { %2024 = vrot.lane.b32.xlu0 %v5338_v35, %s6053_s24  ;;  %v7738_v28 = vpop.permute.xlu2 %1922  ;;  %v1708_v9 = vsel %vm853_vm3, %v1700_v31, %v11122_v7  ;;  %v1747_v51 = vsel %vm898_vm7, %v1739_v58, %v7673_v20  ;;  %11125 = vst [vmem:[#allocation16_spill] sm:$0xff] %v7830_v54  ;;  %v5355_v60 = vld [vmem:[%s6132_s18 + $0x410] sm:$0xff]  ;;  %v5354_v31 = vld [vmem:[%s6132_s18 + $0x380] sm:$0xff] }
 0x28d   : > { %v7740_v63 = vpop.permute.xlu1 %1894  ;;  %v1716_v26 = vsel %vm862_vm4, %v1708_v9, %v11124_v18  ;;  %v7883_v7 = vld [vmem:[%s6132_s18 + $0x2f0] sm:$0xff]  ;;  %v5356_v18 = vld [vmem:[%s6132_s18 + $0x4a0] sm:$0xff] }
 0x28e   : > { %v7742_v41 = vpop.permute.xlu0 %1892  ;;  %v1724_v57 = vsel %vm871_vm5, %v1716_v26, %v11127_v2  ;;  %11135 = vst [vmem:[#allocation42_spill] sm:$0xff] %v7883_v7  ;;  %v11136_v26 = vld [vmem:[#allocation30_spill] sm:$0xff] }
 0x28f   : > { %5436 = vmatmul.msk.f32.gmra.mxu2 %vm910_vm9, %v1745_v33  ;;  %v7836_v33 = vld [vmem:[%s6132_s18 + $0x400] sm:$0xff]  ;;  %v1732_v19 = vsel %vm880_vm6, %v1724_v57, %v11128_v14  ;;  %11144 = vst [vmem:[#allocation30_spill] sm:$0xff] %v7930_v50 }
 0x290   : > { %v1740_v20 = vsel %vm889_vm8, %v1732_v19, %v7576_v0  ;;  %v7863_v0 = vld [vmem:[%s6132_s18 + $0x1d0] sm:$0xff]  ;;  %v11138_v19 = vld [vmem:[#allocation5_spill] sm:$0xff] }
 0x291   : > { %v1748_v34 = vsel %vm898_vm7, %v1740_v20, %v11130_v15  ;;  %11132 = vst [vmem:[#allocation9_spill] sm:$0xff] %v7863_v0  ;;  %v11139_v20 = vld [vmem:[#allocation21_spill] sm:$0xff]  ;;  %v11140_v15 = vld [vmem:[#allocation22_spill] sm:$0xff] }
 0x292   : > { %2050 = vrot.lane.b32.xlu2 %v7750_v55, %s6054_s25  ;;  %11148 = vst [vmem:[#allocation22_spill] sm:$0xff] %v7955_v46 }
 0x293   : > { %2048 = vrot.lane.b32.xlu1 %v7753_v36, %s6054_s25 }
 0x294   : > { %2046 = vrot.lane.b32.xlu0 %v7758_v45, %s6054_s25  ;;  %v7775_v53 = vpop.permute.xlu2 %1936 }
 0x295   : > { %v7781_v5 = vpop.permute.xlu1 %1900 }
 0x296   : > { %v7783_v43 = vpop.permute.xlu0 %1898 }
 0x297   : > { %5437 = vmatmul.msk.f32.gmra.mxu2 %vm910_vm9, %v1746_v56  ;;  %v7860_v56 = vld [vmem:[%s6132_s18 + $0x260] sm:$0xff] }
 0x298   : > { %11131 = vst [vmem:[#allocation23_spill] sm:$0xff] %v7860_v56 }
 0x29a   : > { %2056 = vrot.lane.b32.xlu2 %v7789_v13, %s6054_s25 }
 0x29b   : > { %2054 = vrot.lane.b32.xlu1 %v7792_v48, %s6054_s25 }
 0x29c   : > { %2052 = vrot.lane.b32.xlu0 %v7797_v6, %s6054_s25  ;;  %v7814_v24 = vpop.permute.xlu2 %1942 }
 0x29d   : > { %v7818_v35 = vpop.permute.xlu1 %1914 }
 0x29e   : > { %v7820_v30 = vpop.permute.xlu0 %1912 }
 0x29f   : > { %5438 = vmatmul.msk.f32.gmra.mxu2 %vm910_vm9, %v1747_v51  ;;  %v11137_v51 = vld [vmem:[#allocation17_spill] sm:$0xff] }
 0x2a2   : > { %2078 = vrot.lane.b32.xlu2 %v7830_v54, %s6055_s26 }
 0x2a3   : > { %2060 = vrot.lane.b32.xlu1 %v7833_v22, %s6054_s25  ;;  %v11157_v22 = vld [vmem:[#allocation28_spill] sm:$0xff] }
 0x2a4   : > { %2058 = vrot.lane.b32.xlu0 %v7836_v33, %s6054_s25  ;;  %v7850_v59 = vpop.permute.xlu2 %1948 }
 0x2a5   : > { %11129 = vst [vmem:[#allocation25_spill] sm:$0xff] %v7850_v59  ;;  %v7852_v44 = vpop.permute.xlu1 %1920 }
 0x2a6   : > { %v7854_v10 = vpop.permute.xlu0 %1918 }
 0x2a7   : > { %5439 = vmatmul.msk.f32.gmra.mxu2 %vm910_vm9, %v1748_v34 }
 0x2aa   : > { %2084 = vrot.lane.b32.xlu2 %v7860_v56, %s6055_s26 }
 0x2ab   : > { %2082 = vrot.lane.b32.xlu1 %v7863_v0, %s6055_s26 }
 0x2ac   : > { %2080 = vrot.lane.b32.xlu0 %v7866_v37, %s6055_s26  ;;  %v7874_v11 = vpop.permute.xlu2 %1962  ;;  %v11152_v37 = vld [vmem:[#allocation36_spill] sm:$0xff] }
 0x2ad   : > { %v7876_v16 = vpop.permute.xlu1 %1934 }
 0x2ae   : > { %v7878_v4 = vpop.permute.xlu0 %1924 }
 0x2af   : > { %11134 = vst [vmem:[#allocation41_spill] sm:$0xff] %v7878_v4 }
 0x2b2   : > { %2090 = vrot.lane.b32.xlu2 %v5355_v60, %s6055_s26 }
 0x2b3   : > { %2088 = vrot.lane.b32.xlu1 %v5354_v31, %s6055_s26 }
 0x2b4   : > { %2086 = vrot.lane.b32.xlu0 %v7883_v7, %s6055_s26  ;;  %v7889_v9 = vpop.permute.xlu2 %1968 }
 0x2b5   : > { %v7891_v62 = vpop.permute.xlu1 %1940 }
 0x2b6   : > { %v7893_v58 = vpop.permute.xlu0 %1938 }
 0x2ba   : > { %2305 = vrot.lane.b32.xlu2 %v11136_v26, %s6048_s19  ;;  %v11142_v26 = vld [vmem:[#allocation29_spill] sm:$0xff] }
 0x2bb   : > { %2303 = vrot.lane.b32.xlu1 %v11137_v51, %s6048_s19  ;;  %v11143_v51 = vld [vmem:[#allocation3_spill] sm:$0xff] }
 0x2bc   : > { %2092 = vrot.lane.b32.xlu0 %v5356_v18, %s6055_s26  ;;  %v7901_v2 = vpop.permute.xlu2 %1982  ;;  %v11141_v18 = vld [vmem:[#allocation2_spill] sm:$0xff] }
 0x2bd   : > { %v7903_v57 = vpop.permute.xlu1 %1946 }
 0x2be   : > { %v7905_v14 = vpop.permute.xlu0 %1944 }
 0x2c2   : > { %2311 = vrot.lane.b32.xlu2 %v11138_v19, %s6048_s19 }
 0x2c3   : > { %2309 = vrot.lane.b32.xlu1 %v11139_v20, %s6048_s19 }
 0x2c4   : > { %2307 = vrot.lane.b32.xlu0 %v11140_v15, %s6048_s19  ;;  %v7913_v34 = vpop.permute.xlu2 %1988 }
 0x2c5   : > { %v7915_v60 = vpop.permute.xlu1 %1960 }
 0x2c6   : > { %v1959_v31 = vpop.permute.xlu0 %1958 }
 0x2ca   : > { %2317 = vrot.lane.b32.xlu2 %v11141_v18, %s6048_s19  ;;  %v7935_v18 = vld [vmem:[%s6132_s18 + $0xc1] sm:$0xff] }
 0x2cb   : > { %2315 = vrot.lane.b32.xlu1 %v11142_v26, %s6048_s19  ;;  %11145 = vst [vmem:[#allocation17_spill] sm:$0xff] %v7935_v18  ;;  %v7940_v26 = vld [vmem:[%s6132_s18 + $0x31] sm:$0xff] }
 0x2cc   : > { %2313 = vrot.lane.b32.xlu0 %v11143_v51, %s6048_s19  ;;  %v7923_v19 = vpop.permute.xlu2 %1994  ;;  %11146 = vst [vmem:[#allocation5_spill] sm:$0xff] %v7940_v26 }
 0x2cd   : > { %v7925_v20 = vpop.permute.xlu1 %1966 }
 0x2ce   : > { %v7927_v15 = vpop.permute.xlu0 %1964 }
 0x2d2   : > { %2331 = vrot.lane.b32.xlu2 %v7930_v50, %s6049_s20 }
 0x2d3   : > { %2329 = vrot.lane.b32.xlu1 %v7935_v18, %s6049_s20  ;;  %v5905_v18 = vld [vmem:[%s6132_s18 + $0x421] sm:$0xff] }
 0x2d4   : > { %2327 = vrot.lane.b32.xlu0 %v7940_v26, %s6049_s20  ;;  %v7944_v51 = vpop.permute.xlu2 %2016  ;;  %v11153_v26 = vld [vmem:[#allocation20_spill] sm:$0xff] }
 0x2d5   : > { %v7946_v8 = vpop.permute.xlu1 %1972 }
 0x2d6   : > { %11147 = vst [vmem:[#allocation21_spill] sm:$0xff] %v7946_v8  ;;  %v7948_v17 = vpop.permute.xlu0 %1970 }
 0x2da   : > { %2337 = vrot.lane.b32.xlu2 %v5902_v1, %s6049_s20  ;;  %v5906_v1 = vld [vmem:[%s6132_s18 + $0x391] sm:$0xff] }
 0x2db   : > { %2335 = vrot.lane.b32.xlu1 %v5903_v3, %s6049_s20 }
 0x2dc   : > { %2333 = vrot.lane.b32.xlu0 %v7955_v46, %s6049_s20  ;;  %v7959_v7 = vpop.permute.xlu2 %2022 }
 0x2dd   : > { %v7961_v56 = vpop.permute.xlu1 %1986 }
 0x2de   : > { %v7963_v50 = vpop.permute.xlu0 %1984 }
 0x2e2   : > { %2351 = vrot.lane.b32.xlu2 %v11149_v21, %s6050_s21 }
 0x2e3   : > { %2341 = vrot.lane.b32.xlu1 %v5905_v18, %s6049_s20 }
 0x2e4   : > { %2339 = vrot.lane.b32.xlu0 %v5906_v1, %s6049_s20  ;;  %v7971_v3 = vpop.permute.xlu2 %2028 }
 0x2e5   : > { %11150 = vst [vmem:[#allocation2_spill] sm:$0xff] %v7971_v3  ;;  %v7973_v0 = vpop.permute.xlu1 %1992  ;;  %v11156_v3 = vld [vmem:[#allocation32_spill] sm:$0xff] }
 0x2e6   : > { %v7975_v46 = vpop.permute.xlu0 %1990 }
 0x2ea   : > { %2357 = vrot.lane.b32.xlu2 %v11151_v23, %s6050_s21  ;;  %v11158_v23 = vld [vmem:[#allocation11_spill] sm:$0xff] }
 0x2eb   : > { %2355 = vrot.lane.b32.xlu1 %v11152_v37, %s6050_s21 }
 0x2ec   : > { %2353 = vrot.lane.b32.xlu0 %v11153_v26, %s6050_s21  ;;  %v7983_v18 = vpop.permute.xlu2 %2050 }
 0x2ed   : > { %v2015_v29 = vpop.permute.xlu1 %2014 }
 0x2ee   : > { %v7985_v1 = vpop.permute.xlu0 %1996 }
 0x2ef   : > { %11154 = vst [vmem:[#allocation29_spill] sm:$0xff] %v7985_v1 }
 0x2f2   : > { %v7987_v21 = vpop.f32.mrf.mxu2  ;;  %2363 = vrot.lane.b32.xlu2 %v11156_v3, %s6050_s21  ;;  %v11161_v3 = vld [vmem:[#allocation37_spill] sm:$0xff] }
 0x2f3   : > { %11155 = vst [vmem:[#allocation3_spill] sm:$0xff] %v7987_v21  ;;  %2361 = vrot.lane.b32.xlu1 %v11157_v22, %s6050_s21  ;;  %v11160_v21 = vld [vmem:[#allocation33_spill] sm:$0xff]  ;;  %v5907_v22 = vld [vmem:[%s6132_s18 + $0x30] sm:$0xff] }
 0x2f4   : > { %2359 = vrot.lane.b32.xlu0 %v11158_v23, %s6050_s21  ;;  %v7995_v37 = vpop.permute.xlu2 %2056  ;;  %v2102_v23 = vsel %vm835_vm1, %v5907_v22, %v7713_v52  ;;  %v11163_v52 = vld [vmem:[#allocation15_spill] sm:$0xff] }
 0x2f5   : > { %v2021_v54 = vpop.permute.xlu1 %2020 }
 0x2f6   : > { %v7997_v26 = vpop.permute.xlu0 %2018 }
 0x2fa   : > { %v7999_v8 = vpop.f32.mrf.mxu2  ;;  %2377 = vrot.lane.b32.xlu2 %v7562_v12, %s6051_s22 }
 0x2fb   : > { %11159 = vst [vmem:[#allocation7_spill] sm:$0xff] %v7999_v8  ;;  %2375 = vrot.lane.b32.xlu1 %v11160_v21, %s6051_s22  ;;  %v2110_v8 = vsel %vm844_vm2, %v2102_v23, %v7667_v38 }
 0x2fc   : > { %2365 = vrot.lane.b32.xlu0 %v11161_v3, %s6050_s21  ;;  %v2079_v1 = vpop.permute.xlu2 %2078  ;;  %v2118_v12 = vsel %vm853_vm3, %v2110_v8, %v7876_v16  ;;  %v5908_v3 = vld [vmem:[%s6132_s18 + $0x1e0] sm:$0xff] }
 0x2fd   : > { %v8010_v59 = vpop.permute.xlu1 %2026  ;;  %v2126_v21 = vsel %vm862_vm4, %v2118_v12, %v1959_v31  ;;  %v2105_v38 = vsel %vm835_vm1, %v5908_v3, %v7742_v41 }
 0x2fe   : > { %v8012_v4 = vpop.permute.xlu0 %2024  ;;  %v2134_v8 = vsel %vm871_vm5, %v2126_v21, %v7901_v2 }
 0x2ff   : > { %v2142_v12 = vsel %vm880_vm6, %v2134_v8, %v2015_v29 }
 0x302   : > { %v8019_v48 = vpop.f32.mrf.mxu2  ;;  %2383 = vrot.lane.b32.xlu2 %v7616_v47, %s6051_s22 }
 0x303   : > { %11162 = vst [vmem:[#allocation36_spill] sm:$0xff] %v8019_v48  ;;  %2381 = vrot.lane.b32.xlu1 %v7551_v27, %s6051_s22  ;;  %v2113_v27 = vsel %vm844_vm2, %v2105_v38, %v7705_v40  ;;  %v8077_v38 = vld [vmem:[%s6132_s18 + $0x61] sm:$0xff] }
 0x304   : > { %2379 = vrot.lane.b32.xlu0 %v11163_v52, %s6051_s22  ;;  %v2085_v16 = vpop.permute.xlu2 %2084  ;;  %v2121_v48 = vsel %vm853_vm3, %v2113_v27, %v7891_v62 }
 0x305   : > { %v2049_v31 = vpop.permute.xlu1 %2048  ;;  %v2129_v21 = vsel %vm862_vm4, %v2121_v48, %v7927_v15 }
 0x306   : > { %v2047_v22 = vpop.permute.xlu0 %2046  ;;  %v2137_v40 = vsel %vm871_vm5, %v2129_v21, %v7913_v34 }
 0x307   : > { %v2150_v47 = vsel %vm889_vm8, %v2142_v12, %v2047_v22  ;;  %v2145_v48 = vsel %vm880_vm6, %v2137_v40, %v2021_v54  ;;  %v5911_v54 = vld [vmem:[%s6132_s18 + $0xc0] sm:$0xff] }
 0x308   : > { %v2158_v23 = vsel %vm898_vm7, %v2150_v47, %v2079_v1  ;;  %v8061_v1 = vld [vmem:[%s6132_s18 + $0x181] sm:$0xff]  ;;  %v2103_v34 = vsel %vm835_vm1, %v5911_v54, %v7711_v61 }
 0x309   : > { %5441 = vmatmul.msk.f32.vlgmr.msrb.gmra.mxu2 %vm910_vm9, %v2158_v23  ;;  %v2111_v8 = vsel %vm844_vm2, %v2103_v34, %v7820_v30  ;;  %v8116_v34 = vld [vmem:[%s6132_s18 + $0x211] sm:$0xff] }
 0x30a   : > { %v8042_v29 = vpop.f32.mrf.mxu2  ;;  %2389 = vrot.lane.b32.xlu2 %v7659_v25, %s6051_s22  ;;  %v2119_v47 = vsel %vm853_vm3, %v2111_v8, %v7775_v53  ;;  %v5915_v53 = vld [vmem:[%s6132_s18 + $0x150] sm:$0xff] }
 0x30b   : > { %11164 = vst [vmem:[#allocation32_spill] sm:$0xff] %v8042_v29  ;;  %2387 = vrot.lane.b32.xlu1 %v7596_v42, %s6051_s22  ;;  %v2127_v23 = vsel %vm862_vm4, %v2119_v47, %v7915_v60 }
 0x30c   : > { %2385 = vrot.lane.b32.xlu0 %v7601_v32, %s6051_s22  ;;  %v8052_v41 = vpop.permute.xlu2 %2090  ;;  %v8066_v32 = vld [vmem:[%s6132_s18 + $0xf1] sm:$0xff]  ;;  %v2135_v30 = vsel %vm871_vm5, %v2127_v23, %v7963_v50 }
 0x30d   : > { %v8055_v62 = vpop.permute.xlu1 %2054  ;;  %v2143_v47 = vsel %vm880_vm6, %v2135_v30, %v7944_v51 }
 0x30e   : > { %v2053_v2 = vpop.permute.xlu0 %2052 }
 0x30f   : > { %v2153_v25 = vsel %vm889_vm8, %v2145_v48, %v2053_v2  ;;  %v5913_v48 = vld [vmem:[%s6132_s18 + $0x331] sm:$0xff]  ;;  %v8101_v2 = vld [vmem:[%s6132_s18 + $0x2a1] sm:$0xff] }
 0x310   : > { %v2161_v15 = vsel %vm898_vm7, %v2153_v25, %v2085_v16  ;;  %v11165_v25 = vld [vmem:[#allocation31_spill] sm:$0xff] }
 0x311   : > { %5444 = vmatmul.msk.f32.vlgmr.msra.gmra.mxu3 %vm910_vm9, %v2161_v15  ;;  %v2104_v15 = vsel %vm835_vm1, %v5915_v53, %v11165_v25 }
 0x312   : > { %v1802_v42 = vpop.f32.mrf.mxu2  ;;  %2403 = vrot.lane.b32.xlu2 %v8061_v1, %s6052_s23  ;;  %v2112_v8 = vsel %vm844_vm2, %v2104_v15, %v7818_v35  ;;  %v5918_v15 = vld [vmem:[%s6132_s18 + $0x451] sm:$0xff] }
 0x313   : > { %2401 = vrot.lane.b32.xlu1 %v8066_v32, %s6052_s23  ;;  %v8074_v3 = vadd.f32 %v7466_v39, %v1802_v42  ;;  %v5916_v42 = vld [vmem:[%s6132_s18 + $0x270] sm:$0xff] }
 0x314   : > { %2399 = vrot.lane.b32.xlu0 %v8077_v38, %s6052_s23  ;;  %v8083_v16 = vpop.permute.xlu2 %2305  ;;  %v2106_v60 = vsel %vm835_vm1, %v5916_v42, %v7740_v63  ;;  %v5920_v42 = vld [vmem:[%s6132_s18 + $0x3c1] sm:$0xff] }
 0x315   : > { %v1826_v12 = vmul.f32 0.044715, %v8074_v3  ;;  %v8086_v22 = vpop.permute.xlu1 %2060 }
 0x316   : > { %v8088_v61 = vpop.permute.xlu0 %2058 }
 0x317   : > { %v1834_v27 = vmul.f32 %v1826_v12, %v8074_v3  ;;  %v2114_v12 = vsel %vm844_vm2, %v2106_v60, %v7854_v10 }
 0x318   : > { %v2122_v10 = vsel %vm853_vm3, %v2114_v12, %v7814_v24 }
 0x319   : > { %v1842_v21 = vmul.f32 %v1834_v27, %v8074_v3  ;;  %v2151_v27 = vsel %vm889_vm8, %v2143_v47, %v2049_v31 }
 0x31a   : > { %v1805_v40 = vpop.f32.mrf.mxu2  ;;  %2409 = vrot.lane.b32.xlu2 %v5913_v48, %s6052_s23 }
 0x31b   : > { %2407 = vrot.lane.b32.xlu1 %v8101_v2, %s6052_s23  ;;  %v1850_v50 = vadd.f32 %v1842_v21, %v8074_v3  ;;  %v8113_v54 = vadd.f32 %v7466_v39, %v1805_v40  ;;  %v2120_v39 = vsel %vm853_vm3, %v2112_v8, %v7893_v58  ;;  %v2130_v58 = vsel %vm862_vm4, %v2122_v10, %v7925_v20  ;;  %v5919_v20 = vld [vmem:[%s6132_s18 + $0x300] sm:$0xff] }
 0x31c   : > { %2405 = vrot.lane.b32.xlu0 %v8116_v34, %s6052_s23  ;;  %v8126_v63 = vpop.permute.xlu2 %2311  ;;  %v2128_v31 = vsel %vm862_vm4, %v2120_v39, %v7874_v11  ;;  %v2138_v53 = vsel %vm871_vm5, %v2130_v58, %v7975_v46  ;;  %v2107_v11 = vsel %vm835_vm1, %v5919_v20, %v7625_v49  ;;  %v1818_v58 = vmul.f32 0.5, %v8074_v3  ;;  %v5925_v3 = vld [vmem:[%s6132_s18 + $0x40] sm:$0xff] }
 0x31d   : > { %v1827_v23 = vmul.f32 0.044715, %v8113_v54  ;;  %v2083_v21 = vpop.permute.xlu1 %2082  ;;  %v1858_v51 = vmul.f32 0.7978846, %v1850_v50  ;;  %v2136_v48 = vsel %vm871_vm5, %v2128_v31, %v7961_v56  ;;  %v2115_v46 = vsel %vm844_vm2, %v2107_v11, %v7852_v44 }
 0x31e   : > { %v2081_v40 = vpop.permute.xlu0 %2080  ;;  %v2144_v25 = vsel %vm880_vm6, %v2136_v48, %v7997_v26  ;;  %v2146_v26 = vsel %vm880_vm6, %v2138_v53, %v7959_v7  ;;  %v2123_v50 = vsel %vm853_vm3, %v2115_v46, %v7905_v14  ;;  %v5921_v7 = vld [vmem:[%s6132_s18 + $0x390] sm:$0xff] }
 0x31f   : > { %v2159_v35 = vsel %vm898_vm7, %v2151_v27, %v2081_v40  ;;  %v1835_v30 = vmul.f32 %v1827_v23, %v8113_v54  ;;  %5685 = vtanh.f32 %v1858_v51  ;;  %v2154_v49 = vsel %vm889_vm8, %v2146_v26, %v8055_v62  ;;  %v11173_v26 = vld [vmem:[#allocation29_spill] sm:$0xff] }
 0x320   : > { %5442 = vmatmul.msk.f32.gmra.mxu2 %vm910_vm9, %v2159_v35  ;;  %v2152_v39 = vsel %vm889_vm8, %v2144_v25, %v7983_v18  ;;  %v2108_v14 = vsel %vm835_vm1, %v5921_v7, %v7783_v43  ;;  %v2131_v62 = vsel %vm862_vm4, %v2123_v50, %v7889_v9  ;;  %v11169_v25 = vld [vmem:[#allocation40_spill] sm:$0xff] }
 0x321   : > { %v1843_v24 = vmul.f32 %v1835_v30, %v8113_v54  ;;  %v2160_v27 = vsel %vm898_vm7, %v2152_v39, %v2083_v21  ;;  %v2139_v18 = vsel %vm871_vm5, %v2131_v62, %v7973_v0  ;;  %v2116_v40 = vsel %vm844_vm2, %v2108_v14, %v7738_v28  ;;  %v11177_v14 = vld [vmem:[#allocation33_spill] sm:$0xff]  ;;  %v11178_v62 = vld [vmem:[#allocation14_spill] sm:$0xff] }
 0x322   : > { %2423 = vrot.lane.b32.xlu2 %v7758_v45, %s6053_s24  ;;  %v2147_v21 = vsel %vm880_vm6, %v2139_v18, %v8012_v4  ;;  %v2124_v43 = vsel %vm853_vm3, %v2116_v40, %v7903_v57  ;;  %v1819_v57 = vmul.f32 0.5, %v8113_v54 }
 0x323   : > { %2413 = vrot.lane.b32.xlu1 %v5918_v15, %s6052_s23  ;;  %v1851_v56 = vadd.f32 %v1843_v24, %v8113_v54  ;;  %v2132_v4 = vsel %vm862_vm4, %v2124_v43, %v7948_v17  ;;  %v2155_v28 = vsel %vm889_vm8, %v2147_v21, %v7995_v37  ;;  %v5922_v54 = vld [vmem:[%s6132_s18 + $0x420] sm:$0xff] }
 0x324   : > { %2411 = vrot.lane.b32.xlu0 %v5920_v42, %s6052_s23  ;;  %v8162_v60 = vpop.permute.xlu2 %2317  ;;  %v2140_v17 = vsel %vm871_vm5, %v2132_v4, %v7923_v19  ;;  %v2109_v24 = vsel %vm835_vm1, %v5922_v54, %v7781_v5  ;;  %v11172_v42 = vld [vmem:[#allocation21_spill] sm:$0xff]  ;;  %v11179_v21 = vld [vmem:[#allocation18_spill] sm:$0xff] }
 0x325   : > { %11166 = vst [vmem:[#allocation28_spill] sm:$0xff] %v8162_v60  ;;  %v1859_v8 = vmul.f32 0.7978846, %v1851_v56  ;;  %v2089_v12 = vpop.permute.xlu1 %2088  ;;  %v5686_v23 = vpop.eup %5685  ;;  %v2148_v37 = vsel %vm880_vm6, %v2140_v17, %v8010_v59  ;;  %v11170_v59 = vld [vmem:[#allocation41_spill] sm:$0xff]  ;;  %v8313_v17 = vld [vmem:[%s6132_s18 + $0x121] sm:$0xff]  ;;  %v5929_v60 = vld [vmem:[%s6132_s18 + $0xd0] sm:$0xff] }
 0x326   : > { %v2087_v47 = vpop.permute.xlu0 %2086  ;;  %v1874_v0 = vadd.f32 1.0, %v5686_v23  ;;  %v2163_v30 = vsel %vm898_vm7, %v2155_v28, %v2089_v12  ;;  %v2156_v19 = vsel %vm889_vm8, %v2148_v37, %v8088_v61  ;;  %v2117_v15 = vsel %vm844_vm2, %v2109_v24, %v11170_v59  ;;  %v11171_v56 = vld [vmem:[#allocation25_spill] sm:$0xff]  ;;  %v5373_v28 = vld [vmem:[%s6132_s18 + $0xc0] sm:$0xff] }
 0x327   : > { %v2162_v44 = vsel %vm898_vm7, %v2154_v49, %v2087_v47  ;;  %5687 = vtanh.f32 %v1859_v8  ;;  %v2164_v11 = vsel %vm898_vm7, %v2156_v19, %v8052_v41  ;;  %v2125_v5 = vsel %vm853_vm3, %v2117_v15, %v11171_v56  ;;  %v8240_v61 = vld [vmem:[%s6132_s18 + $0x91] sm:$0xff]  ;;  %v11175_v41 = vld [vmem:[#allocation35_spill] sm:$0xff]  ;;  %v11176_v8 = vld [vmem:[#allocation2_spill] sm:$0xff] }
 0x328   : > { %5443 = vmatmul.msk.f32.gmra.mxu2 %vm910_vm9, %v2160_v27  ;;  %5445 = vmatmul.msk.f32.gmra.mxu3 %vm910_vm9, %v2162_v44  ;;  %v8205_v48 = vmul.f32 %v1874_v0, %v1818_v58  ;;  %v2133_v46 = vsel %vm862_vm4, %v2125_v5, %v11172_v42  ;;  %v11174_v49 = vld [vmem:[#allocation16_spill] sm:$0xff]  ;;  %v5923_v37 = vld [vmem:[%s6132_s18 + $0x41] sm:$0xff] }
 0x329   : > { %v2141_v50 = vsel %vm871_vm5, %v2133_v46, %v11173_v26  ;;  %v11182_v58 = vld [vmem:[#allocation24_spill] sm:$0xff]  ;;  %v5389_v56 = vld [vmem:[%s6132_s18 + $0xe0] sm:$0xff] }
 0x32a   : > { %2429 = vrot.lane.b32.xlu2 %v7797_v6, %s6053_s24  ;;  %11167 = vst [vmem:[#allocation11_spill] sm:$0xff] %v8205_v48  ;;  %v2149_v12 = vsel %vm880_vm6, %v2141_v50, %v11176_v8  ;;  %v5397_v26 = vld [vmem:[%s6132_s18 + $0xc1] sm:$0xff]  ;;  %v5924_v50 = vld [vmem:[%s6132_s18 + $0x71] sm:$0xff] }
 0x32b   : > { %2427 = vrot.lane.b32.xlu1 %v7750_v55, %s6053_s24  ;;  %v2157_v39 = vsel %vm889_vm8, %v2149_v12, %v8086_v22 }
 0x32c   : > { %2425 = vrot.lane.b32.xlu0 %v7753_v36, %s6053_s24  ;;  %v8193_v9 = vpop.permute.xlu2 %2331 }
 0x32d   : > { %v5688_v35 = vpop.eup %5687  ;;  %v8197_v10 = vpop.permute.xlu1 %2303 }
 0x32e   : > { %v2093_v51 = vpop.permute.xlu0 %2092  ;;  %v1875_v31 = vadd.f32 1.0, %v5688_v35  ;;  %v2503_v48 = vsel %vm835_vm1, %v5925_v3, %v8197_v10  ;;  %v5926_v3 = vld [vmem:[%s6132_s18 + $0xd1] sm:$0xff] }
 0x32f   : > { %v2165_v7 = vsel %vm898_vm7, %v2157_v39, %v2093_v51  ;;  %v11186_v39 = vld [vmem:[#allocation8_spill] sm:$0xff] }
 0x330   : > { %5446 = vmatmul.msk.f32.gmra.mxu3 %vm910_vm9, %v2163_v30  ;;  %v8207_v53 = vmul.f32 %v1875_v31, %v1819_v57  ;;  %v11181_v30 = vld [vmem:[#allocation5_spill] sm:$0xff] }
 0x332   : > { %11168 = vst [vmem:[#allocation37_spill] sm:$0xff] %v8207_v53  ;;  %2435 = vrot.lane.b32.xlu2 %v7836_v33, %s6053_s24 }
 0x333   : > { %2433 = vrot.lane.b32.xlu1 %v7789_v13, %s6053_s24 }
 0x334   : > { %2431 = vrot.lane.b32.xlu0 %v11169_v25, %s6053_s24  ;;  %v8228_v33 = vpop.permute.xlu2 %2337  ;;  %v5381_v25 = vld [vmem:[%s6132_s18 + $0xd0] sm:$0xff] }
 0x335   : > { %v8230_v20 = vpop.permute.xlu1 %2309 }
 0x336   : > { %v8232_v13 = vpop.permute.xlu0 %2307 }
 0x338   : > { %5447 = vmatmul.msk.f32.gmra.mxu3 %vm910_vm9, %v2164_v11 }
 0x33a   : > { %2479 = vrot.lane.b32.xlu2 %v8240_v61, %s6055_s26 }
 0x33b   : > { %2447 = vrot.lane.b32.xlu1 %v11174_v49, %s6054_s25 }
 0x33c   : > { %2437 = vrot.lane.b32.xlu0 %v11175_v41, %s6053_s24  ;;  %v8254_v47 = vpop.permute.xlu2 %2351  ;;  %v11185_v41 = vld [vmem:[#allocation20_spill] sm:$0xff] }
 0x33d   : > { %v8258_v27 = vpop.permute.xlu1 %2315 }
 0x33e   : > { %v8260_v44 = vpop.permute.xlu0 %2313 }
 0x340   : > { %5448 = vmatmul.msk.f32.gmra.mxu3 %vm910_vm9, %v2165_v7 }
 0x342   : > { %3522 = vrot.lane.b32.xlu2 %v11177_v14, %s6048_s19 }
 0x343   : > { %3129 = vrot.lane.b32.xlu1 %v11177_v14, %s6049_s20 }
 0x344   : > { %3105 = vrot.lane.b32.xlu0 %v11178_v62, %s6048_s19  ;;  %v8270_v23 = vpop.permute.xlu2 %2357 }
 0x345   : > { %v8272_v22 = vpop.permute.xlu1 %2329 }
 0x346   : > { %v8274_v18 = vpop.permute.xlu0 %2327 }
 0x347   : > { %v2511_v29 = vsel %vm844_vm2, %v2503_v48, %v8274_v18 }
 0x34a   : > { %3177 = vrot.lane.b32.xlu2 %v7758_v45, %s6051_s22 }
 0x34b   : > { %3546 = vrot.lane.b32.xlu1 %v8077_v38, %s6049_s20 }
 0x34c   : > { %3153 = vrot.lane.b32.xlu0 %v11179_v21, %s6050_s21  ;;  %v8282_v40 = vpop.permute.xlu2 %2363  ;;  %v11187_v21 = vld [vmem:[#allocation12_spill] sm:$0xff] }
 0x34d   : > { %v8284_v43 = vpop.permute.xlu1 %2335 }
 0x34e   : > { %v8286_v0 = vpop.permute.xlu0 %2333 }
 0x352   : > { %3594 = vrot.lane.b32.xlu2 %v11174_v49, %s6051_s22 }
 0x353   : > { %3201 = vrot.lane.b32.xlu1 %v11174_v49, %s6052_s23 }
 0x354   : > { %3570 = vrot.lane.b32.xlu0 %v7758_v45, %s6050_s21  ;;  %v8294_v35 = vpop.permute.xlu2 %2377 }
 0x355   : > { %v8296_v4 = vpop.permute.xlu1 %2341 }
 0x356   : > { %11180 = vst [vmem:[#allocation15_spill] sm:$0xff] %v8296_v4  ;;  %v8298_v51 = vpop.permute.xlu0 %2339  ;;  %v8422_v4 = vld [vmem:[%s6132_s18 + $0x1b1] sm:$0xff] }
 0x35a   : > { %3233 = vrot.lane.b32.xlu2 %v5373_v28, %s6053_s24 }
 0x35b   : > { %2704 = vrot.lane.b32.xlu1 %v11181_v30, %s6048_s19 }
 0x35c   : > { %2449 = vrot.lane.b32.xlu0 %v11182_v58, %s6054_s25  ;;  %v8306_v57 = vpop.permute.xlu2 %2383 }
 0x35d   : > { %v8308_v31 = vpop.permute.xlu1 %2355 }
 0x35e   : > { %v8310_v45 = vpop.permute.xlu0 %2353 }
 0x362   : > { %2728 = vrot.lane.b32.xlu2 %v5923_v37, %s6049_s20  ;;  %v5365_v37 = vld [vmem:[%s6132_s18 + $0xa1] sm:$0xff] }
 0x363   : > { %2481 = vrot.lane.b32.xlu1 %v8313_v17, %s6055_s26 }
 0x364   : > { %3618 = vrot.lane.b32.xlu0 %v8240_v61, %s6052_s23  ;;  %v8321_v54 = vpop.permute.xlu2 %2389 }
 0x365   : > { %11183 = vst [vmem:[#allocation31_spill] sm:$0xff] %v8321_v54  ;;  %v8323_v24 = vpop.permute.xlu1 %2361 }
 0x366   : > { %v8325_v19 = vpop.permute.xlu0 %2359 }
 0x36a   : > { %2752 = vrot.lane.b32.xlu2 %v11177_v14, %s6050_s21 }
 0x36b   : > { %3642 = vrot.lane.b32.xlu1 %v5381_v25, %s6053_s24 }
 0x36c   : > { %3265 = vrot.lane.b32.xlu0 %v5381_v25, %s6054_s25  ;;  %v8332_v59 = vpop.permute.xlu2 %2403 }
 0x36d   : > { %v2376_v15 = vpop.permute.xlu1 %2375 }
 0x36e   : > { %v8334_v11 = vpop.permute.xlu0 %2365 }
 0x36f   : > { %11184 = vst [vmem:[#allocation40_spill] sm:$0xff] %v8334_v11  ;;  %v5382_v11 = vld [vmem:[%s6132_s18 + $0x160] sm:$0xff] }
 0x372   : > { %2776 = vrot.lane.b32.xlu2 %v8077_v38, %s6051_s22 }
 0x373   : > { %3666 = vrot.lane.b32.xlu1 %v5389_v56, %s6054_s25 }
 0x374   : > { %3297 = vrot.lane.b32.xlu0 %v5389_v56, %s6055_s26  ;;  %v8341_v5 = vpop.permute.xlu2 %2409 }
 0x375   : > { %v8343_v42 = vpop.permute.xlu1 %2381 }
 0x376   : > { %v8345_v46 = vpop.permute.xlu0 %2379 }
 0x37a   : > { %2800 = vrot.lane.b32.xlu2 %v5924_v50, %s6052_s23 }
 0x37b   : > { %3698 = vrot.lane.b32.xlu1 %v5397_v26, %s6055_s26  ;;  %v11191_v26 = vld [vmem:[#allocation9_spill] sm:$0xff] }
 0x37c   : > { %3107 = vrot.lane.b32.xlu0 %v11185_v41, %s6048_s19  ;;  %v2424_v38 = vpop.permute.xlu2 %2423 }
 0x37d   : > { %v8353_v8 = vpop.permute.xlu1 %2387 }
 0x37e   : > { %v8355_v12 = vpop.permute.xlu0 %2385 }
 0x382   : > { %2824 = vrot.lane.b32.xlu2 %v11174_v49, %s6053_s24 }
 0x383   : > { %3524 = vrot.lane.b32.xlu1 %v11186_v39, %s6048_s19 }
 0x384   : > { %3131 = vrot.lane.b32.xlu0 %v11186_v39, %s6049_s20  ;;  %v8363_v7 = vpop.permute.xlu2 %2429 }
 0x385   : > { %v8365_v14 = vpop.permute.xlu1 %2401 }
 0x386   : > { %v2400_v62 = vpop.permute.xlu0 %2399 }
 0x38a   : > { %2848 = vrot.lane.b32.xlu2 %v8240_v61, %s6054_s25 }
 0x38b   : > { %3548 = vrot.lane.b32.xlu1 %v8066_v32, %s6049_s20 }
 0x38c   : > { %3155 = vrot.lane.b32.xlu0 %v11187_v21, %s6050_s21  ;;  %v8373_v49 = vpop.permute.xlu2 %2435  ;;  %v5374_v21 = vld [vmem:[%s6132_s18 + $0x150] sm:$0xff] }
 0x38d   : > { %11188 = vst [vmem:[#allocation41_spill] sm:$0xff] %v8373_v49  ;;  %v8375_v28 = vpop.permute.xlu1 %2407  ;;  %v2504_v49 = vsel %vm835_vm1, %v5929_v60, %v8083_v16 }
 0x38e   : > { %v8377_v30 = vpop.permute.xlu0 %2405 }
 0x392   : > { %2880 = vrot.lane.b32.xlu2 %v5365_v37, %s6055_s26  ;;  %v11192_v37 = vld [vmem:[#allocation17_spill] sm:$0xff] }
 0x393   : > { %3572 = vrot.lane.b32.xlu1 %v7753_v36, %s6050_s21 }
 0x394   : > { %3179 = vrot.lane.b32.xlu0 %v7753_v36, %s6051_s22  ;;  %v2480_v61 = vpop.permute.xlu2 %2479 }
 0x395   : > { %v8385_v25 = vpop.permute.xlu1 %2413 }
 0x396   : > { %11189 = vst [vmem:[#allocation25_spill] sm:$0xff] %v8385_v25  ;;  %v8387_v56 = vpop.permute.xlu0 %2411 }
 0x397   : > { %11190 = vst [vmem:[#allocation21_spill] sm:$0xff] %v8387_v56  ;;  %v2512_v56 = vsel %vm844_vm2, %v2504_v49, %v8272_v22 }
 0x39a   : > { %2451 = vrot.lane.b32.xlu2 %v11191_v26, %s6054_s25 }
 0x39b   : > { %3596 = vrot.lane.b32.xlu1 %v11182_v58, %s6051_s22 }
 0x39c   : > { %3203 = vrot.lane.b32.xlu0 %v11182_v58, %s6052_s23  ;;  %v8395_v50 = vpop.permute.xlu2 %3522 }
 0x39d   : > { %v8397_v41 = vpop.permute.xlu1 %2427 }
 0x39e   : > { %v8399_v36 = vpop.permute.xlu0 %2425 }
 0x3a2   : > { %3620 = vrot.lane.b32.xlu2 %v8313_v17, %s6052_s23 }
 0x3a3   : > { %3235 = vrot.lane.b32.xlu1 %v5374_v21, %s6053_s24  ;;  %v2519_v21 = vsel %vm853_vm3, %v2511_v29, %v8254_v47 }
 0x3a4   : > { %2706 = vrot.lane.b32.xlu0 %v11192_v37, %s6048_s19  ;;  %v8410_v53 = vpop.permute.xlu2 %3177  ;;  %v2527_v37 = vsel %vm862_vm4, %v2519_v21, %v2376_v15  ;;  %v5390_v21 = vld [vmem:[%s6132_s18 + $0x170] sm:$0xff] }
 0x3a5   : > { %v8414_v25 = vpop.permute.xlu1 %2433  ;;  %v2535_v10 = vsel %vm871_vm5, %v2527_v37, %v2400_v62 }
 0x3a6   : > { %v8416_v54 = vpop.permute.xlu0 %2431  ;;  %v2543_v29 = vsel %vm880_vm6, %v2535_v10, %v2424_v38 }
 0x3aa   : > { %3267 = vrot.lane.b32.xlu2 %v5382_v11, %s6054_s25 }
 0x3ab   : > { %2730 = vrot.lane.b32.xlu1 %v5926_v3, %s6049_s20  ;;  %v8445_v3 = vld [vmem:[%s6132_s18 + $0x190] sm:$0xff] }
 0x3ac   : > { %2483 = vrot.lane.b32.xlu0 %v8422_v4, %s6055_s26  ;;  %v8431_v48 = vpop.permute.xlu2 %3594 }
 0x3ad   : > { %v2448_v18 = vpop.permute.xlu1 %2447 }
 0x3ae   : > { %v8434_v47 = vpop.permute.xlu0 %2437  ;;  %v2551_v15 = vsel %vm889_vm8, %v2543_v29, %v2448_v18 }
 0x3af   : > { %11193 = vst [vmem:[#allocation29_spill] sm:$0xff] %v8434_v47  ;;  %v2559_v62 = vsel %vm898_vm7, %v2551_v15, %v2480_v61 }
 0x3b0   : > { %5450 = vmatmul.msk.f32.vlgmr.msrb.gmra.mxu0 %vm910_vm9, %v2559_v62 }
 0x3b2   : > { %3299 = vrot.lane.b32.xlu2 %v5390_v21, %s6055_s26 }
 0x3b3   : > { %2754 = vrot.lane.b32.xlu1 %v11186_v39, %s6050_s21  ;;  %v5398_v39 = vld [vmem:[%s6132_s18 + $0x151] sm:$0xff] }
 0x3b4   : > { %3644 = vrot.lane.b32.xlu0 %v5382_v11, %s6053_s24  ;;  %v3234_v37 = vpop.permute.xlu2 %3233  ;;  %v5928_v11 = vld [vmem:[%s6132_s18 + $0x101] sm:$0xff] }
 0x3b5   : > { %v3130_v38 = vpop.permute.xlu1 %3129 }
 0x3b6   : > { %v3106_v10 = vpop.permute.xlu0 %3105 }
 0x3ba   : > { %3109 = vrot.lane.b32.xlu2 %v8445_v3, %s6048_s19 }
 0x3bb   : > { %2778 = vrot.lane.b32.xlu1 %v8066_v32, %s6051_s22  ;;  %v11194_v32 = vld [vmem:[#allocation19_spill] sm:$0xff] }
 0x3bc   : > { %3668 = vrot.lane.b32.xlu0 %v5390_v21, %s6054_s25  ;;  %v2729_v61 = vpop.permute.xlu2 %2728 }
 0x3bd   : > { %v3547_v18 = vpop.permute.xlu1 %3546 }
 0x3be   : > { %v3154_v29 = vpop.permute.xlu0 %3153 }
 0x3c2   : > { %3133 = vrot.lane.b32.xlu2 %v11163_v52, %s6049_s20 }
 0x3c3   : > { %2802 = vrot.lane.b32.xlu1 %v5928_v11, %s6052_s23 }
 0x3c4   : > { %3700 = vrot.lane.b32.xlu0 %v5398_v39, %s6055_s26  ;;  %v2753_v15 = vpop.permute.xlu2 %2752 }
 0x3c5   : > { %v3202_v62 = vpop.permute.xlu1 %3201 }
 0x3c6   : > { %v3571_v47 = vpop.permute.xlu0 %3570 }
 0x3ca   : > { %3157 = vrot.lane.b32.xlu2 %v11194_v32, %s6050_s21  ;;  %v2520_v32 = vsel %vm853_vm3, %v2512_v56, %v8310_v45  ;;  %v5930_v56 = vld [vmem:[%s6132_s18 + $0x60] sm:$0xff] }
 0x3cb   : > { %2826 = vrot.lane.b32.xlu1 %v11182_v58, %s6053_s24  ;;  %v2528_v58 = vsel %vm862_vm4, %v2520_v32, %v8294_v35 }
 0x3cc   : > { %3526 = vrot.lane.b32.xlu0 %v11163_v52, %s6048_s19  ;;  %v2777_v21 = vpop.permute.xlu2 %2776  ;;  %v2536_v52 = vsel %vm871_vm5, %v2528_v58, %v8365_v14  ;;  %v3321_v14 = vsel %vm835_vm1, %v5930_v56, %v3106_v10 }
 0x3cd   : > { %v2705_v11 = vpop.permute.xlu1 %2704  ;;  %v2544_v16 = vsel %vm880_vm6, %v2536_v52, %v8399_v36  ;;  %v3329_v36 = vsel %vm844_vm2, %v3321_v14, %v3130_v38  ;;  %v11196_v38 = vld [vmem:[#allocation23_spill] sm:$0xff] }
 0x3ce   : > { %v2450_v39 = vpop.permute.xlu0 %2449  ;;  %v3337_v32 = vsel %vm853_vm3, %v3329_v36, %v3154_v29 }
 0x3cf   : > { %v2552_v22 = vsel %vm889_vm8, %v2544_v16, %v2450_v39  ;;  %v5931_v16 = vld [vmem:[%s6132_s18 + $0x50] sm:$0xff]  ;;  %v3345_v10 = vsel %vm862_vm4, %v3337_v32, %v8410_v53 }
 0x3d2   : > { %3181 = vrot.lane.b32.xlu2 %v7750_v55, %s6051_s22 }
 0x3d3   : > { %2850 = vrot.lane.b32.xlu1 %v8313_v17, %s6054_s25  ;;  %v5366_v17 = vld [vmem:[%s6132_s18 + $0x131] sm:$0xff] }
 0x3d4   : > { %3550 = vrot.lane.b32.xlu0 %v8061_v1, %s6049_s20  ;;  %v2801_v60 = vpop.permute.xlu2 %2800 }
 0x3d5   : > { %v2482_v35 = vpop.permute.xlu1 %2481 }
 0x3d6   : > { %v3619_v45 = vpop.permute.xlu0 %3618  ;;  %v2560_v49 = vsel %vm898_vm7, %v2552_v22, %v2482_v35  ;;  %v2904_v22 = vsel %vm835_vm1, %v5931_v16, %v2705_v11  ;;  %v3353_v35 = vsel %vm871_vm5, %v3345_v10, %v3202_v62 }
 0x3d7   : > { %5451 = vmatmul.msk.f32.gmra.mxu0 %vm910_vm9, %v2560_v49  ;;  %v2912_v49 = vsel %vm844_vm2, %v2904_v22, %v2729_v61  ;;  %v3361_v11 = vsel %vm880_vm6, %v3353_v35, %v3234_v37  ;;  %v8520_v37 = vld [vmem:[%s6132_s18 + $0x241] sm:$0xff] }
 0x3d8   : > { %v2920_v29 = vsel %vm853_vm3, %v2912_v49, %v2753_v15  ;;  %v5375_v15 = vld [vmem:[%s6132_s18 + $0x1e0] sm:$0xff] }
 0x3d9   : > { %v2928_v22 = vsel %vm862_vm4, %v2920_v29, %v2777_v21 }
 0x3da   : > { %3205 = vrot.lane.b32.xlu2 %v11191_v26, %s6052_s23  ;;  %v2936_v10 = vsel %vm871_vm5, %v2928_v22, %v2801_v60 }
 0x3db   : > { %2882 = vrot.lane.b32.xlu1 %v5366_v17, %s6055_s26  ;;  %v5932_v17 = vld [vmem:[%s6132_s18 + $0x70] sm:$0xff] }
 0x3dc   : > { %3574 = vrot.lane.b32.xlu0 %v7750_v55, %s6050_s21  ;;  %v2825_v39 = vpop.permute.xlu2 %2824  ;;  %v11195_v55 = vld [vmem:[#allocation30_spill] sm:$0xff]  ;;  %v3722_v61 = vsel %vm835_vm1, %v5932_v17, %v8395_v50 }
 0x3dd   : > { %v3643_v58 = vpop.permute.xlu1 %3642  ;;  %v3730_v36 = vsel %vm844_vm2, %v3722_v61, %v3547_v18  ;;  %v2944_v18 = vsel %vm880_vm6, %v2936_v10, %v2825_v39  ;;  %v5383_v39 = vld [vmem:[%s6132_s18 + $0x1f0] sm:$0xff]  ;;  %v5391_v17 = vld [vmem:[%s6132_s18 + $0x200] sm:$0xff] }
 0x3de   : > { %v3266_v52 = vpop.permute.xlu0 %3265  ;;  %v3738_v16 = vsel %vm853_vm3, %v3730_v36, %v3571_v47  ;;  %v5934_v61 = vld [vmem:[%s6132_s18 + $0x1a0] sm:$0xff]  ;;  %v8566_v10 = vld [vmem:[%s6132_s18 + $0x230] sm:$0xff] }
 0x3df   : > { %v3369_v62 = vsel %vm889_vm8, %v3361_v11, %v3266_v52  ;;  %v3746_v50 = vsel %vm862_vm4, %v3738_v16, %v8431_v48  ;;  %v5399_v36 = vld [vmem:[%s6132_s18 + $0x1e1] sm:$0xff] }
 0x3e0   : > { %v3754_v47 = vsel %vm871_vm5, %v3746_v50, %v3619_v45  ;;  %v5937_v50 = vld [vmem:[%s6132_s18 + $0x191] sm:$0xff] }
 0x3e1   : > { %v3762_v21 = vsel %vm880_vm6, %v3754_v47, %v3643_v58  ;;  %v5933_v58 = vld [vmem:[%s6132_s18 + $0x161] sm:$0xff] }
 0x3e2   : > { %2708 = vrot.lane.b32.xlu2 %v11195_v55, %s6048_s19 }
 0x3e3   : > { %2453 = vrot.lane.b32.xlu1 %v11196_v38, %s6054_s25 }
 0x3e4   : > { %3598 = vrot.lane.b32.xlu0 %v11191_v26, %s6051_s22  ;;  %v2849_v53 = vpop.permute.xlu2 %2848 }
 0x3e5   : > { %v3667_v56 = vpop.permute.xlu1 %3666  ;;  %v2952_v60 = vsel %vm889_vm8, %v2944_v18, %v2849_v53 }
 0x3e6   : > { %v3298_v14 = vpop.permute.xlu0 %3297  ;;  %v3770_v48 = vsel %vm889_vm8, %v3762_v21, %v3667_v56 }
 0x3e7   : > { %v3377_v32 = vsel %vm898_vm7, %v3369_v62, %v3298_v14 }
 0x3e8   : > { %5468 = vmatmul.msk.f32.vlgmr.msra.gmra.mxu2 %vm910_vm9, %v3377_v32  ;;  %v8559_v32 = vld [vmem:[%s6132_s18 + $0x220] sm:$0xff] }
 0x3ea   : > { %2485 = vrot.lane.b32.xlu2 %v8520_v37, %s6055_s26 }
 0x3eb   : > { %3622 = vrot.lane.b32.xlu1 %v8422_v4, %s6052_s23 }
 0x3ec   : > { %3237 = vrot.lane.b32.xlu0 %v5375_v15, %s6053_s24  ;;  %v2881_v52 = vpop.permute.xlu2 %2880 }
 0x3ed   : > { %v2960_v35 = vsel %vm898_vm7, %v2952_v60, %v2881_v52  ;;  %v3699_v49 = vpop.permute.xlu1 %3698 }
 0x3ee   : > { %v3108_v55 = vpop.permute.xlu0 %3107  ;;  %v3778_v45 = vsel %vm898_vm7, %v3770_v48, %v3699_v49  ;;  %5459 = vmatmul.msk.f32.vlgmr.msra.gmra.mxu1 %vm910_vm9, %v2960_v35  ;;  %v5939_v48 = vld [vmem:[%s6132_s18 + $0x240] sm:$0xff] }
 0x3ef   : > { %5477 = vmatmul.msk.f32.vlgmr.msrb.gmra.mxu3 %vm910_vm9, %v3778_v45  ;;  %v5940_v35 = vld [vmem:[%s6132_s18 + $0x160] sm:$0xff] }
 0x3f0   : > { %v2505_v49 = vsel %vm835_vm1, %v5940_v35, %v8232_v13 }
 0x3f2   : > { %3646 = vrot.lane.b32.xlu2 %v5383_v39, %s6053_s24 }
 0x3f3   : > { %3269 = vrot.lane.b32.xlu1 %v5383_v39, %s6054_s25 }
 0x3f4   : > { %2732 = vrot.lane.b32.xlu0 %v5933_v58, %s6049_s20  ;;  %v2452_v29 = vpop.permute.xlu2 %2451 }
 0x3f5   : > { %v8545_v11 = vpop.permute.xlu1 %3524 }
 0x3f6   : > { %v3132_v53 = vpop.permute.xlu0 %3131 }
 0x3fa   : > { %3670 = vrot.lane.b32.xlu2 %v5391_v17, %s6054_s25 }
 0x3fb   : > { %3301 = vrot.lane.b32.xlu1 %v5391_v17, %s6055_s26 }
 0x3fc   : > { %2756 = vrot.lane.b32.xlu0 %v5934_v61, %s6050_s21  ;;  %v8552_v62 = vpop.permute.xlu2 %3620  ;;  %v2513_v61 = vsel %vm844_vm2, %v2505_v49, %v8193_v9 }
 0x3fd   : > { %v8554_v56 = vpop.permute.xlu1 %3548  ;;  %v2521_v13 = vsel %vm853_vm3, %v2513_v61, %v8308_v31  ;;  %v5942_v61 = vld [vmem:[%s6132_s18 + $0x1f1] sm:$0xff] }
 0x3fe   : > { %v3156_v14 = vpop.permute.xlu0 %3155 }
 0x402   : > { %3702 = vrot.lane.b32.xlu2 %v5399_v36, %s6055_s26 }
 0x403   : > { %3111 = vrot.lane.b32.xlu1 %v8559_v32, %s6048_s19 }
 0x404   : > { %2780 = vrot.lane.b32.xlu0 %v8061_v1, %s6051_s22  ;;  %v3268_v16 = vpop.permute.xlu2 %3267  ;;  %v5938_v1 = vld [vmem:[%s6132_s18 + $0xf0] sm:$0xff] }
 0x405   : > { %v3573_v22 = vpop.permute.xlu1 %3572  ;;  %v3322_v60 = vsel %vm835_vm1, %v5938_v1, %v3108_v55  ;;  %v11197_v1 = vld [vmem:[#allocation22_spill] sm:$0xff] }
 0x406   : > { %v3180_v15 = vpop.permute.xlu0 %3179  ;;  %v3330_v52 = vsel %vm844_vm2, %v3322_v60, %v3132_v53  ;;  %v11198_v60 = vld [vmem:[#allocation42_spill] sm:$0xff] }
 0x407   : > { %v3338_v45 = vsel %vm853_vm3, %v3330_v52, %v3156_v14  ;;  %v2529_v14 = vsel %vm862_vm4, %v2521_v13, %v8345_v46 }
 0x408   : > { %v3346_v39 = vsel %vm862_vm4, %v3338_v45, %v3180_v15  ;;  %v2537_v9 = vsel %vm871_vm5, %v2529_v14, %v8332_v59  ;;  %v5384_v14 = vld [vmem:[%s6132_s18 + $0x280] sm:$0xff] }
 0x409   : > { %v2545_v31 = vsel %vm880_vm6, %v2537_v9, %v8397_v41 }
 0x40a   : > { %3528 = vrot.lane.b32.xlu2 %v8566_v10, %s6048_s19 }
 0x40b   : > { %3135 = vrot.lane.b32.xlu1 %v8566_v10, %s6049_s20 }
 0x40c   : > { %2804 = vrot.lane.b32.xlu0 %v5937_v50, %s6052_s23  ;;  %v3300_v47 = vpop.permute.xlu2 %3299 }
 0x40d   : > { %v3597_v18 = vpop.permute.xlu1 %3596 }
 0x40e   : > { %v3204_v21 = vpop.permute.xlu0 %3203 }
 0x40f   : > { %v3354_v58 = vsel %vm871_vm5, %v3346_v39, %v3204_v21 }
 0x412   : > { %3552 = vrot.lane.b32.xlu2 %v8116_v34, %s6049_s20 }
 0x413   : > { %3159 = vrot.lane.b32.xlu1 %v5939_v48, %s6050_s21 }
 0x414   : > { %2828 = vrot.lane.b32.xlu0 %v11191_v26, %s6053_s24  ;;  %v8588_v55 = vpop.permute.xlu2 %3109 }
 0x415   : > { %v3236_v53 = vpop.permute.xlu1 %3235 }
 0x416   : > { %v8591_v17 = vpop.permute.xlu0 %2706  ;;  %v3362_v36 = vsel %vm880_vm6, %v3354_v58, %v3236_v53  ;;  %v8644_v58 = vld [vmem:[%s6132_s18 + $0x2d1] sm:$0xff] }
 0x417   : > { %v3370_v26 = vsel %vm889_vm8, %v3362_v36, %v3268_v16  ;;  %v2553_v16 = vsel %vm889_vm8, %v2545_v31, %v2452_v29  ;;  %v5376_v29 = vld [vmem:[%s6132_s18 + $0x270] sm:$0xff] }
 0x418   : > { %v3378_v15 = vsel %vm898_vm7, %v3370_v26, %v3300_v47  ;;  %v8669_v31 = vld [vmem:[%s6132_s18 + $0x290] sm:$0xff] }
 0x419   : > { %5469 = vmatmul.msk.f32.gmra.mxu2 %vm910_vm9, %v3378_v15 }
 0x41a   : > { %3576 = vrot.lane.b32.xlu2 %v7797_v6, %s6050_s21 }
 0x41b   : > { %3183 = vrot.lane.b32.xlu1 %v7797_v6, %s6051_s22  ;;  %v8619_v6 = vld [vmem:[%s6132_s18 + $0x1c1] sm:$0xff] }
 0x41c   : > { %2852 = vrot.lane.b32.xlu0 %v8422_v4, %s6054_s25  ;;  %v8613_v46 = vpop.permute.xlu2 %3133 }
 0x41d   : > { %v2731_v50 = vpop.permute.xlu1 %2730 }
 0x41e   : > { %v2484_v47 = vpop.permute.xlu0 %2483 }
 0x41f   : > { %v2561_v21 = vsel %vm898_vm7, %v2553_v16, %v2484_v47 }
 0x420   : > { %5452 = vmatmul.msk.f32.gmra.mxu0 %vm910_vm9, %v2561_v21  ;;  %v5943_v21 = vld [vmem:[%s6132_s18 + $0xe0] sm:$0xff] }
 0x422   : > { %3600 = vrot.lane.b32.xlu2 %v11196_v38, %s6051_s22 }
 0x423   : > { %3207 = vrot.lane.b32.xlu1 %v11196_v38, %s6052_s23  ;;  %v5941_v38 = vld [vmem:[%s6132_s18 + $0x100] sm:$0xff] }
 0x424   : > { %2884 = vrot.lane.b32.xlu0 %v8619_v6, %s6055_s26  ;;  %v8627_v4 = vpop.permute.xlu2 %3157  ;;  %v3723_v48 = vsel %vm835_vm1, %v5941_v38, %v8545_v11  ;;  %v8687_v38 = vld [vmem:[%s6132_s18 + $0x221] sm:$0xff] }
 0x425   : > { %v2755_v59 = vpop.permute.xlu1 %2754  ;;  %v3731_v45 = vsel %vm844_vm2, %v3723_v48, %v8554_v56 }
 0x426   : > { %v3645_v41 = vpop.permute.xlu0 %3644  ;;  %v3739_v39 = vsel %vm853_vm3, %v3731_v45, %v3573_v22 }
 0x427   : > { %v3747_v53 = vsel %vm862_vm4, %v3739_v39, %v3597_v18 }
 0x428   : > { %v3755_v11 = vsel %vm871_vm5, %v3747_v53, %v8552_v62 }
 0x429   : > { %v3763_v56 = vsel %vm880_vm6, %v3755_v11, %v3645_v41  ;;  %v2905_v41 = vsel %vm835_vm1, %v5943_v21, %v8591_v17  ;;  %v8695_v17 = vld [vmem:[%s6132_s18 + $0x2b0] sm:$0xff] }
 0x42a   : > { %3239 = vrot.lane.b32.xlu2 %v5376_v29, %s6053_s24  ;;  %v8681_v29 = vld [vmem:[%s6132_s18 + $0x271] sm:$0xff] }
 0x42b   : > { %2710 = vrot.lane.b32.xlu1 %v11197_v1, %s6048_s19  ;;  %v2913_v1 = vsel %vm844_vm2, %v2905_v41, %v2731_v50  ;;  %v5946_v50 = vld [vmem:[%s6132_s18 + $0x1f0] sm:$0xff] }
 0x42c   : > { %2455 = vrot.lane.b32.xlu0 %v11198_v60, %s6054_s25  ;;  %v8635_v52 = vpop.permute.xlu2 %3181 }
 0x42d   : > { %v2779_v35 = vpop.permute.xlu1 %2778 }
 0x42e   : > { %v3669_v49 = vpop.permute.xlu0 %3668 }
 0x42f   : > { %v3771_v36 = vsel %vm889_vm8, %v3763_v56, %v3669_v49 }
 0x432   : > { %2734 = vrot.lane.b32.xlu2 %v5942_v61, %s6049_s20 }
 0x433   : > { %2487 = vrot.lane.b32.xlu1 %v8644_v58, %s6055_s26 }
 0x434   : > { %3624 = vrot.lane.b32.xlu0 %v8520_v37, %s6052_s23  ;;  %v8656_v22 = vpop.permute.xlu2 %3205 }
 0x435   : > { %v2803_v18 = vpop.permute.xlu1 %2802 }
 0x436   : > { %v3701_v13 = vpop.permute.xlu0 %3700 }
 0x437   : > { %v3779_v26 = vsel %vm898_vm7, %v3771_v36, %v3701_v13 }
 0x438   : > { %5478 = vmatmul.msk.f32.gmra.mxu3 %vm910_vm9, %v3779_v26 }
 0x43a   : > { %2758 = vrot.lane.b32.xlu2 %v8566_v10, %s6050_s21 }
 0x43b   : > { %3648 = vrot.lane.b32.xlu1 %v5384_v14, %s6053_s24 }
 0x43c   : > { %3271 = vrot.lane.b32.xlu0 %v5384_v14, %s6054_s25  ;;  %v8666_v62 = vpop.permute.xlu2 %2708 }
 0x43d   : > { %v2827_v15 = vpop.permute.xlu1 %2826 }
 0x43e   : > { %v3527_v9 = vpop.permute.xlu0 %3526 }
 0x442   : > { %2782 = vrot.lane.b32.xlu2 %v8116_v34, %s6051_s22  ;;  %v2921_v34 = vsel %vm853_vm3, %v2913_v1, %v2755_v59  ;;  %v2506_v59 = vsel %vm835_vm1, %v5946_v50, %v8230_v20 }
 0x443   : > { %3672 = vrot.lane.b32.xlu1 %v8669_v31, %s6054_s25  ;;  %v2929_v60 = vsel %vm862_vm4, %v2921_v34, %v2779_v35  ;;  %v2514_v45 = vsel %vm844_vm2, %v2506_v59, %v8286_v0  ;;  %v8720_v0 = vld [vmem:[%s6132_s18 + $0x2c0] sm:$0xff] }
 0x444   : > { %3303 = vrot.lane.b32.xlu0 %v8669_v31, %s6055_s26  ;;  %v2486_v10 = vpop.permute.xlu2 %2485  ;;  %v2937_v48 = vsel %vm871_vm5, %v2929_v60, %v2803_v18  ;;  %v2522_v56 = vsel %vm853_vm3, %v2514_v45, %v8270_v23  ;;  %v8715_v18 = vld [vmem:[%s6132_s18 + $0x260] sm:$0xff] }
 0x445   : > { %v2851_v16 = vpop.permute.xlu1 %2850  ;;  %v2945_v35 = vsel %vm880_vm6, %v2937_v48, %v2827_v15  ;;  %v2530_v20 = vsel %vm862_vm4, %v2522_v56, %v8343_v42  ;;  %v3724_v15 = vsel %vm835_vm1, %v8445_v3, %v3527_v9  ;;  %v8745_v9 = vld [vmem:[%s6132_s18 + $0x251] sm:$0xff]  ;;  %v5950_v60 = vld [vmem:[%s6132_s18 + $0x180] sm:$0xff] }
 0x446   : > { %v3551_v47 = vpop.permute.xlu0 %3550  ;;  %v2953_v39 = vsel %vm889_vm8, %v2945_v35, %v2851_v16  ;;  %v2538_v36 = vsel %vm871_vm5, %v2530_v20, %v8377_v30  ;;  %v5949_v16 = vld [vmem:[%s6132_s18 + $0x2d0] sm:$0xff]  ;;  %v3323_v48 = vsel %vm835_vm1, %v5950_v60, %v8588_v55  ;;  %v5951_v59 = vld [vmem:[%s6132_s18 + $0x2e0] sm:$0xff] }
 0x447   : > { %v2546_v42 = vsel %vm880_vm6, %v2538_v36, %v8363_v7  ;;  %v3732_v7 = vsel %vm844_vm2, %v3724_v15, %v3551_v47  ;;  %v3331_v35 = vsel %vm844_vm2, %v3323_v48, %v8613_v46  ;;  %v8798_v15 = vld [vmem:[%s6132_s18 + $0x361] sm:$0xff]  ;;  %v5957_v48 = vld [vmem:[%s6132_s18 + $0x170] sm:$0xff] }
 0x44a   : > { %2806 = vrot.lane.b32.xlu2 %v8687_v38, %s6052_s23 }
 0x44b   : > { %3704 = vrot.lane.b32.xlu1 %v8681_v29, %s6055_s26 }
 0x44c   : > { %3113 = vrot.lane.b32.xlu0 %v8695_v17, %s6048_s19  ;;  %v3647_v49 = vpop.permute.xlu2 %3646 }
 0x44d   : > { %v2883_v53 = vpop.permute.xlu1 %2882 }
 0x44e   : > { %v3575_v61 = vpop.permute.xlu0 %3574  ;;  %v2961_v11 = vsel %vm898_vm7, %v2953_v39, %v2883_v53  ;;  %v3339_v39 = vsel %vm853_vm3, %v3331_v35, %v8627_v4  ;;  %v8837_v35 = vld [vmem:[%s6132_s18 + $0x301] sm:$0xff] }
 0x44f   : > { %5460 = vmatmul.msk.f32.gmra.mxu1 %vm910_vm9, %v2961_v11  ;;  %v3347_v53 = vsel %vm862_vm4, %v3339_v39, %v8635_v52  ;;  %v8774_v11 = vld [vmem:[%s6132_s18 + $0x2f0] sm:$0xff] }
 0x450   : > { %v3355_v46 = vsel %vm871_vm5, %v3347_v53, %v8656_v22  ;;  %v8842_v39 = vld [vmem:[%s6132_s18 + $0x350] sm:$0xff] }
 0x452   : > { %2830 = vrot.lane.b32.xlu2 %v8715_v18, %s6053_s24 }
 0x453   : > { %3530 = vrot.lane.b32.xlu1 %v8720_v0, %s6048_s19 }
 0x454   : > { %3137 = vrot.lane.b32.xlu0 %v8720_v0, %s6049_s20  ;;  %v3671_v23 = vpop.permute.xlu2 %3670 }
 0x455   : > { %v2454_v13 = vpop.permute.xlu1 %2453 }
 0x456   : > { %v3599_v30 = vpop.permute.xlu0 %3598  ;;  %v2554_v26 = vsel %vm889_vm8, %v2546_v42, %v2454_v13  ;;  %v5954_v13 = vld [vmem:[%s6132_s18 + $0x271] sm:$0xff] }
 0x457   : > { %v2562_v14 = vsel %vm898_vm7, %v2554_v26, %v2486_v10  ;;  %v3740_v10 = vsel %vm853_vm3, %v3732_v7, %v3575_v61  ;;  %v8767_v61 = vld [vmem:[%s6132_s18 + $0x380] sm:$0xff] }
 0x458   : > { %5453 = vmatmul.msk.f32.gmra.mxu0 %vm910_vm9, %v2562_v14  ;;  %v3748_v41 = vsel %vm862_vm4, %v3740_v10, %v3599_v30  ;;  %v5385_v14 = vld [vmem:[%s6132_s18 + $0x310] sm:$0xff]  ;;  %v5955_v7 = vld [vmem:[%s6132_s18 + $0x281] sm:$0xff] }
 0x45a   : > { %2854 = vrot.lane.b32.xlu2 %v8520_v37, %s6054_s25 }
 0x45b   : > { %3554 = vrot.lane.b32.xlu1 %v8101_v2, %s6049_s20 }
 0x45c   : > { %3161 = vrot.lane.b32.xlu0 %v5949_v16, %s6050_s21  ;;  %v3703_v21 = vpop.permute.xlu2 %3702 }
 0x45d   : > { %v3623_v1 = vpop.permute.xlu1 %3622 }
 0x45e   : > { %v3238_v34 = vpop.permute.xlu0 %3237  ;;  %v3756_v3 = vsel %vm871_vm5, %v3748_v41, %v3623_v1  ;;  %v8810_v41 = vld [vmem:[%s6132_s18 + $0x320] sm:$0xff] }
 0x45f   : > { %v3764_v37 = vsel %vm880_vm6, %v3756_v3, %v3647_v49  ;;  %v3363_v4 = vsel %vm880_vm6, %v3355_v46, %v3238_v34  ;;  %v8848_v46 = vld [vmem:[%s6132_s18 + $0x2b1] sm:$0xff] }
 0x460   : > { %v3772_v47 = vsel %vm889_vm8, %v3764_v37, %v3671_v23  ;;  %v5377_v23 = vld [vmem:[%s6132_s18 + $0x300] sm:$0xff] }
 0x461   : > { %v3780_v50 = vsel %vm898_vm7, %v3772_v47, %v3703_v21  ;;  %v8822_v37 = vld [vmem:[%s6132_s18 + $0x340] sm:$0xff] }
 0x462   : > { %5479 = vmatmul.msk.f32.gmra.mxu3 %vm910_vm9, %v3780_v50  ;;  %2886 = vrot.lane.b32.xlu2 %v8745_v9, %s6055_s26  ;;  %v2906_v50 = vsel %vm835_vm1, %v5957_v48, %v8666_v62  ;;  %v5962_v48 = vld [vmem:[%s6132_s18 + $0x370] sm:$0xff] }
 0x463   : > { %3578 = vrot.lane.b32.xlu1 %v5951_v59, %s6050_s21 }
 0x464   : > { %3185 = vrot.lane.b32.xlu0 %v5951_v59, %s6051_s22  ;;  %v8760_v49 = vpop.permute.xlu2 %3528 }
 0x465   : > { %v3270_v45 = vpop.permute.xlu1 %3269 }
 0x466   : > { %v2733_v55 = vpop.permute.xlu0 %2732  ;;  %v3371_v56 = vsel %vm889_vm8, %v3363_v4, %v3270_v45 }
 0x467   : > { %v2914_v59 = vsel %vm844_vm2, %v2906_v50, %v2733_v55 }
 0x46a   : > { %2457 = vrot.lane.b32.xlu2 %v8767_v61, %s6054_s25 }
 0x46b   : > { %3602 = vrot.lane.b32.xlu1 %v8774_v11, %s6051_s22 }
 0x46c   : > { %3209 = vrot.lane.b32.xlu0 %v8774_v11, %s6052_s23  ;;  %v8781_v52 = vpop.permute.xlu2 %3552 }
 0x46d   : > { %v3302_v20 = vpop.permute.xlu1 %3301 }
 0x46e   : > { %v2757_v36 = vpop.permute.xlu0 %2756  ;;  %v3379_v22 = vsel %vm898_vm7, %v3371_v56, %v3302_v20 }
 0x46f   : > { %5470 = vmatmul.msk.f32.gmra.mxu2 %vm910_vm9, %v3379_v22  ;;  %v2922_v45 = vsel %vm853_vm3, %v2914_v59, %v2757_v36  ;;  %v5960_v22 = vld [vmem:[%s6132_s18 + $0x360] sm:$0xff] }
 0x472   : > { %3626 = vrot.lane.b32.xlu2 %v8644_v58, %s6052_s23 }
 0x473   : > { %3241 = vrot.lane.b32.xlu1 %v5377_v23, %s6053_s24  ;;  %v5961_v23 = vld [vmem:[%s6132_s18 + $0x280] sm:$0xff] }
 0x474   : > { %2712 = vrot.lane.b32.xlu0 %v5954_v13, %s6048_s19  ;;  %v8792_v42 = vpop.permute.xlu2 %3576  ;;  %v2507_v13 = vsel %vm835_vm1, %v5961_v23, %v8126_v63  ;;  %v8880_v63 = vld [vmem:[%s6132_s18 + $0x331] sm:$0xff] }
 0x475   : > { %v8794_v30 = vpop.permute.xlu1 %3111 }
 0x476   : > { %v2781_v26 = vpop.permute.xlu0 %2780 }
 0x47a   : > { %3273 = vrot.lane.b32.xlu2 %v5385_v14, %s6054_s25 }
 0x47b   : > { %2736 = vrot.lane.b32.xlu1 %v5955_v7, %s6049_s20  ;;  %v2515_v7 = vsel %vm844_vm2, %v2507_v13, %v8284_v43  ;;  %v3725_v13 = vsel %vm835_vm1, %v8559_v32, %v8760_v49 }
 0x47c   : > { %2489 = vrot.lane.b32.xlu0 %v8798_v15, %s6055_s26  ;;  %v8805_v16 = vpop.permute.xlu2 %3600  ;;  %v3733_v32 = vsel %vm844_vm2, %v3725_v13, %v8781_v52  ;;  %v5378_v52 = vld [vmem:[%s6132_s18 + $0x390] sm:$0xff] }
 0x47d   : > { %v8807_v10 = vpop.permute.xlu1 %3135 }
 0x47e   : > { %v2805_v21 = vpop.permute.xlu0 %2804 }
 0x482   : > { %3305 = vrot.lane.b32.xlu2 %v8810_v41, %s6055_s26 }
 0x483   : > { %2760 = vrot.lane.b32.xlu1 %v8720_v0, %s6050_s21 }
 0x484   : > { %3650 = vrot.lane.b32.xlu0 %v5385_v14, %s6053_s24  ;;  %v8817_v1 = vpop.permute.xlu2 %3239 }
 0x485   : > { %v8819_v34 = vpop.permute.xlu1 %3159 }
 0x486   : > { %v2829_v3 = vpop.permute.xlu0 %2828 }
 0x48a   : > { %3115 = vrot.lane.b32.xlu2 %v8822_v37, %s6048_s19 }
 0x48b   : > { %2784 = vrot.lane.b32.xlu1 %v8101_v2, %s6051_s22  ;;  %v2930_v2 = vsel %vm862_vm4, %v2922_v45, %v2781_v26 }
 0x48c   : > { %3674 = vrot.lane.b32.xlu0 %v8810_v41, %s6054_s25  ;;  %v8830_v0 = vpop.permute.xlu2 %2734  ;;  %v2938_v53 = vsel %vm871_vm5, %v2930_v2, %v2805_v21 }
 0x48d   : > { %v3184_v47 = vpop.permute.xlu1 %3183  ;;  %v2946_v62 = vsel %vm880_vm6, %v2938_v53, %v2829_v3  ;;  %v2523_v3 = vsel %vm853_vm3, %v2515_v7, %v8325_v19  ;;  %v5964_v53 = vld [vmem:[%s6132_s18 + $0x210] sm:$0xff] }
 0x48e   : > { %v2853_v60 = vpop.permute.xlu0 %2852 }
 0x48f   : > { %v2954_v4 = vsel %vm889_vm8, %v2946_v62, %v2853_v60  ;;  %v2531_v60 = vsel %vm862_vm4, %v2523_v3, %v8306_v57  ;;  %v3324_v62 = vsel %vm835_vm1, %v5964_v53, %v8794_v30  ;;  %v5966_v3 = vld [vmem:[%s6132_s18 + $0x301] sm:$0xff] }
 0x490   : > { %v2539_v50 = vsel %vm871_vm5, %v2531_v60, %v8375_v28  ;;  %v3741_v60 = vsel %vm853_vm3, %v3733_v32, %v8792_v42 }
 0x491   : > { %v2547_v43 = vsel %vm880_vm6, %v2539_v50, %v8416_v54  ;;  %v8932_v50 = vld [vmem:[%s6132_s18 + $0x3f1] sm:$0xff] }
 0x492   : > { %3139 = vrot.lane.b32.xlu2 %v8842_v39, %s6049_s20 }
 0x493   : > { %2808 = vrot.lane.b32.xlu1 %v8848_v46, %s6052_s23 }
 0x494   : > { %3706 = vrot.lane.b32.xlu0 %v8837_v35, %s6055_s26  ;;  %v2759_v55 = vpop.permute.xlu2 %2758 }
 0x495   : > { %v3208_v56 = vpop.permute.xlu1 %3207 }
 0x496   : > { %v2885_v20 = vpop.permute.xlu0 %2884 }
 0x497   : > { %v2962_v36 = vsel %vm898_vm7, %v2954_v4, %v2885_v20  ;;  %v3332_v20 = vsel %vm844_vm2, %v3324_v62, %v8807_v10  ;;  %v8916_v10 = vld [vmem:[%s6132_s18 + $0x410] sm:$0xff] }
 0x498   : > { %5461 = vmatmul.msk.f32.gmra.mxu1 %vm910_vm9, %v2962_v36  ;;  %v5965_v36 = vld [vmem:[%s6132_s18 + $0x200] sm:$0xff]  ;;  %v3340_v23 = vsel %vm853_vm3, %v3332_v20, %v8819_v34 }
 0x499   : > { %v3348_v7 = vsel %vm862_vm4, %v3340_v23, %v3184_v47 }
 0x49a   : > { %3163 = vrot.lane.b32.xlu2 %v5960_v22, %s6050_s21 }
 0x49b   : > { %2832 = vrot.lane.b32.xlu1 %v8774_v11, %s6053_s24 }
 0x49c   : > { %3532 = vrot.lane.b32.xlu0 %v8842_v39, %s6048_s19  ;;  %v2783_v26 = vpop.permute.xlu2 %2782 }
 0x49d   : > { %v2711_v14 = vpop.permute.xlu1 %2710 }
 0x49e   : > { %v2456_v21 = vpop.permute.xlu0 %2455  ;;  %v2907_v22 = vsel %vm835_vm1, %v5965_v36, %v2711_v14 }
 0x49f   : > { %v2555_v57 = vsel %vm889_vm8, %v2547_v43, %v2456_v21  ;;  %v3356_v21 = vsel %vm871_vm5, %v3348_v7, %v3208_v56  ;;  %v2915_v30 = vsel %vm844_vm2, %v2907_v22, %v8830_v0  ;;  %v8962_v22 = vld [vmem:[%s6132_s18 + $0x3b0] sm:$0xff] }
 0x4a0   : > { %v2923_v49 = vsel %vm853_vm3, %v2915_v30, %v2759_v55  ;;  %v3364_v34 = vsel %vm880_vm6, %v3356_v21, %v8817_v1  ;;  %v3749_v1 = vsel %vm862_vm4, %v3741_v60, %v8805_v16  ;;  %v8975_v21 = vld [vmem:[%s6132_s18 + $0x391] sm:$0xff] }
 0x4a1   : > { %v2931_v43 = vsel %vm862_vm4, %v2923_v49, %v2783_v26  ;;  %v8980_v30 = vld [vmem:[%s6132_s18 + $0x3d0] sm:$0xff]  ;;  %v8989_v49 = vld [vmem:[%s6132_s18 + $0x3e0] sm:$0xff] }
 0x4a2   : > { %3187 = vrot.lane.b32.xlu2 %v5962_v48, %s6051_s22 }
 0x4a3   : > { %2856 = vrot.lane.b32.xlu1 %v8644_v58, %s6054_s25  ;;  %v8890_v58 = vld [vmem:[%s6132_s18 + $0x2e1] sm:$0xff] }
 0x4a4   : > { %3556 = vrot.lane.b32.xlu0 %v8880_v63, %s6049_s20  ;;  %v2807_v19 = vpop.permute.xlu2 %2806 }
 0x4a5   : > { %v2488_v59 = vpop.permute.xlu1 %2487  ;;  %v2939_v55 = vsel %vm871_vm5, %v2931_v43, %v2807_v19  ;;  %v9004_v43 = vld [vmem:[%s6132_s18 + $0x3c1] sm:$0xff] }
 0x4a6   : > { %v3625_v45 = vpop.permute.xlu0 %3624  ;;  %v2563_v28 = vsel %vm898_vm7, %v2555_v57, %v2488_v59 }
 0x4a7   : > { %5454 = vmatmul.msk.f32.gmra.mxu0 %vm910_vm9, %v2563_v28  ;;  %v3757_v42 = vsel %vm871_vm5, %v3749_v1, %v3625_v45  ;;  %v5974_v1 = vld [vmem:[%s6132_s18 + $0x3f0] sm:$0xff] }
 0x4aa   : > { %3211 = vrot.lane.b32.xlu2 %v8767_v61, %s6052_s23 }
 0x4ab   : > { %2888 = vrot.lane.b32.xlu1 %v8890_v58, %s6055_s26 }
 0x4ac   : > { %3580 = vrot.lane.b32.xlu0 %v5962_v48, %s6050_s21  ;;  %v2831_v54 = vpop.permute.xlu2 %2830 }
 0x4ad   : > { %v3649_v2 = vpop.permute.xlu1 %3648  ;;  %v2947_v26 = vsel %vm880_vm6, %v2939_v55, %v2831_v54  ;;  %v5386_v54 = vld [vmem:[%s6132_s18 + $0x3a0] sm:$0xff]  ;;  %v5975_v55 = vld [vmem:[%s6132_s18 + $0x310] sm:$0xff] }
 0x4ae   : > { %v3272_v4 = vpop.permute.xlu0 %3271  ;;  %v3765_v57 = vsel %vm880_vm6, %v3757_v42, %v3649_v2  ;;  %v5968_v2 = vld [vmem:[%s6132_s18 + $0x311] sm:$0xff]  ;;  %v2508_v42 = vsel %vm835_vm1, %v5975_v55, %v8260_v44 }
 0x4af   : > { %v3372_v56 = vsel %vm889_vm8, %v3364_v34, %v3272_v4  ;;  %v8996_v34 = vld [vmem:[%s6132_s18 + $0x341] sm:$0xff] }
 0x4b2   : > { %2714 = vrot.lane.b32.xlu2 %v5966_v3, %s6048_s19 }
 0x4b3   : > { %2459 = vrot.lane.b32.xlu1 %v8916_v10, %s6054_s25 }
 0x4b4   : > { %3604 = vrot.lane.b32.xlu0 %v8767_v61, %s6051_s22  ;;  %v2855_v0 = vpop.permute.xlu2 %2854 }
 0x4b5   : > { %v3673_v47 = vpop.permute.xlu1 %3672  ;;  %v2955_v16 = vsel %vm889_vm8, %v2947_v26, %v2855_v0 }
 0x4b6   : > { %v3304_v14 = vpop.permute.xlu0 %3303  ;;  %v3773_v59 = vsel %vm889_vm8, %v3765_v57, %v3673_v47 }
 0x4b7   : > { %v3380_v48 = vsel %vm898_vm7, %v3372_v56, %v3304_v14  ;;  %v5972_v14 = vld [vmem:[%s6132_s18 + $0x2a0] sm:$0xff] }
 0x4b8   : > { %5471 = vmatmul.msk.f32.gmra.mxu2 %vm910_vm9, %v3380_v48 }
 0x4ba   : > { %2491 = vrot.lane.b32.xlu2 %v8932_v50, %s6055_s26 }
 0x4bb   : > { %3628 = vrot.lane.b32.xlu1 %v8798_v15, %s6052_s23 }
 0x4bc   : > { %3243 = vrot.lane.b32.xlu0 %v5378_v52, %s6053_s24  ;;  %v2887_v28 = vpop.permute.xlu2 %2886 }
 0x4bd   : > { %v3705_v53 = vpop.permute.xlu1 %3704  ;;  %v2963_v45 = vsel %vm898_vm7, %v2955_v16, %v2887_v28 }
 0x4be   : > { %v3114_v19 = vpop.permute.xlu0 %3113  ;;  %v3781_v62 = vsel %vm898_vm7, %v3773_v59, %v3705_v53  ;;  %5462 = vmatmul.msk.f32.gmra.mxu1 %vm910_vm9, %v2963_v45 }
 0x4bf   : > { %5480 = vmatmul.msk.f32.gmra.mxu3 %vm910_vm9, %v3781_v62  ;;  %v3325_v60 = vsel %vm835_vm1, %v5972_v14, %v3114_v19  ;;  %v2516_v19 = vsel %vm844_vm2, %v2508_v42, %v8228_v33  ;;  %v9076_v42 = vld [vmem:[%s6132_s18 + $0x481] sm:$0xff] }
 0x4c0   : > { %v2524_v45 = vsel %vm853_vm3, %v2516_v19, %v8323_v24  ;;  %v5387_v19 = vld [vmem:[%s6132_s18 + $0x430] sm:$0xff] }
 0x4c1   : > { %v2532_v62 = vsel %vm862_vm4, %v2524_v45, %v8355_v12 }
 0x4c2   : > { %3652 = vrot.lane.b32.xlu2 %v5386_v54, %s6053_s24  ;;  %v2540_v33 = vsel %vm871_vm5, %v2532_v62, %v8341_v5  ;;  %v5980_v62 = vld [vmem:[%s6132_s18 + $0x61] sm:$0xff] }
 0x4c3   : > { %3275 = vrot.lane.b32.xlu1 %v5386_v54, %s6054_s25  ;;  %v5976_v54 = vld [vmem:[%s6132_s18 + $0x400] sm:$0xff]  ;;  %v2548_v24 = vsel %vm880_vm6, %v2540_v33, %v8414_v25 }
 0x4c4   : > { %2738 = vrot.lane.b32.xlu0 %v5968_v2, %s6049_s20  ;;  %v2458_v4 = vpop.permute.xlu2 %2457 }
 0x4c5   : > { %v8959_v20 = vpop.permute.xlu1 %3530 }
 0x4c6   : > { %v3138_v36 = vpop.permute.xlu0 %3137 }
 0x4c7   : > { %v3333_v48 = vsel %vm844_vm2, %v3325_v60, %v3138_v36  ;;  %v2556_v36 = vsel %vm889_vm8, %v2548_v24, %v2458_v4  ;;  %v5981_v24 = vld [vmem:[%s6132_s18 + $0x290] sm:$0xff] }
 0x4ca   : > { %3676 = vrot.lane.b32.xlu2 %v8962_v22, %s6054_s25 }
 0x4cb   : > { %3307 = vrot.lane.b32.xlu1 %v8962_v22, %s6055_s26 }
 0x4cc   : > { %2762 = vrot.lane.b32.xlu0 %v8842_v39, %s6050_s21  ;;  %v8970_v23 = vpop.permute.xlu2 %3626 }
 0x4cd   : > { %v8972_v13 = vpop.permute.xlu1 %3554 }
 0x4ce   : > { %v3162_v7 = vpop.permute.xlu0 %3161 }
 0x4cf   : > { %v3341_v52 = vsel %vm853_vm3, %v3333_v48, %v3162_v7  ;;  %v3726_v48 = vsel %vm835_vm1, %v8695_v17, %v8959_v20 }
 0x4d2   : > { %3708 = vrot.lane.b32.xlu2 %v8975_v21, %s6055_s26 }
 0x4d3   : > { %3117 = vrot.lane.b32.xlu1 %v8980_v30, %s6048_s19 }
 0x4d4   : > { %2786 = vrot.lane.b32.xlu0 %v8880_v63, %s6051_s22  ;;  %v3274_v39 = vpop.permute.xlu2 %3273 }
 0x4d5   : > { %v8986_v3 = vpop.permute.xlu1 %3578 }
 0x4d6   : > { %v3186_v32 = vpop.permute.xlu0 %3185 }
 0x4d7   : > { %v3349_v26 = vsel %vm862_vm4, %v3341_v52, %v3186_v32  ;;  %v5379_v32 = vld [vmem:[%s6132_s18 + $0x420] sm:$0xff] }
 0x4da   : > { %3534 = vrot.lane.b32.xlu2 %v8989_v49, %s6048_s19 }
 0x4db   : > { %3141 = vrot.lane.b32.xlu1 %v8989_v49, %s6049_s20 }
 0x4dc   : > { %2810 = vrot.lane.b32.xlu0 %v8996_v34, %s6052_s23  ;;  %v3306_v0 = vpop.permute.xlu2 %3305 }
 0x4dd   : > { %v3603_v47 = vpop.permute.xlu1 %3602 }
 0x4de   : > { %v3210_v56 = vpop.permute.xlu0 %3209 }
 0x4df   : > { %v3357_v57 = vsel %vm871_vm5, %v3349_v26, %v3210_v56  ;;  %v9062_v56 = vld [vmem:[%s6132_s18 + $0x4a0] sm:$0xff] }
 0x4e2   : > { %3558 = vrot.lane.b32.xlu2 %v9004_v43, %s6049_s20 }
 0x4e3   : > { %3165 = vrot.lane.b32.xlu1 %v5974_v1, %s6050_s21  ;;  %v3734_v1 = vsel %vm844_vm2, %v3726_v48, %v8972_v13  ;;  %v9122_v48 = vld [vmem:[%s6132_s18 + $0x460] sm:$0xff] }
 0x4e4   : > { %2834 = vrot.lane.b32.xlu0 %v8767_v61, %s6053_s24  ;;  %v9018_v16 = vpop.permute.xlu2 %3115  ;;  %v3742_v55 = vsel %vm853_vm3, %v3734_v1, %v8986_v3 }
 0x4e5   : > { %v3242_v59 = vpop.permute.xlu1 %3241  ;;  %v3750_v26 = vsel %vm862_vm4, %v3742_v55, %v3603_v47 }
 0x4e6   : > { %v3365_v28 = vsel %vm880_vm6, %v3357_v57, %v3242_v59  ;;  %v9021_v53 = vpop.permute.xlu0 %2712  ;;  %v5979_v57 = vld [vmem:[%s6132_s18 + $0x3a1] sm:$0xff]  ;;  %v3758_v17 = vsel %vm871_vm5, %v3750_v26, %v8970_v23 }
 0x4e7   : > { %v3373_v61 = vsel %vm889_vm8, %v3365_v28, %v3274_v39 }
 0x4e8   : > { %v3381_v44 = vsel %vm898_vm7, %v3373_v61, %v3306_v0  ;;  %v5977_v0 = vld [vmem:[%s6132_s18 + $0x391] sm:$0xff] }
 0x4e9   : > { %5472 = vmatmul.msk.f32.gmra.mxu2 %vm910_vm9, %v3381_v44  ;;  %v9101_v44 = vld [vmem:[%s6132_s18 + $0x440] sm:$0xff] }
 0x4ea   : > { %3582 = vrot.lane.b32.xlu2 %v5976_v54, %s6050_s21 }
 0x4eb   : > { %3189 = vrot.lane.b32.xlu1 %v5976_v54, %s6051_s22 }
 0x4ec   : > { %2858 = vrot.lane.b32.xlu0 %v8798_v15, %s6054_s25  ;;  %v9041_v2 = vpop.permute.xlu2 %3139  ;;  %v9047_v15 = vld [vmem:[%s6132_s18 + $0x371] sm:$0xff] }
 0x4ed   : > { %v2737_v12 = vpop.permute.xlu1 %2736 }
 0x4ee   : > { %v2490_v7 = vpop.permute.xlu0 %2489 }
 0x4ef   : > { %v2564_v39 = vsel %vm898_vm7, %v2556_v36, %v2490_v7  ;;  %v2908_v36 = vsel %vm835_vm1, %v5981_v24, %v9021_v53  ;;  %v9113_v7 = vld [vmem:[%s6132_s18 + $0x421] sm:$0xff] }
 0x4f0   : > { %5455 = vmatmul.msk.f32.gmra.mxu0 %vm910_vm9, %v2564_v39  ;;  %v2916_v39 = vsel %vm844_vm2, %v2908_v36, %v2737_v12  ;;  %v5983_v53 = vld [vmem:[%s6132_s18 + $0x3a0] sm:$0xff] }
 0x4f1   : > { %v2509_v12 = vsel %vm835_vm1, %v5983_v53, %v8258_v27  ;;  %v5988_v53 = vld [vmem:[%s6132_s18 + $0x330] sm:$0xff] }
 0x4f2   : > { %3606 = vrot.lane.b32.xlu2 %v8916_v10, %s6051_s22 }
 0x4f3   : > { %3213 = vrot.lane.b32.xlu1 %v8916_v10, %s6052_s23 }
 0x4f4   : > { %2890 = vrot.lane.b32.xlu0 %v9047_v15, %s6055_s26  ;;  %v9055_v5 = vpop.permute.xlu2 %3163 }
 0x4f5   : > { %v2761_v25 = vpop.permute.xlu1 %2760 }
 0x4f6   : > { %v3651_v4 = vpop.permute.xlu0 %3650 }
 0x4f7   : > { %v3766_v20 = vsel %vm880_vm6, %v3758_v17, %v3651_v4  ;;  %v2924_v4 = vsel %vm853_vm3, %v2916_v39, %v2761_v25  ;;  %v5987_v39 = vld [vmem:[%s6132_s18 + $0xb0] sm:$0xff] }
 0x4fa   : > { %3245 = vrot.lane.b32.xlu2 %v5379_v32, %s6053_s24 }
 0x4fb   : > { %2716 = vrot.lane.b32.xlu1 %v5977_v0, %s6048_s19 }
 0x4fc   : > { %2461 = vrot.lane.b32.xlu0 %v9062_v56, %s6054_s25  ;;  %v9066_v14 = vpop.permute.xlu2 %3187 }
 0x4fd   : > { %v2785_v60 = vpop.permute.xlu1 %2784 }
 0x4fe   : > { %v3675_v52 = vpop.permute.xlu0 %3674  ;;  %v2932_v32 = vsel %vm862_vm4, %v2924_v4, %v2785_v60  ;;  %v2517_v60 = vsel %vm844_vm2, %v2509_v12, %v8298_v51  ;;  %v9149_v51 = vld [vmem:[%s6132_s18 + $0x3d1] sm:$0xff]  ;;  %v3326_v12 = vsel %vm835_vm1, %v5988_v53, %v9018_v16 }
 0x4ff   : > { %v3774_v47 = vsel %vm889_vm8, %v3766_v20, %v3675_v52  ;;  %v2525_v17 = vsel %vm853_vm3, %v2517_v60, %v8282_v40  ;;  %v11199_v20 = vld [vmem:[#allocation21_spill] sm:$0xff] }
 0x500   : > { %v2533_v27 = vsel %vm862_vm4, %v2525_v17, %v8353_v8  ;;  %v11200_v8 = vld [vmem:[#allocation41_spill] sm:$0xff] }
 0x501   : > { %v5989_v60 = vld [vmem:[%s6132_s18 + $0x91] sm:$0xff] }
 0x502   : > { %2740 = vrot.lane.b32.xlu2 %v5979_v57, %s6049_s20 }
 0x503   : > { %2493 = vrot.lane.b32.xlu1 %v9076_v42, %s6055_s26 }
 0x504   : > { %3630 = vrot.lane.b32.xlu0 %v8932_v50, %s6052_s23  ;;  %v9088_v13 = vpop.permute.xlu2 %3211 }
 0x505   : > { %v2809_v3 = vpop.permute.xlu1 %2808 }
 0x506   : > { %v3707_v59 = vpop.permute.xlu0 %3706  ;;  %v2940_v0 = vsel %vm871_vm5, %v2932_v32, %v2809_v3  ;;  %v2541_v3 = vsel %vm871_vm5, %v2533_v27, %v11199_v20  ;;  %v5992_v20 = vld [vmem:[%s6132_s18 + $0x490] sm:$0xff] }
 0x507   : > { %v3782_v28 = vsel %vm898_vm7, %v3774_v47, %v3707_v59  ;;  %v9144_v47 = vld [vmem:[%s6132_s18 + $0x470] sm:$0xff] }
 0x508   : > { %5481 = vmatmul.msk.f32.gmra.mxu3 %vm910_vm9, %v3782_v28  ;;  %v5986_v59 = vld [vmem:[%s6132_s18 + $0x71] sm:$0xff] }
 0x50a   : > { %2764 = vrot.lane.b32.xlu2 %v8989_v49, %s6050_s21 }
 0x50b   : > { %3654 = vrot.lane.b32.xlu1 %v5387_v19, %s6053_s24 }
 0x50c   : > { %3277 = vrot.lane.b32.xlu0 %v5387_v19, %s6054_s25  ;;  %v9098_v23 = vpop.permute.xlu2 %2714  ;;  %v2549_v19 = vsel %vm880_vm6, %v2541_v3, %v11200_v8 }
 0x50d   : > { %v2833_v61 = vpop.permute.xlu1 %2832 }
 0x50e   : > { %v3533_v45 = vpop.permute.xlu0 %3532  ;;  %v2948_v25 = vsel %vm880_vm6, %v2940_v0, %v2833_v61 }
 0x50f   : > { %v3727_v24 = vsel %vm835_vm1, %v8822_v37, %v3533_v45 }
 0x512   : > { %3923 = vrot.lane.b32.xlu2 %v5980_v62, %s6048_s19 }
 0x513   : > { %3678 = vrot.lane.b32.xlu1 %v9101_v44, %s6054_s25 }
 0x514   : > { %3309 = vrot.lane.b32.xlu0 %v9101_v44, %s6055_s26  ;;  %v2492_v49 = vpop.permute.xlu2 %2491 }
 0x515   : > { %v2857_v54 = vpop.permute.xlu1 %2856 }
 0x516   : > { %v3557_v33 = vpop.permute.xlu0 %3556  ;;  %v2956_v52 = vsel %vm889_vm8, %v2948_v25, %v2857_v54 }
 0x517   : > { %v3735_v36 = vsel %vm844_vm2, %v3727_v24, %v3557_v33 }
 0x51a   : > { %3710 = vrot.lane.b32.xlu2 %v9113_v7, %s6055_s26 }
 0x51b   : > { %3119 = vrot.lane.b32.xlu1 %v9122_v48, %s6048_s19 }
 0x51c   : > { %2788 = vrot.lane.b32.xlu0 %v9004_v43, %s6051_s22  ;;  %v3653_v1 = vpop.permute.xlu2 %3652 }
 0x51d   : > { %v2889_v55 = vpop.permute.xlu1 %2888 }
 0x51e   : > { %v3581_v26 = vpop.permute.xlu0 %3580  ;;  %v2964_v57 = vsel %vm898_vm7, %v2956_v52, %v2889_v55  ;;  %v9182_v52 = vld [vmem:[%s6132_s18 + $0x451] sm:$0xff]  ;;  %v3334_v55 = vsel %vm844_vm2, %v3326_v12, %v9041_v2 }
 0x51f   : > { %5463 = vmatmul.msk.f32.gmra.mxu1 %vm910_vm9, %v2964_v57  ;;  %11201 = vst [vmem:[#allocation16_spill] sm:$0xff] %v9182_v52  ;;  %v3342_v17 = vsel %vm853_vm3, %v3334_v55, %v9055_v5  ;;  %v5405_v55 = vld [vmem:[%s6132_s18 + $0xd1] sm:$0xff] }
 0x520   : > { %v3350_v27 = vsel %vm862_vm4, %v3342_v17, %v9066_v14 }
 0x521   : > { %v3358_v3 = vsel %vm871_vm5, %v3350_v27, %v9088_v13  ;;  %v9210_v13 = vld [vmem:[%s6132_s18 + $0x401] sm:$0xff] }
 0x522   : > { %3143 = vrot.lane.b32.xlu2 %v9144_v47, %s6049_s20  ;;  %11202 = vst [vmem:[#allocation35_spill] sm:$0xff] %v9210_v13 }
 0x523   : > { %2812 = vrot.lane.b32.xlu1 %v9149_v51, %s6052_s23 }
 0x524   : > { %3947 = vrot.lane.b32.xlu0 %v5986_v59, %s6049_s20  ;;  %v3677_v40 = vpop.permute.xlu2 %3676 }
 0x525   : > { %v2460_v28 = vpop.permute.xlu1 %2459 }
 0x526   : > { %v2557_v61 = vsel %vm889_vm8, %v2549_v19, %v2460_v28  ;;  %v3605_v62 = vpop.permute.xlu0 %3604 }
 0x527   : > { %v2565_v54 = vsel %vm898_vm7, %v2557_v61, %v2492_v49  ;;  %v3743_v49 = vsel %vm853_vm3, %v3735_v36, %v3581_v26 }
 0x528   : > { %5456 = vmatmul.msk.f32.gmra.mxu0 %vm910_vm9, %v2565_v54  ;;  %v3751_v4 = vsel %vm862_vm4, %v3743_v49, %v3605_v62  ;;  %v5994_v62 = vld [vmem:[%s6132_s18 + $0x421] sm:$0xff]  ;;  %v5380_v49 = vld [vmem:[%s6132_s18 + $0x4b0] sm:$0xff] }
 0x529   : > { %v5995_v54 = vld [vmem:[%s6132_s18 + $0xe0] sm:$0xff] }
 0x52a   : > { %2836 = vrot.lane.b32.xlu2 %v8916_v10, %s6053_s24 }
 0x52b   : > { %3971 = vrot.lane.b32.xlu1 %v5987_v39, %s6050_s21 }
 0x52c   : > { %3536 = vrot.lane.b32.xlu0 %v9144_v47, %s6048_s19  ;;  %v3709_v32 = vpop.permute.xlu2 %3708 }
 0x52d   : > { %v3629_v37 = vpop.permute.xlu1 %3628 }
 0x52e   : > { %v3759_v45 = vsel %vm871_vm5, %v3751_v4, %v3629_v37  ;;  %v3244_v10 = vpop.permute.xlu0 %3243  ;;  %v5996_v4 = vld [vmem:[%s6132_s18 + $0xc1] sm:$0xff] }
 0x52f   : > { %v3767_v33 = vsel %vm880_vm6, %v3759_v45, %v3653_v1  ;;  %v5991_v1 = vld [vmem:[%s6132_s18 + $0x480] sm:$0xff]  ;;  %v3366_v2 = vsel %vm880_vm6, %v3358_v3, %v3244_v10 }
 0x530   : > { %v3775_v0 = vsel %vm889_vm8, %v3767_v33, %v3677_v40  ;;  %v5388_v10 = vld [vmem:[%s6132_s18 + $0x4c0] sm:$0xff]  ;;  %v5997_v33 = vld [vmem:[%s6132_s18 + $0x431] sm:$0xff] }
 0x531   : > { %v3783_v25 = vsel %vm898_vm7, %v3775_v0, %v3709_v32 }
 0x532   : > { %5482 = vmatmul.msk.f32.gmra.mxu3 %vm910_vm9, %v3783_v25  ;;  %3995 = vrot.lane.b32.xlu2 %v5989_v60, %s6051_s22  ;;  %v5396_v25 = vld [vmem:[%s6132_s18 + $0x4d0] sm:$0xff]  ;;  %v5998_v60 = vld [vmem:[%s6132_s18 + $0x320] sm:$0xff] }
 0x533   : > { %3560 = vrot.lane.b32.xlu1 %v9182_v52, %s6049_s20 }
 0x534   : > { %3167 = vrot.lane.b32.xlu0 %v5991_v1, %s6050_s21  ;;  %v9190_v26 = vpop.permute.xlu2 %3534  ;;  %v2909_v1 = vsel %vm835_vm1, %v5998_v60, %v9098_v23  ;;  %v9291_v60 = vld [vmem:[%s6132_s18 + $0x461] sm:$0xff] }
 0x535   : > { %v3276_v16 = vpop.permute.xlu1 %3275  ;;  %11207 = vst [vmem:[#allocation33_spill] sm:$0xff] %v9291_v60 }
 0x536   : > { %v2739_v57 = vpop.permute.xlu0 %2738  ;;  %v3374_v5 = vsel %vm889_vm8, %v3366_v2, %v3276_v16 }
 0x537   : > { %v2917_v16 = vsel %vm844_vm2, %v2909_v1, %v2739_v57  ;;  %v11208_v1 = vld [vmem:[#allocation31_spill] sm:$0xff] }
 0x53a   : > { %3584 = vrot.lane.b32.xlu2 %v5992_v20, %s6050_s21 }
 0x53b   : > { %3191 = vrot.lane.b32.xlu1 %v5992_v20, %s6051_s22 }
 0x53c   : > { %2860 = vrot.lane.b32.xlu0 %v8932_v50, %s6054_s25  ;;  %v9205_v59 = vpop.permute.xlu2 %3558  ;;  %v5993_v50 = vld [vmem:[%s6132_s18 + $0xa1] sm:$0xff] }
 0x53d   : > { %v3308_v14 = vpop.permute.xlu1 %3307 }
 0x53e   : > { %v2763_v40 = vpop.permute.xlu0 %2762  ;;  %v3382_v28 = vsel %vm898_vm7, %v3374_v5, %v3308_v14 }
 0x53f   : > { %5473 = vmatmul.msk.f32.gmra.mxu2 %vm910_vm9, %v3382_v28  ;;  %v2925_v17 = vsel %vm853_vm3, %v2917_v16, %v2763_v40  ;;  %v6000_v28 = vld [vmem:[%s6132_s18 + $0x430] sm:$0xff]  ;;  %v6003_v16 = vld [vmem:[%s6132_s18 + $0x101] sm:$0xff] }
 0x542   : > { %3215 = vrot.lane.b32.xlu2 %v9062_v56, %s6052_s23 }
 0x543   : > { %2892 = vrot.lane.b32.xlu1 %v9210_v13, %s6055_s26 }
 0x544   : > { %4019 = vrot.lane.b32.xlu0 %v5993_v50, %s6052_s23  ;;  %v9218_v8 = vpop.permute.xlu2 %3582  ;;  %v11203_v50 = vld [vmem:[#allocation28_spill] sm:$0xff] }
 0x545   : > { %v9220_v19 = vpop.permute.xlu1 %3117 }
 0x546   : > { %v2787_v61 = vpop.permute.xlu0 %2786 }
 0x547   : > { %v2933_v27 = vsel %vm862_vm4, %v2925_v17, %v2787_v61  ;;  %v2510_v61 = vsel %vm835_vm1, %v6000_v28, %v11203_v50  ;;  %v6004_v28 = vld [vmem:[%s6132_s18 + $0x121] sm:$0xff]  ;;  %v3728_v50 = vsel %vm835_vm1, %v8980_v30, %v9190_v26  ;;  %v9327_v26 = vld [vmem:[%s6132_s18 + $0x491] sm:$0xff] }
 0x548   : > { %11211 = vst [vmem:[#allocation14_spill] sm:$0xff] %v9327_v26 }
 0x54a   : > { %2718 = vrot.lane.b32.xlu2 %v5994_v62, %s6048_s19 }
 0x54b   : > { %4043 = vrot.lane.b32.xlu1 %v5995_v54, %s6053_s24 }
 0x54c   : > { %3608 = vrot.lane.b32.xlu0 %v9062_v56, %s6051_s22  ;;  %v9228_v24 = vpop.permute.xlu2 %3606 }
 0x54d   : > { %v9230_v36 = vpop.permute.xlu1 %3141 }
 0x54e   : > { %v2811_v39 = vpop.permute.xlu0 %2810 }
 0x54f   : > { %v2941_v20 = vsel %vm871_vm5, %v2933_v27, %v2811_v39  ;;  %v11204_v39 = vld [vmem:[#allocation15_spill] sm:$0xff]  ;;  %v11210_v27 = vld [vmem:[#allocation29_spill] sm:$0xff] }
 0x552   : > { %4067 = vrot.lane.b32.xlu2 %v5996_v4, %s6054_s25  ;;  %v6001_v4 = vld [vmem:[%s6132_s18 + $0x3b0] sm:$0xff] }
 0x553   : > { %3632 = vrot.lane.b32.xlu1 %v9076_v42, %s6052_s23 }
 0x554   : > { %3247 = vrot.lane.b32.xlu0 %v5380_v49, %s6053_s24  ;;  %v9238_v32 = vpop.permute.xlu2 %3245  ;;  %v2518_v49 = vsel %vm844_vm2, %v2510_v61, %v11204_v39  ;;  %v6005_v61 = vld [vmem:[%s6132_s18 + $0x140] sm:$0xff] }
 0x555   : > { %v9240_v37 = vpop.permute.xlu1 %3165  ;;  %v6006_v39 = vld [vmem:[%s6132_s18 + $0x3c0] sm:$0xff] }
 0x556   : > { %v2835_v45 = vpop.permute.xlu0 %2834 }
 0x557   : > { %v2949_v23 = vsel %vm880_vm6, %v2941_v20, %v2835_v45 }
 0x55a   : > { %3656 = vrot.lane.b32.xlu2 %v5388_v10, %s6053_s24 }
 0x55b   : > { %3279 = vrot.lane.b32.xlu1 %v5388_v10, %s6054_s25  ;;  %v11205_v10 = vld [vmem:[#allocation40_spill] sm:$0xff] }
 0x55c   : > { %2742 = vrot.lane.b32.xlu0 %v5997_v33, %s6049_s20  ;;  %v2741_v0 = vpop.permute.xlu2 %2740  ;;  %v2526_v33 = vsel %vm853_vm3, %v2518_v49, %v11205_v10  ;;  %v3327_v49 = vsel %vm835_vm1, %v6006_v39, %v9220_v19  ;;  %v6007_v19 = vld [vmem:[%s6132_s18 + $0x131] sm:$0xff] }
 0x55d   : > { %v9247_v53 = vpop.permute.xlu1 %3189  ;;  %v3335_v30 = vsel %vm844_vm2, %v3327_v49, %v9230_v36  ;;  %v6014_v39 = vld [vmem:[%s6132_s18 + $0x1b1] sm:$0xff] }
 0x55e   : > { %v2859_v12 = vpop.permute.xlu0 %2858 }
 0x55f   : > { %v2957_v2 = vsel %vm889_vm8, %v2949_v23, %v2859_v12 }
 0x562   : > { %3311 = vrot.lane.b32.xlu2 %v5396_v25, %s6055_s26 }
 0x563   : > { %2766 = vrot.lane.b32.xlu1 %v9144_v47, %s6050_s21  ;;  %v5999_v47 = vld [vmem:[%s6132_s18 + $0xf1] sm:$0xff] }
 0x564   : > { %4099 = vrot.lane.b32.xlu0 %v5405_v55, %s6055_s26  ;;  %v9263_v3 = vpop.permute.xlu2 %2764  ;;  %v2534_v55 = vsel %vm862_vm4, %v2526_v33, %v11208_v1 }
 0x565   : > { %v3214_v57 = vpop.permute.xlu1 %3213 }
 0x566   : > { %v2891_v5 = vpop.permute.xlu0 %2890 }
 0x567   : > { %v2965_v14 = vsel %vm898_vm7, %v2957_v2, %v2891_v5 }
 0x568   : > { %5464 = vmatmul.msk.f32.gmra.mxu1 %vm910_vm9, %v2965_v14 }
 0x56a   : > { %2790 = vrot.lane.b32.xlu2 %v9182_v52, %s6051_s22  ;;  %v5409_v52 = vld [vmem:[%s6132_s18 + $0x311] sm:$0xff] }
 0x56b   : > { %3925 = vrot.lane.b32.xlu1 %v5999_v47, %s6048_s19 }
 0x56c   : > { %3680 = vrot.lane.b32.xlu0 %v5396_v25, %s6054_s25  ;;  %v9273_v40 = vpop.permute.xlu2 %3923  ;;  %v9288_v25 = vld [vmem:[%s6132_s18 + $0x4b1] sm:$0xff] }
 0x56d   : > { %v2717_v62 = vpop.permute.xlu1 %2716  ;;  %11206 = vst [vmem:[#allocation2_spill] sm:$0xff] %v9288_v25 }
 0x56e   : > { %v2462_v54 = vpop.permute.xlu0 %2461  ;;  %v2910_v45 = vsel %vm835_vm1, %v6001_v4, %v2717_v62 }
 0x56f   : > { %v9285_v12 = vsel %vm844_vm2, %v2910_v45, %v2741_v0  ;;  %v11209_v0 = vld [vmem:[#allocation25_spill] sm:$0xff] }
 0x570   : > { %v2542_v17 = vsel %vm871_vm5, %v2534_v55, %v11209_v0  ;;  %v5406_v0 = vld [vmem:[%s6132_s18 + $0x161] sm:$0xff] }
 0x571   : > { %v2550_v20 = vsel %vm880_vm6, %v2542_v17, %v11210_v27  ;;  %v6008_v17 = vld [vmem:[%s6132_s18 + $0x151] sm:$0xff] }
 0x572   : > { %2814 = vrot.lane.b32.xlu2 %v9291_v60, %s6052_s23  ;;  %v2558_v2 = vsel %vm889_vm8, %v2550_v20, %v2462_v54  ;;  %v3736_v54 = vsel %vm844_vm2, %v3728_v50, %v9205_v59  ;;  %v6009_v27 = vld [vmem:[%s6132_s18 + $0x170] sm:$0xff] }
 0x573   : > { %3949 = vrot.lane.b32.xlu1 %v6003_v16, %s6049_s20  ;;  %v3744_v10 = vsel %vm853_vm3, %v3736_v54, %v9218_v8  ;;  %v6013_v54 = vld [vmem:[%s6132_s18 + $0x200] sm:$0xff] }
 0x574   : > { %3712 = vrot.lane.b32.xlu0 %v9288_v25, %s6055_s26  ;;  %v3711_v23 = vpop.permute.xlu2 %3710  ;;  %v3752_v36 = vsel %vm862_vm4, %v3744_v10, %v9228_v24  ;;  %v6015_v10 = vld [vmem:[%s6132_s18 + $0x211] sm:$0xff] }
 0x575   : > { %v2494_v5 = vpop.permute.xlu1 %2493 }
 0x576   : > { %v3631_v14 = vpop.permute.xlu0 %3630  ;;  %v2566_v47 = vsel %vm898_vm7, %v2558_v2, %v2494_v5 }
 0x577   : > { %5457 = vmatmul.msk.f32.gmra.mxu0 %vm910_vm9, %v2566_v47  ;;  %v3760_v8 = vsel %vm871_vm5, %v3752_v36, %v3631_v14  ;;  %v6010_v14 = vld [vmem:[%s6132_s18 + $0x1d0] sm:$0xff]  ;;  %v6012_v47 = vld [vmem:[%s6132_s18 + $0x181] sm:$0xff] }
 0x57a   : > { %3997 = vrot.lane.b32.xlu2 %v6004_v28, %s6051_s22 }
 0x57b   : > { %2838 = vrot.lane.b32.xlu1 %v9062_v56, %s6053_s24  ;;  %v3343_v56 = vsel %vm853_vm3, %v3335_v30, %v9240_v37  ;;  %v5407_v30 = vld [vmem:[%s6132_s18 + $0x1f1] sm:$0xff] }
 0x57c   : > { %3973 = vrot.lane.b32.xlu0 %v6005_v61, %s6050_s21  ;;  %v9317_v62 = vpop.permute.xlu2 %3143  ;;  %v3351_v59 = vsel %vm862_vm4, %v3343_v56, %v9247_v53  ;;  %v9389_v56 = vpop.f32.mrf.mxu0 }
 0x57d   : > { %v3655_v4 = vpop.permute.xlu1 %3654  ;;  %v3359_v33 = vsel %vm871_vm5, %v3351_v59, %v3214_v57  ;;  %11212 = vst [vmem:[#allocation18_spill] sm:$0xff] %v9389_v56  ;;  %v6016_v59 = vld [vmem:[%s6132_s18 + $0x1e1] sm:$0xff] }
 0x57e   : > { %v3278_v45 = vpop.permute.xlu0 %3277  ;;  %v3367_v37 = vsel %vm880_vm6, %v3359_v33, %v9238_v32  ;;  %v3768_v57 = vsel %vm880_vm6, %v3760_v8, %v3655_v4  ;;  %v6017_v8 = vld [vmem:[%s6132_s18 + $0x241] sm:$0xff] }
 0x57f   : > { %v3375_v1 = vsel %vm889_vm8, %v3367_v37, %v3278_v45  ;;  %v9406_v37 = vpop.f32.mrf.mxu2 }
 0x582   : > { %2894 = vrot.lane.b32.xlu2 %v9327_v26, %s6055_s26 }
 0x583   : > { %4021 = vrot.lane.b32.xlu1 %v6007_v19, %s6052_s23 }
 0x584   : > { %2862 = vrot.lane.b32.xlu0 %v9076_v42, %s6054_s25  ;;  %v9347_v53 = vpop.permute.xlu2 %2836  ;;  %v9402_v36 = vpop.f32.mrf.mxu0 }
 0x585   : > { %v3679_v55 = vpop.permute.xlu1 %3678  ;;  %11213 = vst [vmem:[#allocation5_spill] sm:$0xff] %v9402_v36 }
 0x586   : > { %v3310_v16 = vpop.permute.xlu0 %3309  ;;  %v3776_v42 = vsel %vm889_vm8, %v3768_v57, %v3679_v55 }
 0x587   : > { %v3383_v24 = vsel %vm898_vm7, %v3375_v1, %v3310_v16  ;;  %v3784_v32 = vsel %vm898_vm7, %v3776_v42, %v3711_v23  ;;  %v6011_v23 = vld [vmem:[%s6132_s18 + $0x191] sm:$0xff]  ;;  %v2926_v16 = vsel %vm853_vm3, %v9285_v12, %v9263_v3  ;;  %v2216_v42 = vpop.f32.mrf.mxu3 }
 0x588   : > { %5474 = vmatmul.msk.f32.gmra.mxu2 %vm910_vm9, %v3383_v24  ;;  %5483 = vmatmul.msk.f32.gmra.mxu3 %vm910_vm9, %v3784_v32 }
 0x58a   : > { %4101 = vrot.lane.b32.xlu2 %v5406_v0, %s6055_s26  ;;  %v9423_v0 = vld [vmem:[%s10874_s2] ss:$0 sm:$0xff] }
 0x58b   : > { %4069 = vrot.lane.b32.xlu1 %v6008_v17, %s6054_s25  ;;  %v11215_v17 = vld [vmem:[#allocation34_spill] sm:$0xff] }
 0x58c   : > { %4045 = vrot.lane.b32.xlu0 %v6009_v27, %s6053_s24  ;;  %v9362_v20 = vpop.permute.xlu2 %3995  ;;  %v9434_v3 = vadd.f32 %v9423_v0, %v11215_v17  ;;  %v9440_v12 = vpop.f32.mrf.mxu0 }
 0x58d   : > { %v9364_v2 = vpop.permute.xlu1 %3119  ;;  %11216 = vst [vmem:[#allocation24_spill] sm:$0xff] %v9440_v12  ;;  %v9442_v27 = vpop.f32.mrf.mxu2 }
 0x58e   : > { %v2789_v5 = vpop.permute.xlu0 %2788 }
 0x58f   : > { %v2934_v24 = vsel %vm862_vm4, %v2926_v16, %v2789_v5 }
 0x592   : > { %3975 = vrot.lane.b32.xlu2 %v6010_v14, %s6050_s21 }
 0x593   : > { %3951 = vrot.lane.b32.xlu1 %v6011_v23, %s6049_s20 }
 0x594   : > { %3927 = vrot.lane.b32.xlu0 %v6012_v47, %s6048_s19  ;;  %v9372_v28 = vpop.permute.xlu2 %3584 }
 0x595   : > { %v2813_v50 = vpop.permute.xlu1 %2812 }
 0x596   : > { %v9374_v61 = vpop.permute.xlu0 %3947  ;;  %v2942_v32 = vsel %vm871_vm5, %v2934_v24, %v2813_v50 }
 0x597   : > { %v2950_v5 = vsel %vm880_vm6, %v2942_v32, %v9347_v53  ;;  %v6019_v32 = vld [vmem:[%s6132_s18 + $0x2a1] sm:$0xff] }
 0x59a   : > { %4047 = vrot.lane.b32.xlu2 %v6013_v54, %s6053_s24 }
 0x59b   : > { %4023 = vrot.lane.b32.xlu1 %v8619_v6, %s6052_s23 }
 0x59c   : > { %3999 = vrot.lane.b32.xlu0 %v6014_v39, %s6051_s22  ;;  %v9382_v49 = vpop.permute.xlu2 %3215 }
 0x59d   : > { %v9384_v4 = vpop.permute.xlu1 %3971 }
 0x59e   : > { %v9386_v45 = vpop.permute.xlu0 %3536 }
 0x5a2   : > { %3929 = vrot.lane.b32.xlu2 %v6015_v10, %s6048_s19  ;;  %v5408_v10 = vld [vmem:[%s6132_s18 + $0x281] sm:$0xff] }
 0x5a3   : > { %4103 = vrot.lane.b32.xlu1 %v5407_v30, %s6055_s26  ;;  %v11218_v30 = vld [vmem:[#allocation7_spill] sm:$0xff] }
 0x5a4   : > { %4071 = vrot.lane.b32.xlu0 %v6016_v59, %s6054_s25  ;;  %v9396_v6 = vpop.permute.xlu2 %2718  ;;  %v9460_v53 = vadd.f32 %v9423_v0, %v11218_v30  ;;  %v11219_v59 = vld [vmem:[#allocation32_spill] sm:$0xff] }
 0x5a5   : > { %v9398_v33 = vpop.permute.xlu1 %3560 }
 0x5a6   : > { %v9400_v19 = vpop.permute.xlu0 %3167  ;;  %v1823_v17 = vmul.f32 0.044715, %v9460_v53 }
 0x5aa   : > { %4001 = vrot.lane.b32.xlu2 %v6017_v8, %s6051_s22  ;;  %v9466_v8 = vadd.f32 %v9423_v0, %v11219_v59  ;;  %v9493_v59 = vpop.f32.mrf.mxu0 }
 0x5ab   : > { %3977 = vrot.lane.b32.xlu1 %v8715_v18, %s6050_s21  ;;  %v11214_v18 = vld [vmem:[#allocation4_spill] sm:$0xff]  ;;  %11221 = vst [vmem:[#allocation20_spill] sm:$0xff] %v9493_v59 }
 0x5ac   : > { %3953 = vrot.lane.b32.xlu0 %v8687_v38, %s6049_s20  ;;  %v9412_v57 = vpop.permute.xlu2 %4067  ;;  %v9427_v38 = vadd.f32 %v9423_v0, %v11214_v18 }
 0x5ad   : > { %v9414_v1 = vpop.permute.xlu1 %3191 }
 0x5ae   : > { %v2861_v55 = vpop.permute.xlu0 %2860 }
 0x5af   : > { %v2958_v23 = vsel %vm889_vm8, %v2950_v5, %v2861_v55  ;;  %v9468_v55 = vpop.f32.mrf.mxu3  ;;  %v11220_v5 = vld [vmem:[#allocation36_spill] sm:$0xff] }
 0x5b2   : > { %4073 = vrot.lane.b32.xlu2 %v8681_v29, %s6054_s25  ;;  %v1405_v29 = vmul.f32 0.044715, %v9427_v38 }
 0x5b3   : > { %4049 = vrot.lane.b32.xlu1 %v8669_v31, %s6053_s24  ;;  %v1406_v31 = vmul.f32 0.044715, %v9434_v3 }
 0x5b4   : > { %4025 = vrot.lane.b32.xlu0 %v8745_v9, %s6052_s23  ;;  %v9446_v14 = vpop.permute.xlu2 %3656  ;;  %v11217_v9 = vld [vmem:[#allocation3_spill] sm:$0xff]  ;;  %v1413_v16 = vmul.f32 %v1405_v29, %v9427_v38  ;;  %v1825_v29 = vmul.f32 0.044715, %v9466_v8 }
 0x5b5   : > { %v2893_v47 = vpop.permute.xlu1 %2892  ;;  %v9455_v54 = vadd.f32 %v9423_v0, %v11217_v9  ;;  %v1414_v24 = vmul.f32 %v1406_v31, %v9434_v3 }
 0x5b6   : > { %v9450_v50 = vpop.permute.xlu0 %4019  ;;  %v2966_v39 = vsel %vm898_vm7, %v2958_v23, %v2893_v47  ;;  %v9481_v23 = vadd.f32 %v9423_v0, %v11220_v5  ;;  %v2207_v47 = vpop.f32.mrf.mxu2  ;;  %v1421_v31 = vmul.f32 %v1413_v16, %v9427_v38  ;;  %v1833_v12 = vmul.f32 %v1825_v29, %v9466_v8 }
 0x5b7   : > { %5465 = vmatmul.msk.f32.gmra.mxu1 %vm910_vm9, %v2966_v39  ;;  %v1822_v18 = vmul.f32 0.044715, %v9455_v54  ;;  %v1422_v30 = vmul.f32 %v1414_v24, %v9434_v3  ;;  %v9503_v56 = vpop.f32.mrf.mxu3 }
 0x5b8   : > { %v1824_v5 = vmul.f32 0.044715, %v9481_v23  ;;  %v1429_v16 = vadd.f32 %v1421_v31, %v9427_v38  ;;  %v1841_v31 = vmul.f32 %v1833_v12, %v9466_v8 }
 0x5b9   : > { %v1430_v36 = vadd.f32 %v1422_v30, %v9434_v3 }
 0x5ba   : > { %3955 = vrot.lane.b32.xlu2 %v8848_v46, %s6049_s20  ;;  %v1832_v29 = vmul.f32 %v1824_v5, %v9481_v23  ;;  %v1437_v26 = vmul.f32 0.7978846, %v1429_v16  ;;  %v1849_v16 = vadd.f32 %v1841_v31, %v9466_v8 }
 0x5bb   : > { %3931 = vrot.lane.b32.xlu1 %v6019_v32, %s6048_s19  ;;  %v1831_v32 = vmul.f32 %v1823_v17, %v9460_v53  ;;  %v1438_v5 = vmul.f32 0.7978846, %v1430_v36 }
 0x5bc   : > { %4105 = vrot.lane.b32.xlu0 %v5408_v10, %s6055_s26  ;;  %v9484_v46 = vpop.permute.xlu2 %3311  ;;  %v1830_v10 = vmul.f32 %v1822_v18, %v9455_v54  ;;  %v6020_v18 = vld [vmem:[%s6132_s18 + $0x2d1] sm:$0xff]  ;;  %v1840_v12 = vmul.f32 %v1832_v29, %v9481_v23  ;;  %5689 = vtanh.f32 %v1437_v26 }
 0x5bd   : > { %v9487_v9 = vpop.permute.xlu1 %4043  ;;  %v1839_v17 = vmul.f32 %v1831_v32, %v9460_v53  ;;  %5691 = vtanh.f32 %v1438_v5 }
 0x5be   : > { %v9489_v39 = vpop.permute.xlu0 %3608  ;;  %v1838_v24 = vmul.f32 %v1830_v10, %v9455_v54  ;;  %v2210_v30 = vpop.f32.mrf.mxu2  ;;  %v6021_v10 = vld [vmem:[%s6132_s18 + $0x450] sm:$0xff] }
 0x5bf   : > { %v3328_v59 = vsel %vm835_vm1, %v6021_v10, %v9364_v2  ;;  %v1847_v10 = vadd.f32 %v1839_v17, %v9460_v53  ;;  %v9543_v13 = vadd.f32 %v9423_v0, %v2210_v30  ;;  %v9558_v26 = vpop.f32.mrf.mxu3 }
 0x5c0   : > { %v3336_v2 = vsel %vm844_vm2, %v3328_v59, %v9317_v62  ;;  %v6022_v59 = vld [vmem:[%s6132_s18 + $0x80] sm:$0xff] }
 0x5c1   : > { %v3344_v36 = vsel %vm853_vm3, %v3336_v2, %v9400_v19  ;;  %v4123_v17 = vsel %vm835_vm1, %v6022_v59, %v9273_v40  ;;  %v1855_v31 = vmul.f32 0.7978846, %v1847_v10  ;;  %v2240_v40 = vmul.f32 0.044715, %v9543_v13 }
 0x5c2   : > { %4027 = vrot.lane.b32.xlu2 %v8890_v58, %s6052_s23  ;;  %v9512_v58 = vadd.f32 %v9423_v0, %v2207_v47  ;;  %v1846_v47 = vadd.f32 %v1838_v24, %v9455_v54  ;;  %v9539_v24 = vpop.f32.mrf.mxu0  ;;  %v3352_v62 = vsel %vm862_vm4, %v3344_v36, %v9414_v1  ;;  %v1848_v1 = vadd.f32 %v1840_v12, %v9481_v23  ;;  %v5690_v36 = vpop.eup %5689 }
 0x5c3   : > { %4003 = vrot.lane.b32.xlu1 %v6020_v18, %s6051_s22  ;;  %v9521_v18 = vadd.f32 %v9423_v0, %v2216_v42  ;;  %v9534_v42 = vadd.f32 %v9423_v0, %v9406_v37  ;;  %11223 = vst [vmem:[#allocation12_spill] sm:$0xff] %v9539_v24  ;;  %v5692_v59 = vpop.eup %5691 }
 0x5c4   : > { %3979 = vrot.lane.b32.xlu0 %v8774_v11, %s6050_s21  ;;  %v9518_v25 = vpop.permute.xlu2 %2790  ;;  %v2239_v60 = vmul.f32 0.044715, %v9512_v58  ;;  %v1854_v19 = vmul.f32 0.7978846, %v1846_v47 }
 0x5c5   : > { %v9523_v11 = vpop.permute.xlu1 %3632  ;;  %11222 = vst [vmem:[#allocation8_spill] sm:$0xff] %v9534_v42  ;;  %v2242_v29 = vmul.f32 0.044715, %v9521_v18 }
 0x5c6   : > { %v3248_v32 = vpop.permute.xlu0 %3247  ;;  %v2247_v37 = vmul.f32 %v2239_v60, %v9512_v58  ;;  %v1857_v60 = vmul.f32 0.7978846, %v1849_v16  ;;  %5693 = vtanh.f32 %v1854_v19 }
 0x5c7   : > { %v2250_v5 = vmul.f32 %v2242_v29, %v9521_v18  ;;  %v2213_v29 = vpop.f32.mrf.mxu2  ;;  %5695 = vtanh.f32 %v1855_v31  ;;  %v9591_v31 = vadd.f32 %v9423_v0, %v9442_v27 }
 0x5c8   : > { %v2255_v16 = vmul.f32 %v2247_v37, %v9512_v58  ;;  %5697 = vtanh.f32 %v1857_v60  ;;  %v1454_v60 = vadd.f32 1.0, %v5692_v59 }
 0x5c9   : > { %11225 = vst [vmem:[#allocation17_spill] sm:$0xff] %v9591_v31 }
 0x5ca   : > { %4107 = vrot.lane.b32.xlu2 %v5409_v52, %s6055_s26  ;;  %v1828_v52 = vmul.f32 0.044715, %v9534_v42  ;;  %v2608_v37 = vpop.f32.mrf.mxu0 }
 0x5cb   : > { %4075 = vrot.lane.b32.xlu1 %v8837_v35, %s6054_s25  ;;  %v4131_v35 = vsel %vm844_vm2, %v4123_v17, %v9374_v61  ;;  %v2258_v17 = vmul.f32 %v2250_v5, %v9521_v18 }
 0x5cc   : > { %4051 = vrot.lane.b32.xlu0 %v8810_v41, %s6053_s24  ;;  %v3360_v41 = vsel %vm871_vm5, %v3352_v62, %v9382_v49  ;;  %v9564_v30 = vpop.permute.xlu2 %2814  ;;  %v4139_v47 = vsel %vm853_vm3, %v4131_v35, %v9384_v4  ;;  %v9574_v49 = vpop.f32.mrf.mxu1  ;;  %v1856_v4 = vmul.f32 0.7978846, %v1848_v1  ;;  %v1836_v19 = vmul.f32 %v1828_v52, %v9534_v42 }
 0x5cd   : > { %v3368_v12 = vsel %vm880_vm6, %v3360_v41, %v3248_v32  ;;  %v3280_v2 = vpop.permute.xlu1 %3279  ;;  %11224 = vst [vmem:[#allocation9_spill] sm:$0xff] %v9574_v49  ;;  %v4147_v32 = vsel %vm862_vm4, %v4139_v47, %v9362_v20  ;;  %v2248_v35 = vmul.f32 %v2240_v40, %v9543_v13  ;;  %v9594_v20 = vadd.f32 %v9423_v0, %v2213_v29  ;;  %v5694_v5 = vpop.eup %5693  ;;  %v6028_v49 = vld [vmem:[%s6132_s18 + $0x110] sm:$0xff] }
 0x5ce   : > { %v9571_v10 = vpop.permute.xlu0 %2742  ;;  %v3376_v61 = vsel %vm889_vm8, %v3368_v12, %v3280_v2  ;;  %v4155_v41 = vsel %vm871_vm5, %v4147_v32, %v9450_v50  ;;  %v2263_v50 = vadd.f32 %v2255_v16, %v9512_v58  ;;  %5699 = vtanh.f32 %v1856_v4  ;;  %v5696_v47 = vpop.eup %5695 }
 0x5cf   : > { %v3384_v62 = vsel %vm898_vm7, %v3376_v61, %v9484_v46  ;;  %v6023_v46 = vld [vmem:[%s6132_s18 + $0x380] sm:$0xff]  ;;  %v4163_v1 = vsel %vm880_vm6, %v4155_v41, %v9487_v9  ;;  %v1453_v52 = vadd.f32 1.0, %v5690_v36  ;;  %v1397_v40 = vmul.f32 0.5, %v9427_v38  ;;  %v5698_v36 = vpop.eup %5697 }
 0x5d0   : > { %5475 = vmatmul.msk.f32.gmra.mxu2 %vm910_vm9, %v3384_v62  ;;  %v2256_v12 = vmul.f32 %v2248_v35, %v9543_v13  ;;  %v2266_v61 = vadd.f32 %v2258_v17, %v9521_v18  ;;  %v1844_v16 = vmul.f32 %v1836_v19, %v9534_v42  ;;  %v1829_v29 = vmul.f32 0.044715, %v9591_v31  ;;  %v9616_v62 = vpop.f32.mrf.mxu3 }
 0x5d1   : > { %v2241_v38 = vmul.f32 0.044715, %v9594_v20  ;;  %v2271_v59 = vmul.f32 0.7978846, %v2263_v50  ;;  %v1814_v19 = vmul.f32 0.5, %v9455_v54  ;;  %v1815_v17 = vmul.f32 0.5, %v9460_v53 }
 0x5d2   : > { %3981 = vrot.lane.b32.xlu2 %v6023_v46, %s6050_s21  ;;  %v1870_v35 = vadd.f32 1.0, %v5694_v5  ;;  %v1816_v41 = vmul.f32 0.5, %v9481_v23  ;;  %v9635_v50 = vadd.f32 %v9423_v0, %v2608_v37  ;;  %v2274_v54 = vmul.f32 0.7978846, %v2266_v61  ;;  %v6024_v5 = vld [vmem:[%s6132_s18 + $0x361] sm:$0xff] }
 0x5d3   : > { %3957 = vrot.lane.b32.xlu1 %v8996_v34, %s6049_s20  ;;  %v4171_v34 = vsel %vm889_vm8, %v4163_v1, %v9412_v57  ;;  %v9621_v57 = vadd.f32 %v9423_v0, %v9468_v55  ;;  %v2264_v55 = vadd.f32 %v2256_v12, %v9543_v13  ;;  %v1837_v53 = vmul.f32 %v1829_v29, %v9591_v31 }
 0x5d4   : > { %3933 = vrot.lane.b32.xlu0 %v8880_v63, %s6048_s19  ;;  %v9603_v27 = vpop.permute.xlu2 %3997  ;;  %v1398_v63 = vmul.f32 0.5, %v9434_v3  ;;  %v9624_v3 = vmul.f32 %v1453_v52, %v1397_v40  ;;  %v5700_v46 = vpop.eup %5699  ;;  %v1852_v40 = vadd.f32 %v1844_v16, %v9534_v42  ;;  %v2249_v23 = vmul.f32 %v2241_v38, %v9594_v20 }
 0x5d5   : > { %v9607_v9 = vpop.permute.xlu1 %2766  ;;  %v9631_v1 = vpop.f32.mrf.mxu1  ;;  %v1873_v37 = vadd.f32 1.0, %v5698_v36  ;;  %v2243_v12 = vmul.f32 0.044715, %v9621_v57  ;;  %5701 = vtanh.f32 %v2271_v59  ;;  %v1817_v61 = vmul.f32 0.5, %v9466_v8 }
 0x5d6   : > { %v4100_v2 = vpop.permute.xlu0 %4099  ;;  %v9626_v32 = vmul.f32 %v1454_v60, %v1398_v63  ;;  %11226 = vst [vmem:[#allocation19_spill] sm:$0xff] %v9631_v1  ;;  %v2611_v52 = vpop.f32.mrf.mxu0  ;;  %v1871_v60 = vadd.f32 1.0, %v5696_v47  ;;  %v3729_v47 = vsel %vm835_vm1, %v9122_v48, %v9386_v45  ;;  %v1872_v36 = vadd.f32 1.0, %v5700_v46 }
 0x5d7   : > { %v4179_v4 = vsel %vm898_vm7, %v4171_v34, %v4100_v2  ;;  %v9655_v34 = vadd.f32 %v9423_v0, %v2611_v52  ;;  %v3426_v2 = vpop.f32.mrf.mxu2  ;;  %v2640_v16 = vmul.f32 0.044715, %v9635_v50  ;;  %5703 = vtanh.f32 %v2274_v54 }
 0x5d8   : > { %5486 = vmatmul.msk.f32.vlgmr.msra.gmra.mxu0 %vm910_vm9, %v4179_v4  ;;  %v9665_v45 = vmul.f32 %v1871_v60, %v1815_v17  ;;  %v1860_v38 = vmul.f32 0.7978846, %v1852_v40  ;;  %v2257_v4 = vmul.f32 %v2249_v23, %v9594_v20  ;;  %v3827_v59 = vpop.f32.mrf.mxu3  ;;  %v9670_v52 = vmul.f32 %v1873_v37, %v1817_v61  ;;  %v5410_v17 = vld [vmem:[%s6132_s18 + $0x3a1] sm:$0xff] }
 0x5d9   : > { %v1845_v8 = vmul.f32 %v1837_v53, %v9591_v31  ;;  %v2251_v46 = vmul.f32 %v2243_v12, %v9621_v57  ;;  %v2641_v60 = vmul.f32 0.044715, %v9655_v34  ;;  %v9681_v40 = vmul.f32 %v1872_v36, %v1816_v41 }
 0x5da   : > { %4053 = vrot.lane.b32.xlu2 %v8962_v22, %s6053_s24  ;;  %v9649_v22 = vadd.f32 %v9423_v0, %v9503_v56  ;;  %v2272_v56 = vmul.f32 0.7978846, %v2264_v55  ;;  %v2648_v53 = vmul.f32 %v2640_v16, %v9635_v50  ;;  %v9694_v41 = vadd.f32 %v9423_v0, %v3426_v2 }
 0x5db   : > { %4029 = vrot.lane.b32.xlu1 %v9047_v15, %s6052_s23  ;;  %v3737_v15 = vsel %vm844_vm2, %v3729_v47, %v9398_v33  ;;  %v9668_v33 = vmul.f32 %v1870_v35, %v1814_v19  ;;  %v5702_v35 = vpop.eup %5701  ;;  %v2259_v47 = vmul.f32 %v2251_v46, %v9621_v57  ;;  %v2649_v61 = vmul.f32 %v2641_v60, %v9655_v34 }
 0x5dc   : > { %4005 = vrot.lane.b32.xlu0 %v6024_v5, %s6051_s22  ;;  %v9659_v63 = vpop.permute.xlu2 %2894  ;;  %v2244_v55 = vmul.f32 0.044715, %v9649_v22  ;;  %v3745_v5 = vsel %vm853_vm3, %v3737_v15, %v9372_v28  ;;  %5705 = vtanh.f32 %v2272_v56  ;;  %v2287_v16 = vadd.f32 1.0, %v5702_v35 }
 0x5dd   : > { %v9663_v29 = vpop.permute.xlu1 %3925  ;;  %v3753_v54 = vsel %vm862_vm4, %v3745_v5, %v9489_v39  ;;  %v3009_v23 = vpop.f32.mrf.mxu1  ;;  %v2265_v39 = vadd.f32 %v2257_v4, %v9594_v20  ;;  %5707 = vtanh.f32 %v1860_v38  ;;  %v2656_v4 = vmul.f32 %v2648_v53, %v9635_v50 }
 0x5de   : > { %v3681_v48 = vpop.permute.xlu0 %3680  ;;  %v3761_v37 = vsel %vm871_vm5, %v3753_v54, %v9523_v11  ;;  %v5704_v12 = vpop.eup %5703  ;;  %v2252_v15 = vmul.f32 %v2244_v55, %v9649_v22  ;;  %v9706_v2 = vadd.f32 %v9423_v0, %v3009_v23  ;;  %v2231_v5 = vmul.f32 0.5, %v9512_v58 }
 0x5df   : > { %v3429_v36 = vpop.f32.mrf.mxu2  ;;  %v3458_v60 = vmul.f32 0.044715, %v9694_v41  ;;  %v2290_v23 = vadd.f32 1.0, %v5704_v12  ;;  %v2267_v58 = vadd.f32 %v2259_v47, %v9621_v57  ;;  %v6025_v47 = vld [vmem:[%s6132_s18 + $0x3f1] sm:$0xff] }
 0x5e0   : > { %v3830_v54 = vpop.f32.mrf.mxu3  ;;  %v9731_v12 = vadd.f32 %v9423_v0, %v3429_v36 }
 0x5e1   : > { %v3466_v36 = vmul.f32 %v3458_v60, %v9694_v41 }
 0x5e2   : > { %3935 = vrot.lane.b32.xlu2 %v9004_v43, %s6048_s19  ;;  %v1853_v43 = vadd.f32 %v1845_v8, %v9591_v31  ;;  %v9714_v8 = vadd.f32 %v9423_v0, %v3827_v59  ;;  %v5706_v35 = vpop.eup %5705  ;;  %v2260_v59 = vmul.f32 %v2252_v15, %v9649_v22  ;;  %v2664_v15 = vadd.f32 %v2656_v4, %v9635_v50 }
 0x5e3   : > { %4109 = vrot.lane.b32.xlu1 %v5410_v17, %s6055_s26  ;;  %v2273_v17 = vmul.f32 0.7978846, %v2265_v39  ;;  %v3041_v39 = vmul.f32 0.044715, %v9706_v2 }
 0x5e4   : > { %4077 = vrot.lane.b32.xlu0 %v8975_v21, %s6054_s25  ;;  %v3769_v21 = vsel %vm880_vm6, %v3761_v37, %v9446_v14  ;;  %v9710_v56 = vpop.permute.xlu2 %4101  ;;  %v9722_v53 = vmul.f32 0.7978846, %v1853_v43  ;;  %v2657_v37 = vmul.f32 %v2649_v61, %v9655_v34  ;;  %v9735_v43 = vpop.eup %5707  ;;  %v2232_v61 = vmul.f32 0.5, %v9543_v13 }
 0x5e5   : > { %v3777_v46 = vsel %vm889_vm8, %v3769_v21, %v3681_v48  ;;  %v9717_v38 = vpop.permute.xlu1 %3949  ;;  %v2234_v48 = vmul.f32 0.5, %v9521_v18  ;;  %v2614_v21 = vpop.f32.mrf.mxu0  ;;  %11228 = vst [vmem:[#allocation23_spill] sm:$0xff] %v9735_v43  ;;  %v9740_v18 = vadd.f32 %v9423_v0, %v3830_v54  ;;  %5709 = vtanh.f32 %v2273_v17  ;;  %v6027_v17 = vld [vmem:[%s6132_s18 + $0x440] sm:$0xff] }
 0x5e6   : > { %v3713_v55 = vpop.permute.xlu0 %3712  ;;  %11227 = vst [vmem:[#allocation30_spill] sm:$0xff] %v9722_v53  ;;  %v3012_v54 = vpop.f32.mrf.mxu1  ;;  %v9757_v13 = vmul.f32 0.5, %v9594_v20  ;;  %v2268_v60 = vadd.f32 %v2260_v59, %v9649_v22  ;;  %v3049_v19 = vmul.f32 %v3041_v39, %v9706_v2  ;;  %v3474_v39 = vmul.f32 %v3466_v36, %v9694_v41 }
 0x5e7   : > { %v3785_v14 = vsel %vm898_vm7, %v3777_v46, %v3713_v55  ;;  %v9733_v46 = vmul.f32 %v2287_v16, %v2231_v5  ;;  %v3859_v55 = vmul.f32 0.044715, %v9714_v8  ;;  %v2288_v16 = vadd.f32 1.0, %v5706_v35 }
 0x5e8   : > { %5484 = vmatmul.msk.f32.gmra.mxu3 %vm910_vm9, %v3785_v14  ;;  %v6026_v14 = vld [vmem:[%s6132_s18 + $0x410] sm:$0xff]  ;;  %v9750_v4 = vmul.f32 %v2290_v23, %v2234_v48  ;;  %v9754_v5 = vadd.f32 %v9423_v0, %v9558_v26  ;;  %v2911_v23 = vsel %vm835_vm1, %v6027_v17, %v9396_v6  ;;  %v2672_v26 = vmul.f32 0.7978846, %v2664_v15 }
 0x5e9   : > { %v3867_v48 = vmul.f32 %v3859_v55, %v9714_v8  ;;  %v3860_v20 = vmul.f32 0.044715, %v9740_v18  ;;  %v2919_v59 = vsel %vm844_vm2, %v2911_v23, %v9571_v10  ;;  %v9776_v11 = vadd.f32 %v9423_v0, %v2614_v21 }
 0x5ea   : > { %4007 = vrot.lane.b32.xlu2 %v6025_v47, %s6051_s22  ;;  %v2275_v47 = vmul.f32 0.7978846, %v2267_v58  ;;  %v2927_v6 = vsel %vm853_vm3, %v2919_v59, %v9607_v9  ;;  %v9780_v17 = vmul.f32 %v2288_v16, %v2232_v61  ;;  %v2245_v15 = vmul.f32 0.044715, %v9754_v5  ;;  %v3432_v16 = vpop.f32.mrf.mxu2 }
 0x5eb   : > { %3983 = vrot.lane.b32.xlu1 %v6026_v14, %s6050_s21  ;;  %v2665_v14 = vadd.f32 %v2657_v37, %v9655_v34  ;;  %v9784_v55 = vadd.f32 %v9423_v0, %v3012_v54  ;;  %v9787_v10 = vmul.f32 0.5, %v9621_v57  ;;  %v5710_v23 = vpop.eup %5709  ;;  %v3057_v36 = vmul.f32 %v3049_v19, %v9706_v2 }
 0x5ec   : > { %3959 = vrot.lane.b32.xlu0 %v9149_v51, %s6049_s20  ;;  %v3459_v51 = vmul.f32 0.044715, %v9731_v12  ;;  %v9766_v35 = vpop.permute.xlu2 %3975  ;;  %5711 = vtanh.f32 %v2275_v47  ;;  %v2276_v1 = vmul.f32 0.7978846, %v2268_v60  ;;  %v3875_v9 = vmul.f32 %v3867_v48, %v9714_v8  ;;  %v11229_v60 = vld [vmem:[#allocation35_spill] sm:$0xff] }
 0x5ed   : > { %v2839_v58 = vpop.permute.xlu1 %2838  ;;  %v2673_v28 = vmul.f32 0.7978846, %v2665_v14  ;;  %v2617_v24 = vpop.f32.mrf.mxu0  ;;  %v3868_v61 = vmul.f32 %v3860_v20, %v9740_v18  ;;  %v2935_v54 = vsel %vm862_vm4, %v2927_v6, %v9518_v25  ;;  %5713 = vtanh.f32 %v2672_v26 }
 0x5ee   : > { %v9772_v37 = vpop.permute.xlu0 %3973  ;;  %v3467_v21 = vmul.f32 %v3459_v51, %v9731_v12  ;;  %v3482_v57 = vadd.f32 %v3474_v39, %v9694_v41  ;;  %v2642_v19 = vmul.f32 0.044715, %v9776_v11  ;;  %v9806_v14 = vmul.f32 0.5, %v9649_v22  ;;  %v3015_v26 = vpop.f32.mrf.mxu1 }
 0x5ef   : > { %v9809_v25 = vmul.f32 %v2245_v15, %v9754_v5  ;;  %v9813_v51 = vadd.f32 %v9423_v0, %v2617_v24  ;;  %v2289_v48 = vadd.f32 1.0, %v5710_v23  ;;  %v2943_v59 = vsel %vm871_vm5, %v2935_v54, %v9564_v30 }
 0x5f0   : > { %11230 = vst [vmem:[#allocation22_spill] sm:$0xff] %v9806_v14  ;;  %v3475_v20 = vmul.f32 %v3467_v21, %v9731_v12  ;;  %5715 = vtanh.f32 %v2673_v28  ;;  %v3883_v6 = vadd.f32 %v3875_v9, %v9714_v8  ;;  %v3876_v24 = vmul.f32 %v3868_v61, %v9740_v18  ;;  %v5411_v61 = vld [vmem:[%s6132_s18 + $0x431] sm:$0xff] }
 0x5f1   : > { %v2951_v15 = vsel %vm880_vm6, %v2943_v59, %v2839_v58  ;;  %5717 = vtanh.f32 %v2276_v1  ;;  %v2650_v21 = vmul.f32 %v2642_v19, %v9776_v11  ;;  %v9826_v30 = vadd.f32 %v9423_v0, %v3432_v16 }
 0x5f2   : > { %4079 = vrot.lane.b32.xlu2 %v9113_v7, %s6054_s25  ;;  %v3042_v7 = vmul.f32 0.044715, %v9784_v55  ;;  %v5712_v22 = vpop.eup %5711  ;;  %v2643_v9 = vmul.f32 0.044715, %v9813_v51  ;;  %v4124_v58 = vsel %vm835_vm1, %v6028_v49, %v9663_v29  ;;  %v3483_v19 = vadd.f32 %v3475_v20, %v9731_v12 }
 0x5f3   : > { %4055 = vrot.lane.b32.xlu1 %v9101_v44, %s6053_s24  ;;  %v3065_v44 = vadd.f32 %v3057_v36, %v9706_v2  ;;  %v3490_v36 = vmul.f32 0.7978846, %v3482_v57  ;;  %v5714_v28 = vpop.eup %5713  ;;  %v4132_v16 = vsel %vm844_vm2, %v4124_v58, %v9717_v38  ;;  %v9841_v59 = vadd.f32 1.0, %v5712_v22  ;;  %v11232_v22 = vld [vmem:[#allocation16_spill] sm:$0xff] }
 0x5f4   : > { %4031 = vrot.lane.b32.xlu0 %v11229_v60, %s6052_s23  ;;  %v9819_v39 = vpop.permute.xlu2 %4047  ;;  %v3050_v47 = vmul.f32 %v3042_v7, %v9784_v55  ;;  %v3891_v7 = vmul.f32 0.7978846, %v3883_v6  ;;  %v4140_v49 = vsel %vm853_vm3, %v4132_v16, %v9772_v37  ;;  %v9849_v29 = vmul.f32 %v2289_v48, %v9757_v13  ;;  %v3833_v48 = vpop.f32.mrf.mxu3 }
 0x5f5   : > { %v4022_v23 = vpop.permute.xlu1 %4021  ;;  %v3073_v57 = vmul.f32 0.7978846, %v3065_v44  ;;  %v2658_v38 = vmul.f32 %v2650_v21, %v9776_v11  ;;  %v3460_v20 = vmul.f32 0.044715, %v9826_v30  ;;  %v2633_v6 = vmul.f32 0.5, %v9655_v34 }
 0x5f6   : > { %v2863_v60 = vpop.permute.xlu0 %2862  ;;  %v5716_v44 = vpop.eup %5715  ;;  %v2651_v13 = vmul.f32 %v2643_v9, %v9813_v51  ;;  %v9862_v58 = vadd.f32 %v9423_v0, %v3015_v26  ;;  %5719 = vtanh.f32 %v3490_v36  ;;  %v4148_v34 = vsel %vm862_vm4, %v4140_v49, %v9603_v27 }
 0x5f7   : > { %v2959_v54 = vsel %vm889_vm8, %v2951_v15, %v2863_v60  ;;  %v3884_v15 = vadd.f32 %v3876_v24, %v9740_v18  ;;  %v3435_v60 = vpop.f32.mrf.mxu2  ;;  %v2688_v24 = vadd.f32 1.0, %v5714_v28  ;;  %v9857_v37 = vpop.eup %5717  ;;  %5721 = vtanh.f32 %v3073_v57 }
 0x5f8   : > { %v2967_v1 = vsel %vm898_vm7, %v2959_v54, %v9659_v63  ;;  %v11231_v63 = vld [vmem:[#allocation33_spill] sm:$0xff]  ;;  %11233 = vst [vmem:[#allocation42_spill] sm:$0xff] %v9857_v37  ;;  %v3058_v54 = vmul.f32 %v3050_v47, %v9784_v55  ;;  %v3018_v21 = vpop.f32.mrf.mxu1  ;;  %v9865_v16 = vadd.f32 %v9423_v0, %v3435_v60  ;;  %v4156_v47 = vsel %vm871_vm5, %v4148_v34, %v4022_v23 }
 0x5f9   : > { %5466 = vmatmul.msk.f32.gmra.mxu1 %vm910_vm9, %v2967_v1  ;;  %v3491_v1 = vmul.f32 0.7978846, %v3483_v19  ;;  %5723 = vtanh.f32 %v3891_v7  ;;  %v2666_v26 = vadd.f32 %v2658_v38, %v9776_v11  ;;  %v3468_v36 = vmul.f32 %v3460_v20, %v9826_v30 }
 0x5fa   : > { %3961 = vrot.lane.b32.xlu2 %v11231_v63, %s6049_s20  ;;  %v9875_v19 = vadd.f32 %v9423_v0, %v3018_v21  ;;  %v3066_v27 = vadd.f32 %v3058_v54, %v9784_v55  ;;  %v2659_v57 = vmul.f32 %v2651_v13, %v9813_v51  ;;  %v9884_v7 = vadd.f32 %v9423_v0, %v9616_v62  ;;  %v11234_v54 = vld [vmem:[#allocation14_spill] sm:$0xff]  ;;  %s6057_s20 = smov 16  }
 0x5fb   : > { %3937 = vrot.lane.b32.xlu1 %v11232_v22, %s6048_s19  ;;  %v2689_v22 = vadd.f32 1.0, %v5716_v44  ;;  %v3461_v49 = vmul.f32 0.044715, %v9865_v16  ;;  %5725 = vtanh.f32 %v3491_v1  ;;  %v9890_v20 = vadd.f32 %v9423_v0, %v3833_v48  ;;  %v9903_v48 = vpop.f32.mrf.mxu0  ;;  %s6056_s19 = smov 64  }
 0x5fc   : > { %4111 = vrot.lane.b32.xlu0 %v5411_v61, %s6055_s26  ;;  %v9869_v28 = vpop.permute.xlu2 %3929  ;;  %v3892_v61 = vmul.f32 0.7978846, %v3884_v15  ;;  %v3043_v15 = vmul.f32 0.044715, %v9862_v58  ;;  %v5720_v38 = vpop.eup %5719  ;;  %v2632_v62 = vmul.f32 0.5, %v9635_v50  ;;  %v3476_v34 = vmul.f32 %v3468_v36, %v9826_v30 }
 0x5fd   : > { %v4070_v9 = vpop.permute.xlu1 %4069  ;;  %v9896_v13 = vmul.f32 %v2689_v22, %v2633_v6  ;;  %v5722_v21 = vpop.eup %5721  ;;  %v2674_v1 = vmul.f32 0.7978846, %v2666_v26  ;;  %v3074_v6 = vmul.f32 0.7978846, %v3066_v27  ;;  %v6031_v27 = vld [vmem:[%s6132_s18 + $0x1a0] sm:$0xff] }
 0x5fe   : > { %v4046_v63 = vpop.permute.xlu0 %4045  ;;  %5727 = vtanh.f32 %v3892_v61  ;;  %v2667_v61 = vadd.f32 %v2659_v57, %v9813_v51  ;;  %v3836_v22 = vpop.f32.mrf.mxu3  ;;  %v9914_v36 = vmul.f32 %v2688_v24, %v2632_v62  ;;  %v9926_v57 = vmul.f32 %v9841_v59, %v9787_v10  ;;  %v5412_v10 = vld [vmem:[%s6132_s18 + $0x4c1] sm:$0xff] }
 0x5ff   : > { %v4164_v60 = vsel %vm880_vm6, %v4156_v47, %v4046_v63  ;;  %v3044_v47 = vmul.f32 0.044715, %v9875_v19  ;;  %v6030_v63 = vld [vmem:[%s6132_s18 + $0x4a0] sm:$0xff]  ;;  %v5724_v50 = vpop.eup %5723  ;;  %v3484_v42 = vadd.f32 %v3476_v34, %v9826_v30  ;;  %5729 = vtanh.f32 %v2674_v1 }
 0x600   : > { %v4172_v23 = vsel %vm889_vm8, %v4164_v60, %v4070_v9  ;;  %v6029_v9 = vld [vmem:[%s6132_s18 + $0x481] sm:$0xff]  ;;  %v9912_v26 = vpop.f32.mrf.mxu1  ;;  %v9917_v60 = vmul.f32 0.044715, %v9884_v7  ;;  %11235 = vst [vmem:[#allocation21_spill] sm:$0xff] %v9926_v57  ;;  %v2675_v57 = vmul.f32 0.7978846, %v2667_v61  ;;  %v9939_v62 = vadd.f32 %v9423_v0, %v3836_v22 }
 0x601   : > { %v4180_v44 = vsel %vm898_vm7, %v4172_v23, %v9710_v56  ;;  %v9900_v56 = vmul.f32 %v9809_v25, %v9754_v5  ;;  %v3051_v25 = vmul.f32 %v3043_v15, %v9862_v58  ;;  %v3469_v23 = vmul.f32 %v3461_v49, %v9865_v16  ;;  %v5726_v49 = vpop.eup %5725 }
 0x602   : > { %5487 = vmatmul.msk.f32.gmra.mxu0 %vm910_vm9, %v4180_v44  ;;  %4033 = vrot.lane.b32.xlu2 %v11234_v54, %s6052_s23  ;;  %v3861_v15 = vmul.f32 0.044715, %v9890_v20  ;;  %v3052_v43 = vmul.f32 %v3044_v47, %v9875_v19  ;;  %5731 = vtanh.f32 %v3074_v6  ;;  %v3089_v34 = vadd.f32 1.0, %v5722_v21  ;;  %v11236_v6 = vld [vmem:[#allocation2_spill] sm:$0xff]  ;;  %s6060_s23 = smov 32  }
 0x603   : > { %4009 = vrot.lane.b32.xlu1 %v6029_v9, %s6051_s22  ;;  %v3450_v9 = vmul.f32 0.5, %v9694_v41  ;;  %v3059_v53 = vmul.f32 %v3051_v25, %v9862_v58  ;;  %v3477_v41 = vmul.f32 %v3469_v23, %v9865_v16  ;;  %v3851_v47 = vmul.f32 0.5, %v9714_v8  ;;  %v2623_v14 = vpop.f32.mrf.mxu0  ;;  %v6032_v23 = vld [vmem:[%s6132_s18 + $0x4d0] sm:$0xff]  ;;  %s6059_s22 = smov 80  }
 0x604   : > { %3985 = vrot.lane.b32.xlu0 %v6030_v63, %s6050_s21  ;;  %v9920_v44 = vpop.permute.xlu2 %4001  ;;  %v3506_v63 = vadd.f32 1.0, %v5720_v38  ;;  %v5728_v59 = vpop.eup %5727  ;;  %v3033_v38 = vmul.f32 0.5, %v9706_v2  ;;  %v3507_v61 = vadd.f32 1.0, %v5726_v49  ;;  %v3907_v25 = vadd.f32 1.0, %v5724_v50  ;;  %s6058_s21 = smov 96  }
 0x605   : > { %v3952_v54 = vpop.permute.xlu1 %3951  ;;  %v3060_v22 = vmul.f32 %v3052_v43, %v9875_v19  ;;  %v3908_v8 = vadd.f32 1.0, %v5728_v59  ;;  %v3067_v21 = vadd.f32 %v3059_v53, %v9862_v58  ;;  %5733 = vtanh.f32 %v2675_v57  ;;  %v5730_v43 = vpop.eup %5729 }
 0x606   : > { %v3928_v24 = vpop.permute.xlu0 %3927  ;;  %v9952_v2 = vmul.f32 %v3506_v63, %v3450_v9  ;;  %v3438_v49 = vpop.f32.mrf.mxu2  ;;  %v9964_v63 = vmul.f32 %v3089_v34, %v3033_v38  ;;  %v3852_v53 = vmul.f32 0.5, %v9740_v18  ;;  %v9970_v57 = vmul.f32 %v3907_v25, %v3851_v47 }
 0x607   : > { %v4125_v31 = vsel %vm835_vm1, %v6031_v27, %v3928_v24  ;;  %v3869_v27 = vmul.f32 %v3861_v15, %v9890_v20  ;;  %v3492_v24 = vmul.f32 0.7978846, %v3484_v42  ;;  %v9956_v15 = vpop.f32.mrf.mxu3  ;;  %v3451_v42 = vmul.f32 0.5, %v9731_v12 }
 0x608   : > { %v4133_v1 = vsel %vm844_vm2, %v4125_v31, %v3952_v54  ;;  %v3862_v31 = vmul.f32 0.044715, %v9939_v62  ;;  %v3024_v50 = vpop.f32.mrf.mxu1  ;;  %v3485_v54 = vadd.f32 %v3477_v41, %v9865_v16  ;;  %v5732_v59 = vpop.eup %5731  ;;  %v9973_v41 = vmul.f32 0.5, %v9776_v11 }
 0x609   : > { %v4141_v9 = vsel %vm853_vm3, %v4133_v1, %v9766_v35  ;;  %v9968_v12 = vmul.f32 %v3507_v61, %v3451_v42  ;;  %v9977_v35 = vadd.f32 %v9423_v0, %v3024_v50  ;;  %v3916_v38 = vmul.f32 %v3908_v8, %v3852_v53 }
 0x60a   : > { %4113 = vrot.lane.b32.xlu2 %v5412_v10, %s6055_s26  ;;  %5735 = vtanh.f32 %v3492_v24  ;;  %v3075_v18 = vmul.f32 0.7978846, %v3067_v21  ;;  %v3870_v34 = vmul.f32 %v3862_v31, %v9939_v62  ;;  %v3493_v47 = vmul.f32 0.7978846, %v3485_v54 }
 0x60b   : > { %4081 = vrot.lane.b32.xlu1 %v11236_v6, %s6054_s25  ;;  %v3877_v6 = vmul.f32 %v3869_v27, %v9890_v20  ;;  %v9981_v27 = vadd.f32 %v9423_v0, %v2623_v14  ;;  %v9986_v11 = vadd.f32 %v9423_v0, %v9912_v26  ;;  %v3090_v61 = vadd.f32 1.0, %v5732_v59  ;;  %v10013_v42 = vpop.f32.mrf.mxu0 }
 0x60c   : > { %4057 = vrot.lane.b32.xlu0 %v6032_v23, %s6053_s24  ;;  %v9960_v10 = vpop.permute.xlu2 %4073  ;;  %v2690_v25 = vadd.f32 1.0, %v5730_v43  ;;  %v9991_v24 = vadd.f32 %v9423_v0, %v9903_v48  ;;  %v11238_v14 = vpack.i.bf16 %v9896_v13, %v9914_v36  ;;  %v3034_v26 = vmul.f32 0.5, %v9784_v55  ;;  %s6061_s24 = smov 112  }
 0x60d   : > { %11237 = vst [vmem:[#allocation41_spill] sm:$0xff] %v9960_v10  ;;  %v4024_v23 = vpop.permute.xlu1 %4023  ;;  %v3068_v10 = vadd.f32 %v3060_v22, %v9875_v19  ;;  %v5734_v22 = vpop.eup %5733  ;;  %v3885_v50 = vadd.f32 %v3877_v6, %v9890_v20  ;;  %v3046_v21 = vmul.f32 0.044715, %v9977_v35  ;;  %v11239_v48 = vpack.i.bf16 %v9780_v17, %v9733_v46 }
 0x60e   : > { %v4000_v37 = vpop.permute.xlu0 %3999  ;;  %v11240_v13 = vpack.i.bf16 %v9665_v45, %v9668_v33  ;;  %v5572_v36 = vpack.i.bf16 %v3916_v38, %v9970_v57  ;;  %v3878_v55 = vmul.f32 %v3870_v34, %v9939_v62  ;;  %5737 = vtanh.f32 %v3075_v18 }
 0x60f   : > { %v4149_v1 = vsel %vm862_vm4, %v4141_v9, %v4000_v37  ;;  %v5567_v37 = vpack.i.bf16 %v9968_v12, %v9952_v2  ;;  %v3076_v8 = vmul.f32 0.7978846, %v3068_v10  ;;  %v2645_v2 = vmul.f32 0.044715, %v9981_v27  ;;  %v3842_v43 = vpop.f32.mrf.mxu3  ;;  %v3441_v10 = vpop.f32.mrf.mxu2 }
 0x610   : > { %v4157_v31 = vsel %vm871_vm5, %v4149_v1, %v4024_v23  ;;  %v2635_v54 = vmul.f32 0.5, %v9813_v51  ;;  %v5736_v46 = vpop.eup %5735  ;;  %v3045_v17 = vmul.f32 0.044715, %v9986_v11  ;;  %v3098_v45 = vmul.f32 %v3090_v61, %v3034_v26 }
 0x611   : > { %v2691_v33 = vadd.f32 1.0, %v5734_v22  ;;  %5739 = vtanh.f32 %v3493_v47  ;;  %v3893_v53 = vmul.f32 0.7978846, %v3885_v50  ;;  %v2644_v59 = vmul.f32 0.044715, %v9991_v24 }
 0x612   : > { %5558 = vrot.lane.b32.xlu2 %v11238_v14, %s6056_s19  ;;  %v10021_v6 = vadd.f32 %v9423_v0, %v3438_v49  ;;  %v4165_v12 = vsel %vm880_vm6, %v4157_v31, %v9819_v39  ;;  %v10026_v57 = vadd.f32 %v9423_v0, %v3842_v43  ;;  %v3054_v38 = vmul.f32 %v3046_v21, %v9977_v35 }
 0x613   : > { %5553 = vrot.lane.b32.xlu1 %v11239_v48, %s6057_s20  ;;  %5741 = vtanh.f32 %v3076_v8  ;;  %v3886_v34 = vadd.f32 %v3878_v55, %v9939_v62  ;;  %v2653_v1 = vmul.f32 %v2645_v2, %v9981_v27  ;;  %v10033_v49 = vadd.f32 %v9423_v0, %v3441_v10  ;;  %v6033_v10 = vld [vmem:[%s6132_s18 + $0x230] sm:$0xff] }
 0x614   : > { %5548 = vrot.lane.b32.xlu0 %v11240_v13, %s6058_s21  ;;  %v10017_v9 = vpop.permute.xlu2 %3955  ;;  %v10038_v39 = vadd.f32 %v9423_v0, %v9956_v15  ;;  %v3053_v61 = vmul.f32 %v3045_v17, %v9986_v11  ;;  %v5562_v22 = vpack.i.bf16 %v3098_v45, %v9964_v63  ;;  %v3508_v50 = vadd.f32 1.0, %v5736_v46  ;;  %v5738_v14 = vpop.eup %5737 }
 0x615   : > { %v4104_v23 = vpop.permute.xlu1 %4103  ;;  %v10045_v26 = vmul.f32 %v9917_v60, %v9884_v7  ;;  %v2652_v8 = vmul.f32 %v2644_v59, %v9991_v24  ;;  %v3462_v21 = vmul.f32 0.044715, %v10021_v6  ;;  %v10051_v0 = vmul.f32 %v2690_v25, %v9973_v41 }
 0x616   : > { %v4072_v51 = vpop.permute.xlu0 %4071  ;;  %v3864_v31 = vmul.f32 0.044715, %v10026_v57  ;;  %v3062_v63 = vmul.f32 %v3054_v38, %v9977_v35  ;;  %v10057_v60 = vmul.f32 %v2691_v33, %v2635_v54  ;;  %v3452_v48 = vmul.f32 0.5, %v9826_v30 }
 0x617   : > { %v4173_v18 = vsel %vm889_vm8, %v4165_v12, %v4072_v51  ;;  %v5740_v15 = vpop.eup %5739  ;;  %v3894_v13 = vmul.f32 0.7978846, %v3886_v34  ;;  %v2661_v41 = vmul.f32 %v2653_v1, %v9981_v27  ;;  %v3463_v25 = vmul.f32 0.044715, %v10033_v49  ;;  %v10078_v51 = vld [vmem:[%s10874_s2] ss:$0 sm:$0xff] }
 0x618   : > { %v4181_v47 = vsel %vm898_vm7, %v4173_v18, %v4104_v23  ;;  %5743 = vtanh.f32 %v3893_v53  ;;  %v3863_v2 = vmul.f32 0.044715, %v10038_v39  ;;  %v3091_v46 = vadd.f32 1.0, %v5738_v14 }
 0x619   : > { %5488 = vmatmul.msk.f32.gmra.mxu0 %vm910_vm9, %v4181_v47  ;;  %v5742_v55 = vpop.eup %5741  ;;  %v10066_v17 = vmul.f32 %v3508_v50, %v3452_v48  ;;  %v2660_v54 = vmul.f32 %v2652_v8, %v9991_v24  ;;  %v3470_v30 = vmul.f32 %v3462_v21, %v10021_v6  ;;  %v4126_v45 = vsel %vm835_vm1, %v6033_v10, %v9869_v28 }
 0x61a   : > { %5573 = vrot.lane.b32.xlu2 %v5572_v36, %s6059_s22  ;;  %v2629_v36 = vpop.f32.mrf.mxu0  ;;  %v3509_v59 = vadd.f32 1.0, %v5740_v15  ;;  %v3872_v23 = vmul.f32 %v3864_v31, %v10026_v57  ;;  %v3070_v12 = vadd.f32 %v3062_v63, %v9977_v35  ;;  %v3453_v18 = vmul.f32 0.5, %v9865_v16 }
 0x61b   : > { %5568 = vrot.lane.b32.xlu1 %v5567_v37, %s6060_s23  ;;  %v3061_v37 = vmul.f32 %v3053_v61, %v9986_v11  ;;  %v10081_v38 = vadd.f32 %v10078_v51, %v2629_v36  ;;  %v2669_v34 = vadd.f32 %v2661_v41, %v9981_v27  ;;  %v3471_v28 = vmul.f32 %v3463_v25, %v10033_v49 }
 0x61c   : > { %5563 = vrot.lane.b32.xlu0 %v5562_v22, %s6061_s24  ;;  %v10064_v43 = vpop.permute.xlu2 %4027  ;;  %v3092_v1 = vadd.f32 1.0, %v5742_v55  ;;  %5745 = vtanh.f32 %v3894_v13  ;;  %v3871_v47 = vmul.f32 %v3863_v2, %v10038_v39  ;;  %v10090_v22 = vadd.f32 %v10078_v51, %v10013_v42 }
 0x61d   : > { %v3978_v33 = vpop.permute.xlu1 %3977  ;;  %v3069_v61 = vadd.f32 %v3061_v37, %v9986_v11  ;;  %v2668_v8 = vadd.f32 %v2660_v54, %v9991_v24  ;;  %v3478_v16 = vmul.f32 %v3470_v30, %v10021_v6  ;;  %v11241_v21 = vpack.i.bf16 %v9750_v4, %v9849_v29 }
 0x61e   : > { %v3954_v53 = vpop.permute.xlu0 %3953  ;;  %v5744_v14 = vpop.eup %5743  ;;  %v3036_v15 = vmul.f32 0.5, %v9875_v19  ;;  %v3517_v31 = vmul.f32 %v3509_v59, %v3453_v18  ;;  %v3880_v63 = vmul.f32 %v3872_v23, %v10026_v57  ;;  %v3078_v48 = vmul.f32 0.7978846, %v3070_v12 }
 0x61f   : > { %v4134_v50 = vsel %vm844_vm2, %v4126_v45, %v3954_v53  ;;  %v2647_v42 = vmul.f32 0.044715, %v10081_v38  ;;  %v11242_v13 = vpack.i.bf16 %v9670_v52, %v9681_v40  ;;  %v11243_v41 = vpack.i.bf16 %v9626_v32, %v9624_v3 }
 0x620   : > { %v3035_v4 = vmul.f32 0.5, %v9862_v58  ;;  %v2677_v29 = vmul.f32 0.7978846, %v2669_v34  ;;  %v3479_v19 = vmul.f32 %v3471_v28, %v10033_v49  ;;  %v4142_v25 = vsel %vm853_vm3, %v4134_v50, %v3978_v33 }
 0x621   : > { %v3100_v36 = vmul.f32 %v3092_v1, %v3036_v15  ;;  %v3879_v55 = vmul.f32 %v3871_v47, %v10038_v39  ;;  %v3077_v2 = vmul.f32 0.7978846, %v3069_v61  ;;  %v2646_v52 = vmul.f32 0.044715, %v10090_v22 }
 0x622   : > { %5588 = vrot.lane.b32.xlu2 %v11241_v21, %s6057_s20  ;;  %v5592_v37 = vpack.i.bf16 %v10057_v60, %v10051_v0  ;;  %v5746_v3 = vpop.eup %5745  ;;  %v2676_v32 = vmul.f32 0.7978846, %v2668_v8  ;;  %v3486_v58 = vadd.f32 %v3478_v16, %v10021_v6  ;;  %v3099_v10 = vmul.f32 %v3091_v46, %v3035_v4  ;;  %v3845_v0 = vpop.f32.mrf.mxu3 }
 0x623   : > { %5583 = vrot.lane.b32.xlu1 %v11242_v13, %s6058_s21  ;;  %v5602_v45 = vpack.i.bf16 %v3517_v31, %v10066_v17  ;;  %v3888_v33 = vadd.f32 %v3880_v63, %v10026_v57  ;;  %v2655_v53 = vmul.f32 %v2647_v42, %v10081_v38  ;;  %v4150_v59 = vsel %vm862_vm4, %v4142_v25, %v9920_v44  ;;  %v3444_v17 = vpop.f32.mrf.mxu2 }
 0x624   : > { %5578 = vrot.lane.b32.xlu0 %v11243_v41, %s6062_s29  ;;  %v10115_v40 = vpop.permute.xlu2 %4107  ;;  %5747 = vtanh.f32 %v3078_v48  ;;  %v3487_v23 = vadd.f32 %v3479_v19, %v10033_v49  ;;  %v5597_v12 = vpack.i.bf16 %v3100_v36, %v3099_v10  ;;  %v3887_v18 = vadd.f32 %v3879_v55, %v10038_v39  ;;  %v11245_v36 = vld [vmem:[#allocation42_spill] sm:$0xff] }
 0x625   : > { %v4050_v54 = vpop.permute.xlu1 %4049  ;;  %5749 = vtanh.f32 %v2677_v29  ;;  %v2654_v46 = vmul.f32 %v2646_v52, %v10090_v22  ;;  %v3910_v34 = vadd.f32 1.0, %v5746_v3  ;;  %v3494_v28 = vmul.f32 0.7978846, %v3486_v58 }
 0x626   : > { %v4026_v30 = vpop.permute.xlu0 %4025  ;;  %5751 = vtanh.f32 %v3077_v2  ;;  %v3854_v44 = vmul.f32 0.5, %v9939_v62  ;;  %v3909_v1 = vadd.f32 1.0, %v5744_v14  ;;  %v3896_v47 = vmul.f32 0.7978846, %v3888_v33 }
 0x627   : > { %v4158_v60 = vsel %vm871_vm5, %v4150_v59, %v4026_v30  ;;  %5753 = vtanh.f32 %v2676_v32  ;;  %v2663_v61 = vmul.f32 %v2655_v53, %v10081_v38  ;;  %v10133_v50 = vadd.f32 %v10078_v51, %v3845_v0  ;;  %v11246_v53 = vld [vmem:[#allocation37_spill] sm:$0xff]  ;;  %v11247_v59 = vld [vmem:[#allocation11_spill] sm:$0xff]  ;;  %v11249_v0 = vld [vmem:[#allocation22_spill] sm:$0xff] }
 0x628   : > { %v4166_v8 = vsel %vm880_vm6, %v4158_v60, %v4050_v54  ;;  %v2262_v16 = vmul.f32 %v10045_v26, %v9884_v7  ;;  %v3495_v21 = vmul.f32 0.7978846, %v3487_v23  ;;  %v10141_v62 = vadd.f32 %v10078_v51, %v3444_v17  ;;  %v11244_v26 = vld [vmem:[#allocation41_spill] sm:$0xff] }
 0x629   : > { %v3853_v14 = vmul.f32 0.5, %v9890_v20  ;;  %v3895_v31 = vmul.f32 0.7978846, %v3887_v18  ;;  %v2662_v63 = vmul.f32 %v2654_v46, %v10090_v22  ;;  %v3918_v42 = vmul.f32 %v3910_v34, %v3854_v44  ;;  %v11250_v34 = vld [vmem:[#allocation13_spill] sm:$0xff] }
 0x62a   : > { %5603 = vrot.lane.b32.xlu2 %v5602_v45, %s6060_s23  ;;  %v5748_v15 = vpop.eup %5747  ;;  %v2269_v13 = vadd.f32 %v9900_v56, %v9754_v5  ;;  %v4174_v19 = vsel %vm889_vm8, %v4166_v8, %v11244_v26  ;;  %v2292_v55 = vadd.f32 1.0, %v11245_v36  ;;  %5755 = vtanh.f32 %v3494_v28  ;;  %v6035_v45 = vld [vmem:[%s6132_s18 + $0x2c0] sm:$0xff] }
 0x62b   : > { %5598 = vrot.lane.b32.xlu1 %v5597_v12, %s6061_s24  ;;  %v5750_v41 = vpop.eup %5749  ;;  %v3917_v25 = vmul.f32 %v3909_v1, %v3853_v14  ;;  %v2671_v2 = vadd.f32 %v2663_v61, %v10081_v38  ;;  %v3865_v52 = vmul.f32 0.044715, %v10133_v50  ;;  %5757 = vtanh.f32 %v3896_v47  ;;  %v11251_v28 = vld [vmem:[#allocation10_spill] sm:$0xff] }
 0x62c   : > { %5593 = vrot.lane.b32.xlu0 %v5592_v37, %s6056_s19  ;;  %v10145_v48 = vpop.permute.xlu2 %3981  ;;  %v5752_v20 = vpop.eup %5751  ;;  %v3464_v3 = vmul.f32 0.044715, %v10141_v62  ;;  %v3094_v32 = vadd.f32 1.0, %v5748_v15  ;;  %5759 = vtanh.f32 %v3495_v21  ;;  %v2270_v58 = vadd.f32 %v2262_v16, %v9884_v7 }
 0x62d   : > { %v3932_v4 = vpop.permute.xlu1 %3931  ;;  %v5754_v56 = vpop.eup %5753  ;;  %v2670_v54 = vadd.f32 %v2662_v63, %v10090_v22  ;;  %v5607_v30 = vpack.i.bf16 %v3918_v42, %v3917_v25  ;;  %v2693_v10 = vadd.f32 1.0, %v5750_v41  ;;  %5761 = vtanh.f32 %v3895_v31  ;;  %v11253_v25 = vld [vmem:[#allocation30_spill] sm:$0xff] }
 0x62e   : > { %v4106_v29 = vpop.permute.xlu0 %4105  ;;  %v4127_v33 = vsel %vm835_vm1, %v6035_v45, %v3932_v4  ;;  %v11248_v23 = vpack.i.bf16 %v11246_v53, %v11247_v59  ;;  %v2300_v60 = vmul.f32 %v2292_v55, %v11249_v0  ;;  %v3038_v12 = vmul.f32 0.5, %v9977_v35 }
 0x62f   : > { %v4182_v37 = vsel %vm898_vm7, %v4174_v19, %v4106_v29  ;;  %v3093_v18 = vadd.f32 1.0, %v5752_v20  ;;  %v2679_v46 = vmul.f32 0.7978846, %v2671_v2  ;;  %v3873_v17 = vmul.f32 %v3865_v52, %v10133_v50  ;;  %v11254_v20 = vld [vmem:[#allocation21_spill] sm:$0xff] }
 0x630   : > { %5489 = vmatmul.msk.f32.gmra.mxu0 %vm910_vm9, %v4182_v37  ;;  %v11252_v44 = vpack.i.bf16 %v11250_v34, %v11251_v28  ;;  %v2637_v1 = vmul.f32 0.5, %v9981_v27  ;;  %v2692_v47 = vadd.f32 1.0, %v5754_v56  ;;  %v5756_v61 = vpop.eup %5755  ;;  %v3472_v8 = vmul.f32 %v3464_v3, %v10141_v62 }
 0x631   : > { %v3037_v16 = vmul.f32 0.5, %v9986_v11  ;;  %v3102_v35 = vmul.f32 %v3094_v32, %v3038_v12  ;;  %v2278_v21 = vmul.f32 0.7978846, %v2270_v58  ;;  %v5758_v14 = vpop.eup %5757  ;;  %v2678_v15 = vmul.f32 0.7978846, %v2670_v54 }
 0x632   : > { %5618 = vrot.lane.b32.xlu2 %v11248_v23, %s6058_s21  ;;  %v4135_v63 = vsel %vm844_vm2, %v4127_v33, %v10017_v9  ;;  %v2636_v42 = vmul.f32 0.5, %v9991_v24  ;;  %v2701_v41 = vmul.f32 %v2693_v10, %v2637_v1  ;;  %v5760_v4 = vpop.eup %5759  ;;  %v2277_v19 = vmul.f32 0.7978846, %v2269_v13 }
 0x633   : > { %5613 = vrot.lane.b32.xlu1 %v11252_v44, %s6062_s29  ;;  %v3101_v26 = vmul.f32 %v3093_v18, %v3037_v16  ;;  %5763 = vtanh.f32 %v11253_v25  ;;  %v5762_v11 = vpop.eup %5761  ;;  %v3881_v36 = vmul.f32 %v3873_v17, %v10133_v50  ;;  %v5622_v2 = vpack.i.bf16 %v2300_v60, %v11254_v20  ;;  %v11260_v20 = vld [vmem:[#allocation8_spill] sm:$0xff] }
 0x634   : > { %5608 = vrot.lane.b32.xlu0 %v5607_v30, %s6059_s22  ;;  %v10176_v31 = vpop.permute.xlu2 %4053  ;;  %v2700_v55 = vmul.f32 %v2692_v47, %v2636_v42  ;;  %5765 = vtanh.f32 %v2679_v46  ;;  %v3480_v52 = vmul.f32 %v3472_v8, %v10141_v62  ;;  %v3912_v56 = vadd.f32 1.0, %v5758_v14  ;;  %v11258_v42 = vld [vmem:[#allocation17_spill] sm:$0xff] }
 0x635   : > { %v4004_v27 = vpop.permute.xlu1 %4003  ;;  %v5632_v24 = vpack.i.bf16 %v3102_v35, %v3101_v26  ;;  %5767 = vtanh.f32 %v2278_v21  ;;  %v3511_v3 = vadd.f32 1.0, %v5760_v4  ;;  %v3911_v13 = vadd.f32 1.0, %v5762_v11  ;;  %v11259_v26 = vld [vmem:[#allocation23_spill] sm:$0xff] }
 0x636   : > { %v3980_v29 = vpop.permute.xlu0 %3979  ;;  %v5627_v37 = vpack.i.bf16 %v2701_v41, %v2700_v55  ;;  %5769 = vtanh.f32 %v2678_v15  ;;  %v3510_v32 = vadd.f32 1.0, %v5756_v61  ;;  %v3856_v54 = vmul.f32 0.5, %v10026_v57  ;;  %v11256_v15 = vld [vmem:[#allocation38_spill] sm:$0xff] }
 0x637   : > { %v4143_v9 = vsel %vm853_vm3, %v4135_v63, %v3980_v29  ;;  %5771 = vtanh.f32 %v2277_v19  ;;  %v3455_v30 = vmul.f32 0.5, %v10033_v49  ;;  %v3889_v10 = vadd.f32 %v3881_v36, %v10133_v50 }
 0x638   : > { %v4151_v58 = vsel %vm862_vm4, %v4143_v9, %v4004_v27  ;;  %v3488_v33 = vadd.f32 %v3480_v52, %v10141_v62  ;;  %v3855_v23 = vmul.f32 0.5, %v10038_v39  ;;  %v3920_v0 = vmul.f32 %v3912_v56, %v3856_v54 }
 0x639   : > { %v5764_v45 = vpop.eup %5763  ;;  %v3454_v60 = vmul.f32 0.5, %v10021_v6  ;;  %v3519_v12 = vmul.f32 %v3511_v3, %v3455_v30  ;;  %v4159_v57 = vsel %vm871_vm5, %v4151_v58, %v10064_v43  ;;  %v3897_v1 = vmul.f32 0.7978846, %v3889_v10  ;;  %v11255_v43 = vld [vmem:[#allocation39_spill] sm:$0xff] }
 0x63a   : > { %5633 = vrot.lane.b32.xlu2 %v5632_v24, %s6061_s24  ;;  %v5766_v53 = vpop.eup %5765  ;;  %v3919_v28 = vmul.f32 %v3911_v13, %v3855_v23  ;;  %v1877_v39 = vadd.f32 1.0, %v5764_v45  ;;  %v3496_v16 = vmul.f32 0.7978846, %v3488_v33  ;;  %v11257_v63 = vpack.i.bf16 %v11255_v43, %v11256_v15  ;;  %v4638_v15 = vld [vmem:[%s10875_s3 + $0xd8] sm:$0xff] }
 0x63b   : > { %5628 = vrot.lane.b32.xlu1 %v5627_v37, %s6056_s19  ;;  %v5768_v18 = vpop.eup %5767  ;;  %v3518_v44 = vmul.f32 %v3510_v32, %v3454_v60  ;;  %v2695_v8 = vadd.f32 1.0, %v5766_v53  ;;  %v1821_v41 = vmul.f32 0.5, %v11258_v42  ;;  %v2639_v4 = vmul.f32 0.5, %v10081_v38  ;;  %v4654_v42 = vld [vmem:[%s10875_s3 + $0x158] sm:$0xff] }
 0x63c   : > { %5623 = vrot.lane.b32.xlu0 %v5622_v2, %s6057_s20  ;;  %v10194_v59 = vpop.permute.xlu2 %3935  ;;  %v5770_v17 = vpop.eup %5769  ;;  %v5642_v35 = vpack.i.bf16 %v3920_v0, %v3919_v28  ;;  %v2294_v14 = vadd.f32 1.0, %v5768_v18  ;;  %v1876_v19 = vadd.f32 1.0, %v11259_v26  ;;  %5773 = vtanh.f32 %v3897_v1 }
 0x63d   : > { %v4076_v46 = vpop.permute.xlu1 %4075  ;;  %v5772_v47 = vpop.eup %5771  ;;  %v5637_v21 = vpack.i.bf16 %v3519_v12, %v3518_v44  ;;  %v2694_v27 = vadd.f32 1.0, %v5770_v17  ;;  %v2638_v25 = vmul.f32 0.5, %v10090_v22  ;;  %v2703_v11 = vmul.f32 %v2695_v8, %v2639_v4  ;;  %v4637_v4 = vld [vmem:[%s10875_s3 + $0xd0] sm:$0xff] }
 0x63e   : > { %v4052_v49 = vpop.permute.xlu0 %4051  ;;  %v2293_v29 = vadd.f32 1.0, %v5772_v47  ;;  %5775 = vtanh.f32 %v3496_v16  ;;  %v2237_v38 = vmul.f32 0.5, %v9754_v5  ;;  %v1820_v2 = vmul.f32 0.5, %v11260_v20  ;;  %v4640_v16 = vld [vmem:[%s10875_s3 + $0xe8] sm:$0xff] }
 0x63f   : > { %v4167_v34 = vsel %vm880_vm6, %v4159_v57, %v4052_v49  ;;  %v1885_v52 = vmul.f32 %v1877_v39, %v1821_v41  ;;  %v2702_v37 = vmul.f32 %v2694_v27, %v2638_v25  ;;  %v3857_v60 = vmul.f32 0.5, %v10133_v50  ;;  %v4642_v49 = vld [vmem:[%s10875_s3 + $0xf8] sm:$0xff]  ;;  %v4641_v50 = vld [vmem:[%s10875_s3 + $0xf0] sm:$0xff]  ;;  %v6037_v27 = vld [vmem:[%s6132_s18 + $0x3e0] sm:$0xff] }
 0x640   : > { %v4175_v61 = vsel %vm889_vm8, %v4167_v34, %v4076_v46  ;;  %v2301_v3 = vmul.f32 %v2293_v29, %v2237_v38  ;;  %v1884_v13 = vmul.f32 %v1876_v19, %v1820_v2  ;;  %v3456_v12 = vmul.f32 0.5, %v10141_v62  ;;  %4734 = vmatpush.msrb.mxu2 %v4642_v49  ;;  %v4653_v19 = vld [vmem:[%s10875_s3 + $0x150] sm:$0xff]  ;;  %v4624_v2 = vld [vmem:[%s10875_s3 + $0x68] sm:$0xff]  ;;  %v11261_v49 = vld [vmem:[#allocation18_spill] sm:$0xff] }
 0x641   : > { %v4183_v6 = vsel %vm898_vm7, %v4175_v61, %v10115_v40  ;;  %v2238_v40 = vmul.f32 0.5, %v9884_v7  ;;  %v6036_v7 = vld [vmem:[%s6132_s18 + $0x350] sm:$0xff]  ;;  %v5662_v32 = vpack.i.bf16 %v2703_v11, %v2702_v37  ;;  %v4663_v37 = vld [vmem:[%s10875_s3 + $0x1a0] sm:$0xff] }
 0x642   : > { %5490 = vmatmul.msk.f32.gmra.mxu0 %vm910_vm9, %v4183_v6  ;;  %5648 = vrot.lane.b32.xlu2 %v11257_v63, %s6062_s29  ;;  %v5774_v22 = vpop.eup %5773  ;;  %v5652_v54 = vpack.i.bf16 %v1885_v52, %v1884_v13  ;;  %v4657_v61 = vld [vmem:[%s10875_s3 + $0x170] sm:$0xff]  ;;  %v4626_v63 = vld [vmem:[%s10875_s3 + $0x78] sm:$0xff]  ;;  %v4652_v52 = vld [vmem:[%s10875_s3 + $0x148] sm:$0xff] }
 0x643   : > { %5643 = vrot.lane.b32.xlu1 %v5642_v35, %s6059_s22  ;;  %v2302_v55 = vmul.f32 %v2294_v14, %v2238_v40  ;;  %v3913_v5 = vadd.f32 1.0, %v5774_v22  ;;  %4735 = vmatpush.msrb.mxu2 %v4641_v50  ;;  %v4655_v14 = vld [vmem:[%s10875_s3 + $0x160] sm:$0xff]  ;;  %v4129_v40 = vsel %vm835_vm1, %v6037_v27, %v10194_v59  ;;  %v4625_v25 = vld [vmem:[%s10875_s3 + $0x70] sm:$0xff]  ;;  %v4636_v59 = vld [vmem:[%s10875_s3 + $0xc8] sm:$0xff] }
 0x644   : > { %5638 = vrot.lane.b32.xlu0 %v5637_v21, %s6060_s23  ;;  %v10216_v36 = vpop.permute.xlu2 %4007  ;;  %v5776_v30 = vpop.eup %5775  ;;  %v4639_v21 = vld [vmem:[%s10875_s3 + $0xe0] sm:$0xff]  ;;  %4693 = vmatpush.msrb.mxu1 %v4626_v63  ;;  %v4622_v22 = vld [vmem:[%s10875_s3 + $0x58] sm:$0xff] }
 0x645   : > { %v3958_v9 = vpop.permute.xlu1 %3957  ;;  %v5657_v58 = vpack.i.bf16 %v2302_v55, %v2301_v3  ;;  %v3512_v53 = vadd.f32 1.0, %v5776_v30  ;;  %v3921_v46 = vmul.f32 %v3913_v5, %v3857_v60  ;;  %4736 = vmatpush.msrb.mxu2 %v4640_v16  ;;  %v4664_v55 = vld [vmem:[%s10875_s3 + $0x1a8] sm:$0xff]  ;;  %v4634_v3 = vld [vmem:[%s10875_s3 + $0xb8] sm:$0xff]  ;;  %v4633_v30 = vld [vmem:[%s10875_s3 + $0xb0] sm:$0xff] }
 0x646   : > { %v3934_v24 = vpop.permute.xlu0 %3933  ;;  %4694 = vmatpush.msrb.mxu1 %v4625_v25  ;;  %4826 = vmatpush.msrb.mxu0 %v4664_v55  ;;  %v4649_v5 = vld [vmem:[%s10875_s3 + $0x130] sm:$0xff]  ;;  %v4647_v16 = vld [vmem:[%s10875_s3 + $0x120] sm:$0xff]  ;;  %v4644_v55 = vld [vmem:[%s10875_s3 + $0x108] sm:$0xff] }
 0x647   : > { %v4128_v56 = vsel %vm835_vm1, %v6036_v7, %v3934_v24  ;;  %v3520_v57 = vmul.f32 %v3512_v53, %v3456_v12  ;;  %4737 = vmatpush.msrb.mxu2 %v4639_v21  ;;  %v4635_v24 = vld [vmem:[%s10875_s3 + $0xc0] sm:$0xff] }
 0x648   : > { %v4136_v10 = vsel %vm844_vm2, %v4128_v56, %v3958_v9  ;;  %4695 = vmatpush.msrb.mxu1 %v4624_v2  ;;  %4827 = vmatpush.msrb.mxu0 %v4663_v37  ;;  %v4623_v7 = vld [vmem:[%s10875_s3 + $0x60] sm:$0xff] }
 0x649   : > { %v4144_v33 = vsel %vm853_vm3, %v4136_v10, %v10145_v48  ;;  %v4658_v48 = vld [vmem:[%s10875_s3 + $0x178] sm:$0xff]  ;;  %4738 = vmatpush.msrb.mxu2 %v4638_v15  ;;  %v4651_v56 = vld [vmem:[%s10875_s3 + $0x140] sm:$0xff]  ;;  %v4661_v10 = vld [vmem:[%s10875_s3 + $0x190] sm:$0xff] }
 0x64a   : > { %5663 = vrot.lane.b32.xlu2 %v5662_v32, %s6056_s19  ;;  %4775 = vmatpush.msra.mxu3 %v4658_v48  ;;  %v4662_v32 = vld [vmem:[%s10875_s3 + $0x198] sm:$0xff]  ;;  %v10361_v48 = vadd.f32 %v10078_v51, %v11261_v49  ;;  %v4629_v15 = vld [vmem:[%s10875_s3 + $0x90] sm:$0xff] }
 0x64b   : > { %5658 = vrot.lane.b32.xlu1 %v5657_v58, %s6057_s20  ;;  %4739 = vmatpush.msrb.mxu2 %v4637_v4  ;;  %v4650_v58 = vld [vmem:[%s10875_s3 + $0x138] sm:$0xff] }
 0x64c   : > { %5653 = vrot.lane.b32.xlu0 %v5652_v54, %s6058_s21  ;;  %v10226_v45 = vpop.permute.xlu2 %4079  ;;  %4776 = vmatpush.msra.mxu3 %v4657_v61  ;;  %v4659_v61 = vld [vmem:[%s10875_s3 + $0x180] sm:$0xff]  ;;  %v988_v63 = vmul.f32 0.044715, %v10361_v48  ;;  %s5514_s21 = sshll.u32 %s11272_s14, 6 }
 0x64d   : > { %v4030_v23 = vpop.permute.xlu1 %4029  ;;  %4740 = vmatpush.msrb.mxu2 %v4636_v59  ;;  %4696 = vmatpush.msrb.mxu1 %v4623_v7  ;;  %v4628_v59 = vld [vmem:[%s10875_s3 + $0x88] sm:$0xff]  ;;  %v4627_v7 = vld [vmem:[%s10875_s3 + $0x80] sm:$0xff]  ;;  %s359_s11 = scalar_lea.vmem %s10882_s10, %s5514_s21 }
 0x64e   : > { %v4006_v0 = vpop.permute.xlu0 %4005  ;;  %4828 = vmatpush.msrb.mxu0 %v4662_v32  ;;  %v11262_v32 = vld [vmem:[#allocation9_spill] sm:$0xff] }
 0x64f   : > { %v4152_v18 = vsel %vm862_vm4, %v4144_v33, %v4006_v0  ;;  %4741 = vmatpush.msrb.mxu2 %v4635_v24  ;;  %v3027_v33 = vpop.f32.mrf.mxu1  ;;  %4697 = vmatpush.msrb.mxu1 %v4622_v22  ;;  %v4621_v0 = vld [vmem:[%s10875_s3 + $0x50] sm:$0xff]  ;;  %v10446_v22 = vadd.f32 %v10078_v51, %v11262_v32 }
 0x650   : > { %v4160_v62 = vsel %vm871_vm5, %v4152_v18, %v4030_v23  ;;  %4829 = vmatpush.msrb.mxu0 %v4661_v10  ;;  %v6038_v24 = vld [vmem:[%s6132_s18 + $0x470] sm:$0xff] }
 0x651   : > { %v4168_v1 = vsel %vm880_vm6, %v4160_v62, %v10176_v31  ;;  %v4656_v31 = vld [vmem:[%s10875_s3 + $0x168] sm:$0xff]  ;;  %4742 = vmatpush.msrb.mxu2 %v4634_v3  ;;  %4698 = vmatpush.msrb.mxu1 %v4621_v0  ;;  %v4643_v3 = vld [vmem:[%s10875_s3 + $0x100] sm:$0xff] }
 0x652   : > { %4536 = vrot.lane.b32.xlu2 %v3921_v46, %s6059_s22  ;;  %4777 = vmatpush.msra.mxu3 %v4656_v31  ;;  %v4632_v46 = vld [vmem:[%s10875_s3 + $0xa8] sm:$0xff]  ;;  %v4618_v31 = vld [vmem:[%s10875_s3 + $0x38] sm:$0xff] }
 0x653   : > { %4504 = vrot.lane.b32.xlu1 %v3520_v57, %s6060_s23  ;;  %v3447_v17 = vpop.f32.mrf.mxu2  ;;  %4743 = vmatpush.msrb.mxu2 %v4633_v30  ;;  %v4660_v57 = vld [vmem:[%s10875_s3 + $0x188] sm:$0xff]  ;;  %v4614_v30 = vld [vmem:[%s10875_s3 + $0x18] sm:$0xff] }
 0x654   : > { %v10246_v34 = vadd.f32 %v10078_v51, %v3447_v17  ;;  %v10248_v28 = vpop.permute.xlu2 %3961  ;;  %4778 = vmatpush.msra.mxu3 %v4655_v14  ;;  %4830 = vmatpush.msrb.mxu0 %v4660_v57 }
 0x655   : > { %v4110_v44 = vpop.permute.xlu1 %4109  ;;  %v4228_v20 = vpop.f32.mrf.mxu0  ;;  %4744 = vmatpush.msrb.mxu2 %v4632_v46  ;;  %v1411_v46 = vmul.f32 0.044715, %v10446_v22 }
 0x656   : > { %v4078_v47 = vpop.permute.xlu0 %4077  ;;  %v3465_v39 = vmul.f32 0.044715, %v10246_v34  ;;  %4779 = vmatpush.msra.mxu3 %v4654_v42  ;;  %v10326_v13 = vadd.f32 %v10078_v51, %v4228_v20  ;;  %v3457_v62 = vmul.f32 0.5, %v10246_v34  ;;  %4831 = vmatpush.msrb.mxu0 %v4659_v61  ;;  %v996_v20 = vmul.f32 %v988_v63, %v10361_v48  ;;  %v4612_v61 = vld [vmem:[%s10875_s3 + $0x8] sm:$0xff] }
 0x657   : > { %v4176_v8 = vsel %vm889_vm8, %v4168_v1, %v4078_v47  ;;  %v10372_v1 = vadd.f32 %v10078_v51, %v3027_v33 }
 0x658   : > { %v4184_v6 = vsel %vm898_vm7, %v4176_v8, %v4110_v44  ;;  %v3473_v35 = vmul.f32 %v3465_v39, %v10246_v34  ;;  %4780 = vmatpush.msra.mxu3 %v4653_v19  ;;  %v4260_v12 = vmul.f32 0.044715, %v10326_v13  ;;  %v4648_v44 = vld [vmem:[%s10875_s3 + $0x128] sm:$0xff]  ;;  %v4619_v39 = vld [vmem:[%s10875_s3 + $0x40] sm:$0xff]  ;;  %v4617_v19 = vld [vmem:[%s10875_s3 + $0x30] sm:$0xff]  ;;  %v1004_v10 = vmul.f32 %v996_v20, %v10361_v48 }
 0x659   : > { %5491 = vmatmul.msk.f32.gmra.mxu0 %vm910_vm9, %v4184_v6  ;;  %v4630_v6 = vld [vmem:[%s10875_s3 + $0x98] sm:$0xff]  ;;  %v3047_v4 = vmul.f32 0.044715, %v10372_v1 }
 0x65a   : > { %v3481_v43 = vmul.f32 %v3473_v35, %v10246_v34  ;;  %4781 = vmatpush.msra.mxu3 %v4652_v52  ;;  %v4268_v35 = vmul.f32 %v4260_v12, %v10326_v13 }
 0x65b   : > { %v3055_v52 = vmul.f32 %v3047_v4, %v10372_v1 }
 0x65c   : > { %v3489_v41 = vadd.f32 %v3481_v43, %v10246_v34  ;;  %v10295_v11 = vpop.permute.xlu2 %4033  ;;  %4782 = vmatpush.msra.mxu3 %v4651_v56  ;;  %v4631_v34 = vld [vmem:[%s10875_s3 + $0xa0] sm:$0xff]  ;;  %v4646_v43 = vld [vmem:[%s10875_s3 + $0x118] sm:$0xff]  ;;  %v4276_v25 = vmul.f32 %v4268_v35, %v10326_v13  ;;  %v1419_v35 = vmul.f32 %v1411_v46, %v10446_v22 }
 0x65d   : > { %v3984_v29 = vpop.permute.xlu1 %3983  ;;  %4745 = vmatpush.msrb.mxu2 %v4631_v34  ;;  %v4615_v56 = vld [vmem:[%s10875_s3 + $0x20] sm:$0xff]  ;;  %v3063_v33 = vmul.f32 %v3055_v52, %v10372_v1 }
 0x65e   : > { %v3960_v26 = vpop.permute.xlu0 %3959  ;;  %v3497_v38 = vmul.f32 0.7978846, %v3489_v41  ;;  %4783 = vmatpush.msra.mxu3 %v4650_v58  ;;  %v4645_v41 = vld [vmem:[%s10875_s3 + $0x110] sm:$0xff]  ;;  %v4284_v58 = vadd.f32 %v4276_v25, %v10326_v13 }
 0x65f   : > { %v4137_v9 = vsel %vm844_vm2, %v4129_v40, %v3960_v26  ;;  %4746 = vmatpush.msrb.mxu2 %v4630_v6  ;;  %v3071_v34 = vadd.f32 %v3063_v33, %v10372_v1 }
 0x660   : > { %5777 = vtanh.f32 %v3497_v38  ;;  %v4145_v54 = vsel %vm853_vm3, %v4137_v9, %v3984_v29  ;;  %4784 = vmatpush.msra.mxu3 %v4649_v5  ;;  %v4292_v57 = vmul.f32 0.7978846, %v4284_v58 }
 0x661   : > { %v4153_v18 = vsel %vm862_vm4, %v4145_v54, %v10216_v36  ;;  %v4620_v36 = vld [vmem:[%s10875_s3 + $0x48] sm:$0xff]  ;;  %4747 = vmatpush.msrb.mxu2 %v4629_v15  ;;  %v3079_v63 = vmul.f32 0.7978846, %v3071_v34  ;;  %v980_v34 = vmul.f32 0.5, %v10361_v48 }
 0x662   : > { %4699 = vmatpush.msrb.mxu1 %v4620_v36  ;;  %4785 = vmatpush.msra.mxu3 %v4648_v44  ;;  %v11264_v36 = vld [vmem:[#allocation19_spill] sm:$0xff] }
 0x663   : > { %4748 = vmatpush.msrb.mxu2 %v4628_v59  ;;  %v10474_v44 = vadd.f32 %v10078_v51, %v11264_v36 }
 0x664   : > { %v10374_v47 = vpop.permute.xlu2 %4113  ;;  %4700 = vmatpush.msrb.mxu1 %v4619_v39  ;;  %4786 = vmatpush.msra.mxu3 %v4647_v16 }
 0x665   : > { %v4056_v53 = vpop.permute.xlu1 %4055  ;;  %4749 = vmatpush.msrb.mxu2 %v4627_v7  ;;  %v1412_v15 = vmul.f32 0.044715, %v10474_v44 }
 0x666   : > { %v4032_v23 = vpop.permute.xlu0 %4031  ;;  %v5778_v60 = vpop.eup %5777  ;;  %4701 = vmatpush.msrb.mxu1 %v4618_v31  ;;  %4787 = vmatpush.msra.mxu3 %v4646_v43  ;;  %v4611_v31 = vld [vmem:[%s10875_s3] sm:$0xff] }
 0x667   : > { %v4161_v50 = vsel %vm871_vm5, %v4153_v18, %v4032_v23  ;;  %v3513_v17 = vadd.f32 1.0, %v5778_v60  ;;  %v11263_v23 = vld [vmem:[#allocation5_spill] sm:$0xff] }
 0x668   : > { %v4169_v21 = vsel %vm880_vm6, %v4161_v50, %v4056_v53  ;;  %4788 = vmatpush.msra.mxu3 %v4645_v41  ;;  %4702 = vmatpush.msrb.mxu1 %v4617_v19  ;;  %v10461_v0 = vadd.f32 %v10078_v51, %v11263_v23  ;;  %v4613_v50 = vld [vmem:[%s10875_s3 + $0x10] sm:$0xff]  ;;  %v4252_v23 = vmul.f32 0.5, %v10326_v13 }
 0x669   : > { %v3521_v8 = vmul.f32 %v3513_v17, %v3457_v62  ;;  %v4177_v26 = vsel %vm889_vm8, %v4169_v21, %v10226_v45  ;;  %v4616_v45 = vld [vmem:[%s10875_s3 + $0x28] sm:$0xff]  ;;  %v1012_v62 = vadd.f32 %v1004_v10, %v10361_v48 }
 0x66a   : > { %4703 = vmatpush.msrb.mxu1 %v4616_v45  ;;  %4789 = vmatpush.msra.mxu3 %v4644_v55  ;;  %v989_v39 = vmul.f32 0.044715, %v10461_v0 }
 0x66b   : > { %v3848_v14 = vpop.f32.mrf.mxu3  ;;  %4506 = vrot.lane.b32.xlu1 %v3521_v8, %s6060_s23  ;;  %v11265_v8 = vld [vmem:[#allocation24_spill] sm:$0xff]  ;;  %v1020_v43 = vmul.f32 0.7978846, %v1012_v62 }
 0x66c   : > { %v10404_v42 = vadd.f32 %v10078_v51, %v3848_v14  ;;  %v10449_v54 = vpop.permute.xlu2 %5558  ;;  %4704 = vmatpush.msrb.mxu1 %v4615_v56  ;;  %4790 = vmatpush.msra.mxu3 %v4643_v3  ;;  %v10483_v16 = vadd.f32 %v10078_v51, %v11265_v8 }
 0x66d   : > { %v3938_v40 = vpop.permute.xlu1 %3937 }
 0x66e   : > { %v3866_v27 = vmul.f32 0.044715, %v10404_v42  ;;  %v4112_v29 = vpop.permute.xlu0 %4111  ;;  %v4130_v37 = vsel %vm835_vm1, %v6038_v24, %v3938_v40  ;;  %4705 = vmatpush.msrb.mxu1 %v4614_v30  ;;  %v990_v40 = vmul.f32 0.044715, %v10483_v16  ;;  %v3858_v55 = vmul.f32 0.5, %v10404_v42  ;;  %v11266_v30 = vld [vmem:[#allocation20_spill] sm:$0xff] }
 0x66f   : > { %v4185_v38 = vsel %vm898_vm7, %v4177_v26, %v4112_v29  ;;  %v4138_v53 = vsel %vm844_vm2, %v4130_v37, %v10248_v28  ;;  %v10519_v10 = vadd.f32 %v10078_v51, %v11266_v30 }
 0x670   : > { %v3874_v2 = vmul.f32 %v3866_v27, %v10404_v42  ;;  %5492 = vmatmul.msk.f32.gmra.mxu0 %vm910_vm9, %v4185_v38  ;;  %4706 = vmatpush.msrb.mxu1 %v4613_v50  ;;  %v997_v27 = vmul.f32 %v989_v39, %v10461_v0  ;;  %v1427_v38 = vmul.f32 %v1419_v35, %v10446_v22 }
 0x671   : > { %v998_v32 = vmul.f32 %v990_v40, %v10483_v16  ;;  %v3039_v40 = vmul.f32 0.5, %v10372_v1 }
 0x672   : > { %v3882_v9 = vmul.f32 %v3874_v2, %v10404_v42  ;;  %4707 = vmatpush.msrb.mxu1 %v4612_v61  ;;  %v1005_v3 = vmul.f32 %v997_v27, %v10461_v0  ;;  %v1435_v58 = vadd.f32 %v1427_v38, %v10446_v22 }
 0x673   : > { %v1006_v62 = vmul.f32 %v998_v32, %v10483_v16 }
 0x674   : > { %v3890_v5 = vadd.f32 %v3882_v9, %v10404_v42  ;;  %4708 = vmatpush.msrb.mxu1 %v4611_v31  ;;  %v10493_v41 = vpop.permute.xlu2 %5573  ;;  %v1013_v46 = vadd.f32 %v1005_v3, %v10461_v0  ;;  %v1443_v50 = vmul.f32 0.7978846, %v1435_v58 }
 0x675   : > { %v4010_v60 = vpop.permute.xlu1 %4009  ;;  %v1014_v48 = vadd.f32 %v1006_v62, %v10483_v16  ;;  %v5575_v1 = vunpack.i.l.bf16 %v10493_v41 }
 0x676   : > { %v3986_v12 = vpop.permute.xlu0 %3985  ;;  %v3898_v18 = vmul.f32 0.7978846, %v3890_v5  ;;  %v3030_v49 = vpop.f32.mrf.mxu1 }
 0x677   : > { %v4146_v28 = vsel %vm853_vm3, %v4138_v53, %v3986_v12  ;;  %v10470_v17 = vadd.f32 %v10078_v51, %v3030_v49 }
 0x678   : > { %5779 = vtanh.f32 %v3898_v18  ;;  %v4154_v21 = vsel %vm862_vm4, %v4146_v28, %v4010_v60  ;;  %v991_v28 = vmul.f32 0.044715, %v10519_v10 }
 0x679   : > { %v3048_v6 = vmul.f32 0.044715, %v10470_v17  ;;  %5781 = vtanh.f32 %v4292_v57  ;;  %v4162_v19 = vsel %vm871_vm5, %v4154_v21, %v10295_v11  ;;  %v1420_v11 = vmul.f32 %v1412_v15, %v10474_v44 }
 0x67a   : > { %5783 = vtanh.f32 %v1020_v43  ;;  %v3040_v43 = vmul.f32 0.5, %v10470_v17 }
 0x67b   : > { %v3056_v14 = vmul.f32 %v3048_v6, %v10470_v17  ;;  %5785 = vtanh.f32 %v3079_v63  ;;  %v1428_v33 = vmul.f32 %v1420_v11, %v10474_v44  ;;  %v999_v63 = vmul.f32 %v991_v28, %v10519_v10 }
 0x67c   : > { %v10530_v49 = vpop.permute.xlu2 %5588 }
 0x67d   : > { %v3064_v29 = vmul.f32 %v3056_v14, %v10470_v17  ;;  %v4082_v26 = vpop.permute.xlu1 %4081  ;;  %v1436_v6 = vadd.f32 %v1428_v33, %v10474_v44  ;;  %v1021_v14 = vmul.f32 0.7978846, %v1013_v46  ;;  %v1007_v58 = vmul.f32 %v999_v63, %v10519_v10 }
 0x67e   : > { %v5780_v4 = vpop.eup %5779  ;;  %v4058_v25 = vpop.permute.xlu0 %4057 }
 0x67f   : > { %v4170_v59 = vsel %vm880_vm6, %v4162_v19, %v4058_v25  ;;  %v4231_v45 = vpop.f32.mrf.mxu0  ;;  %v3914_v20 = vadd.f32 1.0, %v5780_v4  ;;  %v3072_v2 = vadd.f32 %v3064_v29, %v10470_v17  ;;  %v5782_v24 = vpop.eup %5781  ;;  %v11267_v4 = vld [vmem:[#allocation12_spill] sm:$0xff]  ;;  %v1444_v17 = vmul.f32 0.7978846, %v1436_v6 }
 0x680   : > { %v10505_v52 = vadd.f32 %v10078_v51, %v4231_v45  ;;  %v4178_v9 = vsel %vm889_vm8, %v4170_v59, %v4082_v26  ;;  %v5784_v53 = vpop.eup %5783  ;;  %v10545_v27 = vadd.f32 %v10078_v51, %v11267_v4  ;;  %v5560_v19 = vunpack.i.l.bf16 %v10449_v54 }
 0x681   : > { %v4186_v37 = vsel %vm898_vm7, %v4178_v9, %v10374_v47  ;;  %v3922_v7 = vmul.f32 %v3914_v20, %v3858_v55  ;;  %v3080_v56 = vmul.f32 0.7978846, %v3072_v2  ;;  %v4308_v47 = vadd.f32 1.0, %v5782_v24  ;;  %v5786_v57 = vpop.eup %5785 }
 0x682   : > { %v4261_v42 = vmul.f32 0.044715, %v10505_v52  ;;  %5493 = vmatmul.msk.f32.gmra.mxu0 %vm910_vm9, %v4186_v37  ;;  %v1036_v8 = vadd.f32 1.0, %v5784_v53  ;;  %v3095_v35 = vadd.f32 1.0, %v5786_v57  ;;  %v1022_v2 = vmul.f32 0.7978846, %v1014_v48 }
 0x683   : > { %4538 = vrot.lane.b32.xlu2 %v3922_v7, %s6059_s22  ;;  %5787 = vtanh.f32 %v3080_v56  ;;  %v4316_v36 = vmul.f32 %v4308_v47, %v4252_v23  ;;  %v992_v3 = vmul.f32 0.044715, %v10545_v27 }
 0x684   : > { %v4269_v5 = vmul.f32 %v4261_v42, %v10505_v52  ;;  %5789 = vtanh.f32 %v1443_v50  ;;  %v3103_v59 = vmul.f32 %v3095_v35, %v3039_v40  ;;  %v10556_v37 = vpop.permute.xlu2 %5603  ;;  %v1044_v62 = vmul.f32 %v1036_v8, %v980_v34 }
 0x685   : > { %v10524_v60 = vpop.permute.xlu1 %5553  ;;  %v1000_v6 = vmul.f32 %v992_v3, %v10545_v27 }
 0x686   : > { %v10526_v12 = vpop.permute.xlu0 %5548  ;;  %v4277_v18 = vmul.f32 %v4269_v5, %v10505_v52  ;;  %v5555_v61 = vunpack.i.l.bf16 %v10524_v60  ;;  %v5556_v24 = vunpack.i.h.bf16 %v10524_v60  ;;  %v4253_v5 = vmul.f32 0.5, %v10505_v52  ;;  %v10568_v60 = vld [vmem:[%s10874_s2] ss:$0 sm:$0xff] }
 0x687   : > { %v5550_v39 = vunpack.i.l.bf16 %v10526_v12  ;;  %v5551_v11 = vunpack.i.h.bf16 %v10526_v12  ;;  %v5605_v12 = vunpack.i.l.bf16 %v10556_v37 }
 0x688   : > { %v4285_v13 = vadd.f32 %v4277_v18, %v10505_v52  ;;  %v11268_v18 = vld [vmem:[#allocation27_spill] sm:$0xff]  ;;  %v5561_v52 = vunpack.i.h.bf16 %v10449_v54  ;;  %v5576_v54 = vunpack.i.h.bf16 %v10493_v41 }
 0x689   : > { %v5788_v31 = vpop.eup %5787  ;;  %v4567_v29 = vsel %vm4566_vm11, %v5550_v39, %v5555_v61  ;;  %v10572_v46 = vadd.f32 %v10568_v60, %v11268_v18  ;;  %v4568_v50 = vsel %vm4566_vm11, %v5551_v11, %v5556_v24  ;;  %v1015_v61 = vadd.f32 %v1007_v58, %v10519_v10 }
 0x68a   : > { %5494 = vmatmul.msk.f32.vlgmr.msrb.gmra.mxu0 %vm4548_vm10, %v4316_v36  ;;  %v4293_v21 = vmul.f32 0.7978846, %v4285_v13  ;;  %v3096_v15 = vadd.f32 1.0, %v5788_v31  ;;  %v4576_v20 = vsel %vm4575_vm12, %v4567_v29, %v5560_v19  ;;  %v5790_v9 = vpop.eup %5789  ;;  %v1403_v13 = vmul.f32 0.5, %v10446_v22 }
 0x68b   : > { %v1459_v53 = vadd.f32 1.0, %v5790_v9  ;;  %v4577_v22 = vsel %vm4575_vm12, %v4568_v50, %v5561_v52  ;;  %v1008_v19 = vmul.f32 %v1000_v6, %v10545_v27  ;;  %v1404_v9 = vmul.f32 0.5, %v10474_v44 }
 0x68c   : > { %5791 = vtanh.f32 %v4293_v21  ;;  %v3104_v26 = vmul.f32 %v3096_v15, %v3040_v43  ;;  %v993_v43 = vmul.f32 0.044715, %v10572_v46  ;;  %v10599_v29 = vpop.permute.xlu2 %5618  ;;  %v5591_v50 = vunpack.i.h.bf16 %v10530_v49 }
 0x68d   : > { %v5569_v25 = vpop.permute.xlu1 %5568  ;;  %5793 = vtanh.f32 %v1021_v14  ;;  %v1467_v14 = vmul.f32 %v1459_v53, %v1403_v13 }
 0x68e   : > { %v5564_v38 = vpop.permute.xlu0 %5563  ;;  %v5570_v45 = vunpack.i.l.bf16 %v5569_v25  ;;  %v5667_v55 = vpack.i.bf16 %v3104_v26, %v3103_v59  ;;  %5795 = vtanh.f32 %v1444_v17  ;;  %v5571_v30 = vunpack.i.h.bf16 %v5569_v25 }
 0x68f   : > { %v5565_v51 = vunpack.i.l.bf16 %v5564_v38  ;;  %v5566_v47 = vunpack.i.h.bf16 %v5564_v38  ;;  %5797 = vtanh.f32 %v1022_v2  ;;  %v981_v17 = vmul.f32 0.5, %v10461_v0 }
 0x690   : > { %5668 = vrot.lane.b32.xlu0 %v5667_v55, %s6061_s24  ;;  %v5590_v55 = vunpack.i.l.bf16 %v10530_v49 }
 0x691   : > { %v4585_v7 = vsel %vm4584_vm13, %v4576_v20, %v5565_v51  ;;  %v4594_v56 = vsel %vm4593_vm14, %v5565_v51, %v5570_v45  ;;  %v4595_v21 = vsel %vm4593_vm14, %v5566_v47, %v5571_v30  ;;  %v4586_v15 = vsel %vm4584_vm13, %v4577_v22, %v5566_v47 }
 0x692   : > { %v5792_v42 = vpop.eup %5791  ;;  %4750 = vmatmul.f32.vlgmr.msrb.gmra.mxu2 %v4585_v7  ;;  %v4603_v32 = vsel %vm4602_vm15, %v4594_v56, %v5575_v1  ;;  %v4604_v40 = vsel %vm4602_vm15, %v4595_v21, %v5576_v54  ;;  %v1023_v51 = vmul.f32 0.7978846, %v1015_v61 }
 0x693   : > { %4791 = vmatmul.f32.vlgmr.msra.gmra.mxu3 %v4603_v32  ;;  %v4309_v33 = vadd.f32 1.0, %v5792_v42  ;;  %v5794_v23 = vpop.eup %5793  ;;  %v1016_v42 = vadd.f32 %v1008_v19, %v10545_v27 }
 0x694   : > { %v5796_v34 = vpop.eup %5795  ;;  %v1037_v63 = vadd.f32 1.0, %v5794_v23  ;;  %5799 = vtanh.f32 %v1023_v51  ;;  %v10626_v52 = vpop.permute.xlu2 %5633  ;;  %v5606_v51 = vunpack.i.h.bf16 %v10556_v37 }
 0x695   : > { %v4317_v57 = vmul.f32 %v4309_v33, %v4253_v5  ;;  %v10578_v28 = vpop.permute.xlu1 %5583  ;;  %v5798_v25 = vpop.eup %5797  ;;  %v1460_v59 = vadd.f32 1.0, %v5796_v34 }
 0x696   : > { %v5579_v36 = vpop.permute.xlu0 %5578  ;;  %v4234_v35 = vpop.f32.mrf.mxu0  ;;  %v5585_v38 = vunpack.i.l.bf16 %v10578_v28  ;;  %v1045_v1 = vmul.f32 %v1037_v63, %v981_v17  ;;  %v1038_v44 = vadd.f32 1.0, %v5798_v25  ;;  %v5586_v5 = vunpack.i.h.bf16 %v10578_v28 }
 0x697   : > { %v5580_v31 = vunpack.i.l.bf16 %v5579_v36  ;;  %5495 = vmatmul.msk.f32.gmra.mxu0 %vm4548_vm10, %v4317_v57  ;;  %v10587_v8 = vadd.f32 %v10568_v60, %v4234_v35  ;;  %v5581_v26 = vunpack.i.h.bf16 %v5579_v36  ;;  %v1468_v3 = vmul.f32 %v1460_v59, %v1404_v9 }
 0x698   : > { %4344 = vrot.lane.b32.xlu0 %v1467_v14, %s6062_s29  ;;  %v4569_v32 = vsel %vm4566_vm11, %v5585_v38, %v5590_v55  ;;  %v1024_v57 = vmul.f32 0.7978846, %v1016_v42  ;;  %v4570_v35 = vsel %vm4566_vm11, %v5586_v5, %v5591_v50  ;;  %v5620_v55 = vunpack.i.l.bf16 %v10599_v29 }
 0x699   : > { %v4549_v48 = vsel %vm4548_vm10, %v1044_v62, %v5580_v31  ;;  %v4262_v4 = vmul.f32 0.044715, %v10587_v8  ;;  %v4550_v56 = vsel %vm4548_vm10, %v1045_v1, %v5581_v26  ;;  %v982_v62 = vmul.f32 0.5, %v10483_v16 }
 0x69a   : > { %4753 = vmatmul.f32.gmra.mxu2 %v4586_v15  ;;  %v4558_v41 = vsel %vm4557_vm0, %v4549_v48, %v5550_v39  ;;  %v1001_v39 = vmul.f32 %v993_v43, %v10572_v46  ;;  %v4559_v33 = vsel %vm4557_vm0, %v4550_v56, %v5551_v11  ;;  %v5800_v13 = vpop.eup %5799  ;;  %v983_v26 = vmul.f32 0.5, %v10519_v10 }
 0x69b   : > { %4709 = vmatmul.f32.vlgmr.msrb.gmra.mxu1 %v4558_v41  ;;  %4794 = vmatmul.f32.gmra.mxu3 %v4604_v40  ;;  %v4270_v45 = vmul.f32 %v4262_v4, %v10587_v8  ;;  %v1046_v31 = vmul.f32 %v1038_v44, %v982_v62  ;;  %v1039_v22 = vadd.f32 1.0, %v5800_v13  ;;  %v4254_v41 = vmul.f32 0.5, %v10587_v8 }
 0x69c   : > { %v1009_v30 = vmul.f32 %v1001_v39, %v10572_v46 }
 0x69d   : > { %v10607_v20 = vpop.permute.xlu1 %5598  ;;  %v4278_v0 = vmul.f32 %v4270_v45, %v10587_v8  ;;  %v1047_v45 = vmul.f32 %v1039_v22, %v983_v26 }
 0x69e   : > { %v5594_v2 = vpop.permute.xlu0 %5593  ;;  %v5600_v24 = vunpack.i.l.bf16 %v10607_v20  ;;  %v1017_v36 = vadd.f32 %v1009_v30, %v10572_v46  ;;  %v5601_v11 = vunpack.i.h.bf16 %v10607_v20  ;;  %v5621_v30 = vunpack.i.h.bf16 %v10599_v29 }
 0x69f   : > { %v5595_v7 = vunpack.i.l.bf16 %v5594_v2  ;;  %v4286_v58 = vadd.f32 %v4278_v0, %v10587_v8  ;;  %v5596_v18 = vunpack.i.h.bf16 %v5594_v2  ;;  %v5649_v2 = vpop.permute.xlu2 %5648 }
 0x6a0   : > { %4346 = vrot.lane.b32.xlu0 %v1468_v3, %s6062_s29  ;;  %v4596_v34 = vsel %vm4593_vm14, %v5600_v24, %v5605_v12  ;;  %v1025_v63 = vmul.f32 0.7978846, %v1017_v36  ;;  %v4597_v0 = vsel %vm4593_vm14, %v5601_v11, %v5606_v51 }
 0x6a1   : > { %v4578_v47 = vsel %vm4575_vm12, %v4569_v32, %v5595_v7  ;;  %v4294_v23 = vmul.f32 0.7978846, %v4286_v58  ;;  %v4579_v16 = vsel %vm4575_vm12, %v4570_v35, %v5596_v18  ;;  %v985_v35 = vmul.f32 0.5, %v10572_v46 }
 0x6a2   : > { %v4587_v53 = vsel %vm4584_vm13, %v4578_v47, %v5600_v24  ;;  %v4588_v48 = vsel %vm4584_vm13, %v4579_v16, %v5601_v11  ;;  %v5635_v24 = vunpack.i.l.bf16 %v10626_v52  ;;  %v5650_v47 = vunpack.i.l.bf16 %v5649_v2 }
 0x6a3   : > { %4712 = vmatmul.f32.gmra.mxu1 %v4559_v33  ;;  %4756 = vmatmul.f32.gmra.mxu2 %v4587_v53  ;;  %5801 = vtanh.f32 %v4294_v23  ;;  %v984_v33 = vmul.f32 0.5, %v10545_v27 }
 0x6a4   : > { %5803 = vtanh.f32 %v1024_v57 }
 0x6a5   : > { %v5614_v61 = vpop.permute.xlu1 %5613  ;;  %5805 = vtanh.f32 %v1025_v63 }
 0x6a6   : > { %v5609_v6 = vpop.permute.xlu0 %5608  ;;  %v5615_v49 = vunpack.i.l.bf16 %v5614_v61  ;;  %v5616_v4 = vunpack.i.h.bf16 %v5614_v61  ;;  %v5636_v61 = vunpack.i.h.bf16 %v10626_v52 }
 0x6a7   : > { %v5610_v21 = vunpack.i.l.bf16 %v5609_v6  ;;  %v5611_v19 = vunpack.i.h.bf16 %v5609_v6  ;;  %v5651_v6 = vunpack.i.h.bf16 %v5649_v2 }
 0x6a8   : > { %v4551_v14 = vsel %vm4548_vm10, %v1046_v31, %v5615_v49  ;;  %v4552_v10 = vsel %vm4548_vm10, %v1047_v45, %v5616_v4 }
 0x6a9   : > { %v4605_v54 = vsel %vm4602_vm15, %v4596_v34, %v5610_v21  ;;  %v5802_v43 = vpop.eup %5801  ;;  %v4560_v15 = vsel %vm4557_vm0, %v4551_v14, %v5585_v38  ;;  %v4606_v56 = vsel %vm4602_vm15, %v4597_v0, %v5611_v19  ;;  %v4561_v32 = vsel %vm4557_vm0, %v4552_v10, %v5586_v5  ;;  %v5664_v14 = vpop.permute.xlu2 %5663 }
 0x6aa   : > { %4797 = vmatmul.f32.gmra.mxu3 %v4605_v54  ;;  %v4310_v40 = vadd.f32 1.0, %v5802_v43  ;;  %v5804_v17 = vpop.eup %5803  ;;  %v5665_v19 = vunpack.i.l.bf16 %v5664_v14 }
 0x6ab   : > { %4715 = vmatmul.f32.gmra.mxu1 %v4560_v15  ;;  %4759 = vmatmul.f32.gmra.mxu2 %v4588_v48  ;;  %v1040_v37 = vadd.f32 1.0, %v5804_v17  ;;  %v5806_v53 = vpop.eup %5805  ;;  %v5666_v17 = vunpack.i.h.bf16 %v5664_v14 }
 0x6ac   : > { %v4318_v59 = vmul.f32 %v4310_v40, %v4254_v41  ;;  %v1041_v12 = vadd.f32 1.0, %v5806_v53  ;;  %v11269_v53 = vld [vmem:[#allocation26_spill] sm:$0xff] }
 0x6ad   : > { %v4237_v25 = vpop.f32.mrf.mxu0  ;;  %v5629_v39 = vpop.permute.xlu1 %5628  ;;  %v1048_v57 = vmul.f32 %v1040_v37, %v984_v33 }
 0x6ae   : > { %v10644_v38 = vadd.f32 %v10568_v60, %v4237_v25  ;;  %v5624_v1 = vpop.permute.xlu0 %5623  ;;  %5496 = vmatmul.msk.f32.gmra.mxu0 %vm4548_vm10, %v4318_v59  ;;  %v5630_v8 = vunpack.i.l.bf16 %v5629_v39  ;;  %v5631_v18 = vunpack.i.h.bf16 %v5629_v39  ;;  %v1049_v54 = vmul.f32 %v1041_v12, %v985_v35 }
 0x6af   : > { %v5625_v20 = vunpack.i.l.bf16 %v5624_v1  ;;  %v5626_v7 = vunpack.i.h.bf16 %v5624_v1  ;;  %v4553_v13 = vsel %vm4548_vm10, %v1048_v57, %v5650_v47 }
 0x6b0   : > { %v4263_v9 = vmul.f32 0.044715, %v10644_v38  ;;  %v4562_v21 = vsel %vm4557_vm0, %v4553_v13, %v5620_v55  ;;  %v4554_v52 = vsel %vm4548_vm10, %v1049_v54, %v5651_v6  ;;  %v4255_v45 = vmul.f32 0.5, %v10644_v38 }
 0x6b1   : > { %v4571_v42 = vsel %vm4566_vm11, %v5620_v55, %v5625_v20  ;;  %v4572_v28 = vsel %vm4566_vm11, %v5621_v30, %v5626_v7  ;;  %v4563_v59 = vsel %vm4557_vm0, %v4554_v52, %v5621_v30 }
 0x6b2   : > { %v4271_v3 = vmul.f32 %v4263_v9, %v10644_v38  ;;  %4800 = vmatmul.f32.gmra.mxu3 %v4606_v56  ;;  %v4580_v58 = vsel %vm4575_vm12, %v4571_v42, %v5630_v8  ;;  %v4581_v11 = vsel %vm4575_vm12, %v4572_v28, %v5631_v18 }
 0x6b3   : > { %4718 = vmatmul.f32.gmra.mxu1 %v4561_v32  ;;  %v4589_v44 = vsel %vm4584_vm13, %v4580_v58, %v5635_v24  ;;  %v4590_v34 = vsel %vm4584_vm13, %v4581_v11, %v5636_v61 }
 0x6b4   : > { %v4279_v23 = vmul.f32 %v4271_v3, %v10644_v38  ;;  %4762 = vmatmul.f32.gmra.mxu2 %v4589_v44 }
 0x6b5   : > { %v5644_v50 = vpop.permute.xlu1 %5643 }
 0x6b6   : > { %v5639_v5 = vpop.permute.xlu0 %5638  ;;  %v4287_v62 = vadd.f32 %v4279_v23, %v10644_v38  ;;  %v5645_v36 = vunpack.i.l.bf16 %v5644_v50  ;;  %v5646_v22 = vunpack.i.h.bf16 %v5644_v50  ;;  %v975_v23 = vadd.f32 %v10568_v60, %v11269_v53 }
 0x6b7   : > { %v5640_v29 = vunpack.i.l.bf16 %v5639_v5  ;;  %v5641_v49 = vunpack.i.h.bf16 %v5639_v5 }
 0x6b8   : > { %v4295_v27 = vmul.f32 0.7978846, %v4287_v62  ;;  %v994_v57 = vmul.f32 0.044715, %v975_v23 }
 0x6b9   : > { %v4598_v31 = vsel %vm4593_vm14, %v5635_v24, %v5640_v29  ;;  %v4599_v46 = vsel %vm4593_vm14, %v5636_v61, %v5641_v49  ;;  %v11270_v29 = vld [vmem:[#allocation6_spill] sm:$0xff] }
 0x6ba   : > { %v4607_v16 = vsel %vm4602_vm15, %v4598_v31, %v5645_v36  ;;  %5807 = vtanh.f32 %v4295_v27  ;;  %v4608_v8 = vsel %vm4602_vm15, %v4599_v46, %v5646_v22  ;;  %v1002_v36 = vmul.f32 %v994_v57, %v975_v23 }
 0x6bb   : > { %4721 = vmatmul.f32.gmra.mxu1 %v4562_v21  ;;  %4803 = vmatmul.f32.gmra.mxu3 %v4607_v16  ;;  %v978_v13 = vadd.f32 %v10568_v60, %v11270_v29 }
 0x6bc   : > { %4765 = vmatmul.f32.gmra.mxu2 %v4590_v34  ;;  %v1010_v6 = vmul.f32 %v1002_v36, %v975_v23 }
 0x6bd   : > { %v5659_v43 = vpop.permute.xlu1 %5658  ;;  %v995_v27 = vmul.f32 0.044715, %v978_v13 }
 0x6be   : > { %v10674_v15 = vpop.permute.xlu0 %5653  ;;  %v5661_v48 = vunpack.i.h.bf16 %v5659_v43  ;;  %v5660_v63 = vunpack.i.l.bf16 %v5659_v43  ;;  %v1018_v21 = vadd.f32 %v1010_v6, %v975_v23 }
 0x6bf   : > { %v5656_v4 = vunpack.i.h.bf16 %v10674_v15  ;;  %v5655_v41 = vunpack.i.l.bf16 %v10674_v15  ;;  %v4240_v40 = vpop.f32.mrf.mxu0  ;;  %v1003_v35 = vmul.f32 %v995_v27, %v978_v13 }
 0x6c0   : > { %v5808_v26 = vpop.eup %5807  ;;  %v4241_v25 = vadd.f32 %v10568_v60, %v4240_v40  ;;  %v1026_v34 = vmul.f32 0.7978846, %v1018_v21 }
 0x6c1   : > { %v4311_v51 = vadd.f32 1.0, %v5808_v26  ;;  %v4573_v39 = vsel %vm4566_vm11, %v5655_v41, %v5660_v63  ;;  %v4574_v1 = vsel %vm4566_vm11, %v5656_v4, %v5661_v48  ;;  %v1011_v54 = vmul.f32 %v1003_v35, %v978_v13 }
 0x6c2   : > { %v4264_v55 = vmul.f32 0.044715, %v4241_v25  ;;  %v10690_v20 = vsel %vm4575_vm12, %v4573_v39, %v5665_v19  ;;  %v10693_v10 = vsel %vm4575_vm12, %v4574_v1, %v5666_v17  ;;  %v4256_v7 = vmul.f32 0.5, %v4241_v25  ;;  %v4537_v39 = vpop.permute.xlu2 %4536 }
 0x6c3   : > { %4724 = vmatmul.f32.gmra.mxu1 %v4563_v59  ;;  %4806 = vmatmul.f32.gmra.mxu3 %v4608_v8  ;;  %v4319_v38 = vmul.f32 %v4311_v51, %v4255_v45  ;;  %v1019_v14 = vadd.f32 %v1011_v54, %v978_v13 }
 0x6c4   : > { %v4272_v2 = vmul.f32 %v4264_v55, %v4241_v25 }
 0x6c5   : > { %5497 = vmatmul.msk.f32.gmra.mxu0 %vm4548_vm10, %v4319_v38  ;;  %v1027_v40 = vmul.f32 0.7978846, %v1019_v14  ;;  %v4505_v19 = vpop.permute.xlu1 %4504 }
 0x6c6   : > { %v4280_v9 = vmul.f32 %v4272_v2, %v4241_v25 }
 0x6c8   : > { %v4288_v0 = vadd.f32 %v4280_v9, %v4241_v25  ;;  %v986_v9 = vmul.f32 0.5, %v975_v23 }
 0x6ca   : > { %v4296_v37 = vmul.f32 0.7978846, %v4288_v0 }
 0x6cc   : > { %5809 = vtanh.f32 %v4296_v37 }
 0x6d2   : > { %v5810_v24 = vpop.eup %5809 }
 0x6d3   : > { %v4312_v56 = vadd.f32 1.0, %v5810_v24 }
 0x6d5   : > { %v4320_v42 = vmul.f32 %v4312_v56, %v4256_v7 }
 0x6d6   : > { %v4243_v3 = vpop.f32.mrf.mxu0 }
 0x6d7   : > { %v4244_v32 = vadd.f32 %v10568_v60, %v4243_v3  ;;  %5498 = vmatmul.msk.f32.gmra.mxu0 %vm4548_vm10, %v4320_v42 }
 0x6d9   : > { %v4265_v58 = vmul.f32 0.044715, %v4244_v32  ;;  %v4257_v28 = vmul.f32 0.5, %v4244_v32 }
 0x6db   : > { %v4273_v30 = vmul.f32 %v4265_v58, %v4244_v32 }
 0x6dd   : > { %v4281_v47 = vmul.f32 %v4273_v30, %v4244_v32  ;;  %v4507_v7 = vpop.permute.xlu1 %4506 }
 0x6df   : > { %v4289_v44 = vadd.f32 %v4281_v47, %v4244_v32  ;;  %v4539_v32 = vpop.permute.xlu2 %4538 }
 0x6e1   : > { %v4297_v33 = vmul.f32 0.7978846, %v4289_v44  ;;  %v987_v44 = vmul.f32 0.5, %v978_v13 }
 0x6e3   : > { %5811 = vtanh.f32 %v4297_v33 }
 0x6e9   : > { %v5812_v18 = vpop.eup %5811 }
 0x6ea   : > { %v4313_v50 = vadd.f32 1.0, %v5812_v18 }
 0x6ec   : > { %v4321_v5 = vmul.f32 %v4313_v50, %v4257_v28 }
 0x6ed   : > { %v4246_v62 = vpop.f32.mrf.mxu0 }
 0x6ee   : > { %v4247_v12 = vadd.f32 %v10568_v60, %v4246_v62  ;;  %5499 = vmatmul.msk.f32.gmra.mxu0 %vm4548_vm10, %v4321_v5  ;;  %v4882_v5 = vld [vmem:[%s10877_s5 + $0x20] sm:$0xff]  ;;  %v4881_v62 = vld [vmem:[%s10877_s5 + $0x18] sm:$0xff] }
 0x6f0   : > { %v4266_v11 = vmul.f32 0.044715, %v4247_v12  ;;  %v4258_v46 = vmul.f32 0.5, %v4247_v12 }
 0x6f2   : > { %v4274_v61 = vmul.f32 %v4266_v11, %v4247_v12 }
 0x6f4   : > { %v4282_v31 = vmul.f32 %v4274_v61, %v4247_v12 }
 0x6f6   : > { %v4290_v49 = vadd.f32 %v4282_v31, %v4247_v12 }
 0x6f8   : > { %v4298_v16 = vmul.f32 0.7978846, %v4290_v49 }
 0x6fa   : > { %5813 = vtanh.f32 %v4298_v16 }
 0x6fb   : > { %5815 = vtanh.f32 %v1026_v34  ;;  %v4880_v34 = vld [vmem:[%s10877_s5 + $0x10] sm:$0xff] }
 0x6fc   : > { %5817 = vtanh.f32 %v1027_v40 }
 0x6ff   : > { %v4249_v52 = vpop.f32.mrf.mxu0 }
 0x700   : > { %v5814_v22 = vpop.eup %5813  ;;  %v4250_v43 = vadd.f32 %v10568_v60, %v4249_v52 }
 0x701   : > { %v4314_v48 = vadd.f32 1.0, %v5814_v22  ;;  %v5816_v17 = vpop.eup %5815  ;;  %v5673_v22 = vld [vmem:[%s10876_s4] ss:$0 sm:$0xff] }
 0x702   : > { %v4267_v63 = vmul.f32 0.044715, %v4250_v43  ;;  %v5669_v59 = vpop.permute.xlu0 %5668  ;;  %v1042_v55 = vadd.f32 1.0, %v5816_v17  ;;  %v5818_v24 = vpop.eup %5817  ;;  %v4259_v23 = vmul.f32 0.5, %v4250_v43 }
 0x703   : > { %v4322_v26 = vmul.f32 %v4314_v48, %v4258_v46  ;;  %v5670_v45 = vunpack.i.l.bf16 %v5669_v59  ;;  %v5671_v2 = vunpack.i.h.bf16 %v5669_v59  ;;  %v1043_v30 = vadd.f32 1.0, %v5818_v24 }
 0x704   : > { %v4275_v25 = vmul.f32 %v4267_v63, %v4250_v43  ;;  %v1050_v37 = vmul.f32 %v1042_v55, %v986_v9 }
 0x705   : > { %5500 = vmatmul.msk.f32.gmra.mxu0 %vm4548_vm10, %v4322_v26  ;;  %v4591_v1 = vsel %vm4584_vm13, %v10690_v20, %v5670_v45  ;;  %v4600_v60 = vsel %vm4593_vm14, %v5670_v45, %v4505_v19  ;;  %v4601_v20 = vsel %vm4593_vm14, %v5671_v2, %v4507_v7  ;;  %v4592_v58 = vsel %vm4584_vm13, %v10693_v10, %v5671_v2  ;;  %v4883_v10 = vld [vmem:[%s10877_s5 + $0x28] sm:$0xff] }
 0x706   : > { %v4283_v51 = vmul.f32 %v4275_v25, %v4250_v43  ;;  %4768 = vmatmul.f32.gmra.mxu2 %v4591_v1  ;;  %v4609_v8 = vsel %vm4602_vm15, %v4600_v60, %v4537_v39  ;;  %v4610_v47 = vsel %vm4602_vm15, %v4601_v20, %v4539_v32  ;;  %v1051_v53 = vmul.f32 %v1043_v30, %v987_v44  ;;  %v4879_v60 = vld [vmem:[%s10877_s5 + $0x8] sm:$0xff] }
 0x707   : > { %4809 = vmatmul.f32.gmra.mxu3 %v4609_v8  ;;  %4897 = vmatpush.msra.mxu1 %v4883_v10  ;;  %v4833_v11 = vpop.f32.mrf.mxu0 }
 0x708   : > { %v4291_v38 = vadd.f32 %v4283_v51, %v4250_v43  ;;  %4958 = vmatpush.msra.mxu2 %v4883_v10 }
 0x709   : > { %4898 = vmatpush.msra.mxu1 %v4882_v5 }
 0x70a   : > { %v4299_v0 = vmul.f32 0.7978846, %v4291_v38  ;;  %v4345_v56 = vpop.permute.xlu0 %4344  ;;  %4959 = vmatpush.msra.mxu2 %v4882_v5 }
 0x70b   : > { %v4555_v42 = vsel %vm4548_vm10, %v1050_v37, %v4345_v56  ;;  %4899 = vmatpush.msra.mxu1 %v4881_v62 }
 0x70c   : > { %5819 = vtanh.f32 %v4299_v0  ;;  %v4564_v3 = vsel %vm4557_vm0, %v4555_v42, %v5655_v41  ;;  %4960 = vmatpush.msra.mxu2 %v4881_v62  ;;  %v4878_v0 = vld [vmem:[%s10877_s5] sm:$0xff] }
 0x70d   : > { %4727 = vmatmul.f32.gmra.mxu1 %v4564_v3 }
 0x70e   : > { %4771 = vmatmul.f32.gmra.mxu2 %v4592_v58  ;;  %4900 = vmatpush.msra.mxu1 %v4880_v34 }
 0x70f   : > { %4812 = vmatmul.f32.gmra.mxu3 %v4610_v47  ;;  %4961 = vmatpush.msra.mxu2 %v4880_v34 }
 0x710   : > { %4901 = vmatpush.msra.mxu1 %v4879_v60 }
 0x711   : > { %4962 = vmatpush.msra.mxu2 %v4879_v60 }
 0x712   : > { %v5820_v33 = vpop.eup %5819  ;;  %v4347_v57 = vpop.permute.xlu0 %4346  ;;  %4902 = vmatpush.msra.mxu1 %v4878_v0 }
 0x713   : > { %v4315_v18 = vadd.f32 1.0, %v5820_v33  ;;  %v4556_v28 = vsel %vm4548_vm10, %v1051_v53, %v4347_v57  ;;  %4963 = vmatpush.msra.mxu2 %v4878_v0 }
 0x714   : > { %v4565_v41 = vsel %vm4557_vm0, %v4556_v28, %v5656_v4  ;;  %v4836_v31 = vpop.f32.mrf.mxu0 }
 0x715   : > { %v4323_v50 = vmul.f32 %v4315_v18, %v4259_v23  ;;  %4730 = vmatmul.f32.gmra.mxu1 %v4565_v41  ;;  %v4751_v15 = vpop.f32.mrf.mxu2 }
 0x716   : > { %v4792_v36 = vpop.f32.mrf.mxu3 }
 0x717   : > { %5501 = vmatmul.msk.f32.gmra.mxu0 %vm4548_vm10, %v4323_v50 }
 0x718   : > { %v4710_v4 = vpop.f32.mrf.mxu1 }
 0x719   : > { %v4711_v48 = vadd.f32 %v5673_v22, %v4710_v4 }
 0x71b   : > { %v4752_v17 = vadd.f32 %v4751_v15, %v4711_v48 }
 0x71d   : > { %v4754_v29 = vpop.f32.mrf.mxu2  ;;  %v4793_v1 = vadd.f32 %v4792_v36, %v4752_v17 }
 0x71e   : > { %v4795_v12 = vpop.f32.mrf.mxu3 }
 0x71f   : > { %v4834_v24 = vadd.f32 %v4833_v11, %v4793_v1 }
 0x720   : > { %v4713_v13 = vpop.f32.mrf.mxu1 }
 0x721   : > { %v4714_v46 = vadd.f32 %v5673_v22, %v4713_v13  ;;  %v4857_v23 = vsel %vm4548_vm10, %v4834_v24, 0.0 }
 0x723   : > { %v4755_v40 = vadd.f32 %v4754_v29, %v4714_v46 }
 0x725   : > { %v4796_v51 = vadd.f32 %v4795_v12, %v4755_v40 }
 0x726   : > { %v4757_v27 = vpop.f32.mrf.mxu2 }
 0x727   : > { %v4837_v2 = vadd.f32 %v4836_v31, %v4796_v51 }
 0x728   : > { %v4716_v61 = vpop.f32.mrf.mxu1 }
 0x729   : > { %v4717_v63 = vadd.f32 %v5673_v22, %v4716_v61  ;;  %v4858_v58 = vsel %vm4548_vm10, %v4837_v2, 0.0 }
 0x72a   : > { %v4859_v41 = vadd.f32 %v4858_v58, %v4857_v23 }
 0x72b   : > { %v4839_v21 = vpop.f32.mrf.mxu0  ;;  %v4758_v59 = vadd.f32 %v4757_v27, %v4717_v63 }
 0x72d   : > { %v4798_v6 = vpop.f32.mrf.mxu3 }
 0x72e   : > { %v4760_v35 = vpop.f32.mrf.mxu2  ;;  %v4799_v55 = vadd.f32 %v4798_v6, %v4758_v59 }
 0x730   : > { %v4719_v49 = vpop.f32.mrf.mxu1  ;;  %v4840_v42 = vadd.f32 %v4839_v21, %v4799_v55 }
 0x731   : > { %v4720_v45 = vadd.f32 %v5673_v22, %v4719_v49 }
 0x732   : > { %v4860_v18 = vsel %vm4548_vm10, %v4840_v42, 0.0 }
 0x733   : > { %v4761_v8 = vadd.f32 %v4760_v35, %v4720_v45  ;;  %v4861_v15 = vadd.f32 %v4860_v18, %v4859_v41 }
 0x735   : > { %v4801_v16 = vpop.f32.mrf.mxu3 }
 0x736   : > { %v4802_v20 = vadd.f32 %v4801_v16, %v4761_v8 }
 0x737   : > { %v4763_v54 = vpop.f32.mrf.mxu2 }
 0x738   : > { %v4722_v14 = vpop.f32.mrf.mxu1 }
 0x739   : > { %v4723_v38 = vadd.f32 %v5673_v22, %v4722_v14 }
 0x73b   : > { %v4764_v3 = vadd.f32 %v4763_v54, %v4723_v38 }
 0x73e   : > { %v4804_v43 = vpop.f32.mrf.mxu3 }
 0x73f   : > { %v4766_v19 = vpop.f32.mrf.mxu2  ;;  %v4805_v47 = vadd.f32 %v4804_v43, %v4764_v3 }
 0x740   : > { %v4725_v25 = vpop.f32.mrf.mxu1 }
 0x741   : > { %v4726_v37 = vadd.f32 %v5673_v22, %v4725_v25  ;;  %v5087_v25 = vld [vmem:[%s10880_s8 + $0x20] sm:$0xff] }
 0x742   : > { %v4842_v52 = vpop.f32.mrf.mxu0 }
 0x743   : > { %v4843_v44 = vadd.f32 %v4842_v52, %v4802_v20  ;;  %v4767_v33 = vadd.f32 %v4766_v19, %v4726_v37  ;;  %v5088_v19 = vld [vmem:[%s10880_s8 + $0x28] sm:$0xff] }
 0x744   : > { %5127 = vmatpush.msrb.mxu3 %v5088_v19 }
 0x745   : > { %v4862_v5 = vsel %vm4548_vm10, %v4843_v44, 0.0 }
 0x746   : > { %v4807_v39 = vpop.f32.mrf.mxu3  ;;  %v4863_v12 = vadd.f32 %v4862_v5, %v4861_v15  ;;  %5128 = vmatpush.msrb.mxu3 %v5087_v25 }
 0x747   : > { %v4808_v57 = vadd.f32 %v4807_v39, %v4767_v33 }
 0x754   : > { %v4845_v26 = vpop.f32.mrf.mxu0 }
 0x755   : > { %v4846_v28 = vadd.f32 %v4845_v26, %v4805_v47 }
 0x757   : > { %v4864_v36 = vsel %vm4548_vm10, %v4846_v28, 0.0 }
 0x758   : > { %v4865_v6 = vadd.f32 %v4864_v36, %v4863_v12  ;;  %v5086_v36 = vld [vmem:[%s10880_s8 + $0x18] sm:$0xff]  ;;  %v5083_v12 = vld [vmem:[%s10880_s8] sm:$0xff] }
 0x759   : > { %5129 = vmatpush.msrb.mxu3 %v5086_v36 }
 0x76b   : > { %v4848_v9 = vpop.f32.mrf.mxu0 }
 0x76c   : > { %v4849_v62 = vadd.f32 %v4848_v9, %v4808_v57 }
 0x76e   : > { %v4866_v27 = vsel %vm4548_vm10, %v4849_v62, 0.0 }
 0x76f   : > { %v4867_v21 = vadd.f32 %v4866_v27, %v4865_v6 }
 0x782   : > { %v4851_v10 = vpop.f32.mrf.mxu0 }
 0x789   : > { %v4769_v7 = vpop.f32.mrf.mxu2 }
 0x78a   : > { %v4728_v56 = vpop.f32.mrf.mxu1  ;;  %v4810_v30 = vpop.f32.mrf.mxu3 }
 0x78b   : > { %v4729_v32 = vadd.f32 %v5673_v22, %v4728_v56 }
 0x78d   : > { %v4770_v53 = vadd.f32 %v4769_v7, %v4729_v32 }
 0x78f   : > { %v4811_v50 = vadd.f32 %v4810_v30, %v4770_v53 }
 0x791   : > { %v4852_v29 = vadd.f32 %v4851_v10, %v4811_v50  ;;  %v4772_v11 = vpop.f32.mrf.mxu2 }
 0x792   : > { %v4731_v4 = vpop.f32.mrf.mxu1  ;;  %v4813_v31 = vpop.f32.mrf.mxu3 }
 0x793   : > { %v4732_v13 = vadd.f32 %v5673_v22, %v4731_v4  ;;  %v4868_v35 = vsel %vm4548_vm10, %v4852_v29, 0.0 }
 0x794   : > { %v4854_v16 = vpop.f32.mrf.mxu0  ;;  %v4869_v54 = vadd.f32 %v4868_v35, %v4867_v21 }
 0x795   : > { %v4773_v61 = vadd.f32 %v4772_v11, %v4732_v13  ;;  %v5084_v13 = vld [vmem:[%s10880_s8 + $0x8] sm:$0xff] }
 0x797   : > { %v4814_v49 = vadd.f32 %v4813_v31, %v4773_v61 }
 0x799   : > { %v4855_v34 = vadd.f32 %v4854_v16, %v4814_v49 }
 0x79b   : > { %v4870_v14 = vsel %vm4548_vm10, %v4855_v34, 0.0 }
 0x79c   : > { %v4871_v52 = vadd.f32 %v4870_v14, %v4869_v54  ;;  %v10815_v54 = vld [vmem:[%s10878_s6] ss:$0 sm:$0xff] }
 0x79e   : > { %v4872_v43 = vrot.slane %v4871_v52, 4 }
 0x7a0   : > { %v4873_v46 = vadd.f32 %v4872_v43, %v4871_v52  ;;  %v10821_v52 = vld [vmem:[%s10879_s7] ss:$0 sm:$0xff] }
 0x7a2   : > { %v4874_v22 = vrot.slane %v4873_v46, 2 }
 0x7a4   : > { %v4875_v48 = vadd.f32 %v4874_v22, %v4873_v46 }
 0x7a6   : > { %v4876_v63 = vrot.slane %v4875_v48, 1 }
 0x7a8   : > { %v4877_v40 = vadd.f32 %v4876_v63, %v4875_v48 }
 0x7aa   : > { %5502 = vmatmul.msk.f32.vlgmr.msra.gmra.mxu1 %vm4548_vm10, %v4877_v40 }
 0x827   : > { %v4904_v26 = vpop.f32.mrf.mxu1 }
 0x828   : > { %v4907_v17 = vperm.slane %v4904_v26, 0 }
 0x82a   : > { %v10759_v59 = vsub.f32 %v4834_v24, %v4907_v17  ;;  %v10761_v45 = vsub.f32 %v4837_v2, %v4907_v17  ;;  %v10763_v51 = vsub.f32 %v4840_v42, %v4907_v17  ;;  %v10765_v39 = vsub.f32 %v4843_v44, %v4907_v17 }
 0x82b   : > { %v10767_v1 = vsub.f32 %v4846_v28, %v4907_v17  ;;  %v10775_v38 = vsub.f32 %v4849_v62, %v4907_v17  ;;  %v10781_v24 = vsub.f32 %v4852_v29, %v4907_v17  ;;  %v10786_v20 = vsub.f32 %v4855_v34, %v4907_v17  ;;  %v5085_v29 = vld [vmem:[%s10880_s8 + $0x10] sm:$0xff] }
 0x82c   : > { %v4916_v60 = vmul.f32 %v10759_v59, %v10759_v59  ;;  %v4917_v55 = vmul.f32 %v10761_v45, %v10761_v45  ;;  %v4918_v8 = vmul.f32 %v10763_v51, %v10763_v51  ;;  %v4919_v2 = vmul.f32 %v10765_v39, %v10765_v39  ;;  %5130 = vmatpush.msrb.mxu3 %v5085_v29 }
 0x82d   : > { %v4920_v7 = vmul.f32 %v10767_v1, %v10767_v1  ;;  %v4921_v3 = vmul.f32 %v10775_v38, %v10775_v38  ;;  %v4922_v30 = vmul.f32 %v10781_v24, %v10781_v24  ;;  %v4923_v33 = vmul.f32 %v10786_v20, %v10786_v20 }
 0x82e   : > { %v4924_v9 = vsel %vm4548_vm10, %v4916_v60, 0.0  ;;  %v4925_v0 = vsel %vm4548_vm10, %v4917_v55, 0.0  ;;  %v4927_v56 = vsel %vm4548_vm10, %v4918_v8, 0.0  ;;  %v4929_v32 = vsel %vm4548_vm10, %v4919_v2, 0.0  ;;  %5131 = vmatpush.msrb.mxu3 %v5084_v13 }
 0x82f   : > { %v4926_v37 = vadd.f32 %v4925_v0, %v4924_v9  ;;  %v4931_v47 = vsel %vm4548_vm10, %v4920_v7, 0.0  ;;  %v4933_v53 = vsel %vm4548_vm10, %v4921_v3, 0.0  ;;  %v4935_v18 = vsel %vm4548_vm10, %v4922_v30, 0.0 }
 0x830   : > { %v4937_v28 = vsel %vm4548_vm10, %v4923_v33, 0.0  ;;  %5132 = vmatpush.msrb.mxu3 %v5083_v12 }
 0x831   : > { %v4928_v42 = vadd.f32 %v4927_v56, %v4926_v37 }
 0x833   : > { %v4930_v58 = vadd.f32 %v4929_v32, %v4928_v42 }
 0x835   : > { %v4932_v44 = vadd.f32 %v4931_v47, %v4930_v58 }
 0x837   : > { %v4934_v23 = vadd.f32 %v4933_v53, %v4932_v44 }
 0x839   : > { %v4936_v57 = vadd.f32 %v4935_v18, %v4934_v23 }
 0x83b   : > { %v4938_v50 = vadd.f32 %v4937_v28, %v4936_v57 }
 0x83d   : > { %v4939_v41 = vrot.slane %v4938_v50, 4 }
 0x83f   : > { %v4940_v10 = vadd.f32 %v4939_v41, %v4938_v50 }
 0x841   : > { %v4941_v5 = vrot.slane %v4940_v10, 2 }
 0x843   : > { %v4942_v62 = vadd.f32 %v4941_v5, %v4940_v10 }
 0x845   : > { %v4943_v15 = vrot.slane %v4942_v62, 1 }
 0x847   : > { %v4944_v4 = vadd.f32 %v4943_v15, %v4942_v62 }
 0x849   : > { %5503 = vmatmul.msk.f32.vlgmr.msra.gmra.mxu2 %vm4548_vm10, %v4944_v4 }
 0x8cc   : > { %v4965_v11 = vpop.f32.mrf.mxu2 }
 0x8cd   : > { %v4966_v27 = vadd.f32 1e-05, %v4965_v11 }
 0x8cf   : > { %5821 = vrsqrt.f32 %v4966_v27  ;;  %vm4974_vm2 = vweird.f32 %v4966_v27 }
 0x8d5   : > { %v5822_v61 = vpop.eup %5821 }
 0x8d6   : > { %v4969_v6 = vmul.f32 %v5822_v61, %v4966_v27  ;;  %vm4975_vm1 = vweird.f32 %v5822_v61 }
 0x8d7   : > { %vm4976_vm3 = vmor %vm4974_vm2, %vm4975_vm1 }
 0x8d8   : > { %v4970_v31 = vmul.f32 %v5822_v61, %v4969_v6 }
 0x8da   : > { %v4971_v35 = vmul.f32 0.5, %v4970_v31 }
 0x8dc   : > { %v4972_v49 = vsub.f32 1.5, %v4971_v35 }
 0x8de   : > { %v4973_v21 = vmul.f32 %v5822_v61, %v4972_v49 }
 0x8e0   : > { %v4977_v16 = vsel %vm4976_vm3, %v5822_v61, %v4973_v21 }
 0x8e1   : > { %v4978_v34 = vperm.slane %v4977_v16, 0 }
 0x8e3   : > { %v4979_v14 = vmul.f32 %v4978_v34, %v10759_v59  ;;  %v4980_v43 = vmul.f32 %v4978_v34, %v10761_v45  ;;  %v4981_v46 = vmul.f32 %v4978_v34, %v10763_v51  ;;  %v4982_v19 = vmul.f32 %v4978_v34, %v10765_v39 }
 0x8e4   : > { %v4983_v9 = vmul.f32 %v4978_v34, %v10767_v1  ;;  %v4984_v30 = vmul.f32 %v4978_v34, %v10775_v38  ;;  %v4985_v5 = vmul.f32 %v4978_v34, %v10781_v24  ;;  %v4986_v6 = vmul.f32 %v4978_v34, %v10786_v20 }
 0x8e5   : > { %v4991_v22 = vmul.f32 %v10815_v54, %v4979_v14  ;;  %v4992_v48 = vmul.f32 %v10815_v54, %v4980_v43  ;;  %v4993_v63 = vmul.f32 %v10815_v54, %v4981_v46  ;;  %v4994_v51 = vmul.f32 %v10815_v54, %v4982_v19 }
 0x8e6   : > { %v4995_v3 = vmul.f32 %v10815_v54, %v4983_v9  ;;  %v4996_v50 = vmul.f32 %v10815_v54, %v4984_v30  ;;  %v4997_v11 = vmul.f32 %v10815_v54, %v4985_v5  ;;  %v4998_v46 = vmul.f32 %v10815_v54, %v4986_v6 }
 0x8e7   : > { %v5003_v40 = vadd.f32 %v10821_v52, %v4991_v22  ;;  %v5004_v26 = vadd.f32 %v10821_v52, %v4992_v48  ;;  %v5005_v17 = vadd.f32 %v10821_v52, %v4993_v63  ;;  %v5006_v56 = vadd.f32 %v10821_v52, %v4994_v51 }
 0x8e8   : > { %v5007_v33 = vadd.f32 %v10821_v52, %v4995_v3  ;;  %v5008_v15 = vadd.f32 %v10821_v52, %v4996_v50  ;;  %v5009_v35 = vadd.f32 %v10821_v52, %v4997_v11  ;;  %v5010_v20 = vadd.f32 %v10821_v52, %v4998_v46 }
 0x8e9   : > { %v5019_v25 = vmul.f32 0.044715, %v5003_v40  ;;  %v5020_v59 = vmul.f32 0.044715, %v5004_v26  ;;  %v5021_v55 = vmul.f32 0.044715, %v5005_v17 }
 0x8ea   : > { %v5022_v58 = vmul.f32 0.044715, %v5006_v56  ;;  %v5011_v53 = vmul.f32 0.5, %v5003_v40  ;;  %v5023_v28 = vmul.f32 0.044715, %v5007_v33  ;;  %v5012_v36 = vmul.f32 0.5, %v5004_v26 }
 0x8eb   : > { %v5027_v60 = vmul.f32 %v5019_v25, %v5003_v40  ;;  %v5028_v45 = vmul.f32 %v5020_v59, %v5004_v26  ;;  %v5029_v7 = vmul.f32 %v5021_v55, %v5005_v17  ;;  %v5024_v12 = vmul.f32 0.044715, %v5008_v15 }
 0x8ec   : > { %v5030_v44 = vmul.f32 %v5022_v58, %v5006_v56  ;;  %v5031_v62 = vmul.f32 %v5023_v28, %v5007_v33  ;;  %v5013_v21 = vmul.f32 0.5, %v5005_v17  ;;  %v5025_v43 = vmul.f32 0.044715, %v5009_v35 }
 0x8ed   : > { %v5035_v8 = vmul.f32 %v5027_v60, %v5003_v40  ;;  %v5036_v2 = vmul.f32 %v5028_v45, %v5004_v26  ;;  %v5037_v32 = vmul.f32 %v5029_v7, %v5005_v17  ;;  %v5032_v31 = vmul.f32 %v5024_v12, %v5008_v15 }
 0x8ee   : > { %v5038_v57 = vmul.f32 %v5030_v44, %v5006_v56  ;;  %v5039_v13 = vmul.f32 %v5031_v62, %v5007_v33  ;;  %v5026_v59 = vmul.f32 0.044715, %v5010_v20  ;;  %v5015_v51 = vmul.f32 0.5, %v5007_v33 }
 0x8ef   : > { %v5043_v0 = vadd.f32 %v5035_v8, %v5003_v40  ;;  %v5044_v37 = vadd.f32 %v5036_v2, %v5004_v26  ;;  %v5045_v47 = vadd.f32 %v5037_v32, %v5005_v17  ;;  %v5040_v14 = vmul.f32 %v5032_v31, %v5008_v15 }
 0x8f0   : > { %v5046_v38 = vadd.f32 %v5038_v57, %v5006_v56  ;;  %v5047_v24 = vadd.f32 %v5039_v13, %v5007_v33  ;;  %v5033_v40 = vmul.f32 %v5025_v43, %v5009_v35  ;;  %v5014_v26 = vmul.f32 0.5, %v5006_v56 }
 0x8f1   : > { %v5051_v42 = vmul.f32 0.7978846, %v5043_v0  ;;  %v5052_v39 = vmul.f32 0.7978846, %v5044_v37  ;;  %v5053_v18 = vmul.f32 0.7978846, %v5045_v47  ;;  %v5048_v63 = vadd.f32 %v5040_v14, %v5008_v15 }
 0x8f2   : > { %v5054_v29 = vmul.f32 0.7978846, %v5046_v38  ;;  %v5055_v16 = vmul.f32 0.7978846, %v5047_v24  ;;  %v5041_v25 = vmul.f32 %v5033_v40, %v5009_v35  ;;  %v5034_v45 = vmul.f32 %v5026_v59, %v5010_v20 }
 0x8f3   : > { %5823 = vtanh.f32 %v5051_v42  ;;  %v5056_v19 = vmul.f32 0.7978846, %v5048_v63  ;;  %v5016_v7 = vmul.f32 0.5, %v5008_v15  ;;  %v5017_v32 = vmul.f32 0.5, %v5009_v35 }
 0x8f4   : > { %5825 = vtanh.f32 %v5052_v39  ;;  %v5049_v54 = vadd.f32 %v5041_v25, %v5009_v35  ;;  %v5042_v2 = vmul.f32 %v5034_v45, %v5010_v20  ;;  %v5018_v44 = vmul.f32 0.5, %v5010_v20 }
 0x8f5   : > { %5827 = vtanh.f32 %v5053_v18 }
 0x8f6   : > { %5829 = vtanh.f32 %v5054_v29  ;;  %v5057_v8 = vmul.f32 0.7978846, %v5049_v54  ;;  %v5050_v52 = vadd.f32 %v5042_v2, %v5010_v20 }
 0x8f7   : > { %5831 = vtanh.f32 %v5055_v16 }
 0x8f8   : > { %5833 = vtanh.f32 %v5056_v19  ;;  %v5058_v56 = vmul.f32 0.7978846, %v5050_v52 }
 0x8f9   : > { %v5824_v1 = vpop.eup %5823  ;;  %5835 = vtanh.f32 %v5057_v8 }
 0x8fa   : > { %v5067_v23 = vadd.f32 1.0, %v5824_v1  ;;  %v5826_v10 = vpop.eup %5825  ;;  %5837 = vtanh.f32 %v5058_v56  ;;  %v5676_v1 = vld [vmem:[%s10881_s9] ss:$0 sm:$0xff] }
 0x8fb   : > { %v5068_v4 = vadd.f32 1.0, %v5826_v10  ;;  %v5828_v61 = vpop.eup %5827 }
 0x8fc   : > { %v5075_v41 = vmul.f32 %v5067_v23, %v5011_v53  ;;  %v5069_v49 = vadd.f32 1.0, %v5828_v61  ;;  %v5830_v48 = vpop.eup %5829 }
 0x8fd   : > { %v5076_v27 = vmul.f32 %v5068_v4, %v5012_v36  ;;  %v5070_v34 = vadd.f32 1.0, %v5830_v48  ;;  %v5832_v60 = vpop.eup %5831 }
 0x8fe   : > { %5504 = vmatmul.msk.f32.vlgmr.msrb.gmra.mxu3 %vm4548_vm10, %v5075_v41  ;;  %v5077_v22 = vmul.f32 %v5069_v49, %v5013_v21  ;;  %v5071_v55 = vadd.f32 1.0, %v5832_v60  ;;  %v5834_v0 = vpop.eup %5833 }
 0x8ff   : > { %v5078_v17 = vmul.f32 %v5070_v34, %v5014_v26  ;;  %v5072_v37 = vadd.f32 1.0, %v5834_v0  ;;  %v5836_v3 = vpop.eup %5835 }
 0x900   : > { %v5079_v9 = vmul.f32 %v5071_v55, %v5015_v51  ;;  %v5073_v39 = vadd.f32 1.0, %v5836_v3  ;;  %v5838_v30 = vpop.eup %5837 }
 0x901   : > { %v5080_v42 = vmul.f32 %v5072_v37, %v5016_v7  ;;  %v5074_v47 = vadd.f32 1.0, %v5838_v30 }
 0x902   : > { %v5081_v58 = vmul.f32 %v5073_v39, %v5017_v32 }
 0x903   : > { %v5082_v33 = vmul.f32 %v5074_v47, %v5018_v44 }
 0x906   : > { %5505 = vmatmul.msk.f32.gmra.mxu3 %vm4548_vm10, %v5076_v27 }
 0x90e   : > { %5506 = vmatmul.msk.f32.gmra.mxu3 %vm4548_vm10, %v5077_v22 }
 0x916   : > { %5507 = vmatmul.msk.f32.gmra.mxu3 %vm4548_vm10, %v5078_v17 }
 0x91e   : > { %5508 = vmatmul.msk.f32.gmra.mxu3 %vm4548_vm10, %v5079_v9 }
 0x926   : > { %5509 = vmatmul.msk.f32.gmra.mxu3 %vm4548_vm10, %v5080_v42 }
 0x92e   : > { %5510 = vmatmul.msk.f32.gmra.mxu3 %vm4548_vm10, %v5081_v58 }
 0x936   : > { %5511 = vmatmul.msk.f32.gmra.mxu3 %vm4548_vm10, %v5082_v33 }
 0x981   : > { %v5134_v53 = vpop.f32.mrf.mxu3 }
 0x982   : > { %v5135_v23 = vadd.f32 %v5676_v1, %v5134_v53 }
 0x984   : > { %5158 = vst.msk [vmem:[%s359_s11] sm:$0xff] %vm4548_vm10, %v5135_v23 }
 0x989   : > { %v5137_v18 = vpop.f32.mrf.mxu3 }
 0x98a   : > { %v5138_v57 = vadd.f32 %v5676_v1, %v5137_v18 }
 0x98c   : > { %5159 = vst.msk [vmem:[%s359_s11 + $0x8] sm:$0xff] %vm4548_vm10, %v5138_v57 }
 0x991   : > { %v5140_v28 = vpop.f32.mrf.mxu3 }
 0x992   : > { %v5141_v50 = vadd.f32 %v5676_v1, %v5140_v28 }
 0x994   : > { %5160 = vst.msk [vmem:[%s359_s11 + $0x10] sm:$0xff] %vm4548_vm10, %v5141_v50 }
 0x999   : > { %v5143_v41 = vpop.f32.mrf.mxu3 }
 0x99a   : > { %v5144_v10 = vadd.f32 %v5676_v1, %v5143_v41 }
 0x99c   : > { %5161 = vst.msk [vmem:[%s359_s11 + $0x18] sm:$0xff] %vm4548_vm10, %v5144_v10 }
 0x9a1   : > { %v5146_v5 = vpop.f32.mrf.mxu3 }
 0x9a2   : > { %v5147_v38 = vadd.f32 %v5676_v1, %v5146_v5 }
 0x9a4   : > { %5162 = vst.msk [vmem:[%s359_s11 + $0x20] sm:$0xff] %vm4548_vm10, %v5147_v38 }
 0x9a9   : > { %v5149_v62 = vpop.f32.mrf.mxu3 }
 0x9aa   : > { %v5150_v15 = vadd.f32 %v5676_v1, %v5149_v62 }
 0x9ac   : > { %5163 = vst.msk [vmem:[%s359_s11 + $0x28] sm:$0xff] %vm4548_vm10, %v5150_v15 }
 0x9b1   : > { %v5152_v4 = vpop.f32.mrf.mxu3 }
 0x9b2   : > { %v5153_v36 = vadd.f32 %v5676_v1, %v5152_v4 }
 0x9b4   : > { %5164 = vst.msk [vmem:[%s359_s11 + $0x30] sm:$0xff] %vm4548_vm10, %v5153_v36 }
 0x9b9   : > { %v5155_v29 = vpop.f32.mrf.mxu3 }
 0x9ba   : > { %v5156_v13 = vadd.f32 %v5676_v1, %v5155_v29 }
 0x9bc   : > { %5165 = vst.msk [vmem:[%s359_s11 + $0x38] sm:$0xff] %vm4548_vm10, %v5156_v13 }
 0x9bd PF: > { %s20_s13 = sadd.s32 1, %s6046_s13  }
 0x9be   : > { %p17_p4 = scmp.ge.s32.totalorder %s20_s13, 4  }
 0x9c0   :  { %19 = sbr.rel (!%p17_p4) target bundleno = 1 (0x1), region = 104 }

</bundles_post_ra>
